<compile_context>
chip_gen: v7x
topology: tpu7x:2x2x1
jax: 0.10.0
libtpu: 0.0.40
codegen_flags: <defaults>
</compile_context>

<pallas_src>
import jax
import jax.numpy as jnp
from jax.experimental import pallas as pl
from jax.experimental.pallas import tpu as pltpu


# ----------------------------------------------------------------------------
# helpers
# ----------------------------------------------------------------------------
def _gelu_tanh(x):
    return 0.5 * x * (1.0 + jnp.tanh(0.7978845608028654 * (x + 0.044715 * x * x * x)))


def _ceil_div(a, b):
    return -(-a // b)


# ----------------------------------------------------------------------------
# fused Conv1d (no bias) + BatchNorm (eval) + GELU  — channel-last layout
# ----------------------------------------------------------------------------
def _conv_bn_gelu_kernel(x_ref, w_ref, scale_ref, shift_ref, o_ref):
    # x_ref:     (1, U, Cin*stride)   phase-split, zero-padded input
    # w_ref:     (A, Cin*stride, C_out)  tap-block weights
    # scale_ref: (1, C_out)   shift_ref: (1, C_out)   (folded BatchNorm)
    # o_ref:     (1, L_out, C_out)
    L_out = o_ref.shape[1]
    C_out = o_ref.shape[2]
    A = w_ref.shape[0]

    acc = jnp.zeros((L_out, C_out), jnp.float32)
    for a in range(A):  # static unroll (A <= 9)
        xs = x_ref[0, pl.ds(a, L_out), :]          # (L_out, Cin*stride)
        acc = acc + jnp.dot(xs, w_ref[a], preferred_element_type=jnp.float32)

    y = acc * scale_ref[...] + shift_ref[...]      # fused BatchNorm (eval)
    y = _gelu_tanh(y)
    o_ref[0] = y.astype(o_ref.dtype)


def _prep_conv_input(x_cl, stride, K, pad, L_out):
    # x_cl: (B, L, C_in) -> (B, U, C_in*stride) with [b,u,ci*s+r] = x_pad[b, s*u+r, ci]
    B, L, C_in = x_cl.shape
    A = _ceil_div(K, stride)
    U = L_out + A - 1
    L_need = stride * U
    right = max(0, L_need - L - pad)
    xp = jnp.pad(x_cl, ((0, 0), (pad, right), (0, 0)))[:, :L_need, :]
    xr = xp.reshape(B, U, stride, C_in)                     # [b,u,r,ci]
    return xr.transpose(0, 1, 3, 2).reshape(B, U, C_in * stride)


def _prep_conv_weight(w, stride):
    # w: (C_out, C_in, K) -> (A, C_in*stride, C_out) with [a, ci*s+r, co] = w[co, ci, s*a+r]
    C_out, C_in, K = w.shape
    A = _ceil_div(K, stride)
    Kp = A * stride
    wp = jnp.pad(w, ((0, 0), (0, 0), (0, Kp - K)))          # zero taps
    wr = wp.reshape(C_out, C_in, A, stride)                 # [co,ci,a,r]
    return wr.transpose(2, 1, 3, 0).reshape(A, C_in * stride, C_out)


def conv_bn_gelu(x_cl, w, gamma, beta, mean, var, *, stride, pad, eps=1e-5):
    """x_cl: (B, L, C_in) channel-last; w: (C_out, C_in, K) PyTorch layout."""
    B, L, _ = x_cl.shape
    C_out, _, K = w.shape
    L_out = (L + 2 * pad - K) // stride + 1

    xc = _prep_conv_input(x_cl, stride, K, pad, L_out)      # (B, U, CinS)
    ws = _prep_conv_weight(w, stride)                       # (A, CinS, C_out)
    A, CinS, _ = ws.shape
    U = xc.shape[1]

    inv = gamma / jnp.sqrt(var + eps)
    scale = inv.reshape(1, C_out)
    shift = (beta - mean * inv).reshape(1, C_out)

    return pl.pallas_call(
        _conv_bn_gelu_kernel,
        out_shape=jax.ShapeDtypeStruct((B, L_out, C_out), x_cl.dtype),
        grid=(B,),
        in_specs=[
            pl.BlockSpec((1, U, CinS), lambda b: (b, 0, 0)),
            pl.BlockSpec((A, CinS, C_out), lambda b: (0, 0, 0)),
            pl.BlockSpec((1, C_out), lambda b: (0, 0)),
            pl.BlockSpec((1, C_out), lambda b: (0, 0)),
        ],
        out_specs=pl.BlockSpec((1, L_out, C_out), lambda b: (b, 0, 0)),
        compiler_params=pltpu.CompilerParams(dimension_semantics=("parallel",)),
    )(xc, ws, scale, shift)


# ----------------------------------------------------------------------------
# MaxPool1d (floor mode, -inf padding) — channel-last layout
# ----------------------------------------------------------------------------
def _maxpool_kernel(x_ref, o_ref):
    # x_ref: (1, s, U, C) phase-split input;  o_ref: (1, L_out, C)
    L_out = o_ref.shape[1]
    x = x_ref[0]                       # (s, U, C)
    m = jnp.max(x, axis=0)             # (U, C)  max across stride phases
    W = m.shape[0] - L_out + 1         # kernel_size // stride
    out = m[0:L_out, :]
    for a in range(1, W):              # static unroll
        out = jnp.maximum(out, m[a:a + L_out, :])
    o_ref[0] = out.astype(o_ref.dtype)


def maxpool(h_cl, *, k, s, p):
    """h_cl: (B, L, C) channel-last. Requires s | k (true for all pools here)."""
    B, L, C = h_cl.shape
    L_out = (L + 2 * p - k) // s + 1
    W = k // s
    U = L_out + W - 1
    L_need = s * U
    neg = float(jnp.finfo(h_cl.dtype).min)
    right = max(0, L_need - L - p)
    xp = jnp.pad(h_cl, ((0, 0), (p, right), (0, 0)), constant_values=neg)[:, :L_need, :]
    xph = xp.reshape(B, U, s, C).transpose(0, 2, 1, 3)      # (B, s, U, C)

    return pl.pallas_call(
        _maxpool_kernel,
        out_shape=jax.ShapeDtypeStruct((B, L_out, C), h_cl.dtype),
        grid=(B,),
        in_specs=[pl.BlockSpec((1, s, U, C), lambda b: (b, 0, 0, 0))],
        out_specs=pl.BlockSpec((1, L_out, C), lambda b: (b, 0, 0)),
        compiler_params=pltpu.CompilerParams(dimension_semantics=("parallel",)),
    )(xph)


# ----------------------------------------------------------------------------
# DUCNN forward (Pallas path)
# ----------------------------------------------------------------------------
def ducnn_forward(x, params):
    """x: (B, 1, L) float32 (PyTorch NCL). Returns (B, 128, L1+L2) (NCL)."""
    p = params
    x_cl = jnp.transpose(x, (0, 2, 1))                      # (B, L, 1)

    # branch 1
    h = conv_bn_gelu(x_cl, p['b1c1_w'], *p['b1bn1'], stride=6, pad=24)
    h = maxpool(h, k=8, s=2, p=4)
    # Dropout -> identity (inference)
    h = conv_bn_gelu(h, p['b1c2_w'], *p['b1bn2'], stride=1, pad=4)
    h = conv_bn_gelu(h, p['b1c3_w'], *p['b1bn3'], stride=1, pad=4)
    x1 = maxpool(h, k=4, s=4, p=2)

    # branch 2
    g = conv_bn_gelu(x_cl, p['b2c1_w'], *p['b2bn1'], stride=50, pad=200)
    g = maxpool(g, k=4, s=2, p=2)
    # Dropout -> identity (inference)
    g = conv_bn_gelu(g, p['b2c2_w'], *p['b2bn2'], stride=1, pad=3)
    g = conv_bn_gelu(g, p['b2c3_w'], *p['b2bn3'], stride=1, pad=3)
    x2 = maxpool(g, k=2, s=2, p=1)

    out_cl = jnp.concatenate([x1, x2], axis=1)              # concat over time
    # final Dropout -> identity (inference)
    return jnp.transpose(out_cl, (0, 2, 1))                 # back to (B, C, L)


# ----------------------------------------------------------------------------
# pure-JAX reference (mirrors the PyTorch module, inference semantics)
# ----------------------------------------------------------------------------
def _conv_bn_gelu_ref(x, w, gamma, beta, mean, var, *, stride, pad, eps=1e-5):
    y = jax.lax.conv_general_dilated(
        x, w, window_strides=(stride,), padding=[(pad, pad)],
        dimension_numbers=('NCH', 'OIH', 'NCH'),
        precision=jax.lax.Precision.HIGHEST)
    inv = gamma / jnp.sqrt(var + eps)
    y = y * inv[None, :, None] + (beta - mean * inv)[None, :, None]
    return _gelu_tanh(y)


def _maxpool_ref(x, k, s, p):
    return jax.lax.reduce_window(
        x, -jnp.inf, jax.lax.max,
        window_dimensions=(1, 1, k), window_strides=(1, 1, s),
        padding=((0, 0), (0, 0), (p, p)))


def ducnn_ref(x, params):
    p = params
    h = _conv_bn_gelu_ref(x, p['b1c1_w'], *p['b1bn1'], stride=6, pad=24)
    h = _maxpool_ref(h, 8, 2, 4)
    h = _conv_bn_gelu_ref(h, p['b1c2_w'], *p['b1bn2'], stride=1, pad=4)
    h = _conv_bn_gelu_ref(h, p['b1c3_w'], *p['b1bn3'], stride=1, pad=4)
    x1 = _maxpool_ref(h, 4, 4, 2)
    g = _conv_bn_gelu_ref(x, p['b2c1_w'], *p['b2bn1'], stride=50, pad=200)
    g = _maxpool_ref(g, 4, 2, 2)
    g = _conv_bn_gelu_ref(g, p['b2c2_w'], *p['b2bn2'], stride=1, pad=3)
    g = _conv_bn_gelu_ref(g, p['b2c3_w'], *p['b2bn3'], stride=1, pad=3)
    x2 = _maxpool_ref(g, 2, 2, 1)
    return jnp.concatenate([x1, x2], axis=2)


# ----------------------------------------------------------------------------
# deterministic parameters + test
# ----------------------------------------------------------------------------
def init_params(key):
    ks = jax.random.split(key, 12)

    def conv_w(k, co, ci, K):
        b = 1.0 / (ci * K) ** 0.5
        return jax.random.uniform(k, (co, ci, K), jnp.float32, -b, b)

    def bn(k, c):
        k1, k2, k3, k4 = jax.random.split(k, 4)
        gamma = jax.random.uniform(k1, (c,), jnp.float32, 0.5, 1.5)
        beta = jax.random.uniform(k2, (c,), jnp.float32, -0.1, 0.1)
        mean = 0.1 * jax.random.normal(k3, (c,), jnp.float32)
        var = jax.random.uniform(k4, (c,), jnp.float32, 0.5, 1.5)
        return (gamma, beta, mean, var)

    return {
        'b1c1_w': conv_w(ks[0], 64, 1, 50),    'b1bn1': bn(ks[1], 64),
        'b1c2_w': conv_w(ks[2], 128, 64, 8),   'b1bn2': bn(ks[3], 128),
        'b1c3_w': conv_w(ks[4], 128, 128, 8),  'b1bn3': bn(ks[5], 128),
        'b2c1_w': conv_w(ks[6], 64, 1, 400),   'b2bn1': bn(ks[7], 64),
        'b2c2_w': conv_w(ks[8], 128, 64, 7),   'b2bn2': bn(ks[9], 128),
        'b2c3_w': conv_w(ks[10], 128, 128, 7), 'b2bn3': bn(ks[11], 128),
    }


if __name__ == "__main__":
    B, L = 2, 600  # small 1D signal, long enough for the k=400 conv of branch 2

    key = jax.random.PRNGKey(0)
    kx, kp = jax.random.split(key)
    x = jax.random.normal(kx, (B, 1, L), dtype=jnp.float32)
    params = init_params(kp)

    out = jax.jit(ducnn_forward)(x, params)
    out = jax.block_until_ready(out)

    ref = ducnn_ref(x, params)
    assert out.shape == ref.shape, (out.shape, ref.shape)
    assert jnp.allclose(out, ref, atol=1e-3, rtol=1e-3), "mismatch vs reference"

    print("KERNEL_OK")
</pallas_src>

<mosaic_0001>
module attributes {stable_mosaic.version = 11 : i64} {
  func.func @_conv_bn_gelu_kernel(%arg0: i32, %arg1: memref<1x108x6xf32, #tpu.memory_space<vmem>>, %arg2: memref<9x6x64xf32, #tpu.memory_space<vmem>>, %arg3: memref<1x64xf32, #tpu.memory_space<vmem>>, %arg4: memref<1x64xf32, #tpu.memory_space<vmem>>, %arg5: memref<1x100x64xf32, #tpu.memory_space<vmem>>) attributes {dimension_semantics = [#tpu.dimension_semantics<parallel>], iteration_bounds = array<i64: 2>, scalar_prefetch = 0 : i64, scratch_operands = 0 : i64, tpu.core_type = #tpu.core_type<tc>, window_params = [{transform_indices = @transform_0, window_bounds = array<i64: 1, 108, 6>}, {pipeline_mode = #tpu.pipeline_mode<synchronous>, transform_indices = @transform_1, window_bounds = array<i64: 9, 6, 64>}, {pipeline_mode = #tpu.pipeline_mode<synchronous>, transform_indices = @transform_2, window_bounds = array<i64: 1, 64>}, {pipeline_mode = #tpu.pipeline_mode<synchronous>, transform_indices = @transform_3, window_bounds = array<i64: 1, 64>}, {transform_indices = @transform_4, window_bounds = array<i64: 1, 100, 64>}]} {
    %cst = arith.constant 0.000000e+00 : f32
    %0 = vector.broadcast %cst : f32 to vector<100x64xf32>
    %c0 = arith.constant 0 : index
    %c0_0 = arith.constant 0 : index
    %c0_1 = arith.constant 0 : index
    %1 = vector.load %arg1[%c0, %c0_0, %c0_1] : memref<1x108x6xf32, #tpu.memory_space<vmem>>, vector<1x100x6xf32>
    %2 = vector.shape_cast %1 : vector<1x100x6xf32> to vector<100x6xf32>
    %c0_2 = arith.constant 0 : index
    %c0_3 = arith.constant 0 : index
    %c0_4 = arith.constant 0 : index
    %3 = vector.load %arg2[%c0_2, %c0_3, %c0_4] : memref<9x6x64xf32, #tpu.memory_space<vmem>>, vector<1x6x64xf32>
    %4 = vector.shape_cast %3 : vector<1x6x64xf32> to vector<6x64xf32>
    %cst_5 = arith.constant dense<0.000000e+00> : vector<100x64xf32>
    %5 = tpu.matmul %2, %4, %cst_5 {dimension_numbers = #tpu.dot_dimension_numbers<[1], [0], [0], [1], [0, 0, 1, 1], [], []>} : vector<100x6xf32>, vector<6x64xf32>, vector<100x64xf32> -> vector<100x64xf32>
    %6 = arith.addf %0, %5 : vector<100x64xf32>
    %c0_6 = arith.constant 0 : index
    %c1 = arith.constant 1 : index
    %c0_7 = arith.constant 0 : index
    %7 = vector.load %arg1[%c0_6, %c1, %c0_7] : memref<1x108x6xf32, #tpu.memory_space<vmem>>, vector<1x100x6xf32>
    %8 = vector.shape_cast %7 : vector<1x100x6xf32> to vector<100x6xf32>
    %c1_8 = arith.constant 1 : index
    %c0_9 = arith.constant 0 : index
    %c0_10 = arith.constant 0 : index
    %9 = vector.load %arg2[%c1_8, %c0_9, %c0_10] : memref<9x6x64xf32, #tpu.memory_space<vmem>>, vector<1x6x64xf32>
    %10 = vector.shape_cast %9 : vector<1x6x64xf32> to vector<6x64xf32>
    %cst_11 = arith.constant dense<0.000000e+00> : vector<100x64xf32>
    %11 = tpu.matmul %8, %10, %cst_11 {dimension_numbers = #tpu.dot_dimension_numbers<[1], [0], [0], [1], [0, 0, 1, 1], [], []>} : vector<100x6xf32>, vector<6x64xf32>, vector<100x64xf32> -> vector<100x64xf32>
    %12 = arith.addf %6, %11 : vector<100x64xf32>
    %c0_12 = arith.constant 0 : index
    %c2 = arith.constant 2 : index
    %c0_13 = arith.constant 0 : index
    %13 = vector.load %arg1[%c0_12, %c2, %c0_13] : memref<1x108x6xf32, #tpu.memory_space<vmem>>, vector<1x100x6xf32>
    %14 = vector.shape_cast %13 : vector<1x100x6xf32> to vector<100x6xf32>
    %c2_14 = arith.constant 2 : index
    %c0_15 = arith.constant 0 : index
    %c0_16 = arith.constant 0 : index
    %15 = vector.load %arg2[%c2_14, %c0_15, %c0_16] : memref<9x6x64xf32, #tpu.memory_space<vmem>>, vector<1x6x64xf32>
    %16 = vector.shape_cast %15 : vector<1x6x64xf32> to vector<6x64xf32>
    %cst_17 = arith.constant dense<0.000000e+00> : vector<100x64xf32>
    %17 = tpu.matmul %14, %16, %cst_17 {dimension_numbers = #tpu.dot_dimension_numbers<[1], [0], [0], [1], [0, 0, 1, 1], [], []>} : vector<100x6xf32>, vector<6x64xf32>, vector<100x64xf32> -> vector<100x64xf32>
    %18 = arith.addf %12, %17 : vector<100x64xf32>
    %c0_18 = arith.constant 0 : index
    %c3 = arith.constant 3 : index
    %c0_19 = arith.constant 0 : index
    %19 = vector.load %arg1[%c0_18, %c3, %c0_19] : memref<1x108x6xf32, #tpu.memory_space<vmem>>, vector<1x100x6xf32>
    %20 = vector.shape_cast %19 : vector<1x100x6xf32> to vector<100x6xf32>
    %c3_20 = arith.constant 3 : index
    %c0_21 = arith.constant 0 : index
    %c0_22 = arith.constant 0 : index
    %21 = vector.load %arg2[%c3_20, %c0_21, %c0_22] : memref<9x6x64xf32, #tpu.memory_space<vmem>>, vector<1x6x64xf32>
    %22 = vector.shape_cast %21 : vector<1x6x64xf32> to vector<6x64xf32>
    %cst_23 = arith.constant dense<0.000000e+00> : vector<100x64xf32>
    %23 = tpu.matmul %20, %22, %cst_23 {dimension_numbers = #tpu.dot_dimension_numbers<[1], [0], [0], [1], [0, 0, 1, 1], [], []>} : vector<100x6xf32>, vector<6x64xf32>, vector<100x64xf32> -> vector<100x64xf32>
    %24 = arith.addf %18, %23 : vector<100x64xf32>
    %c0_24 = arith.constant 0 : index
    %c4 = arith.constant 4 : index
    %c0_25 = arith.constant 0 : index
    %25 = vector.load %arg1[%c0_24, %c4, %c0_25] : memref<1x108x6xf32, #tpu.memory_space<vmem>>, vector<1x100x6xf32>
    %26 = vector.shape_cast %25 : vector<1x100x6xf32> to vector<100x6xf32>
    %c4_26 = arith.constant 4 : index
    %c0_27 = arith.constant 0 : index
    %c0_28 = arith.constant 0 : index
    %27 = vector.load %arg2[%c4_26, %c0_27, %c0_28] : memref<9x6x64xf32, #tpu.memory_space<vmem>>, vector<1x6x64xf32>
    %28 = vector.shape_cast %27 : vector<1x6x64xf32> to vector<6x64xf32>
    %cst_29 = arith.constant dense<0.000000e+00> : vector<100x64xf32>
    %29 = tpu.matmul %26, %28, %cst_29 {dimension_numbers = #tpu.dot_dimension_numbers<[1], [0], [0], [1], [0, 0, 1, 1], [], []>} : vector<100x6xf32>, vector<6x64xf32>, vector<100x64xf32> -> vector<100x64xf32>
    %30 = arith.addf %24, %29 : vector<100x64xf32>
    %c0_30 = arith.constant 0 : index
    %c5 = arith.constant 5 : index
    %c0_31 = arith.constant 0 : index
    %31 = vector.load %arg1[%c0_30, %c5, %c0_31] : memref<1x108x6xf32, #tpu.memory_space<vmem>>, vector<1x100x6xf32>
    %32 = vector.shape_cast %31 : vector<1x100x6xf32> to vector<100x6xf32>
    %c5_32 = arith.constant 5 : index
    %c0_33 = arith.constant 0 : index
    %c0_34 = arith.constant 0 : index
    %33 = vector.load %arg2[%c5_32, %c0_33, %c0_34] : memref<9x6x64xf32, #tpu.memory_space<vmem>>, vector<1x6x64xf32>
    %34 = vector.shape_cast %33 : vector<1x6x64xf32> to vector<6x64xf32>
    %cst_35 = arith.constant dense<0.000000e+00> : vector<100x64xf32>
    %35 = tpu.matmul %32, %34, %cst_35 {dimension_numbers = #tpu.dot_dimension_numbers<[1], [0], [0], [1], [0, 0, 1, 1], [], []>} : vector<100x6xf32>, vector<6x64xf32>, vector<100x64xf32> -> vector<100x64xf32>
    %36 = arith.addf %30, %35 : vector<100x64xf32>
    %c0_36 = arith.constant 0 : index
    %c6 = arith.constant 6 : index
    %c0_37 = arith.constant 0 : index
    %37 = vector.load %arg1[%c0_36, %c6, %c0_37] : memref<1x108x6xf32, #tpu.memory_space<vmem>>, vector<1x100x6xf32>
    %38 = vector.shape_cast %37 : vector<1x100x6xf32> to vector<100x6xf32>
    %c6_38 = arith.constant 6 : index
    %c0_39 = arith.constant 0 : index
    %c0_40 = arith.constant 0 : index
    %39 = vector.load %arg2[%c6_38, %c0_39, %c0_40] : memref<9x6x64xf32, #tpu.memory_space<vmem>>, vector<1x6x64xf32>
    %40 = vector.shape_cast %39 : vector<1x6x64xf32> to vector<6x64xf32>
    %cst_41 = arith.constant dense<0.000000e+00> : vector<100x64xf32>
    %41 = tpu.matmul %38, %40, %cst_41 {dimension_numbers = #tpu.dot_dimension_numbers<[1], [0], [0], [1], [0, 0, 1, 1], [], []>} : vector<100x6xf32>, vector<6x64xf32>, vector<100x64xf32> -> vector<100x64xf32>
    %42 = arith.addf %36, %41 : vector<100x64xf32>
    %c0_42 = arith.constant 0 : index
    %c7 = arith.constant 7 : index
    %c0_43 = arith.constant 0 : index
    %43 = vector.load %arg1[%c0_42, %c7, %c0_43] : memref<1x108x6xf32, #tpu.memory_space<vmem>>, vector<1x100x6xf32>
    %44 = vector.shape_cast %43 : vector<1x100x6xf32> to vector<100x6xf32>
    %c7_44 = arith.constant 7 : index
    %c0_45 = arith.constant 0 : index
    %c0_46 = arith.constant 0 : index
    %45 = vector.load %arg2[%c7_44, %c0_45, %c0_46] : memref<9x6x64xf32, #tpu.memory_space<vmem>>, vector<1x6x64xf32>
    %46 = vector.shape_cast %45 : vector<1x6x64xf32> to vector<6x64xf32>
    %cst_47 = arith.constant dense<0.000000e+00> : vector<100x64xf32>
    %47 = tpu.matmul %44, %46, %cst_47 {dimension_numbers = #tpu.dot_dimension_numbers<[1], [0], [0], [1], [0, 0, 1, 1], [], []>} : vector<100x6xf32>, vector<6x64xf32>, vector<100x64xf32> -> vector<100x64xf32>
    %48 = arith.addf %42, %47 : vector<100x64xf32>
    %c0_48 = arith.constant 0 : index
    %c8 = arith.constant 8 : index
    %c0_49 = arith.constant 0 : index
    %49 = vector.load %arg1[%c0_48, %c8, %c0_49] : memref<1x108x6xf32, #tpu.memory_space<vmem>>, vector<1x100x6xf32>
    %50 = vector.shape_cast %49 : vector<1x100x6xf32> to vector<100x6xf32>
    %c8_50 = arith.constant 8 : index
    %c0_51 = arith.constant 0 : index
    %c0_52 = arith.constant 0 : index
    %51 = vector.load %arg2[%c8_50, %c0_51, %c0_52] : memref<9x6x64xf32, #tpu.memory_space<vmem>>, vector<1x6x64xf32>
    %52 = vector.shape_cast %51 : vector<1x6x64xf32> to vector<6x64xf32>
    %cst_53 = arith.constant dense<0.000000e+00> : vector<100x64xf32>
    %53 = tpu.matmul %50, %52, %cst_53 {dimension_numbers = #tpu.dot_dimension_numbers<[1], [0], [0], [1], [0, 0, 1, 1], [], []>} : vector<100x6xf32>, vector<6x64xf32>, vector<100x64xf32> -> vector<100x64xf32>
    %54 = arith.addf %48, %53 : vector<100x64xf32>
    %c0_54 = arith.constant 0 : index
    %c0_55 = arith.constant 0 : index
    %55 = vector.load %arg3[%c0_54, %c0_55] : memref<1x64xf32, #tpu.memory_space<vmem>>, vector<1x64xf32>
    %56 = vector.broadcast %55 : vector<1x64xf32> to vector<100x64xf32>
    %57 = arith.mulf %54, %56 : vector<100x64xf32>
    %c0_56 = arith.constant 0 : index
    %c0_57 = arith.constant 0 : index
    %58 = vector.load %arg4[%c0_56, %c0_57] : memref<1x64xf32, #tpu.memory_space<vmem>>, vector<1x64xf32>
    %59 = vector.broadcast %58 : vector<1x64xf32> to vector<100x64xf32>
    %60 = arith.addf %57, %59 : vector<100x64xf32>
    %cst_58 = arith.constant 5.000000e-01 : f32
    %61 = vector.broadcast %cst_58 : f32 to vector<100x64xf32>
    %62 = arith.mulf %61, %60 : vector<100x64xf32>
    %cst_59 = arith.constant 4.471500e-02 : f32
    %63 = vector.broadcast %cst_59 : f32 to vector<100x64xf32>
    %64 = arith.mulf %63, %60 : vector<100x64xf32>
    %65 = arith.mulf %64, %60 : vector<100x64xf32>
    %66 = arith.mulf %65, %60 : vector<100x64xf32>
    %67 = arith.addf %60, %66 : vector<100x64xf32>
    %cst_60 = arith.constant 0.797884583 : f32
    %68 = vector.broadcast %cst_60 : f32 to vector<100x64xf32>
    %69 = arith.mulf %68, %67 : vector<100x64xf32>
    %70 = math.tanh %69 : vector<100x64xf32>
    %cst_61 = arith.constant 1.000000e+00 : f32
    %71 = vector.broadcast %cst_61 : f32 to vector<100x64xf32>
    %72 = arith.addf %71, %70 : vector<100x64xf32>
    %73 = arith.mulf %62, %72 : vector<100x64xf32>
    %c0_62 = arith.constant 0 : index
    %c0_63 = arith.constant 0 : index
    %c0_64 = arith.constant 0 : index
    %74 = vector.load %arg5[%c0_62, %c0_63, %c0_64] : memref<1x100x64xf32, #tpu.memory_space<vmem>>, vector<1x100x64xf32>
    %75 = vector.shape_cast %74 : vector<1x100x64xf32> to vector<100x64xf32>
    %76 = vector.shape_cast %73 : vector<100x64xf32> to vector<1x100x64xf32>
    tpu.vector_store %arg5[%c0_62, %c0_63, %c0_64], %76 {strides = array<i32>} : memref<1x100x64xf32, #tpu.memory_space<vmem>>, vector<1x100x64xf32>,
    return
  }
  func.func @transform_0(%arg0: i32) -> (i32, i32, i32) {
    %c0_i32 = arith.constant 0 : i32
    %c0_i32_0 = arith.constant 0 : i32
    %c0_i32_1 = arith.constant 0 : i32
    return %arg0, %c0_i32, %c0_i32_0 : i32, i32, i32
  }
  func.func @transform_1(%arg0: i32) -> (i32, i32, i32) {
    %c0_i32 = arith.constant 0 : i32
    %c0_i32_0 = arith.constant 0 : i32
    %c0_i32_1 = arith.constant 0 : i32
    %c0_i32_2 = arith.constant 0 : i32
    return %c0_i32, %c0_i32_0, %c0_i32_1 : i32, i32, i32
  }
  func.func @transform_2(%arg0: i32) -> (i32, i32) {
    %c0_i32 = arith.constant 0 : i32
    %c0_i32_0 = arith.constant 0 : i32
    %c0_i32_1 = arith.constant 0 : i32
    return %c0_i32, %c0_i32_0 : i32, i32
  }
  func.func @transform_3(%arg0: i32) -> (i32, i32) {
    %c0_i32 = arith.constant 0 : i32
    %c0_i32_0 = arith.constant 0 : i32
    %c0_i32_1 = arith.constant 0 : i32
    return %c0_i32, %c0_i32_0 : i32, i32
  }
  func.func @transform_4(%arg0: i32) -> (i32, i32, i32) {
    %c0_i32 = arith.constant 0 : i32
    %c0_i32_0 = arith.constant 0 : i32
    %c0_i32_1 = arith.constant 0 : i32
    return %arg0, %c0_i32, %c0_i32_0 : i32, i32, i32
  }
}

module attributes {stable_mosaic.version = 11 : i64} {
  func.func @_maxpool_kernel(%arg0: i32, %arg1: memref<1x2x54x64xf32, #tpu.memory_space<vmem>>, %arg2: memref<1x51x64xf32, #tpu.memory_space<vmem>>) attributes {dimension_semantics = [#tpu.dimension_semantics<parallel>], iteration_bounds = array<i64: 2>, scalar_prefetch = 0 : i64, scratch_operands = 0 : i64, tpu.core_type = #tpu.core_type<tc>, window_params = [{transform_indices = @transform_0, window_bounds = array<i64: 1, 2, 54, 64>}, {transform_indices = @transform_1, window_bounds = array<i64: 1, 51, 64>}]} {
    %c0 = arith.constant 0 : index
    %c0_0 = arith.constant 0 : index
    %c0_1 = arith.constant 0 : index
    %c0_2 = arith.constant 0 : index
    %0 = vector.load %arg1[%c0, %c0_0, %c0_1, %c0_2] : memref<1x2x54x64xf32, #tpu.memory_space<vmem>>, vector<1x2x54x64xf32>
    %1 = vector.shape_cast %0 : vector<1x2x54x64xf32> to vector<2x54x64xf32>
    %cst = arith.constant dense<0xFF800000> : vector<54x64xf32>
    %2 = vector.multi_reduction <maximumf>, %1, %cst [0] : vector<2x54x64xf32> to vector<54x64xf32>
    %3 = vector.extract_strided_slice %2 {offsets = [0, 0], sizes = [51, 64], strides = [1, 1]} : vector<54x64xf32> to vector<51x64xf32>
    %4 = vector.extract_strided_slice %2 {offsets = [1, 0], sizes = [51, 64], strides = [1, 1]} : vector<54x64xf32> to vector<51x64xf32>
    %5 = arith.maximumf %3, %4 : vector<51x64xf32>
    %6 = vector.extract_strided_slice %2 {offsets = [2, 0], sizes = [51, 64], strides = [1, 1]} : vector<54x64xf32> to vector<51x64xf32>
    %7 = arith.maximumf %5, %6 : vector<51x64xf32>
    %8 = vector.extract_strided_slice %2 {offsets = [3, 0], sizes = [51, 64], strides = [1, 1]} : vector<54x64xf32> to vector<51x64xf32>
    %9 = arith.maximumf %7, %8 : vector<51x64xf32>
    %c0_3 = arith.constant 0 : index
    %c0_4 = arith.constant 0 : index
    %c0_5 = arith.constant 0 : index
    %10 = vector.load %arg2[%c0_3, %c0_4, %c0_5] : memref<1x51x64xf32, #tpu.memory_space<vmem>>, vector<1x51x64xf32>
    %11 = vector.shape_cast %10 : vector<1x51x64xf32> to vector<51x64xf32>
    %12 = vector.shape_cast %9 : vector<51x64xf32> to vector<1x51x64xf32>
    tpu.vector_store %arg2[%c0_3, %c0_4, %c0_5], %12 {strides = array<i32>} : memref<1x51x64xf32, #tpu.memory_space<vmem>>, vector<1x51x64xf32>,
    return
  }
  func.func @transform_0(%arg0: i32) -> (i32, i32, i32, i32) {
    %c0_i32 = arith.constant 0 : i32
    %c0_i32_0 = arith.constant 0 : i32
    %c0_i32_1 = arith.constant 0 : i32
    %c0_i32_2 = arith.constant 0 : i32
    return %arg0, %c0_i32, %c0_i32_0, %c0_i32_1 : i32, i32, i32, i32
  }
  func.func @transform_1(%arg0: i32) -> (i32, i32, i32) {
    %c0_i32 = arith.constant 0 : i32
    %c0_i32_0 = arith.constant 0 : i32
    %c0_i32_1 = arith.constant 0 : i32
    return %arg0, %c0_i32, %c0_i32_0 : i32, i32, i32
  }
}

module attributes {stable_mosaic.version = 11 : i64} {
  func.func @_conv_bn_gelu_kernel(%arg0: i32, %arg1: memref<1x59x64xf32, #tpu.memory_space<vmem>>, %arg2: memref<8x64x128xf32, #tpu.memory_space<vmem>>, %arg3: memref<1x128xf32, #tpu.memory_space<vmem>>, %arg4: memref<1x128xf32, #tpu.memory_space<vmem>>, %arg5: memref<1x52x128xf32, #tpu.memory_space<vmem>>) attributes {dimension_semantics = [#tpu.dimension_semantics<parallel>], iteration_bounds = array<i64: 2>, scalar_prefetch = 0 : i64, scratch_operands = 0 : i64, tpu.core_type = #tpu.core_type<tc>, window_params = [{transform_indices = @transform_0, window_bounds = array<i64: 1, 59, 64>}, {pipeline_mode = #tpu.pipeline_mode<synchronous>, transform_indices = @transform_1, window_bounds = array<i64: 8, 64, 128>}, {pipeline_mode = #tpu.pipeline_mode<synchronous>, transform_indices = @transform_2, window_bounds = array<i64: 1, 128>}, {pipeline_mode = #tpu.pipeline_mode<synchronous>, transform_indices = @transform_3, window_bounds = array<i64: 1, 128>}, {transform_indices = @transform_4, window_bounds = array<i64: 1, 52, 128>}]} {
    %cst = arith.constant 0.000000e+00 : f32
    %0 = vector.broadcast %cst : f32 to vector<52x128xf32>
    %c0 = arith.constant 0 : index
    %c0_0 = arith.constant 0 : index
    %c0_1 = arith.constant 0 : index
    %1 = vector.load %arg1[%c0, %c0_0, %c0_1] : memref<1x59x64xf32, #tpu.memory_space<vmem>>, vector<1x52x64xf32>
    %2 = vector.shape_cast %1 : vector<1x52x64xf32> to vector<52x64xf32>
    %c0_2 = arith.constant 0 : index
    %c0_3 = arith.constant 0 : index
    %c0_4 = arith.constant 0 : index
    %3 = vector.load %arg2[%c0_2, %c0_3, %c0_4] : memref<8x64x128xf32, #tpu.memory_space<vmem>>, vector<1x64x128xf32>
    %4 = vector.shape_cast %3 : vector<1x64x128xf32> to vector<64x128xf32>
    %cst_5 = arith.constant dense<0.000000e+00> : vector<52x128xf32>
    %5 = tpu.matmul %2, %4, %cst_5 {dimension_numbers = #tpu.dot_dimension_numbers<[1], [0], [0], [1], [0, 0, 1, 1], [], []>} : vector<52x64xf32>, vector<64x128xf32>, vector<52x128xf32> -> vector<52x128xf32>
    %6 = arith.addf %0, %5 : vector<52x128xf32>
    %c0_6 = arith.constant 0 : index
    %c1 = arith.constant 1 : index
    %c0_7 = arith.constant 0 : index
    %7 = vector.load %arg1[%c0_6, %c1, %c0_7] : memref<1x59x64xf32, #tpu.memory_space<vmem>>, vector<1x52x64xf32>
    %8 = vector.shape_cast %7 : vector<1x52x64xf32> to vector<52x64xf32>
    %c1_8 = arith.constant 1 : index
    %c0_9 = arith.constant 0 : index
    %c0_10 = arith.constant 0 : index
    %9 = vector.load %arg2[%c1_8, %c0_9, %c0_10] : memref<8x64x128xf32, #tpu.memory_space<vmem>>, vector<1x64x128xf32>
    %10 = vector.shape_cast %9 : vector<1x64x128xf32> to vector<64x128xf32>
    %cst_11 = arith.constant dense<0.000000e+00> : vector<52x128xf32>
    %11 = tpu.matmul %8, %10, %cst_11 {dimension_numbers = #tpu.dot_dimension_numbers<[1], [0], [0], [1], [0, 0, 1, 1], [], []>} : vector<52x64xf32>, vector<64x128xf32>, vector<52x128xf32> -> vector<52x128xf32>
    %12 = arith.addf %6, %11 : vector<52x128xf32>
    %c0_12 = arith.constant 0 : index
    %c2 = arith.constant 2 : index
    %c0_13 = arith.constant 0 : index
    %13 = vector.load %arg1[%c0_12, %c2, %c0_13] : memref<1x59x64xf32, #tpu.memory_space<vmem>>, vector<1x52x64xf32>
    %14 = vector.shape_cast %13 : vector<1x52x64xf32> to vector<52x64xf32>
    %c2_14 = arith.constant 2 : index
    %c0_15 = arith.constant 0 : index
    %c0_16 = arith.constant 0 : index
    %15 = vector.load %arg2[%c2_14, %c0_15, %c0_16] : memref<8x64x128xf32, #tpu.memory_space<vmem>>, vector<1x64x128xf32>
    %16 = vector.shape_cast %15 : vector<1x64x128xf32> to vector<64x128xf32>
    %cst_17 = arith.constant dense<0.000000e+00> : vector<52x128xf32>
    %17 = tpu.matmul %14, %16, %cst_17 {dimension_numbers = #tpu.dot_dimension_numbers<[1], [0], [0], [1], [0, 0, 1, 1], [], []>} : vector<52x64xf32>, vector<64x128xf32>, vector<52x128xf32> -> vector<52x128xf32>
    %18 = arith.addf %12, %17 : vector<52x128xf32>
    %c0_18 = arith.constant 0 : index
    %c3 = arith.constant 3 : index
    %c0_19 = arith.constant 0 : index
    %19 = vector.load %arg1[%c0_18, %c3, %c0_19] : memref<1x59x64xf32, #tpu.memory_space<vmem>>, vector<1x52x64xf32>
    %20 = vector.shape_cast %19 : vector<1x52x64xf32> to vector<52x64xf32>
    %c3_20 = arith.constant 3 : index
    %c0_21 = arith.constant 0 : index
    %c0_22 = arith.constant 0 : index
    %21 = vector.load %arg2[%c3_20, %c0_21, %c0_22] : memref<8x64x128xf32, #tpu.memory_space<vmem>>, vector<1x64x128xf32>
    %22 = vector.shape_cast %21 : vector<1x64x128xf32> to vector<64x128xf32>
    %cst_23 = arith.constant dense<0.000000e+00> : vector<52x128xf32>
    %23 = tpu.matmul %20, %22, %cst_23 {dimension_numbers = #tpu.dot_dimension_numbers<[1], [0], [0], [1], [0, 0, 1, 1], [], []>} : vector<52x64xf32>, vector<64x128xf32>, vector<52x128xf32> -> vector<52x128xf32>
    %24 = arith.addf %18, %23 : vector<52x128xf32>
    %c0_24 = arith.constant 0 : index
    %c4 = arith.constant 4 : index
    %c0_25 = arith.constant 0 : index
    %25 = vector.load %arg1[%c0_24, %c4, %c0_25] : memref<1x59x64xf32, #tpu.memory_space<vmem>>, vector<1x52x64xf32>
    %26 = vector.shape_cast %25 : vector<1x52x64xf32> to vector<52x64xf32>
    %c4_26 = arith.constant 4 : index
    %c0_27 = arith.constant 0 : index
    %c0_28 = arith.constant 0 : index
    %27 = vector.load %arg2[%c4_26, %c0_27, %c0_28] : memref<8x64x128xf32, #tpu.memory_space<vmem>>, vector<1x64x128xf32>
    %28 = vector.shape_cast %27 : vector<1x64x128xf32> to vector<64x128xf32>
    %cst_29 = arith.constant dense<0.000000e+00> : vector<52x128xf32>
    %29 = tpu.matmul %26, %28, %cst_29 {dimension_numbers = #tpu.dot_dimension_numbers<[1], [0], [0], [1], [0, 0, 1, 1], [], []>} : vector<52x64xf32>, vector<64x128xf32>, vector<52x128xf32> -> vector<52x128xf32>
    %30 = arith.addf %24, %29 : vector<52x128xf32>
    %c0_30 = arith.constant 0 : index
    %c5 = arith.constant 5 : index
    %c0_31 = arith.constant 0 : index
    %31 = vector.load %arg1[%c0_30, %c5, %c0_31] : memref<1x59x64xf32, #tpu.memory_space<vmem>>, vector<1x52x64xf32>
    %32 = vector.shape_cast %31 : vector<1x52x64xf32> to vector<52x64xf32>
    %c5_32 = arith.constant 5 : index
    %c0_33 = arith.constant 0 : index
    %c0_34 = arith.constant 0 : index
    %33 = vector.load %arg2[%c5_32, %c0_33, %c0_34] : memref<8x64x128xf32, #tpu.memory_space<vmem>>, vector<1x64x128xf32>
    %34 = vector.shape_cast %33 : vector<1x64x128xf32> to vector<64x128xf32>
    %cst_35 = arith.constant dense<0.000000e+00> : vector<52x128xf32>
    %35 = tpu.matmul %32, %34, %cst_35 {dimension_numbers = #tpu.dot_dimension_numbers<[1], [0], [0], [1], [0, 0, 1, 1], [], []>} : vector<52x64xf32>, vector<64x128xf32>, vector<52x128xf32> -> vector<52x128xf32>
    %36 = arith.addf %30, %35 : vector<52x128xf32>
    %c0_36 = arith.constant 0 : index
    %c6 = arith.constant 6 : index
    %c0_37 = arith.constant 0 : index
    %37 = vector.load %arg1[%c0_36, %c6, %c0_37] : memref<1x59x64xf32, #tpu.memory_space<vmem>>, vector<1x52x64xf32>
    %38 = vector.shape_cast %37 : vector<1x52x64xf32> to vector<52x64xf32>
    %c6_38 = arith.constant 6 : index
    %c0_39 = arith.constant 0 : index
    %c0_40 = arith.constant 0 : index
    %39 = vector.load %arg2[%c6_38, %c0_39, %c0_40] : memref<8x64x128xf32, #tpu.memory_space<vmem>>, vector<1x64x128xf32>
    %40 = vector.shape_cast %39 : vector<1x64x128xf32> to vector<64x128xf32>
    %cst_41 = arith.constant dense<0.000000e+00> : vector<52x128xf32>
    %41 = tpu.matmul %38, %40, %cst_41 {dimension_numbers = #tpu.dot_dimension_numbers<[1], [0], [0], [1], [0, 0, 1, 1], [], []>} : vector<52x64xf32>, vector<64x128xf32>, vector<52x128xf32> -> vector<52x128xf32>
    %42 = arith.addf %36, %41 : vector<52x128xf32>
    %c0_42 = arith.constant 0 : index
    %c7 = arith.constant 7 : index
    %c0_43 = arith.constant 0 : index
    %43 = vector.load %arg1[%c0_42, %c7, %c0_43] : memref<1x59x64xf32, #tpu.memory_space<vmem>>, vector<1x52x64xf32>
    %44 = vector.shape_cast %43 : vector<1x52x64xf32> to vector<52x64xf32>
    %c7_44 = arith.constant 7 : index
    %c0_45 = arith.constant 0 : index
    %c0_46 = arith.constant 0 : index
    %45 = vector.load %arg2[%c7_44, %c0_45, %c0_46] : memref<8x64x128xf32, #tpu.memory_space<vmem>>, vector<1x64x128xf32>
    %46 = vector.shape_cast %45 : vector<1x64x128xf32> to vector<64x128xf32>
    %cst_47 = arith.constant dense<0.000000e+00> : vector<52x128xf32>
    %47 = tpu.matmul %44, %46, %cst_47 {dimension_numbers = #tpu.dot_dimension_numbers<[1], [0], [0], [1], [0, 0, 1, 1], [], []>} : vector<52x64xf32>, vector<64x128xf32>, vector<52x128xf32> -> vector<52x128xf32>
    %48 = arith.addf %42, %47 : vector<52x128xf32>
    %c0_48 = arith.constant 0 : index
    %c0_49 = arith.constant 0 : index
    %49 = vector.load %arg3[%c0_48, %c0_49] : memref<1x128xf32, #tpu.memory_space<vmem>>, vector<1x128xf32>
    %50 = vector.broadcast %49 : vector<1x128xf32> to vector<52x128xf32>
    %51 = arith.mulf %48, %50 : vector<52x128xf32>
    %c0_50 = arith.constant 0 : index
    %c0_51 = arith.constant 0 : index
    %52 = vector.load %arg4[%c0_50, %c0_51] : memref<1x128xf32, #tpu.memory_space<vmem>>, vector<1x128xf32>
    %53 = vector.broadcast %52 : vector<1x128xf32> to vector<52x128xf32>
    %54 = arith.addf %51, %53 : vector<52x128xf32>
    %cst_52 = arith.constant 5.000000e-01 : f32
    %55 = vector.broadcast %cst_52 : f32 to vector<52x128xf32>
    %56 = arith.mulf %55, %54 : vector<52x128xf32>
    %cst_53 = arith.constant 4.471500e-02 : f32
    %57 = vector.broadcast %cst_53 : f32 to vector<52x128xf32>
    %58 = arith.mulf %57, %54 : vector<52x128xf32>
    %59 = arith.mulf %58, %54 : vector<52x128xf32>
    %60 = arith.mulf %59, %54 : vector<52x128xf32>
    %61 = arith.addf %54, %60 : vector<52x128xf32>
    %cst_54 = arith.constant 0.797884583 : f32
    %62 = vector.broadcast %cst_54 : f32 to vector<52x128xf32>
    %63 = arith.mulf %62, %61 : vector<52x128xf32>
    %64 = math.tanh %63 : vector<52x128xf32>
    %cst_55 = arith.constant 1.000000e+00 : f32
    %65 = vector.broadcast %cst_55 : f32 to vector<52x128xf32>
    %66 = arith.addf %65, %64 : vector<52x128xf32>
    %67 = arith.mulf %56, %66 : vector<52x128xf32>
    %c0_56 = arith.constant 0 : index
    %c0_57 = arith.constant 0 : index
    %c0_58 = arith.constant 0 : index
    %68 = vector.load %arg5[%c0_56, %c0_57, %c0_58] : memref<1x52x128xf32, #tpu.memory_space<vmem>>, vector<1x52x128xf32>
    %69 = vector.shape_cast %68 : vector<1x52x128xf32> to vector<52x128xf32>
    %70 = vector.shape_cast %67 : vector<52x128xf32> to vector<1x52x128xf32>
    tpu.vector_store %arg5[%c0_56, %c0_57, %c0_58], %70 {strides = array<i32>} : memref<1x52x128xf32, #tpu.memory_space<vmem>>, vector<1x52x128xf32>,
    return
  }
  func.func @transform_0(%arg0: i32) -> (i32, i32, i32) {
    %c0_i32 = arith.constant 0 : i32
    %c0_i32_0 = arith.constant 0 : i32
    %c0_i32_1 = arith.constant 0 : i32
    return %arg0, %c0_i32, %c0_i32_0 : i32, i32, i32
  }
  func.func @transform_1(%arg0: i32) -> (i32, i32, i32) {
    %c0_i32 = arith.constant 0 : i32
    %c0_i32_0 = arith.constant 0 : i32
    %c0_i32_1 = arith.constant 0 : i32
    %c0_i32_2 = arith.constant 0 : i32
    return %c0_i32, %c0_i32_0, %c0_i32_1 : i32, i32, i32
  }
  func.func @transform_2(%arg0: i32) -> (i32, i32) {
    %c0_i32 = arith.constant 0 : i32
    %c0_i32_0 = arith.constant 0 : i32
    %c0_i32_1 = arith.constant 0 : i32
    return %c0_i32, %c0_i32_0 : i32, i32
  }
  func.func @transform_3(%arg0: i32) -> (i32, i32) {
    %c0_i32 = arith.constant 0 : i32
    %c0_i32_0 = arith.constant 0 : i32
    %c0_i32_1 = arith.constant 0 : i32
    return %c0_i32, %c0_i32_0 : i32, i32
  }
  func.func @transform_4(%arg0: i32) -> (i32, i32, i32) {
    %c0_i32 = arith.constant 0 : i32
    %c0_i32_0 = arith.constant 0 : i32
    %c0_i32_1 = arith.constant 0 : i32
    return %arg0, %c0_i32, %c0_i32_0 : i32, i32, i32
  }
}

module attributes {stable_mosaic.version = 11 : i64} {
  func.func @_conv_bn_gelu_kernel(%arg0: i32, %arg1: memref<1x60x128xf32, #tpu.memory_space<vmem>>, %arg2: memref<8x128x128xf32, #tpu.memory_space<vmem>>, %arg3: memref<1x128xf32, #tpu.memory_space<vmem>>, %arg4: memref<1x128xf32, #tpu.memory_space<vmem>>, %arg5: memref<1x53x128xf32, #tpu.memory_space<vmem>>) attributes {dimension_semantics = [#tpu.dimension_semantics<parallel>], iteration_bounds = array<i64: 2>, scalar_prefetch = 0 : i64, scratch_operands = 0 : i64, tpu.core_type = #tpu.core_type<tc>, window_params = [{transform_indices = @transform_0, window_bounds = array<i64: 1, 60, 128>}, {pipeline_mode = #tpu.pipeline_mode<synchronous>, transform_indices = @transform_1, window_bounds = array<i64: 8, 128, 128>}, {pipeline_mode = #tpu.pipeline_mode<synchronous>, transform_indices = @transform_2, window_bounds = array<i64: 1, 128>}, {pipeline_mode = #tpu.pipeline_mode<synchronous>, transform_indices = @transform_3, window_bounds = array<i64: 1, 128>}, {transform_indices = @transform_4, window_bounds = array<i64: 1, 53, 128>}]} {
    %cst = arith.constant 0.000000e+00 : f32
    %0 = vector.broadcast %cst : f32 to vector<53x128xf32>
    %c0 = arith.constant 0 : index
    %c0_0 = arith.constant 0 : index
    %c0_1 = arith.constant 0 : index
    %1 = vector.load %arg1[%c0, %c0_0, %c0_1] : memref<1x60x128xf32, #tpu.memory_space<vmem>>, vector<1x53x128xf32>
    %2 = vector.shape_cast %1 : vector<1x53x128xf32> to vector<53x128xf32>
    %c0_2 = arith.constant 0 : index
    %c0_3 = arith.constant 0 : index
    %c0_4 = arith.constant 0 : index
    %3 = vector.load %arg2[%c0_2, %c0_3, %c0_4] : memref<8x128x128xf32, #tpu.memory_space<vmem>>, vector<1x128x128xf32>
    %4 = vector.shape_cast %3 : vector<1x128x128xf32> to vector<128x128xf32>
    %cst_5 = arith.constant dense<0.000000e+00> : vector<53x128xf32>
    %5 = tpu.matmul %2, %4, %cst_5 {dimension_numbers = #tpu.dot_dimension_numbers<[1], [0], [0], [1], [0, 0, 1, 1], [], []>} : vector<53x128xf32>, vector<128x128xf32>, vector<53x128xf32> -> vector<53x128xf32>
    %6 = arith.addf %0, %5 : vector<53x128xf32>
    %c0_6 = arith.constant 0 : index
    %c1 = arith.constant 1 : index
    %c0_7 = arith.constant 0 : index
    %7 = vector.load %arg1[%c0_6, %c1, %c0_7] : memref<1x60x128xf32, #tpu.memory_space<vmem>>, vector<1x53x128xf32>
    %8 = vector.shape_cast %7 : vector<1x53x128xf32> to vector<53x128xf32>
    %c1_8 = arith.constant 1 : index
    %c0_9 = arith.constant 0 : index
    %c0_10 = arith.constant 0 : index
    %9 = vector.load %arg2[%c1_8, %c0_9, %c0_10] : memref<8x128x128xf32, #tpu.memory_space<vmem>>, vector<1x128x128xf32>
    %10 = vector.shape_cast %9 : vector<1x128x128xf32> to vector<128x128xf32>
    %cst_11 = arith.constant dense<0.000000e+00> : vector<53x128xf32>
    %11 = tpu.matmul %8, %10, %cst_11 {dimension_numbers = #tpu.dot_dimension_numbers<[1], [0], [0], [1], [0, 0, 1, 1], [], []>} : vector<53x128xf32>, vector<128x128xf32>, vector<53x128xf32> -> vector<53x128xf32>
    %12 = arith.addf %6, %11 : vector<53x128xf32>
    %c0_12 = arith.constant 0 : index
    %c2 = arith.constant 2 : index
    %c0_13 = arith.constant 0 : index
    %13 = vector.load %arg1[%c0_12, %c2, %c0_13] : memref<1x60x128xf32, #tpu.memory_space<vmem>>, vector<1x53x128xf32>
    %14 = vector.shape_cast %13 : vector<1x53x128xf32> to vector<53x128xf32>
    %c2_14 = arith.constant 2 : index
    %c0_15 = arith.constant 0 : index
    %c0_16 = arith.constant 0 : index
    %15 = vector.load %arg2[%c2_14, %c0_15, %c0_16] : memref<8x128x128xf32, #tpu.memory_space<vmem>>, vector<1x128x128xf32>
    %16 = vector.shape_cast %15 : vector<1x128x128xf32> to vector<128x128xf32>
    %cst_17 = arith.constant dense<0.000000e+00> : vector<53x128xf32>
    %17 = tpu.matmul %14, %16, %cst_17 {dimension_numbers = #tpu.dot_dimension_numbers<[1], [0], [0], [1], [0, 0, 1, 1], [], []>} : vector<53x128xf32>, vector<128x128xf32>, vector<53x128xf32> -> vector<53x128xf32>
    %18 = arith.addf %12, %17 : vector<53x128xf32>
    %c0_18 = arith.constant 0 : index
    %c3 = arith.constant 3 : index
    %c0_19 = arith.constant 0 : index
    %19 = vector.load %arg1[%c0_18, %c3, %c0_19] : memref<1x60x128xf32, #tpu.memory_space<vmem>>, vector<1x53x128xf32>
    %20 = vector.shape_cast %19 : vector<1x53x128xf32> to vector<53x128xf32>
    %c3_20 = arith.constant 3 : index
    %c0_21 = arith.constant 0 : index
    %c0_22 = arith.constant 0 : index
    %21 = vector.load %arg2[%c3_20, %c0_21, %c0_22] : memref<8x128x128xf32, #tpu.memory_space<vmem>>, vector<1x128x128xf32>
    %22 = vector.shape_cast %21 : vector<1x128x128xf32> to vector<128x128xf32>
    %cst_23 = arith.constant dense<0.000000e+00> : vector<53x128xf32>
    %23 = tpu.matmul %20, %22, %cst_23 {dimension_numbers = #tpu.dot_dimension_numbers<[1], [0], [0], [1], [0, 0, 1, 1], [], []>} : vector<53x128xf32>, vector<128x128xf32>, vector<53x128xf32> -> vector<53x128xf32>
    %24 = arith.addf %18, %23 : vector<53x128xf32>
    %c0_24 = arith.constant 0 : index
    %c4 = arith.constant 4 : index
    %c0_25 = arith.constant 0 : index
    %25 = vector.load %arg1[%c0_24, %c4, %c0_25] : memref<1x60x128xf32, #tpu.memory_space<vmem>>, vector<1x53x128xf32>
    %26 = vector.shape_cast %25 : vector<1x53x128xf32> to vector<53x128xf32>
    %c4_26 = arith.constant 4 : index
    %c0_27 = arith.constant 0 : index
    %c0_28 = arith.constant 0 : index
    %27 = vector.load %arg2[%c4_26, %c0_27, %c0_28] : memref<8x128x128xf32, #tpu.memory_space<vmem>>, vector<1x128x128xf32>
    %28 = vector.shape_cast %27 : vector<1x128x128xf32> to vector<128x128xf32>
    %cst_29 = arith.constant dense<0.000000e+00> : vector<53x128xf32>
    %29 = tpu.matmul %26, %28, %cst_29 {dimension_numbers = #tpu.dot_dimension_numbers<[1], [0], [0], [1], [0, 0, 1, 1], [], []>} : vector<53x128xf32>, vector<128x128xf32>, vector<53x128xf32> -> vector<53x128xf32>
    %30 = arith.addf %24, %29 : vector<53x128xf32>
    %c0_30 = arith.constant 0 : index
    %c5 = arith.constant 5 : index
    %c0_31 = arith.constant 0 : index
    %31 = vector.load %arg1[%c0_30, %c5, %c0_31] : memref<1x60x128xf32, #tpu.memory_space<vmem>>, vector<1x53x128xf32>
    %32 = vector.shape_cast %31 : vector<1x53x128xf32> to vector<53x128xf32>
    %c5_32 = arith.constant 5 : index
    %c0_33 = arith.constant 0 : index
    %c0_34 = arith.constant 0 : index
    %33 = vector.load %arg2[%c5_32, %c0_33, %c0_34] : memref<8x128x128xf32, #tpu.memory_space<vmem>>, vector<1x128x128xf32>
    %34 = vector.shape_cast %33 : vector<1x128x128xf32> to vector<128x128xf32>
    %cst_35 = arith.constant dense<0.000000e+00> : vector<53x128xf32>
    %35 = tpu.matmul %32, %34, %cst_35 {dimension_numbers = #tpu.dot_dimension_numbers<[1], [0], [0], [1], [0, 0, 1, 1], [], []>} : vector<53x128xf32>, vector<128x128xf32>, vector<53x128xf32> -> vector<53x128xf32>
    %36 = arith.addf %30, %35 : vector<53x128xf32>
    %c0_36 = arith.constant 0 : index
    %c6 = arith.constant 6 : index
    %c0_37 = arith.constant 0 : index
    %37 = vector.load %arg1[%c0_36, %c6, %c0_37] : memref<1x60x128xf32, #tpu.memory_space<vmem>>, vector<1x53x128xf32>
    %38 = vector.shape_cast %37 : vector<1x53x128xf32> to vector<53x128xf32>
    %c6_38 = arith.constant 6 : index
    %c0_39 = arith.constant 0 : index
    %c0_40 = arith.constant 0 : index
    %39 = vector.load %arg2[%c6_38, %c0_39, %c0_40] : memref<8x128x128xf32, #tpu.memory_space<vmem>>, vector<1x128x128xf32>
    %40 = vector.shape_cast %39 : vector<1x128x128xf32> to vector<128x128xf32>
    %cst_41 = arith.constant dense<0.000000e+00> : vector<53x128xf32>
    %41 = tpu.matmul %38, %40, %cst_41 {dimension_numbers = #tpu.dot_dimension_numbers<[1], [0], [0], [1], [0, 0, 1, 1], [], []>} : vector<53x128xf32>, vector<128x128xf32>, vector<53x128xf32> -> vector<53x128xf32>
    %42 = arith.addf %36, %41 : vector<53x128xf32>
    %c0_42 = arith.constant 0 : index
    %c7 = arith.constant 7 : index
    %c0_43 = arith.constant 0 : index
    %43 = vector.load %arg1[%c0_42, %c7, %c0_43] : memref<1x60x128xf32, #tpu.memory_space<vmem>>, vector<1x53x128xf32>
    %44 = vector.shape_cast %43 : vector<1x53x128xf32> to vector<53x128xf32>
    %c7_44 = arith.constant 7 : index
    %c0_45 = arith.constant 0 : index
    %c0_46 = arith.constant 0 : index
    %45 = vector.load %arg2[%c7_44, %c0_45, %c0_46] : memref<8x128x128xf32, #tpu.memory_space<vmem>>, vector<1x128x128xf32>
    %46 = vector.shape_cast %45 : vector<1x128x128xf32> to vector<128x128xf32>
    %cst_47 = arith.constant dense<0.000000e+00> : vector<53x128xf32>
    %47 = tpu.matmul %44, %46, %cst_47 {dimension_numbers = #tpu.dot_dimension_numbers<[1], [0], [0], [1], [0, 0, 1, 1], [], []>} : vector<53x128xf32>, vector<128x128xf32>, vector<53x128xf32> -> vector<53x128xf32>
    %48 = arith.addf %42, %47 : vector<53x128xf32>
    %c0_48 = arith.constant 0 : index
    %c0_49 = arith.constant 0 : index
    %49 = vector.load %arg3[%c0_48, %c0_49] : memref<1x128xf32, #tpu.memory_space<vmem>>, vector<1x128xf32>
    %50 = vector.broadcast %49 : vector<1x128xf32> to vector<53x128xf32>
    %51 = arith.mulf %48, %50 : vector<53x128xf32>
    %c0_50 = arith.constant 0 : index
    %c0_51 = arith.constant 0 : index
    %52 = vector.load %arg4[%c0_50, %c0_51] : memref<1x128xf32, #tpu.memory_space<vmem>>, vector<1x128xf32>
    %53 = vector.broadcast %52 : vector<1x128xf32> to vector<53x128xf32>
    %54 = arith.addf %51, %53 : vector<53x128xf32>
    %cst_52 = arith.constant 5.000000e-01 : f32
    %55 = vector.broadcast %cst_52 : f32 to vector<53x128xf32>
    %56 = arith.mulf %55, %54 : vector<53x128xf32>
    %cst_53 = arith.constant 4.471500e-02 : f32
    %57 = vector.broadcast %cst_53 : f32 to vector<53x128xf32>
    %58 = arith.mulf %57, %54 : vector<53x128xf32>
    %59 = arith.mulf %58, %54 : vector<53x128xf32>
    %60 = arith.mulf %59, %54 : vector<53x128xf32>
    %61 = arith.addf %54, %60 : vector<53x128xf32>
    %cst_54 = arith.constant 0.797884583 : f32
    %62 = vector.broadcast %cst_54 : f32 to vector<53x128xf32>
    %63 = arith.mulf %62, %61 : vector<53x128xf32>
    %64 = math.tanh %63 : vector<53x128xf32>
    %cst_55 = arith.constant 1.000000e+00 : f32
    %65 = vector.broadcast %cst_55 : f32 to vector<53x128xf32>
    %66 = arith.addf %65, %64 : vector<53x128xf32>
    %67 = arith.mulf %56, %66 : vector<53x128xf32>
    %c0_56 = arith.constant 0 : index
    %c0_57 = arith.constant 0 : index
    %c0_58 = arith.constant 0 : index
    %68 = vector.load %arg5[%c0_56, %c0_57, %c0_58] : memref<1x53x128xf32, #tpu.memory_space<vmem>>, vector<1x53x128xf32>
    %69 = vector.shape_cast %68 : vector<1x53x128xf32> to vector<53x128xf32>
    %70 = vector.shape_cast %67 : vector<53x128xf32> to vector<1x53x128xf32>
    tpu.vector_store %arg5[%c0_56, %c0_57, %c0_58], %70 {strides = array<i32>} : memref<1x53x128xf32, #tpu.memory_space<vmem>>, vector<1x53x128xf32>,
    return
  }
  func.func @transform_0(%arg0: i32) -> (i32, i32, i32) {
    %c0_i32 = arith.constant 0 : i32
    %c0_i32_0 = arith.constant 0 : i32
    %c0_i32_1 = arith.constant 0 : i32
    return %arg0, %c0_i32, %c0_i32_0 : i32, i32, i32
  }
  func.func @transform_1(%arg0: i32) -> (i32, i32, i32) {
    %c0_i32 = arith.constant 0 : i32
    %c0_i32_0 = arith.constant 0 : i32
    %c0_i32_1 = arith.constant 0 : i32
    %c0_i32_2 = arith.constant 0 : i32
    return %c0_i32, %c0_i32_0, %c0_i32_1 : i32, i32, i32
  }
  func.func @transform_2(%arg0: i32) -> (i32, i32) {
    %c0_i32 = arith.constant 0 : i32
    %c0_i32_0 = arith.constant 0 : i32
    %c0_i32_1 = arith.constant 0 : i32
    return %c0_i32, %c0_i32_0 : i32, i32
  }
  func.func @transform_3(%arg0: i32) -> (i32, i32) {
    %c0_i32 = arith.constant 0 : i32
    %c0_i32_0 = arith.constant 0 : i32
    %c0_i32_1 = arith.constant 0 : i32
    return %c0_i32, %c0_i32_0 : i32, i32
  }
  func.func @transform_4(%arg0: i32) -> (i32, i32, i32) {
    %c0_i32 = arith.constant 0 : i32
    %c0_i32_0 = arith.constant 0 : i32
    %c0_i32_1 = arith.constant 0 : i32
    return %arg0, %c0_i32, %c0_i32_0 : i32, i32, i32
  }
}

module attributes {stable_mosaic.version = 11 : i64} {
  func.func @_maxpool_kernel(%arg0: i32, %arg1: memref<1x4x14x128xf32, #tpu.memory_space<vmem>>, %arg2: memref<1x14x128xf32, #tpu.memory_space<vmem>>) attributes {dimension_semantics = [#tpu.dimension_semantics<parallel>], iteration_bounds = array<i64: 2>, scalar_prefetch = 0 : i64, scratch_operands = 0 : i64, tpu.core_type = #tpu.core_type<tc>, window_params = [{transform_indices = @transform_0, window_bounds = array<i64: 1, 4, 14, 128>}, {transform_indices = @transform_1, window_bounds = array<i64: 1, 14, 128>}]} {
    %c0 = arith.constant 0 : index
    %c0_0 = arith.constant 0 : index
    %c0_1 = arith.constant 0 : index
    %c0_2 = arith.constant 0 : index
    %0 = vector.load %arg1[%c0, %c0_0, %c0_1, %c0_2] : memref<1x4x14x128xf32, #tpu.memory_space<vmem>>, vector<1x4x14x128xf32>
    %1 = vector.shape_cast %0 : vector<1x4x14x128xf32> to vector<4x14x128xf32>
    %cst = arith.constant dense<0xFF800000> : vector<14x128xf32>
    %2 = vector.multi_reduction <maximumf>, %1, %cst [0] : vector<4x14x128xf32> to vector<14x128xf32>
    %c0_3 = arith.constant 0 : index
    %c0_4 = arith.constant 0 : index
    %c0_5 = arith.constant 0 : index
    %3 = vector.load %arg2[%c0_3, %c0_4, %c0_5] : memref<1x14x128xf32, #tpu.memory_space<vmem>>, vector<1x14x128xf32>
    %4 = vector.shape_cast %3 : vector<1x14x128xf32> to vector<14x128xf32>
    %5 = vector.shape_cast %2 : vector<14x128xf32> to vector<1x14x128xf32>
    tpu.vector_store %arg2[%c0_3, %c0_4, %c0_5], %5 {strides = array<i32>} : memref<1x14x128xf32, #tpu.memory_space<vmem>>, vector<1x14x128xf32>,
    return
  }
  func.func @transform_0(%arg0: i32) -> (i32, i32, i32, i32) {
    %c0_i32 = arith.constant 0 : i32
    %c0_i32_0 = arith.constant 0 : i32
    %c0_i32_1 = arith.constant 0 : i32
    %c0_i32_2 = arith.constant 0 : i32
    return %arg0, %c0_i32, %c0_i32_0, %c0_i32_1 : i32, i32, i32, i32
  }
  func.func @transform_1(%arg0: i32) -> (i32, i32, i32) {
    %c0_i32 = arith.constant 0 : i32
    %c0_i32_0 = arith.constant 0 : i32
    %c0_i32_1 = arith.constant 0 : i32
    return %arg0, %c0_i32, %c0_i32_0 : i32, i32, i32
  }
}

module attributes {stable_mosaic.version = 11 : i64} {
  func.func @_conv_bn_gelu_kernel(%arg0: i32, %arg1: memref<1x20x50xf32, #tpu.memory_space<vmem>>, %arg2: memref<8x50x64xf32, #tpu.memory_space<vmem>>, %arg3: memref<1x64xf32, #tpu.memory_space<vmem>>, %arg4: memref<1x64xf32, #tpu.memory_space<vmem>>, %arg5: memref<1x13x64xf32, #tpu.memory_space<vmem>>) attributes {dimension_semantics = [#tpu.dimension_semantics<parallel>], iteration_bounds = array<i64: 2>, scalar_prefetch = 0 : i64, scratch_operands = 0 : i64, tpu.core_type = #tpu.core_type<tc>, window_params = [{transform_indices = @transform_0, window_bounds = array<i64: 1, 20, 50>}, {pipeline_mode = #tpu.pipeline_mode<synchronous>, transform_indices = @transform_1, window_bounds = array<i64: 8, 50, 64>}, {pipeline_mode = #tpu.pipeline_mode<synchronous>, transform_indices = @transform_2, window_bounds = array<i64: 1, 64>}, {pipeline_mode = #tpu.pipeline_mode<synchronous>, transform_indices = @transform_3, window_bounds = array<i64: 1, 64>}, {transform_indices = @transform_4, window_bounds = array<i64: 1, 13, 64>}]} {
    %cst = arith.constant 0.000000e+00 : f32
    %0 = vector.broadcast %cst : f32 to vector<13x64xf32>
    %c0 = arith.constant 0 : index
    %c0_0 = arith.constant 0 : index
    %c0_1 = arith.constant 0 : index
    %1 = vector.load %arg1[%c0, %c0_0, %c0_1] : memref<1x20x50xf32, #tpu.memory_space<vmem>>, vector<1x13x50xf32>
    %2 = vector.shape_cast %1 : vector<1x13x50xf32> to vector<13x50xf32>
    %c0_2 = arith.constant 0 : index
    %c0_3 = arith.constant 0 : index
    %c0_4 = arith.constant 0 : index
    %3 = vector.load %arg2[%c0_2, %c0_3, %c0_4] : memref<8x50x64xf32, #tpu.memory_space<vmem>>, vector<1x50x64xf32>
    %4 = vector.shape_cast %3 : vector<1x50x64xf32> to vector<50x64xf32>
    %cst_5 = arith.constant dense<0.000000e+00> : vector<13x64xf32>
    %5 = tpu.matmul %2, %4, %cst_5 {dimension_numbers = #tpu.dot_dimension_numbers<[1], [0], [0], [1], [0, 0, 1, 1], [], []>} : vector<13x50xf32>, vector<50x64xf32>, vector<13x64xf32> -> vector<13x64xf32>
    %6 = arith.addf %0, %5 : vector<13x64xf32>
    %c0_6 = arith.constant 0 : index
    %c1 = arith.constant 1 : index
    %c0_7 = arith.constant 0 : index
    %7 = vector.load %arg1[%c0_6, %c1, %c0_7] : memref<1x20x50xf32, #tpu.memory_space<vmem>>, vector<1x13x50xf32>
    %8 = vector.shape_cast %7 : vector<1x13x50xf32> to vector<13x50xf32>
    %c1_8 = arith.constant 1 : index
    %c0_9 = arith.constant 0 : index
    %c0_10 = arith.constant 0 : index
    %9 = vector.load %arg2[%c1_8, %c0_9, %c0_10] : memref<8x50x64xf32, #tpu.memory_space<vmem>>, vector<1x50x64xf32>
    %10 = vector.shape_cast %9 : vector<1x50x64xf32> to vector<50x64xf32>
    %cst_11 = arith.constant dense<0.000000e+00> : vector<13x64xf32>
    %11 = tpu.matmul %8, %10, %cst_11 {dimension_numbers = #tpu.dot_dimension_numbers<[1], [0], [0], [1], [0, 0, 1, 1], [], []>} : vector<13x50xf32>, vector<50x64xf32>, vector<13x64xf32> -> vector<13x64xf32>
    %12 = arith.addf %6, %11 : vector<13x64xf32>
    %c0_12 = arith.constant 0 : index
    %c2 = arith.constant 2 : index
    %c0_13 = arith.constant 0 : index
    %13 = vector.load %arg1[%c0_12, %c2, %c0_13] : memref<1x20x50xf32, #tpu.memory_space<vmem>>, vector<1x13x50xf32>
    %14 = vector.shape_cast %13 : vector<1x13x50xf32> to vector<13x50xf32>
    %c2_14 = arith.constant 2 : index
    %c0_15 = arith.constant 0 : index
    %c0_16 = arith.constant 0 : index
    %15 = vector.load %arg2[%c2_14, %c0_15, %c0_16] : memref<8x50x64xf32, #tpu.memory_space<vmem>>, vector<1x50x64xf32>
    %16 = vector.shape_cast %15 : vector<1x50x64xf32> to vector<50x64xf32>
    %cst_17 = arith.constant dense<0.000000e+00> : vector<13x64xf32>
    %17 = tpu.matmul %14, %16, %cst_17 {dimension_numbers = #tpu.dot_dimension_numbers<[1], [0], [0], [1], [0, 0, 1, 1], [], []>} : vector<13x50xf32>, vector<50x64xf32>, vector<13x64xf32> -> vector<13x64xf32>
    %18 = arith.addf %12, %17 : vector<13x64xf32>
    %c0_18 = arith.constant 0 : index
    %c3 = arith.constant 3 : index
    %c0_19 = arith.constant 0 : index
    %19 = vector.load %arg1[%c0_18, %c3, %c0_19] : memref<1x20x50xf32, #tpu.memory_space<vmem>>, vector<1x13x50xf32>
    %20 = vector.shape_cast %19 : vector<1x13x50xf32> to vector<13x50xf32>
    %c3_20 = arith.constant 3 : index
    %c0_21 = arith.constant 0 : index
    %c0_22 = arith.constant 0 : index
    %21 = vector.load %arg2[%c3_20, %c0_21, %c0_22] : memref<8x50x64xf32, #tpu.memory_space<vmem>>, vector<1x50x64xf32>
    %22 = vector.shape_cast %21 : vector<1x50x64xf32> to vector<50x64xf32>
    %cst_23 = arith.constant dense<0.000000e+00> : vector<13x64xf32>
    %23 = tpu.matmul %20, %22, %cst_23 {dimension_numbers = #tpu.dot_dimension_numbers<[1], [0], [0], [1], [0, 0, 1, 1], [], []>} : vector<13x50xf32>, vector<50x64xf32>, vector<13x64xf32> -> vector<13x64xf32>
    %24 = arith.addf %18, %23 : vector<13x64xf32>
    %c0_24 = arith.constant 0 : index
    %c4 = arith.constant 4 : index
    %c0_25 = arith.constant 0 : index
    %25 = vector.load %arg1[%c0_24, %c4, %c0_25] : memref<1x20x50xf32, #tpu.memory_space<vmem>>, vector<1x13x50xf32>
    %26 = vector.shape_cast %25 : vector<1x13x50xf32> to vector<13x50xf32>
    %c4_26 = arith.constant 4 : index
    %c0_27 = arith.constant 0 : index
    %c0_28 = arith.constant 0 : index
    %27 = vector.load %arg2[%c4_26, %c0_27, %c0_28] : memref<8x50x64xf32, #tpu.memory_space<vmem>>, vector<1x50x64xf32>
    %28 = vector.shape_cast %27 : vector<1x50x64xf32> to vector<50x64xf32>
    %cst_29 = arith.constant dense<0.000000e+00> : vector<13x64xf32>
    %29 = tpu.matmul %26, %28, %cst_29 {dimension_numbers = #tpu.dot_dimension_numbers<[1], [0], [0], [1], [0, 0, 1, 1], [], []>} : vector<13x50xf32>, vector<50x64xf32>, vector<13x64xf32> -> vector<13x64xf32>
    %30 = arith.addf %24, %29 : vector<13x64xf32>
    %c0_30 = arith.constant 0 : index
    %c5 = arith.constant 5 : index
    %c0_31 = arith.constant 0 : index
    %31 = vector.load %arg1[%c0_30, %c5, %c0_31] : memref<1x20x50xf32, #tpu.memory_space<vmem>>, vector<1x13x50xf32>
    %32 = vector.shape_cast %31 : vector<1x13x50xf32> to vector<13x50xf32>
    %c5_32 = arith.constant 5 : index
    %c0_33 = arith.constant 0 : index
    %c0_34 = arith.constant 0 : index
    %33 = vector.load %arg2[%c5_32, %c0_33, %c0_34] : memref<8x50x64xf32, #tpu.memory_space<vmem>>, vector<1x50x64xf32>
    %34 = vector.shape_cast %33 : vector<1x50x64xf32> to vector<50x64xf32>
    %cst_35 = arith.constant dense<0.000000e+00> : vector<13x64xf32>
    %35 = tpu.matmul %32, %34, %cst_35 {dimension_numbers = #tpu.dot_dimension_numbers<[1], [0], [0], [1], [0, 0, 1, 1], [], []>} : vector<13x50xf32>, vector<50x64xf32>, vector<13x64xf32> -> vector<13x64xf32>
    %36 = arith.addf %30, %35 : vector<13x64xf32>
    %c0_36 = arith.constant 0 : index
    %c6 = arith.constant 6 : index
    %c0_37 = arith.constant 0 : index
    %37 = vector.load %arg1[%c0_36, %c6, %c0_37] : memref<1x20x50xf32, #tpu.memory_space<vmem>>, vector<1x13x50xf32>
    %38 = vector.shape_cast %37 : vector<1x13x50xf32> to vector<13x50xf32>
    %c6_38 = arith.constant 6 : index
    %c0_39 = arith.constant 0 : index
    %c0_40 = arith.constant 0 : index
    %39 = vector.load %arg2[%c6_38, %c0_39, %c0_40] : memref<8x50x64xf32, #tpu.memory_space<vmem>>, vector<1x50x64xf32>
    %40 = vector.shape_cast %39 : vector<1x50x64xf32> to vector<50x64xf32>
    %cst_41 = arith.constant dense<0.000000e+00> : vector<13x64xf32>
    %41 = tpu.matmul %38, %40, %cst_41 {dimension_numbers = #tpu.dot_dimension_numbers<[1], [0], [0], [1], [0, 0, 1, 1], [], []>} : vector<13x50xf32>, vector<50x64xf32>, vector<13x64xf32> -> vector<13x64xf32>
    %42 = arith.addf %36, %41 : vector<13x64xf32>
    %c0_42 = arith.constant 0 : index
    %c7 = arith.constant 7 : index
    %c0_43 = arith.constant 0 : index
    %43 = vector.load %arg1[%c0_42, %c7, %c0_43] : memref<1x20x50xf32, #tpu.memory_space<vmem>>, vector<1x13x50xf32>
    %44 = vector.shape_cast %43 : vector<1x13x50xf32> to vector<13x50xf32>
    %c7_44 = arith.constant 7 : index
    %c0_45 = arith.constant 0 : index
    %c0_46 = arith.constant 0 : index
    %45 = vector.load %arg2[%c7_44, %c0_45, %c0_46] : memref<8x50x64xf32, #tpu.memory_space<vmem>>, vector<1x50x64xf32>
    %46 = vector.shape_cast %45 : vector<1x50x64xf32> to vector<50x64xf32>
    %cst_47 = arith.constant dense<0.000000e+00> : vector<13x64xf32>
    %47 = tpu.matmul %44, %46, %cst_47 {dimension_numbers = #tpu.dot_dimension_numbers<[1], [0], [0], [1], [0, 0, 1, 1], [], []>} : vector<13x50xf32>, vector<50x64xf32>, vector<13x64xf32> -> vector<13x64xf32>
    %48 = arith.addf %42, %47 : vector<13x64xf32>
    %c0_48 = arith.constant 0 : index
    %c0_49 = arith.constant 0 : index
    %49 = vector.load %arg3[%c0_48, %c0_49] : memref<1x64xf32, #tpu.memory_space<vmem>>, vector<1x64xf32>
    %50 = vector.broadcast %49 : vector<1x64xf32> to vector<13x64xf32>
    %51 = arith.mulf %48, %50 : vector<13x64xf32>
    %c0_50 = arith.constant 0 : index
    %c0_51 = arith.constant 0 : index
    %52 = vector.load %arg4[%c0_50, %c0_51] : memref<1x64xf32, #tpu.memory_space<vmem>>, vector<1x64xf32>
    %53 = vector.broadcast %52 : vector<1x64xf32> to vector<13x64xf32>
    %54 = arith.addf %51, %53 : vector<13x64xf32>
    %cst_52 = arith.constant 5.000000e-01 : f32
    %55 = vector.broadcast %cst_52 : f32 to vector<13x64xf32>
    %56 = arith.mulf %55, %54 : vector<13x64xf32>
    %cst_53 = arith.constant 4.471500e-02 : f32
    %57 = vector.broadcast %cst_53 : f32 to vector<13x64xf32>
    %58 = arith.mulf %57, %54 : vector<13x64xf32>
    %59 = arith.mulf %58, %54 : vector<13x64xf32>
    %60 = arith.mulf %59, %54 : vector<13x64xf32>
    %61 = arith.addf %54, %60 : vector<13x64xf32>
    %cst_54 = arith.constant 0.797884583 : f32
    %62 = vector.broadcast %cst_54 : f32 to vector<13x64xf32>
    %63 = arith.mulf %62, %61 : vector<13x64xf32>
    %64 = math.tanh %63 : vector<13x64xf32>
    %cst_55 = arith.constant 1.000000e+00 : f32
    %65 = vector.broadcast %cst_55 : f32 to vector<13x64xf32>
    %66 = arith.addf %65, %64 : vector<13x64xf32>
    %67 = arith.mulf %56, %66 : vector<13x64xf32>
    %c0_56 = arith.constant 0 : index
    %c0_57 = arith.constant 0 : index
    %c0_58 = arith.constant 0 : index
    %68 = vector.load %arg5[%c0_56, %c0_57, %c0_58] : memref<1x13x64xf32, #tpu.memory_space<vmem>>, vector<1x13x64xf32>
    %69 = vector.shape_cast %68 : vector<1x13x64xf32> to vector<13x64xf32>
    %70 = vector.shape_cast %67 : vector<13x64xf32> to vector<1x13x64xf32>
    tpu.vector_store %arg5[%c0_56, %c0_57, %c0_58], %70 {strides = array<i32>} : memref<1x13x64xf32, #tpu.memory_space<vmem>>, vector<1x13x64xf32>,
    return
  }
  func.func @transform_0(%arg0: i32) -> (i32, i32, i32) {
    %c0_i32 = arith.constant 0 : i32
    %c0_i32_0 = arith.constant 0 : i32
    %c0_i32_1 = arith.constant 0 : i32
    return %arg0, %c0_i32, %c0_i32_0 : i32, i32, i32
  }
  func.func @transform_1(%arg0: i32) -> (i32, i32, i32) {
    %c0_i32 = arith.constant 0 : i32
    %c0_i32_0 = arith.constant 0 : i32
    %c0_i32_1 = arith.constant 0 : i32
    %c0_i32_2 = arith.constant 0 : i32
    return %c0_i32, %c0_i32_0, %c0_i32_1 : i32, i32, i32
  }
  func.func @transform_2(%arg0: i32) -> (i32, i32) {
    %c0_i32 = arith.constant 0 : i32
    %c0_i32_0 = arith.constant 0 : i32
    %c0_i32_1 = arith.constant 0 : i32
    return %c0_i32, %c0_i32_0 : i32, i32
  }
  func.func @transform_3(%arg0: i32) -> (i32, i32) {
    %c0_i32 = arith.constant 0 : i32
    %c0_i32_0 = arith.constant 0 : i32
    %c0_i32_1 = arith.constant 0 : i32
    return %c0_i32, %c0_i32_0 : i32, i32
  }
  func.func @transform_4(%arg0: i32) -> (i32, i32, i32) {
    %c0_i32 = arith.constant 0 : i32
    %c0_i32_0 = arith.constant 0 : i32
    %c0_i32_1 = arith.constant 0 : i32
    return %arg0, %c0_i32, %c0_i32_0 : i32, i32, i32
  }
}

module attributes {stable_mosaic.version = 11 : i64} {
  func.func @_conv_bn_gelu_kernel(%arg0: i32, %arg1: memref<1x13x64xf32, #tpu.memory_space<vmem>>, %arg2: memref<7x64x128xf32, #tpu.memory_space<vmem>>, %arg3: memref<1x128xf32, #tpu.memory_space<vmem>>, %arg4: memref<1x128xf32, #tpu.memory_space<vmem>>, %arg5: memref<1x7x128xf32, #tpu.memory_space<vmem>>) attributes {dimension_semantics = [#tpu.dimension_semantics<parallel>], iteration_bounds = array<i64: 2>, scalar_prefetch = 0 : i64, scratch_operands = 0 : i64, tpu.core_type = #tpu.core_type<tc>, window_params = [{transform_indices = @transform_0, window_bounds = array<i64: 1, 13, 64>}, {pipeline_mode = #tpu.pipeline_mode<synchronous>, transform_indices = @transform_1, window_bounds = array<i64: 7, 64, 128>}, {pipeline_mode = #tpu.pipeline_mode<synchronous>, transform_indices = @transform_2, window_bounds = array<i64: 1, 128>}, {pipeline_mode = #tpu.pipeline_mode<synchronous>, transform_indices = @transform_3, window_bounds = array<i64: 1, 128>}, {transform_indices = @transform_4, window_bounds = array<i64: 1, 7, 128>}]} {
    %cst = arith.constant 0.000000e+00 : f32
    %0 = vector.broadcast %cst : f32 to vector<7x128xf32>
    %c0 = arith.constant 0 : index
    %c0_0 = arith.constant 0 : index
    %c0_1 = arith.constant 0 : index
    %1 = vector.load %arg1[%c0, %c0_0, %c0_1] : memref<1x13x64xf32, #tpu.memory_space<vmem>>, vector<1x7x64xf32>
    %2 = vector.shape_cast %1 : vector<1x7x64xf32> to vector<7x64xf32>
    %c0_2 = arith.constant 0 : index
    %c0_3 = arith.constant 0 : index
    %c0_4 = arith.constant 0 : index
    %3 = vector.load %arg2[%c0_2, %c0_3, %c0_4] : memref<7x64x128xf32, #tpu.memory_space<vmem>>, vector<1x64x128xf32>
    %4 = vector.shape_cast %3 : vector<1x64x128xf32> to vector<64x128xf32>
    %cst_5 = arith.constant dense<0.000000e+00> : vector<7x128xf32>
    %5 = tpu.matmul %2, %4, %cst_5 {dimension_numbers = #tpu.dot_dimension_numbers<[1], [0], [0], [1], [0, 0, 1, 1], [], []>} : vector<7x64xf32>, vector<64x128xf32>, vector<7x128xf32> -> vector<7x128xf32>
    %6 = arith.addf %0, %5 : vector<7x128xf32>
    %c0_6 = arith.constant 0 : index
    %c1 = arith.constant 1 : index
    %c0_7 = arith.constant 0 : index
    %7 = vector.load %arg1[%c0_6, %c1, %c0_7] : memref<1x13x64xf32, #tpu.memory_space<vmem>>, vector<1x7x64xf32>
    %8 = vector.shape_cast %7 : vector<1x7x64xf32> to vector<7x64xf32>
    %c1_8 = arith.constant 1 : index
    %c0_9 = arith.constant 0 : index
    %c0_10 = arith.constant 0 : index
    %9 = vector.load %arg2[%c1_8, %c0_9, %c0_10] : memref<7x64x128xf32, #tpu.memory_space<vmem>>, vector<1x64x128xf32>
    %10 = vector.shape_cast %9 : vector<1x64x128xf32> to vector<64x128xf32>
    %cst_11 = arith.constant dense<0.000000e+00> : vector<7x128xf32>
    %11 = tpu.matmul %8, %10, %cst_11 {dimension_numbers = #tpu.dot_dimension_numbers<[1], [0], [0], [1], [0, 0, 1, 1], [], []>} : vector<7x64xf32>, vector<64x128xf32>, vector<7x128xf32> -> vector<7x128xf32>
    %12 = arith.addf %6, %11 : vector<7x128xf32>
    %c0_12 = arith.constant 0 : index
    %c2 = arith.constant 2 : index
    %c0_13 = arith.constant 0 : index
    %13 = vector.load %arg1[%c0_12, %c2, %c0_13] : memref<1x13x64xf32, #tpu.memory_space<vmem>>, vector<1x7x64xf32>
    %14 = vector.shape_cast %13 : vector<1x7x64xf32> to vector<7x64xf32>
    %c2_14 = arith.constant 2 : index
    %c0_15 = arith.constant 0 : index
    %c0_16 = arith.constant 0 : index
    %15 = vector.load %arg2[%c2_14, %c0_15, %c0_16] : memref<7x64x128xf32, #tpu.memory_space<vmem>>, vector<1x64x128xf32>
    %16 = vector.shape_cast %15 : vector<1x64x128xf32> to vector<64x128xf32>
    %cst_17 = arith.constant dense<0.000000e+00> : vector<7x128xf32>
    %17 = tpu.matmul %14, %16, %cst_17 {dimension_numbers = #tpu.dot_dimension_numbers<[1], [0], [0], [1], [0, 0, 1, 1], [], []>} : vector<7x64xf32>, vector<64x128xf32>, vector<7x128xf32> -> vector<7x128xf32>
    %18 = arith.addf %12, %17 : vector<7x128xf32>
    %c0_18 = arith.constant 0 : index
    %c3 = arith.constant 3 : index
    %c0_19 = arith.constant 0 : index
    %19 = vector.load %arg1[%c0_18, %c3, %c0_19] : memref<1x13x64xf32, #tpu.memory_space<vmem>>, vector<1x7x64xf32>
    %20 = vector.shape_cast %19 : vector<1x7x64xf32> to vector<7x64xf32>
    %c3_20 = arith.constant 3 : index
    %c0_21 = arith.constant 0 : index
    %c0_22 = arith.constant 0 : index
    %21 = vector.load %arg2[%c3_20, %c0_21, %c0_22] : memref<7x64x128xf32, #tpu.memory_space<vmem>>, vector<1x64x128xf32>
    %22 = vector.shape_cast %21 : vector<1x64x128xf32> to vector<64x128xf32>
    %cst_23 = arith.constant dense<0.000000e+00> : vector<7x128xf32>
    %23 = tpu.matmul %20, %22, %cst_23 {dimension_numbers = #tpu.dot_dimension_numbers<[1], [0], [0], [1], [0, 0, 1, 1], [], []>} : vector<7x64xf32>, vector<64x128xf32>, vector<7x128xf32> -> vector<7x128xf32>
    %24 = arith.addf %18, %23 : vector<7x128xf32>
    %c0_24 = arith.constant 0 : index
    %c4 = arith.constant 4 : index
    %c0_25 = arith.constant 0 : index
    %25 = vector.load %arg1[%c0_24, %c4, %c0_25] : memref<1x13x64xf32, #tpu.memory_space<vmem>>, vector<1x7x64xf32>
    %26 = vector.shape_cast %25 : vector<1x7x64xf32> to vector<7x64xf32>
    %c4_26 = arith.constant 4 : index
    %c0_27 = arith.constant 0 : index
    %c0_28 = arith.constant 0 : index
    %27 = vector.load %arg2[%c4_26, %c0_27, %c0_28] : memref<7x64x128xf32, #tpu.memory_space<vmem>>, vector<1x64x128xf32>
    %28 = vector.shape_cast %27 : vector<1x64x128xf32> to vector<64x128xf32>
    %cst_29 = arith.constant dense<0.000000e+00> : vector<7x128xf32>
    %29 = tpu.matmul %26, %28, %cst_29 {dimension_numbers = #tpu.dot_dimension_numbers<[1], [0], [0], [1], [0, 0, 1, 1], [], []>} : vector<7x64xf32>, vector<64x128xf32>, vector<7x128xf32> -> vector<7x128xf32>
    %30 = arith.addf %24, %29 : vector<7x128xf32>
    %c0_30 = arith.constant 0 : index
    %c5 = arith.constant 5 : index
    %c0_31 = arith.constant 0 : index
    %31 = vector.load %arg1[%c0_30, %c5, %c0_31] : memref<1x13x64xf32, #tpu.memory_space<vmem>>, vector<1x7x64xf32>
    %32 = vector.shape_cast %31 : vector<1x7x64xf32> to vector<7x64xf32>
    %c5_32 = arith.constant 5 : index
    %c0_33 = arith.constant 0 : index
    %c0_34 = arith.constant 0 : index
    %33 = vector.load %arg2[%c5_32, %c0_33, %c0_34] : memref<7x64x128xf32, #tpu.memory_space<vmem>>, vector<1x64x128xf32>
    %34 = vector.shape_cast %33 : vector<1x64x128xf32> to vector<64x128xf32>
    %cst_35 = arith.constant dense<0.000000e+00> : vector<7x128xf32>
    %35 = tpu.matmul %32, %34, %cst_35 {dimension_numbers = #tpu.dot_dimension_numbers<[1], [0], [0], [1], [0, 0, 1, 1], [], []>} : vector<7x64xf32>, vector<64x128xf32>, vector<7x128xf32> -> vector<7x128xf32>
    %36 = arith.addf %30, %35 : vector<7x128xf32>
    %c0_36 = arith.constant 0 : index
    %c6 = arith.constant 6 : index
    %c0_37 = arith.constant 0 : index
    %37 = vector.load %arg1[%c0_36, %c6, %c0_37] : memref<1x13x64xf32, #tpu.memory_space<vmem>>, vector<1x7x64xf32>
    %38 = vector.shape_cast %37 : vector<1x7x64xf32> to vector<7x64xf32>
    %c6_38 = arith.constant 6 : index
    %c0_39 = arith.constant 0 : index
    %c0_40 = arith.constant 0 : index
    %39 = vector.load %arg2[%c6_38, %c0_39, %c0_40] : memref<7x64x128xf32, #tpu.memory_space<vmem>>, vector<1x64x128xf32>
    %40 = vector.shape_cast %39 : vector<1x64x128xf32> to vector<64x128xf32>
    %cst_41 = arith.constant dense<0.000000e+00> : vector<7x128xf32>
    %41 = tpu.matmul %38, %40, %cst_41 {dimension_numbers = #tpu.dot_dimension_numbers<[1], [0], [0], [1], [0, 0, 1, 1], [], []>} : vector<7x64xf32>, vector<64x128xf32>, vector<7x128xf32> -> vector<7x128xf32>
    %42 = arith.addf %36, %41 : vector<7x128xf32>
    %c0_42 = arith.constant 0 : index
    %c0_43 = arith.constant 0 : index
    %43 = vector.load %arg3[%c0_42, %c0_43] : memref<1x128xf32, #tpu.memory_space<vmem>>, vector<1x128xf32>
    %44 = vector.broadcast %43 : vector<1x128xf32> to vector<7x128xf32>
    %45 = arith.mulf %42, %44 : vector<7x128xf32>
    %c0_44 = arith.constant 0 : index
    %c0_45 = arith.constant 0 : index
    %46 = vector.load %arg4[%c0_44, %c0_45] : memref<1x128xf32, #tpu.memory_space<vmem>>, vector<1x128xf32>
    %47 = vector.broadcast %46 : vector<1x128xf32> to vector<7x128xf32>
    %48 = arith.addf %45, %47 : vector<7x128xf32>
    %cst_46 = arith.constant 5.000000e-01 : f32
    %49 = vector.broadcast %cst_46 : f32 to vector<7x128xf32>
    %50 = arith.mulf %49, %48 : vector<7x128xf32>
    %cst_47 = arith.constant 4.471500e-02 : f32
    %51 = vector.broadcast %cst_47 : f32 to vector<7x128xf32>
    %52 = arith.mulf %51, %48 : vector<7x128xf32>
    %53 = arith.mulf %52, %48 : vector<7x128xf32>
    %54 = arith.mulf %53, %48 : vector<7x128xf32>
    %55 = arith.addf %48, %54 : vector<7x128xf32>
    %cst_48 = arith.constant 0.797884583 : f32
    %56 = vector.broadcast %cst_48 : f32 to vector<7x128xf32>
    %57 = arith.mulf %56, %55 : vector<7x128xf32>
    %58 = math.tanh %57 : vector<7x128xf32>
    %cst_49 = arith.constant 1.000000e+00 : f32
    %59 = vector.broadcast %cst_49 : f32 to vector<7x128xf32>
    %60 = arith.addf %59, %58 : vector<7x128xf32>
    %61 = arith.mulf %50, %60 : vector<7x128xf32>
    %c0_50 = arith.constant 0 : index
    %c0_51 = arith.constant 0 : index
    %c0_52 = arith.constant 0 : index
    %62 = vector.load %arg5[%c0_50, %c0_51, %c0_52] : memref<1x7x128xf32, #tpu.memory_space<vmem>>, vector<1x7x128xf32>
    %63 = vector.shape_cast %62 : vector<1x7x128xf32> to vector<7x128xf32>
    %64 = vector.shape_cast %61 : vector<7x128xf32> to vector<1x7x128xf32>
    tpu.vector_store %arg5[%c0_50, %c0_51, %c0_52], %64 {strides = array<i32>} : memref<1x7x128xf32, #tpu.memory_space<vmem>>, vector<1x7x128xf32>,
    return
  }
  func.func @transform_0(%arg0: i32) -> (i32, i32, i32) {
    %c0_i32 = arith.constant 0 : i32
    %c0_i32_0 = arith.constant 0 : i32
    %c0_i32_1 = arith.constant 0 : i32
    return %arg0, %c0_i32, %c0_i32_0 : i32, i32, i32
  }
  func.func @transform_1(%arg0: i32) -> (i32, i32, i32) {
    %c0_i32 = arith.constant 0 : i32
    %c0_i32_0 = arith.constant 0 : i32
    %c0_i32_1 = arith.constant 0 : i32
    %c0_i32_2 = arith.constant 0 : i32
    return %c0_i32, %c0_i32_0, %c0_i32_1 : i32, i32, i32
  }
  func.func @transform_2(%arg0: i32) -> (i32, i32) {
    %c0_i32 = arith.constant 0 : i32
    %c0_i32_0 = arith.constant 0 : i32
    %c0_i32_1 = arith.constant 0 : i32
    return %c0_i32, %c0_i32_0 : i32, i32
  }
  func.func @transform_3(%arg0: i32) -> (i32, i32) {
    %c0_i32 = arith.constant 0 : i32
    %c0_i32_0 = arith.constant 0 : i32
    %c0_i32_1 = arith.constant 0 : i32
    return %c0_i32, %c0_i32_0 : i32, i32
  }
  func.func @transform_4(%arg0: i32) -> (i32, i32, i32) {
    %c0_i32 = arith.constant 0 : i32
    %c0_i32_0 = arith.constant 0 : i32
    %c0_i32_1 = arith.constant 0 : i32
    return %arg0, %c0_i32, %c0_i32_0 : i32, i32, i32
  }
}

module attributes {stable_mosaic.version = 11 : i64} {
  func.func @_maxpool_kernel(%arg0: i32, %arg1: memref<1x2x8x64xf32, #tpu.memory_space<vmem>>, %arg2: memref<1x7x64xf32, #tpu.memory_space<vmem>>) attributes {dimension_semantics = [#tpu.dimension_semantics<parallel>], iteration_bounds = array<i64: 2>, scalar_prefetch = 0 : i64, scratch_operands = 0 : i64, tpu.core_type = #tpu.core_type<tc>, window_params = [{transform_indices = @transform_0, window_bounds = array<i64: 1, 2, 8, 64>}, {transform_indices = @transform_1, window_bounds = array<i64: 1, 7, 64>}]} {
    %c0 = arith.constant 0 : index
    %c0_0 = arith.constant 0 : index
    %c0_1 = arith.constant 0 : index
    %c0_2 = arith.constant 0 : index
    %0 = vector.load %arg1[%c0, %c0_0, %c0_1, %c0_2] : memref<1x2x8x64xf32, #tpu.memory_space<vmem>>, vector<1x2x8x64xf32>
    %1 = vector.shape_cast %0 : vector<1x2x8x64xf32> to vector<2x8x64xf32>
    %cst = arith.constant dense<0xFF800000> : vector<8x64xf32>
    %2 = vector.multi_reduction <maximumf>, %1, %cst [0] : vector<2x8x64xf32> to vector<8x64xf32>
    %3 = vector.extract_strided_slice %2 {offsets = [0, 0], sizes = [7, 64], strides = [1, 1]} : vector<8x64xf32> to vector<7x64xf32>
    %4 = vector.extract_strided_slice %2 {offsets = [1, 0], sizes = [7, 64], strides = [1, 1]} : vector<8x64xf32> to vector<7x64xf32>
    %5 = arith.maximumf %3, %4 : vector<7x64xf32>
    %c0_3 = arith.constant 0 : index
    %c0_4 = arith.constant 0 : index
    %c0_5 = arith.constant 0 : index
    %6 = vector.load %arg2[%c0_3, %c0_4, %c0_5] : memref<1x7x64xf32, #tpu.memory_space<vmem>>, vector<1x7x64xf32>
    %7 = vector.shape_cast %6 : vector<1x7x64xf32> to vector<7x64xf32>
    %8 = vector.shape_cast %5 : vector<7x64xf32> to vector<1x7x64xf32>
    tpu.vector_store %arg2[%c0_3, %c0_4, %c0_5], %8 {strides = array<i32>} : memref<1x7x64xf32, #tpu.memory_space<vmem>>, vector<1x7x64xf32>,
    return
  }
  func.func @transform_0(%arg0: i32) -> (i32, i32, i32, i32) {
    %c0_i32 = arith.constant 0 : i32
    %c0_i32_0 = arith.constant 0 : i32
    %c0_i32_1 = arith.constant 0 : i32
    %c0_i32_2 = arith.constant 0 : i32
    return %arg0, %c0_i32, %c0_i32_0, %c0_i32_1 : i32, i32, i32, i32
  }
  func.func @transform_1(%arg0: i32) -> (i32, i32, i32) {
    %c0_i32 = arith.constant 0 : i32
    %c0_i32_0 = arith.constant 0 : i32
    %c0_i32_1 = arith.constant 0 : i32
    return %arg0, %c0_i32, %c0_i32_0 : i32, i32, i32
  }
}

module attributes {stable_mosaic.version = 11 : i64} {
  func.func @_conv_bn_gelu_kernel(%arg0: i32, %arg1: memref<1x13x128xf32, #tpu.memory_space<vmem>>, %arg2: memref<7x128x128xf32, #tpu.memory_space<vmem>>, %arg3: memref<1x128xf32, #tpu.memory_space<vmem>>, %arg4: memref<1x128xf32, #tpu.memory_space<vmem>>, %arg5: memref<1x7x128xf32, #tpu.memory_space<vmem>>) attributes {dimension_semantics = [#tpu.dimension_semantics<parallel>], iteration_bounds = array<i64: 2>, scalar_prefetch = 0 : i64, scratch_operands = 0 : i64, tpu.core_type = #tpu.core_type<tc>, window_params = [{transform_indices = @transform_0, window_bounds = array<i64: 1, 13, 128>}, {pipeline_mode = #tpu.pipeline_mode<synchronous>, transform_indices = @transform_1, window_bounds = array<i64: 7, 128, 128>}, {pipeline_mode = #tpu.pipeline_mode<synchronous>, transform_indices = @transform_2, window_bounds = array<i64: 1, 128>}, {pipeline_mode = #tpu.pipeline_mode<synchronous>, transform_indices = @transform_3, window_bounds = array<i64: 1, 128>}, {transform_indices = @transform_4, window_bounds = array<i64: 1, 7, 128>}]} {
    %cst = arith.constant 0.000000e+00 : f32
    %0 = vector.broadcast %cst : f32 to vector<7x128xf32>
    %c0 = arith.constant 0 : index
    %c0_0 = arith.constant 0 : index
    %c0_1 = arith.constant 0 : index
    %1 = vector.load %arg1[%c0, %c0_0, %c0_1] : memref<1x13x128xf32, #tpu.memory_space<vmem>>, vector<1x7x128xf32>
    %2 = vector.shape_cast %1 : vector<1x7x128xf32> to vector<7x128xf32>
    %c0_2 = arith.constant 0 : index
    %c0_3 = arith.constant 0 : index
    %c0_4 = arith.constant 0 : index
    %3 = vector.load %arg2[%c0_2, %c0_3, %c0_4] : memref<7x128x128xf32, #tpu.memory_space<vmem>>, vector<1x128x128xf32>
    %4 = vector.shape_cast %3 : vector<1x128x128xf32> to vector<128x128xf32>
    %cst_5 = arith.constant dense<0.000000e+00> : vector<7x128xf32>
    %5 = tpu.matmul %2, %4, %cst_5 {dimension_numbers = #tpu.dot_dimension_numbers<[1], [0], [0], [1], [0, 0, 1, 1], [], []>} : vector<7x128xf32>, vector<128x128xf32>, vector<7x128xf32> -> vector<7x128xf32>
    %6 = arith.addf %0, %5 : vector<7x128xf32>
    %c0_6 = arith.constant 0 : index
    %c1 = arith.constant 1 : index
    %c0_7 = arith.constant 0 : index
    %7 = vector.load %arg1[%c0_6, %c1, %c0_7] : memref<1x13x128xf32, #tpu.memory_space<vmem>>, vector<1x7x128xf32>
    %8 = vector.shape_cast %7 : vector<1x7x128xf32> to vector<7x128xf32>
    %c1_8 = arith.constant 1 : index
    %c0_9 = arith.constant 0 : index
    %c0_10 = arith.constant 0 : index
    %9 = vector.load %arg2[%c1_8, %c0_9, %c0_10] : memref<7x128x128xf32, #tpu.memory_space<vmem>>, vector<1x128x128xf32>
    %10 = vector.shape_cast %9 : vector<1x128x128xf32> to vector<128x128xf32>
    %cst_11 = arith.constant dense<0.000000e+00> : vector<7x128xf32>
    %11 = tpu.matmul %8, %10, %cst_11 {dimension_numbers = #tpu.dot_dimension_numbers<[1], [0], [0], [1], [0, 0, 1, 1], [], []>} : vector<7x128xf32>, vector<128x128xf32>, vector<7x128xf32> -> vector<7x128xf32>
    %12 = arith.addf %6, %11 : vector<7x128xf32>
    %c0_12 = arith.constant 0 : index
    %c2 = arith.constant 2 : index
    %c0_13 = arith.constant 0 : index
    %13 = vector.load %arg1[%c0_12, %c2, %c0_13] : memref<1x13x128xf32, #tpu.memory_space<vmem>>, vector<1x7x128xf32>
    %14 = vector.shape_cast %13 : vector<1x7x128xf32> to vector<7x128xf32>
    %c2_14 = arith.constant 2 : index
    %c0_15 = arith.constant 0 : index
    %c0_16 = arith.constant 0 : index
    %15 = vector.load %arg2[%c2_14, %c0_15, %c0_16] : memref<7x128x128xf32, #tpu.memory_space<vmem>>, vector<1x128x128xf32>
    %16 = vector.shape_cast %15 : vector<1x128x128xf32> to vector<128x128xf32>
    %cst_17 = arith.constant dense<0.000000e+00> : vector<7x128xf32>
    %17 = tpu.matmul %14, %16, %cst_17 {dimension_numbers = #tpu.dot_dimension_numbers<[1], [0], [0], [1], [0, 0, 1, 1], [], []>} : vector<7x128xf32>, vector<128x128xf32>, vector<7x128xf32> -> vector<7x128xf32>
    %18 = arith.addf %12, %17 : vector<7x128xf32>
    %c0_18 = arith.constant 0 : index
    %c3 = arith.constant 3 : index
    %c0_19 = arith.constant 0 : index
    %19 = vector.load %arg1[%c0_18, %c3, %c0_19] : memref<1x13x128xf32, #tpu.memory_space<vmem>>, vector<1x7x128xf32>
    %20 = vector.shape_cast %19 : vector<1x7x128xf32> to vector<7x128xf32>
    %c3_20 = arith.constant 3 : index
    %c0_21 = arith.constant 0 : index
    %c0_22 = arith.constant 0 : index
    %21 = vector.load %arg2[%c3_20, %c0_21, %c0_22] : memref<7x128x128xf32, #tpu.memory_space<vmem>>, vector<1x128x128xf32>
    %22 = vector.shape_cast %21 : vector<1x128x128xf32> to vector<128x128xf32>
    %cst_23 = arith.constant dense<0.000000e+00> : vector<7x128xf32>
    %23 = tpu.matmul %20, %22, %cst_23 {dimension_numbers = #tpu.dot_dimension_numbers<[1], [0], [0], [1], [0, 0, 1, 1], [], []>} : vector<7x128xf32>, vector<128x128xf32>, vector<7x128xf32> -> vector<7x128xf32>
    %24 = arith.addf %18, %23 : vector<7x128xf32>
    %c0_24 = arith.constant 0 : index
    %c4 = arith.constant 4 : index
    %c0_25 = arith.constant 0 : index
    %25 = vector.load %arg1[%c0_24, %c4, %c0_25] : memref<1x13x128xf32, #tpu.memory_space<vmem>>, vector<1x7x128xf32>
    %26 = vector.shape_cast %25 : vector<1x7x128xf32> to vector<7x128xf32>
    %c4_26 = arith.constant 4 : index
    %c0_27 = arith.constant 0 : index
    %c0_28 = arith.constant 0 : index
    %27 = vector.load %arg2[%c4_26, %c0_27, %c0_28] : memref<7x128x128xf32, #tpu.memory_space<vmem>>, vector<1x128x128xf32>
    %28 = vector.shape_cast %27 : vector<1x128x128xf32> to vector<128x128xf32>
    %cst_29 = arith.constant dense<0.000000e+00> : vector<7x128xf32>
    %29 = tpu.matmul %26, %28, %cst_29 {dimension_numbers = #tpu.dot_dimension_numbers<[1], [0], [0], [1], [0, 0, 1, 1], [], []>} : vector<7x128xf32>, vector<128x128xf32>, vector<7x128xf32> -> vector<7x128xf32>
    %30 = arith.addf %24, %29 : vector<7x128xf32>
    %c0_30 = arith.constant 0 : index
    %c5 = arith.constant 5 : index
    %c0_31 = arith.constant 0 : index
    %31 = vector.load %arg1[%c0_30, %c5, %c0_31] : memref<1x13x128xf32, #tpu.memory_space<vmem>>, vector<1x7x128xf32>
    %32 = vector.shape_cast %31 : vector<1x7x128xf32> to vector<7x128xf32>
    %c5_32 = arith.constant 5 : index
    %c0_33 = arith.constant 0 : index
    %c0_34 = arith.constant 0 : index
    %33 = vector.load %arg2[%c5_32, %c0_33, %c0_34] : memref<7x128x128xf32, #tpu.memory_space<vmem>>, vector<1x128x128xf32>
    %34 = vector.shape_cast %33 : vector<1x128x128xf32> to vector<128x128xf32>
    %cst_35 = arith.constant dense<0.000000e+00> : vector<7x128xf32>
    %35 = tpu.matmul %32, %34, %cst_35 {dimension_numbers = #tpu.dot_dimension_numbers<[1], [0], [0], [1], [0, 0, 1, 1], [], []>} : vector<7x128xf32>, vector<128x128xf32>, vector<7x128xf32> -> vector<7x128xf32>
    %36 = arith.addf %30, %35 : vector<7x128xf32>
    %c0_36 = arith.constant 0 : index
    %c6 = arith.constant 6 : index
    %c0_37 = arith.constant 0 : index
    %37 = vector.load %arg1[%c0_36, %c6, %c0_37] : memref<1x13x128xf32, #tpu.memory_space<vmem>>, vector<1x7x128xf32>
    %38 = vector.shape_cast %37 : vector<1x7x128xf32> to vector<7x128xf32>
    %c6_38 = arith.constant 6 : index
    %c0_39 = arith.constant 0 : index
    %c0_40 = arith.constant 0 : index
    %39 = vector.load %arg2[%c6_38, %c0_39, %c0_40] : memref<7x128x128xf32, #tpu.memory_space<vmem>>, vector<1x128x128xf32>
    %40 = vector.shape_cast %39 : vector<1x128x128xf32> to vector<128x128xf32>
    %cst_41 = arith.constant dense<0.000000e+00> : vector<7x128xf32>
    %41 = tpu.matmul %38, %40, %cst_41 {dimension_numbers = #tpu.dot_dimension_numbers<[1], [0], [0], [1], [0, 0, 1, 1], [], []>} : vector<7x128xf32>, vector<128x128xf32>, vector<7x128xf32> -> vector<7x128xf32>
    %42 = arith.addf %36, %41 : vector<7x128xf32>
    %c0_42 = arith.constant 0 : index
    %c0_43 = arith.constant 0 : index
    %43 = vector.load %arg3[%c0_42, %c0_43] : memref<1x128xf32, #tpu.memory_space<vmem>>, vector<1x128xf32>
    %44 = vector.broadcast %43 : vector<1x128xf32> to vector<7x128xf32>
    %45 = arith.mulf %42, %44 : vector<7x128xf32>
    %c0_44 = arith.constant 0 : index
    %c0_45 = arith.constant 0 : index
    %46 = vector.load %arg4[%c0_44, %c0_45] : memref<1x128xf32, #tpu.memory_space<vmem>>, vector<1x128xf32>
    %47 = vector.broadcast %46 : vector<1x128xf32> to vector<7x128xf32>
    %48 = arith.addf %45, %47 : vector<7x128xf32>
    %cst_46 = arith.constant 5.000000e-01 : f32
    %49 = vector.broadcast %cst_46 : f32 to vector<7x128xf32>
    %50 = arith.mulf %49, %48 : vector<7x128xf32>
    %cst_47 = arith.constant 4.471500e-02 : f32
    %51 = vector.broadcast %cst_47 : f32 to vector<7x128xf32>
    %52 = arith.mulf %51, %48 : vector<7x128xf32>
    %53 = arith.mulf %52, %48 : vector<7x128xf32>
    %54 = arith.mulf %53, %48 : vector<7x128xf32>
    %55 = arith.addf %48, %54 : vector<7x128xf32>
    %cst_48 = arith.constant 0.797884583 : f32
    %56 = vector.broadcast %cst_48 : f32 to vector<7x128xf32>
    %57 = arith.mulf %56, %55 : vector<7x128xf32>
    %58 = math.tanh %57 : vector<7x128xf32>
    %cst_49 = arith.constant 1.000000e+00 : f32
    %59 = vector.broadcast %cst_49 : f32 to vector<7x128xf32>
    %60 = arith.addf %59, %58 : vector<7x128xf32>
    %61 = arith.mulf %50, %60 : vector<7x128xf32>
    %c0_50 = arith.constant 0 : index
    %c0_51 = arith.constant 0 : index
    %c0_52 = arith.constant 0 : index
    %62 = vector.load %arg5[%c0_50, %c0_51, %c0_52] : memref<1x7x128xf32, #tpu.memory_space<vmem>>, vector<1x7x128xf32>
    %63 = vector.shape_cast %62 : vector<1x7x128xf32> to vector<7x128xf32>
    %64 = vector.shape_cast %61 : vector<7x128xf32> to vector<1x7x128xf32>
    tpu.vector_store %arg5[%c0_50, %c0_51, %c0_52], %64 {strides = array<i32>} : memref<1x7x128xf32, #tpu.memory_space<vmem>>, vector<1x7x128xf32>,
    return
  }
  func.func @transform_0(%arg0: i32) -> (i32, i32, i32) {
    %c0_i32 = arith.constant 0 : i32
    %c0_i32_0 = arith.constant 0 : i32
    %c0_i32_1 = arith.constant 0 : i32
    return %arg0, %c0_i32, %c0_i32_0 : i32, i32, i32
  }
  func.func @transform_1(%arg0: i32) -> (i32, i32, i32) {
    %c0_i32 = arith.constant 0 : i32
    %c0_i32_0 = arith.constant 0 : i32
    %c0_i32_1 = arith.constant 0 : i32
    %c0_i32_2 = arith.constant 0 : i32
    return %c0_i32, %c0_i32_0, %c0_i32_1 : i32, i32, i32
  }
  func.func @transform_2(%arg0: i32) -> (i32, i32) {
    %c0_i32 = arith.constant 0 : i32
    %c0_i32_0 = arith.constant 0 : i32
    %c0_i32_1 = arith.constant 0 : i32
    return %c0_i32, %c0_i32_0 : i32, i32
  }
  func.func @transform_3(%arg0: i32) -> (i32, i32) {
    %c0_i32 = arith.constant 0 : i32
    %c0_i32_0 = arith.constant 0 : i32
    %c0_i32_1 = arith.constant 0 : i32
    return %c0_i32, %c0_i32_0 : i32, i32
  }
  func.func @transform_4(%arg0: i32) -> (i32, i32, i32) {
    %c0_i32 = arith.constant 0 : i32
    %c0_i32_0 = arith.constant 0 : i32
    %c0_i32_1 = arith.constant 0 : i32
    return %arg0, %c0_i32, %c0_i32_0 : i32, i32, i32
  }
}

module attributes {stable_mosaic.version = 11 : i64} {
  func.func @_maxpool_kernel(%arg0: i32, %arg1: memref<1x2x4x128xf32, #tpu.memory_space<vmem>>, %arg2: memref<1x4x128xf32, #tpu.memory_space<vmem>>) attributes {dimension_semantics = [#tpu.dimension_semantics<parallel>], iteration_bounds = array<i64: 2>, scalar_prefetch = 0 : i64, scratch_operands = 0 : i64, tpu.core_type = #tpu.core_type<tc>, window_params = [{transform_indices = @transform_0, window_bounds = array<i64: 1, 2, 4, 128>}, {transform_indices = @transform_1, window_bounds = array<i64: 1, 4, 128>}]} {
    %c0 = arith.constant 0 : index
    %c0_0 = arith.constant 0 : index
    %c0_1 = arith.constant 0 : index
    %c0_2 = arith.constant 0 : index
    %0 = vector.load %arg1[%c0, %c0_0, %c0_1, %c0_2] : memref<1x2x4x128xf32, #tpu.memory_space<vmem>>, vector<1x2x4x128xf32>
    %1 = vector.shape_cast %0 : vector<1x2x4x128xf32> to vector<2x4x128xf32>
    %cst = arith.constant dense<0xFF800000> : vector<4x128xf32>
    %2 = vector.multi_reduction <maximumf>, %1, %cst [0] : vector<2x4x128xf32> to vector<4x128xf32>
    %c0_3 = arith.constant 0 : index
    %c0_4 = arith.constant 0 : index
    %c0_5 = arith.constant 0 : index
    %3 = vector.load %arg2[%c0_3, %c0_4, %c0_5] : memref<1x4x128xf32, #tpu.memory_space<vmem>>, vector<1x4x128xf32>
    %4 = vector.shape_cast %3 : vector<1x4x128xf32> to vector<4x128xf32>
    %5 = vector.shape_cast %2 : vector<4x128xf32> to vector<1x4x128xf32>
    tpu.vector_store %arg2[%c0_3, %c0_4, %c0_5], %5 {strides = array<i32>} : memref<1x4x128xf32, #tpu.memory_space<vmem>>, vector<1x4x128xf32>,
    return
  }
  func.func @transform_0(%arg0: i32) -> (i32, i32, i32, i32) {
    %c0_i32 = arith.constant 0 : i32
    %c0_i32_0 = arith.constant 0 : i32
    %c0_i32_1 = arith.constant 0 : i32
    %c0_i32_2 = arith.constant 0 : i32
    return %arg0, %c0_i32, %c0_i32_0, %c0_i32_1 : i32, i32, i32, i32
  }
  func.func @transform_1(%arg0: i32) -> (i32, i32, i32) {
    %c0_i32 = arith.constant 0 : i32
    %c0_i32_0 = arith.constant 0 : i32
    %c0_i32_1 = arith.constant 0 : i32
    return %arg0, %c0_i32, %c0_i32_0 : i32, i32, i32
  }
}

</mosaic_0001>

<bundles_post_ra>
// kernel: ducnn_forward.11
= control target key start
LH: loop header
LB: loop body
LE: loop exit
PB: predicated region body
PF: predicated region fallthrough
CT: control target
= control target key end

     0   :  { %s345_s6 = smov 0   ;;  %s429_s0 = inlined_call_operand.vmem [shape: f32[2,2,54,64], index: 0, kind: input, shape index: {}]   ;;  %s430_s1 = inlined_call_operand.vmem [shape: f32[2,51,64], index: 1, kind: output, shape index: {}]  }
   0x1 LB: > { %s308_s7 = sadd.s32 4294967295, %s333_s6   ;;  %p312_p0 = scmp.ge.s32.totalorder %s333_s6, 1  ;;  %s333_s6 = sphi %s345_s6, %s11_s6  }
   0x2   : > { %p87_p1 = scmp.lt.s32.totalorder %s333_s6, 3 }
   0x4   : > { %p88_p2 = pnand %p312_p0, %p87_p1 }
   0x5   : > { %p107_p3 = scmp.lt.s32.totalorder (!%p88_p2), %s308_s7, 1  ;;  %vm131_vm0 = vcmask (!%p88_p2), 523264   ;;  %vm161_vm1 = vcmask (!%p88_p2), 1046528   ;;  %vm189_vm2 = vcmask (!%p88_p2), 1045504   ;;  %vm217_vm3 = vcmask (!%p88_p2), 1044480  }
   0x6   : > { %91 = sbr.rel (%p88_p2) target bundleno = 45 (0x2d), region = 24  ;;  %vm150_vm4 = vcmask (!%p88_p2), 521216   ;;  %vm251_vm5 = vcmask (!%p88_p2), 518144  }
   0xd   : > { %s432_s7 = smov (!%p107_p3, %s308_s7), 1 }
   0xe   : > { %s317_s8 = smul.u32 112, %s432_s7 }
   0xf   : > { %s318_s12 = smul.u32 56, %s432_s7 }
  0x10   : > { %s359_s11 = scalar_lea.vmem %s429_s0, %s317_s8 }
  0x11   : > { %v117_v0 = vld [vmem:[%s359_s11] sm:$0xff]  ;;  %v118_v1 = vld [vmem:[%s359_s11 + $0x8] sm:$0xff]  ;;  %v124_v2 = vld [vmem:[%s359_s11 + $0x38] sm:$0xff]  ;;  %s396_s15 = scalar_lea.vmem %s430_s1, %s318_s12 }
  0x12   : > { %v125_v3 = vld [vmem:[%s359_s11 + $0x40] sm:$0xff]  ;;  %v132_v4 = vsel %vm131_vm0, %v117_v0, -inf  ;;  %v133_v5 = vsel %vm131_vm0, %v124_v2, -inf  ;;  %v135_v6 = vsel %vm131_vm0, %v118_v1, -inf  ;;  %v119_v7 = vld [vmem:[%s359_s11 + $0x10] sm:$0xff]  ;;  %v126_v8 = vld [vmem:[%s359_s11 + $0x48] sm:$0xff] }
  0x13   : > { %v134_v9 = vmax.f32 %v132_v4, %v133_v5  ;;  %v136_v10 = vsel %vm131_vm0, %v125_v3, -inf  ;;  %v138_v11 = vsel %vm131_vm0, %v119_v7, -inf  ;;  %v139_v12 = vsel %vm131_vm0, %v126_v8, -inf  ;;  %v120_v13 = vld [vmem:[%s359_s11 + $0x18] sm:$0xff]  ;;  %v127_v14 = vld [vmem:[%s359_s11 + $0x50] sm:$0xff]  ;;  %v121_v31 = vld [vmem:[%s359_s11 + $0x20] sm:$0xff] }
  0x14   : > { %v137_v15 = vmax.f32 %v135_v6, %v136_v10  ;;  %v140_v16 = vmax.f32 %v138_v11, %v139_v12  ;;  %v141_v17 = vsel %vm131_vm0, %v120_v13, -inf  ;;  %v142_v18 = vsel %vm131_vm0, %v127_v14, -inf  ;;  %v128_v36 = vld [vmem:[%s359_s11 + $0x58] sm:$0xff]  ;;  %v122_v41 = vld [vmem:[%s359_s11 + $0x28] sm:$0xff]  ;;  %v129_v42 = vld [vmem:[%s359_s11 + $0x60] sm:$0xff] }
  0x15   : > { %v162_v19 = vrot.slane %v134_v9, 1  ;;  %v190_v20 = vrot.slane %v134_v9, 2  ;;  %v218_v21 = vrot.slane %v134_v9, 3  ;;  %v143_v22 = vmax.f32 %v141_v17, %v142_v18  ;;  %v123_v51 = vld [vmem:[%s359_s11 + $0x30] sm:$0x3f] }
  0x16   : > { %v163_v23 = vrot.slane %v137_v15, 1  ;;  %v191_v24 = vrot.slane %v137_v15, 2  ;;  %v219_v25 = vrot.slane %v137_v15, 3  ;;  %v165_v26 = vrot.slane %v140_v16, 1  ;;  %v130_v60 = vld [vmem:[%s359_s11 + $0x68] sm:$0x3f] }
  0x17   : > { %v193_v27 = vrot.slane %v140_v16, 2  ;;  %v221_v28 = vrot.slane %v140_v16, 3  ;;  %v167_v29 = vrot.slane %v143_v22, 1  ;;  %v195_v30 = vrot.slane %v143_v22, 2 }
  0x18   : > { %v164_v32 = vsel %vm161_vm1, %v162_v19, %v163_v23  ;;  %v192_v33 = vsel %vm189_vm2, %v190_v20, %v191_v24  ;;  %v220_v34 = vsel %vm217_vm3, %v218_v21, %v219_v25  ;;  %v166_v35 = vsel %vm161_vm1, %v163_v23, %v165_v26 }
  0x19   : > { %v182_v37 = vmax.f32 %v134_v9, %v164_v32  ;;  %v183_v38 = vmax.f32 %v137_v15, %v166_v35  ;;  %v194_v39 = vsel %vm189_vm2, %v191_v24, %v193_v27  ;;  %v222_v40 = vsel %vm217_vm3, %v219_v25, %v221_v28 }
  0x1a   : > { %v168_v43 = vsel %vm161_vm1, %v165_v26, %v167_v29  ;;  %v196_v44 = vsel %vm189_vm2, %v193_v27, %v195_v30  ;;  %v223_v45 = vrot.slane %v143_v22, 3  ;;  %v144_v46 = vsel %vm131_vm0, %v121_v31, -inf }
  0x1b   : > { %v210_v47 = vmax.f32 %v182_v37, %v192_v33  ;;  %v211_v48 = vmax.f32 %v183_v38, %v194_v39  ;;  %v184_v49 = vmax.f32 %v140_v16, %v168_v43  ;;  %v145_v50 = vsel %vm131_vm0, %v128_v36, -inf }
  0x1c   : > { %v224_v52 = vsel %vm217_vm3, %v221_v28, %v223_v45  ;;  %v146_v53 = vmax.f32 %v144_v46, %v145_v50  ;;  %v147_v54 = vsel %vm131_vm0, %v122_v41, -inf  ;;  %v148_v55 = vsel %vm131_vm0, %v129_v42, -inf }
  0x1d   : > { %v238_v56 = vmax.f32 %v210_v47, %v220_v34  ;;  %v239_v57 = vmax.f32 %v211_v48, %v222_v40  ;;  %v212_v58 = vmax.f32 %v184_v49, %v196_v44  ;;  %v149_v59 = vmax.f32 %v147_v54, %v148_v55 }
  0x1e   : > { %v169_v61 = vrot.slane %v146_v53, 1  ;;  %v197_v62 = vrot.slane %v146_v53, 2  ;;  %v225_v63 = vrot.slane %v146_v53, 3  ;;  %v151_v0 = vsel %vm150_vm4, %v123_v51, -inf }
  0x1f   : > { %245 = vst.msk [vmem:[%s396_s15] sm:$0xff] %vm131_vm0, %v238_v56  ;;  %246 = vst.msk [vmem:[%s396_s15 + $0x8] sm:$0xff] %vm131_vm0, %v239_v57  ;;  %v240_v1 = vmax.f32 %v212_v58, %v224_v52  ;;  %v171_v2 = vrot.slane %v149_v59, 1  ;;  %v199_v3 = vrot.slane %v149_v59, 2  ;;  %v227_v4 = vrot.slane %v149_v59, 3 }
  0x20   : > { %v170_v5 = vsel %vm161_vm1, %v167_v29, %v169_v61  ;;  %v198_v6 = vsel %vm189_vm2, %v195_v30, %v197_v62  ;;  %v152_v7 = vsel %vm150_vm4, %v130_v60, -inf  ;;  %v226_v11 = vsel %vm217_vm3, %v223_v45, %v225_v63 }
  0x21   : > { %247 = vst.msk [vmem:[%s396_s15 + $0x10] sm:$0xff] %vm131_vm0, %v240_v1  ;;  %v185_v8 = vmax.f32 %v143_v22, %v170_v5  ;;  %v172_v9 = vsel %vm161_vm1, %v169_v61, %v171_v2  ;;  %v200_v10 = vsel %vm189_vm2, %v197_v62, %v199_v3  ;;  %v153_v13 = vmax.f32 %v151_v0, %v152_v7 }
  0x22   : > { %v186_v12 = vmax.f32 %v146_v53, %v172_v9  ;;  %v228_v15 = vsel %vm217_vm3, %v225_v63, %v227_v4 }
  0x23   : > { %v213_v14 = vmax.f32 %v185_v8, %v198_v6  ;;  %v173_v17 = vrot.slane %v153_v13, 1  ;;  %v201_v18 = vrot.slane %v153_v13, 2  ;;  %v229_v19 = vrot.slane %v153_v13, 3 }
  0x24   : > { %v214_v16 = vmax.f32 %v186_v12, %v200_v10 }
  0x25   : > { %v241_v20 = vmax.f32 %v213_v14, %v226_v11  ;;  %v174_v22 = vsel %vm161_vm1, %v171_v2, %v173_v17  ;;  %v202_v23 = vsel %vm189_vm2, %v199_v3, %v201_v18  ;;  %v188_v25 = vmax.f32 %v153_v13, %v173_v17 }
  0x26   : > { %v242_v21 = vmax.f32 %v214_v16, %v228_v15  ;;  %v187_v24 = vmax.f32 %v149_v59, %v174_v22  ;;  %v230_v26 = vsel %vm217_vm3, %v227_v4, %v229_v19 }
  0x27   : > { %248 = vst.msk [vmem:[%s396_s15 + $0x18] sm:$0xff] %vm131_vm0, %v241_v20  ;;  %v216_v28 = vmax.f32 %v188_v25, %v201_v18 }
  0x28   : > { %249 = vst.msk [vmem:[%s396_s15 + $0x20] sm:$0xff] %vm131_vm0, %v242_v21  ;;  %v215_v27 = vmax.f32 %v187_v24, %v202_v23 }
  0x29   : > { %v244_v30 = vmax.f32 %v216_v28, %v229_v19 }
  0x2a   : > { %v243_v29 = vmax.f32 %v215_v27, %v230_v26 }
  0x2b   : > { %252 = vst.msk [vmem:[%s396_s15 + $0x30] sm:$0x7] %vm251_vm5, %v244_v30 }
  0x2c   : > { %250 = vst.msk [vmem:[%s396_s15 + $0x28] sm:$0xff] %vm131_vm0, %v243_v29 }
  0x2d PF: > { %s11_s6 = sadd.s32 1, %s333_s6  }
  0x2e   : > { %p8_p4 = scmp.ge.s32.totalorder %s11_s6, 4  }
  0x30   :  { %10 = sbr.rel (!%p8_p4) target bundleno = 1 (0x1), region = 54 }

// kernel: ducnn_forward.12
= control target key start
LH: loop header
LB: loop body
LE: loop exit
PB: predicated region body
PF: predicated region fallthrough
CT: control target
= control target key end

     0   :  { %s2279_s15 = smov 0   ;;  %s2821_s0 = inlined_call_operand.vmem [shape: f32[2,59,64], index: 0, kind: input, shape index: {}]   ;;  %s2822_s1 = inlined_call_operand.vmem [shape: f32[8,64,128], index: 1, kind: input, shape index: {}]   ;;  %s2823_s2 = inlined_call_operand.vmem [shape: f32[1,128], index: 2, kind: input, shape index: {}]   ;;  %s2824_s3 = inlined_call_operand.vmem [shape: f32[1,128], index: 3, kind: input, shape index: {}]   ;;  %s2825_s4 = inlined_call_operand.vmem [shape: f32[2,52,128], index: 4, kind: output, shape index: {}]  }
   0x1 LB: > { %s1489_s16 = sadd.s32 4294967295, %s2249_s15   ;;  %p1493_p0 = scmp.ge.s32.totalorder %s2249_s15, 1  ;;  %s2249_s15 = sphi %s2279_s15, %s14_s15  }
   0x2   : > { %p162_p1 = scmp.lt.s32.totalorder %s2249_s15, 3 }
   0x4   : > { %p163_p2 = pnand %p1493_p0, %p162_p1 }
   0x5   : > { %v1497_v0 = vld [vmem:[%s2822_s1 + $0x40] sm:$0xff] (!%p163_p2)  ;;  %v1498_v1 = vld [vmem:[%s2822_s1 + $0x48] sm:$0xff] (!%p163_p2)  ;;  %v2251_v3 = vmov (!%p163_p2), 0.0|0.0   ;;  %v1499_v6 = vld [vmem:[%s2822_s1 + $0x50] sm:$0xff] (!%p163_p2)  ;;  %p2309_p3 = scmp.lt.s32.totalorder (!%p163_p2), %s1489_s16, 1  ;;  %vm2252_vm0 = vmmov (!%p163_p2), 0  }
   0x6   : > { %166 = sbr.rel (%p163_p2) target bundleno = 376 (0x178), region = 36  ;;  %v1549_v2 = vld [vmem:[%s2822_s1 + $0x100] sm:$0xff] (!%p163_p2)  ;;  %2030 = vmatprep.subr.bf16.mxu1 (!%p163_p2), %v2251_v3  ;;  %2078 = vmatprep.subr.bf16.mxu0 (!%p163_p2), %v2251_v3  ;;  %v2031_v4 = vpack.c.bf16 (!%p163_p2), %v1498_v1, %v1497_v0  ;;  %v1550_v5 = vld [vmem:[%s2822_s1 + $0x108] sm:$0xff] (!%p163_p2)  ;;  %v1500_v7 = vld [vmem:[%s2822_s1 + $0x58] sm:$0xff] (!%p163_p2)  ;;  %v2253_v11 = vmov (!%p163_p2), 0.0   ;;  %vm229_vm1 = vcmask (!%p163_p2), 523264  }
   0x7   : > { %v2079_v8 = vpack.c.bf16 (!%p163_p2), %v1550_v5, %v1549_v2  ;;  %v1551_v9 = vld [vmem:[%s2822_s1 + $0x110] sm:$0xff] (!%p163_p2)  ;;  %v1552_v10 = vld [vmem:[%s2822_s1 + $0x118] sm:$0xff] (!%p163_p2)  ;;  %1750 = vmatprep.mubr.msk.f32.mxu1 (!%p163_p2), %vm2252_vm0, %v2253_v11  ;;  %1898 = vmatprep.mubr.msk.f32.mxu0 (!%p163_p2), %vm2252_vm0, %v2253_v11  ;;  %v2034_v12 = vpack.c.bf16 (!%p163_p2), %v1500_v7, %v1499_v6  ;;  %v1501_v14 = vld [vmem:[%s2822_s1 + $0x60] sm:$0xff] (!%p163_p2) }
   0x8   : > { %2032 = vmatpush3.bf16.msra.mxu1 (!%p163_p2), %v2031_v4  ;;  %v2082_v13 = vpack.c.bf16 (!%p163_p2), %v1552_v10, %v1551_v9  ;;  %v1502_v15 = vld [vmem:[%s2822_s1 + $0x68] sm:$0xff] (!%p163_p2)  ;;  %v1553_v16 = vld [vmem:[%s2822_s1 + $0x120] sm:$0xff] (!%p163_p2)  ;;  %v1503_v20 = vld [vmem:[%s2822_s1 + $0x70] sm:$0xff] (!%p163_p2) }
   0x9   : > { %2080 = vmatpush3.bf16.msra.mxu0 (!%p163_p2), %v2079_v8  ;;  %2033 = vmatprep.subr.bf16.mxu1 (!%p163_p2), %v2251_v3  ;;  %v1554_v17 = vld [vmem:[%s2822_s1 + $0x128] sm:$0xff] (!%p163_p2)  ;;  %v2037_v18 = vpack.c.bf16 (!%p163_p2), %v1502_v15, %v1501_v14  ;;  %v1504_v21 = vld [vmem:[%s2822_s1 + $0x78] sm:$0xff] (!%p163_p2)  ;;  %v1555_v22 = vld [vmem:[%s2822_s1 + $0x130] sm:$0xff] (!%p163_p2) }
   0xa   : > { %2081 = vmatprep.subr.bf16.mxu0 (!%p163_p2), %v2251_v3  ;;  %v2085_v19 = vpack.c.bf16 (!%p163_p2), %v1554_v17, %v1553_v16  ;;  %v1556_v23 = vld [vmem:[%s2822_s1 + $0x138] sm:$0xff] (!%p163_p2)  ;;  %v2040_v24 = vpack.c.bf16 (!%p163_p2), %v1504_v21, %v1503_v20  ;;  %v205_v26 = vld [vmem:[%s2822_s1] sm:$0xff] (!%p163_p2)  ;;  %v206_v27 = vld [vmem:[%s2822_s1 + $0x8] sm:$0xff] (!%p163_p2) }
   0xb   : > { %v2088_v25 = vpack.c.bf16 (!%p163_p2), %v1556_v23, %v1555_v22  ;;  %v1564_v28 = vld [vmem:[%s2822_s1 + $0x140] sm:$0xff] (!%p163_p2)  ;;  %v1565_v29 = vld [vmem:[%s2822_s1 + $0x148] sm:$0xff] (!%p163_p2)  ;;  %v2043_v31 = vpack.c.bf16 (!%p163_p2), %v206_v27, %v205_v26  ;;  %v207_v34 = vld [vmem:[%s2822_s1 + $0x10] sm:$0xff] (!%p163_p2) }
   0xc   : > { %2035 = vmatpush3.bf16.msra.mxu1 (!%p163_p2), %v2034_v12  ;;  %v2091_v33 = vpack.c.bf16 (!%p163_p2), %v1565_v29, %v1564_v28  ;;  %v208_v35 = vld [vmem:[%s2822_s1 + $0x18] sm:$0xff] (!%p163_p2)  ;;  %v1566_v36 = vld [vmem:[%s2822_s1 + $0x150] sm:$0xff] (!%p163_p2)  ;;  %v209_v42 = vld [vmem:[%s2822_s1 + $0x20] sm:$0xff] (!%p163_p2) }
   0xd   : > { %s2828_s16 = smov (!%p2309_p3, %s1489_s16), 1  ;;  %2083 = vmatpush3.bf16.msra.mxu0 %v2082_v13  ;;  %2036 = vmatprep.subr.bf16.mxu1 %v2251_v3  ;;  %v1567_v37 = vld [vmem:[%s2822_s1 + $0x158] sm:$0xff]  ;;  %v2046_v40 = vpack.c.bf16 %v208_v35, %v207_v34  ;;  %v210_v43 = vld [vmem:[%s2822_s1 + $0x28] sm:$0xff]  ;;  %v1568_v44 = vld [vmem:[%s2822_s1 + $0x160] sm:$0xff] }
   0xe   : > { %2084 = vmatprep.subr.bf16.mxu0 %v2251_v3  ;;  %s1613_s26 = sshll.u32 %s2828_s16, 6  ;;  %v2094_v41 = vpack.c.bf16 %v1567_v37, %v1566_v36  ;;  %v1569_v45 = vld [vmem:[%s2822_s1 + $0x168] sm:$0xff]  ;;  %v2049_v48 = vpack.c.bf16 %v210_v43, %v209_v42  ;;  %v211_v50 = vld [vmem:[%s2822_s1 + $0x30] sm:$0xff]  ;;  %v212_v51 = vld [vmem:[%s2822_s1 + $0x38] sm:$0xff] }
   0xf   : > { %s2362_s29 = scalar_lea.vmem %s2821_s0, %s1613_s26  ;;  %v2097_v49 = vpack.c.bf16 %v1569_v45, %v1568_v44  ;;  %v1570_v52 = vld [vmem:[%s2822_s1 + $0x170] sm:$0xff]  ;;  %v1571_v53 = vld [vmem:[%s2822_s1 + $0x178] sm:$0xff]  ;;  %v2052_v56 = vpack.c.bf16 %v212_v51, %v211_v50  ;;  %v1519_v0 = vld [vmem:[%s2822_s1 + $0x80] sm:$0xff] }
  0x10   : > { %2038 = vmatpush3.bf16.msra.mxu1 %v2037_v18  ;;  %v213_v30 = vld [vmem:[%s2362_s29 + $0x1] sm:$0xff]  ;;  %v214_v38 = vld [vmem:[%s2362_s29 + $0x9] sm:$0xff]  ;;  %v215_v46 = vld [vmem:[%s2362_s29 + $0x11] sm:$0xff]  ;;  %v2100_v57 = vpack.c.bf16 %v1571_v53, %v1570_v52 }
  0x11   : > { %2086 = vmatpush3.bf16.msra.mxu0 %v2085_v19  ;;  %2039 = vmatprep.subr.bf16.mxu1 %v2251_v3  ;;  %v760_v32 = vld [vmem:[%s2362_s29 + $0x4] sm:$0xff]  ;;  %v761_v39 = vld [vmem:[%s2362_s29 + $0xc] sm:$0xff]  ;;  %v762_v47 = vld [vmem:[%s2362_s29 + $0x14] sm:$0xff] }
  0x12   : > { %2087 = vmatprep.subr.bf16.mxu0 %v2251_v3  ;;  %v216_v54 = vld [vmem:[%s2362_s29 + $0x19] sm:$0xff]  ;;  %v217_v58 = vld [vmem:[%s2362_s29 + $0x21] sm:$0xff]  ;;  %v218_v60 = vld [vmem:[%s2362_s29 + $0x29] sm:$0xff] }
  0x13   : > { %v763_v55 = vld [vmem:[%s2362_s29 + $0x1c] sm:$0xff]  ;;  %v764_v59 = vld [vmem:[%s2362_s29 + $0x24] sm:$0xff]  ;;  %v765_v61 = vld [vmem:[%s2362_s29 + $0x2c] sm:$0xff] }
  0x14   : > { %2041 = vmatpush3.bf16.msra.mxu1 %v2040_v24  ;;  %v219_v62 = vld [vmem:[%s2362_s29 + $0x31] sm:$0xf]  ;;  %v1520_v1 = vld [vmem:[%s2822_s1 + $0x88] sm:$0xff]  ;;  %v1579_v2 = vld [vmem:[%s2822_s1 + $0x180] sm:$0xff] }
  0x15   : > { %2089 = vmatpush3.bf16.msra.mxu0 %v2088_v25  ;;  %2042 = vmatprep.subr.bf16.mxu1 %v2251_v3  ;;  %v766_v63 = vld [vmem:[%s2362_s29 + $0x34] sm:$0xf]  ;;  %v1580_v4 = vld [vmem:[%s2822_s1 + $0x188] sm:$0xff]  ;;  %v198_v5 = vld [vmem:[%s2362_s29] sm:$0xff]  ;;  %v2055_v6 = vpack.c.bf16 %v1520_v1, %v1519_v0 }
  0x16   : > { %2090 = vmatprep.subr.bf16.mxu0 %v2251_v3  ;;  %v904_v7 = vld [vmem:[%s2362_s29 + $0x5] sm:$0xff]  ;;  %v2103_v8 = vpack.c.bf16 %v1580_v4, %v1579_v2  ;;  %v1521_v9 = vld [vmem:[%s2822_s1 + $0x90] sm:$0xff]  ;;  %v1522_v10 = vld [vmem:[%s2822_s1 + $0x98] sm:$0xff] }
  0x17   : > { %1751 = vmatmul.mubr.msk.f32.vlgmr.msra.gmra.mrb[0].mxu1 %vm229_vm1, %v213_v30  ;;  %v1581_v12 = vld [vmem:[%s2822_s1 + $0x190] sm:$0xff]  ;;  %v1582_v13 = vld [vmem:[%s2822_s1 + $0x198] sm:$0xff]  ;;  %v199_v14 = vld [vmem:[%s2362_s29 + $0x8] sm:$0xff]  ;;  %v2058_v16 = vpack.c.bf16 %v1522_v10, %v1521_v9 }
  0x18   : > { %1899 = vmatmul.mubr.msk.f32.vlgmr.msra.gmra.mrb[0].mxu0 %vm229_vm1, %v760_v32  ;;  %2044 = vmatpush3.bf16.msra.mxu1 %v2043_v31  ;;  %v905_v15 = vld [vmem:[%s2362_s29 + $0xd] sm:$0xff]  ;;  %v2106_v17 = vpack.c.bf16 %v1582_v13, %v1581_v12  ;;  %v1523_v18 = vld [vmem:[%s2822_s1 + $0xa0] sm:$0xff]  ;;  %v906_v23 = vld [vmem:[%s2362_s29 + $0x15] sm:$0xff] }
  0x19   : > { %2092 = vmatpush3.bf16.msra.mxu0 %v2091_v33  ;;  %1753 = vmatprep.mubr.msk.f32.mxu1 %vm2252_vm0, %v2253_v11  ;;  %v1524_v19 = vld [vmem:[%s2822_s1 + $0xa8] sm:$0xff]  ;;  %v1583_v20 = vld [vmem:[%s2822_s1 + $0x1a0] sm:$0xff]  ;;  %v200_v22 = vld [vmem:[%s2362_s29 + $0x10] sm:$0xff] }
  0x1a   : > { %1901 = vmatprep.mubr.msk.f32.mxu0 %vm2252_vm0, %v2253_v11  ;;  %2045 = vmatprep.subr.bf16.mxu1 %v2251_v3  ;;  %v1584_v21 = vld [vmem:[%s2822_s1 + $0x1a8] sm:$0xff]  ;;  %v2061_v24 = vpack.c.bf16 %v1524_v19, %v1523_v18  ;;  %v1525_v26 = vld [vmem:[%s2822_s1 + $0xb0] sm:$0xff]  ;;  %v1526_v27 = vld [vmem:[%s2822_s1 + $0xb8] sm:$0xff] }
  0x1b   : > { %1754 = vmatmul.mubr.msk.f32.gmra.mrb[2].mxu1 %vm229_vm1, %v214_v38  ;;  %2093 = vmatprep.subr.bf16.mxu0 %v2251_v3  ;;  %v2109_v25 = vpack.c.bf16 %v1584_v21, %v1583_v20  ;;  %v1585_v28 = vld [vmem:[%s2822_s1 + $0x1b0] sm:$0xff]  ;;  %v1586_v29 = vld [vmem:[%s2822_s1 + $0x1b8] sm:$0xff]  ;;  %v2064_v32 = vpack.c.bf16 %v1526_v27, %v1525_v26  ;;  %v202_v34 = vld [vmem:[%s2362_s29 + $0x20] sm:$0xff] }
  0x1c   : > { %1902 = vmatmul.mubr.msk.f32.gmra.mrb[2].mxu0 %vm229_vm1, %v761_v39  ;;  %1756 = vmatprep.mubr.msk.f32.mxu1 %vm2252_vm0, %v2253_v11  ;;  %v201_v30 = vld [vmem:[%s2362_s29 + $0x18] sm:$0xff]  ;;  %v2112_v33 = vpack.c.bf16 %v1586_v29, %v1585_v28  ;;  %v908_v35 = vld [vmem:[%s2362_s29 + $0x25] sm:$0xff]  ;;  %v909_v37 = vld [vmem:[%s2362_s29 + $0x2d] sm:$0xff] }
  0x1d   : > { %1904 = vmatprep.mubr.msk.f32.mxu0 %vm2252_vm0, %v2253_v11  ;;  %2047 = vmatpush3.bf16.msra.mxu1 %v2046_v40  ;;  %v907_v31 = vld [vmem:[%s2362_s29 + $0x1d] sm:$0xff]  ;;  %v203_v36 = vld [vmem:[%s2362_s29 + $0x28] sm:$0xff]  ;;  %v204_v38 = vld [vmem:[%s2362_s29 + $0x30] sm:$0xf] }
  0x1e   : > { %2095 = vmatpush3.bf16.msra.mxu0 %v2094_v41  ;;  %2048 = vmatprep.subr.bf16.mxu1 %v2251_v3  ;;  %v910_v39 = vld [vmem:[%s2362_s29 + $0x35] sm:$0xf]  ;;  %v1534_v40 = vld [vmem:[%s2822_s1 + $0xc0] sm:$0xff]  ;;  %v1535_v41 = vld [vmem:[%s2822_s1 + $0xc8] sm:$0xff] }
  0x1f   : > { %1757 = vmatmul.mubr.msk.f32.gmra.mrb[4].mxu1 %vm229_vm1, %v215_v46  ;;  %2096 = vmatprep.subr.bf16.mxu0 %v2251_v3  ;;  %v1594_v42 = vld [vmem:[%s2822_s1 + $0x1c0] sm:$0xff]  ;;  %v1595_v43 = vld [vmem:[%s2822_s1 + $0x1c8] sm:$0xff]  ;;  %v2067_v45 = vpack.c.bf16 %v1535_v41, %v1534_v40  ;;  %v1596_v50 = vld [vmem:[%s2822_s1 + $0x1d0] sm:$0xff] }
  0x20   : > { %1905 = vmatmul.mubr.msk.f32.gmra.mrb[4].mxu0 %vm229_vm1, %v762_v47  ;;  %1759 = vmatprep.mubr.msk.f32.mxu1 %vm2252_vm0, %v2253_v11  ;;  %v472_v44 = vld [vmem:[%s2362_s29 + $0x2] sm:$0xff]  ;;  %v2115_v47 = vpack.c.bf16 %v1595_v43, %v1594_v42  ;;  %v1597_v51 = vld [vmem:[%s2822_s1 + $0x1d8] sm:$0xff]  ;;  %v473_v52 = vld [vmem:[%s2362_s29 + $0xa] sm:$0xff] }
  0x21   : > { %1907 = vmatprep.mubr.msk.f32.mxu0 %vm2252_vm0, %v2253_v11  ;;  %2050 = vmatpush3.bf16.msra.mxu1 %v2049_v48  ;;  %v1048_v46 = vld [vmem:[%s2362_s29 + $0x6] sm:$0xff]  ;;  %v1536_v48 = vld [vmem:[%s2822_s1 + $0xd0] sm:$0xff]  ;;  %v1541_v1 = vld [vmem:[%s2822_s1 + $0xf8] sm:$0xff] }
  0x22   : > { %2098 = vmatpush3.bf16.msra.mxu0 %v2097_v49  ;;  %2051 = vmatprep.subr.bf16.mxu1 %v2251_v3  ;;  %v1537_v49 = vld [vmem:[%s2822_s1 + $0xd8] sm:$0xff]  ;;  %v1049_v53 = vld [vmem:[%s2362_s29 + $0xe] sm:$0xff]  ;;  %v476_v9 = vld [vmem:[%s2362_s29 + $0x22] sm:$0xff] }
  0x23   : > { %1760 = vmatmul.mubr.msk.f32.gmra.mrb[6].mxu1 %vm229_vm1, %v216_v54  ;;  %2099 = vmatprep.subr.bf16.mxu0 %v2251_v3  ;;  %v2070_v54 = vpack.c.bf16 %v1537_v49, %v1536_v48  ;;  %v1540_v0 = vld [vmem:[%s2822_s1 + $0xf0] sm:$0xff]  ;;  %v1601_v4 = vld [vmem:[%s2822_s1 + $0x1f8] sm:$0xff]  ;;  %v1052_v10 = vld [vmem:[%s2362_s29 + $0x26] sm:$0xff] }
  0x24   : > { %1908 = vmatmul.mubr.msk.f32.gmra.mrb[6].mxu0 %vm229_vm1, %v763_v55  ;;  %1762 = vmatprep.mubr.msk.f32.mxu1 %vm2252_vm0, %v2253_v11  ;;  %v2118_v55 = vpack.c.bf16 %v1597_v51, %v1596_v50  ;;  %v1600_v2 = vld [vmem:[%s2822_s1 + $0x1f0] sm:$0xff]  ;;  %v619_v21 = vld [vmem:[%s2362_s29 + $0x1b] sm:$0xff] }
  0x25   : > { %1910 = vmatprep.mubr.msk.f32.mxu0 %vm2252_vm0, %v2253_v11  ;;  %2053 = vmatpush3.bf16.msra.mxu1 %v2052_v56  ;;  %v1538_v56 = vld [vmem:[%s2822_s1 + $0xe0] sm:$0xff]  ;;  %v1053_v12 = vld [vmem:[%s2362_s29 + $0x2e] sm:$0xff]  ;;  %v1194_v20 = vld [vmem:[%s2362_s29 + $0x17] sm:$0xff] }
  0x26   : > { %2101 = vmatpush3.bf16.msra.mxu0 %v2100_v57  ;;  %2054 = vmatprep.subr.bf16.mxu1 %v2251_v3  ;;  %v1539_v57 = vld [vmem:[%s2822_s1 + $0xe8] sm:$0xff]  ;;  %v478_v13 = vld [vmem:[%s2362_s29 + $0x32] sm:$0xf]  ;;  %v1198_v28 = vld [vmem:[%s2362_s29 + $0x37] sm:$0xf] }
  0x27   : > { %1763 = vmatmul.mubr.msk.f32.gmra.mrb[8].mxu1 %vm229_vm1, %v217_v58  ;;  %2102 = vmatprep.subr.bf16.mxu0 %v2251_v3  ;;  %v1598_v58 = vld [vmem:[%s2822_s1 + $0x1e0] sm:$0xff]  ;;  %v1193_v18 = vld [vmem:[%s2362_s29 + $0xf] sm:$0xff] }
  0x28   : > { %1911 = vmatmul.mubr.msk.f32.gmra.mrb[8].mxu0 %vm229_vm1, %v764_v59  ;;  %1765 = vmatprep.mubr.msk.f32.mxu1 %vm2252_vm0, %v2253_v11  ;;  %v1599_v59 = vld [vmem:[%s2822_s1 + $0x1e8] sm:$0xff]  ;;  %v618_v19 = vld [vmem:[%s2362_s29 + $0x13] sm:$0xff] }
  0x29   : > { %1913 = vmatprep.mubr.msk.f32.mxu0 %vm2252_vm0, %v2253_v11  ;;  %v1197_v26 = vld [vmem:[%s2362_s29 + $0x2f] sm:$0xff] }
  0x2a   : > { %v622_v27 = vld [vmem:[%s2362_s29 + $0x33] sm:$0xf] }
  0x2b   : > { %1766 = vmatmul.mubr.msk.f32.gmra.mrb[10].mxu1 %vm229_vm1, %v218_v60  ;;  %v474_v60 = vld [vmem:[%s2362_s29 + $0x12] sm:$0xff] }
  0x2c   : > { %1914 = vmatmul.mubr.msk.f32.gmra.mrb[10].mxu0 %vm229_vm1, %v765_v61  ;;  %1768 = vmatprep.mubr.msk.f32.mxu1 %vm2252_vm0, %v2253_v11  ;;  %v1050_v61 = vld [vmem:[%s2362_s29 + $0x16] sm:$0xff] }
  0x2d   : > { %1916 = vmatprep.mubr.msk.f32.mxu0 %vm2252_vm0, %v2253_v11 }
  0x2f   : > { %1769 = vmatmul.mubr.msk.f32.gmra.mrb[12].mxu1 %vm229_vm1, %v219_v62  ;;  %v2073_v62 = vpack.c.bf16 %v1539_v57, %v1538_v56 }
  0x30   : > { %1917 = vmatmul.mubr.msk.f32.gmra.mrb[12].mxu0 %vm229_vm1, %v766_v63  ;;  %1787 = vmatprep.mubr.msk.f32.mxu1 %vm2252_vm0, %v2253_v11  ;;  %v2121_v63 = vpack.c.bf16 %v1599_v59, %v1598_v58 }
  0x31   : > { %1935 = vmatprep.mubr.msk.f32.mxu0 %vm2252_vm0, %v2253_v11 }
  0x33   : > { %1788 = vmatmul.mubr.msk.f32.vlgmr.msra.gmra.mrb[0].mxu1 %vm229_vm1, %v198_v5  ;;  %v475_v5 = vld [vmem:[%s2362_s29 + $0x1a] sm:$0xff] }
  0x34   : > { %1936 = vmatmul.mubr.msk.f32.vlgmr.msra.gmra.mrb[0].mxu0 %vm229_vm1, %v904_v7  ;;  %2056 = vmatpush3.bf16.msra.mxu1 %v2055_v6  ;;  %v1051_v6 = vld [vmem:[%s2362_s29 + $0x1e] sm:$0xff]  ;;  %v2076_v7 = vpack.c.bf16 %v1541_v1, %v1540_v0 }
  0x35   : > { %2104 = vmatpush3.bf16.msra.mxu0 %v2103_v8  ;;  %1790 = vmatprep.mubr.msk.f32.mxu1 %vm2252_vm0, %v2253_v11  ;;  %v2124_v8 = vpack.c.bf16 %v1601_v4, %v1600_v2 }
  0x36   : > { %1938 = vmatprep.mubr.msk.f32.mxu0 %vm2252_vm0, %v2253_v11  ;;  %2057 = vmatprep.subr.bf16.mxu1 %v2251_v3 }
  0x37   : > { %1791 = vmatmul.mubr.msk.f32.gmra.mrb[2].mxu1 %vm229_vm1, %v199_v14  ;;  %2105 = vmatprep.subr.bf16.mxu0 %v2251_v3  ;;  %v1054_v14 = vld [vmem:[%s2362_s29 + $0x36] sm:$0xf] }
  0x38   : > { %1939 = vmatmul.mubr.msk.f32.gmra.mrb[2].mxu0 %vm229_vm1, %v905_v15  ;;  %1793 = vmatprep.mubr.msk.f32.mxu1 %vm2252_vm0, %v2253_v11  ;;  %v616_v15 = vld [vmem:[%s2362_s29 + $0x3] sm:$0xff] }
  0x39   : > { %1941 = vmatprep.mubr.msk.f32.mxu0 %vm2252_vm0, %v2253_v11  ;;  %2059 = vmatpush3.bf16.msra.mxu1 %v2058_v16  ;;  %v1192_v16 = vld [vmem:[%s2362_s29 + $0x7] sm:$0xff] }
  0x3a   : > { %2107 = vmatpush3.bf16.msra.mxu0 %v2106_v17  ;;  %2060 = vmatprep.subr.bf16.mxu1 %v2251_v3  ;;  %v617_v17 = vld [vmem:[%s2362_s29 + $0xb] sm:$0xff] }
  0x3b   : > { %1794 = vmatmul.mubr.msk.f32.gmra.mrb[4].mxu1 %vm229_vm1, %v200_v22  ;;  %2108 = vmatprep.subr.bf16.mxu0 %v2251_v3  ;;  %v1195_v22 = vld [vmem:[%s2362_s29 + $0x1f] sm:$0xff] }
  0x3c   : > { %1942 = vmatmul.mubr.msk.f32.gmra.mrb[4].mxu0 %vm229_vm1, %v906_v23  ;;  %1796 = vmatprep.mubr.msk.f32.mxu1 %vm2252_vm0, %v2253_v11  ;;  %v620_v23 = vld [vmem:[%s2362_s29 + $0x23] sm:$0xff] }
  0x3d   : > { %1944 = vmatprep.mubr.msk.f32.mxu0 %vm2252_vm0, %v2253_v11  ;;  %2062 = vmatpush3.bf16.msra.mxu1 %v2061_v24  ;;  %v1196_v24 = vld [vmem:[%s2362_s29 + $0x27] sm:$0xff] }
  0x3e   : > { %2110 = vmatpush3.bf16.msra.mxu0 %v2109_v25  ;;  %2063 = vmatprep.subr.bf16.mxu1 %v2251_v3  ;;  %v621_v25 = vld [vmem:[%s2362_s29 + $0x2b] sm:$0xff] }
  0x3f   : > { %1797 = vmatmul.mubr.msk.f32.gmra.mrb[6].mxu1 %vm229_vm1, %v201_v30  ;;  %2111 = vmatprep.subr.bf16.mxu0 %v2251_v3 }
  0x40   : > { %1945 = vmatmul.mubr.msk.f32.gmra.mrb[6].mxu0 %vm229_vm1, %v907_v31  ;;  %1799 = vmatprep.mubr.msk.f32.mxu1 %vm2252_vm0, %v2253_v11  ;;  %v2756_v31 = vld [vmem:[%s2823_s2] ss:$0 sm:$0xff] }
  0x41   : > { %1947 = vmatprep.mubr.msk.f32.mxu0 %vm2252_vm0, %v2253_v11  ;;  %2065 = vmatpush3.bf16.msra.mxu1 %v2064_v32 }
  0x42   : > { %2113 = vmatpush3.bf16.msra.mxu0 %v2112_v33  ;;  %2066 = vmatprep.subr.bf16.mxu1 %v2251_v3 }
  0x43   : > { %1800 = vmatmul.mubr.msk.f32.gmra.mrb[8].mxu1 %vm229_vm1, %v202_v34  ;;  %2114 = vmatprep.subr.bf16.mxu0 %v2251_v3 }
  0x44   : > { %1948 = vmatmul.mubr.msk.f32.gmra.mrb[8].mxu0 %vm229_vm1, %v908_v35  ;;  %1802 = vmatprep.mubr.msk.f32.mxu1 %vm2252_vm0, %v2253_v11  ;;  %v2761_v35 = vld [vmem:[%s2824_s3] ss:$0 sm:$0xff] }
  0x45   : > { %1950 = vmatprep.mubr.msk.f32.mxu0 %vm2252_vm0, %v2253_v11 }
  0x47   : > { %1803 = vmatmul.mubr.msk.f32.gmra.mrb[10].mxu1 %vm229_vm1, %v203_v36 }
  0x48   : > { %1951 = vmatmul.mubr.msk.f32.gmra.mrb[10].mxu0 %vm229_vm1, %v909_v37  ;;  %1805 = vmatprep.mubr.msk.f32.mxu1 %vm2252_vm0, %v2253_v11 }
  0x49   : > { %1953 = vmatprep.mubr.msk.f32.mxu0 %vm2252_vm0, %v2253_v11 }
  0x4b   : > { %1806 = vmatmul.mubr.msk.f32.gmra.mrb[12].mxu1 %vm229_vm1, %v204_v38 }
  0x4c   : > { %1954 = vmatmul.mubr.msk.f32.gmra.mrb[12].mxu0 %vm229_vm1, %v910_v39  ;;  %1824 = vmatprep.mubr.msk.f32.mxu1 %vm2252_vm0, %v2253_v11 }
  0x4d   : > { %1972 = vmatprep.mubr.msk.f32.mxu0 %vm2252_vm0, %v2253_v11 }
  0x4f   : > { %1825 = vmatmul.mubr.msk.f32.vlgmr.msra.gmra.mrb[0].mxu1 %vm229_vm1, %v472_v44 }
  0x50   : > { %1973 = vmatmul.mubr.msk.f32.vlgmr.msra.gmra.mrb[0].mxu0 %vm229_vm1, %v1048_v46  ;;  %2068 = vmatpush3.bf16.msra.mxu1 %v2067_v45 }
  0x51   : > { %2116 = vmatpush3.bf16.msra.mxu0 %v2115_v47  ;;  %1827 = vmatprep.mubr.msk.f32.mxu1 %vm2252_vm0, %v2253_v11 }
  0x52   : > { %1975 = vmatprep.mubr.msk.f32.mxu0 %vm2252_vm0, %v2253_v11  ;;  %2069 = vmatprep.subr.bf16.mxu1 %v2251_v3 }
  0x53   : > { %1828 = vmatmul.mubr.msk.f32.gmra.mrb[2].mxu1 %vm229_vm1, %v473_v52  ;;  %2117 = vmatprep.subr.bf16.mxu0 %v2251_v3 }
  0x54   : > { %1976 = vmatmul.mubr.msk.f32.gmra.mrb[2].mxu0 %vm229_vm1, %v1049_v53  ;;  %1830 = vmatprep.mubr.msk.f32.mxu1 %vm2252_vm0, %v2253_v11 }
  0x55   : > { %1978 = vmatprep.mubr.msk.f32.mxu0 %vm2252_vm0, %v2253_v11  ;;  %2071 = vmatpush3.bf16.msra.mxu1 %v2070_v54 }
  0x56   : > { %2119 = vmatpush3.bf16.msra.mxu0 %v2118_v55  ;;  %2072 = vmatprep.subr.bf16.mxu1 %v2251_v3 }
  0x57   : > { %1831 = vmatmul.mubr.msk.f32.gmra.mrb[4].mxu1 %vm229_vm1, %v474_v60  ;;  %2120 = vmatprep.subr.bf16.mxu0 %v2251_v3 }
  0x58   : > { %1979 = vmatmul.mubr.msk.f32.gmra.mrb[4].mxu0 %vm229_vm1, %v1050_v61  ;;  %1833 = vmatprep.mubr.msk.f32.mxu1 %vm2252_vm0, %v2253_v11 }
  0x59   : > { %1981 = vmatprep.mubr.msk.f32.mxu0 %vm2252_vm0, %v2253_v11  ;;  %2074 = vmatpush3.bf16.msra.mxu1 %v2073_v62 }
  0x5a   : > { %2122 = vmatpush3.bf16.msra.mxu0 %v2121_v63  ;;  %2075 = vmatprep.subr.bf16.mxu1 %v2251_v3 }
  0x5b   : > { %1834 = vmatmul.mubr.msk.f32.gmra.mrb[6].mxu1 %vm229_vm1, %v475_v5  ;;  %2123 = vmatprep.subr.bf16.mxu0 %v2251_v3  ;;  %v477_v3 = vld [vmem:[%s2362_s29 + $0x2a] sm:$0xff]  ;;  %s2217_s29 = smul.u32 56, %s2828_s16 }
  0x5c   : > { %1982 = vmatmul.mubr.msk.f32.gmra.mrb[6].mxu0 %vm229_vm1, %v1051_v6  ;;  %1836 = vmatprep.mubr.msk.f32.mxu1 %vm2252_vm0, %v2253_v11 }
  0x5d   : > { %1984 = vmatprep.mubr.msk.f32.mxu0 %vm2252_vm0, %v2253_v11  ;;  %2077 = vmatpush3.bf16.msra.mxu1 %v2076_v7  ;;  %s2805_s16 = scalar_lea.vmem %s2825_s4, %s2217_s29 }
  0x5e   : > { %2125 = vmatpush3.bf16.msra.mxu0 %v2124_v8 }
  0x5f   : > { %1837 = vmatmul.mubr.msk.f32.gmra.mrb[8].mxu1 %vm229_vm1, %v476_v9 }
  0x60   : > { %1985 = vmatmul.mubr.msk.f32.gmra.mrb[8].mxu0 %vm229_vm1, %v1052_v10  ;;  %1839 = vmatprep.mubr.msk.f32.mxu1 %vm2252_vm0, %v2253_v11 }
  0x61   : > { %1987 = vmatprep.mubr.msk.f32.mxu0 %vm2252_vm0, %v2253_v11 }
  0x63   : > { %1840 = vmatmul.mubr.msk.f32.gmra.mrb[10].mxu1 %vm229_vm1, %v477_v3 }
  0x64   : > { %1988 = vmatmul.mubr.msk.f32.gmra.mrb[10].mxu0 %vm229_vm1, %v1053_v12  ;;  %1842 = vmatprep.mubr.msk.f32.mxu1 %vm2252_vm0, %v2253_v11 }
  0x65   : > { %1990 = vmatprep.mubr.msk.f32.mxu0 %vm2252_vm0, %v2253_v11 }
  0x67   : > { %1843 = vmatmul.mubr.msk.f32.gmra.mrb[12].mxu1 %vm229_vm1, %v478_v13 }
  0x68   : > { %1991 = vmatmul.mubr.msk.f32.gmra.mrb[12].mxu0 %vm229_vm1, %v1054_v14  ;;  %1861 = vmatprep.mubr.msk.f32.mxu1 %vm2252_vm0, %v2253_v11 }
  0x69   : > { %2009 = vmatprep.mubr.msk.f32.mxu0 %vm2252_vm0, %v2253_v11 }
  0x6b   : > { %1862 = vmatmul.mubr.msk.f32.vlgmr.msra.gmra.mrb[0].mxu1 %vm229_vm1, %v616_v15 }
  0x6c   : > { %2010 = vmatmul.mubr.msk.f32.vlgmr.msra.gmra.mrb[0].mxu0 %vm229_vm1, %v1192_v16  ;;  %1864 = vmatprep.mubr.msk.f32.mxu1 %vm2252_vm0, %v2253_v11 }
  0x6d   : > { %2012 = vmatprep.mubr.msk.f32.mxu0 %vm2252_vm0, %v2253_v11 }
  0x6f   : > { %1865 = vmatmul.mubr.msk.f32.gmra.mrb[2].mxu1 %vm229_vm1, %v617_v17 }
  0x70   : > { %2013 = vmatmul.mubr.msk.f32.gmra.mrb[2].mxu0 %vm229_vm1, %v1193_v18  ;;  %1867 = vmatprep.mubr.msk.f32.mxu1 %vm2252_vm0, %v2253_v11 }
  0x71   : > { %2015 = vmatprep.mubr.msk.f32.mxu0 %vm2252_vm0, %v2253_v11 }
  0x73   : > { %1868 = vmatmul.mubr.msk.f32.gmra.mrb[4].mxu1 %vm229_vm1, %v618_v19 }
  0x74   : > { %2016 = vmatmul.mubr.msk.f32.gmra.mrb[4].mxu0 %vm229_vm1, %v1194_v20  ;;  %1870 = vmatprep.mubr.msk.f32.mxu1 %vm2252_vm0, %v2253_v11 }
  0x75   : > { %2018 = vmatprep.mubr.msk.f32.mxu0 %vm2252_vm0, %v2253_v11 }
  0x77   : > { %1871 = vmatmul.mubr.msk.f32.gmra.mrb[6].mxu1 %vm229_vm1, %v619_v21 }
  0x78   : > { %2019 = vmatmul.mubr.msk.f32.gmra.mrb[6].mxu0 %vm229_vm1, %v1195_v22  ;;  %1873 = vmatprep.mubr.msk.f32.mxu1 %vm2252_vm0, %v2253_v11 }
  0x79   : > { %2021 = vmatprep.mubr.msk.f32.mxu0 %vm2252_vm0, %v2253_v11 }
  0x7b   : > { %1874 = vmatmul.mubr.msk.f32.gmra.mrb[8].mxu1 %vm229_vm1, %v620_v23 }
  0x7c   : > { %2022 = vmatmul.mubr.msk.f32.gmra.mrb[8].mxu0 %vm229_vm1, %v1196_v24  ;;  %1876 = vmatprep.mubr.msk.f32.mxu1 %vm2252_vm0, %v2253_v11 }
  0x7d   : > { %2024 = vmatprep.mubr.msk.f32.mxu0 %vm2252_vm0, %v2253_v11 }
  0x7f   : > { %1877 = vmatmul.mubr.msk.f32.gmra.mrb[10].mxu1 %vm229_vm1, %v621_v25 }
  0x80   : > { %2025 = vmatmul.mubr.msk.f32.gmra.mrb[10].mxu0 %vm229_vm1, %v1197_v26  ;;  %1879 = vmatprep.mubr.msk.f32.mxu1 %vm2252_vm0, %v2253_v11 }
  0x81   : > { %2027 = vmatprep.mubr.msk.f32.mxu0 %vm2252_vm0, %v2253_v11 }
  0x83   : > { %1880 = vmatmul.mubr.msk.f32.gmra.mrb[12].mxu1 %vm229_vm1, %v622_v27 }
  0x84   : > { %2028 = vmatmul.mubr.msk.f32.gmra.mrb[12].mxu0 %vm229_vm1, %v1198_v28 }
 0x13e   : > { %v719_v29 = vpop.f32.mrb[0].mxu1 }
 0x13f   : > { %v1295_v30 = vpop.f32.mrb[0].mxu0  ;;  %v1863_v32 = vpop.f32.mrb[1].mxu1 }
 0x140   : > { %v2126_v33 = vadd.f32 %v1295_v30, %v719_v29  ;;  %v2011_v34 = vpop.f32.mrb[1].mxu0 }
 0x142   : > { %v1343_v11 = vmul.f32 %v2126_v33, %v2756_v31  ;;  %v724_v36 = vpop.f32.mrb[2].mxu1 }
 0x143   : > { %v1300_v37 = vpop.f32.mrb[2].mxu0  ;;  %v1866_v38 = vpop.f32.mrb[3].mxu1 }
 0x144   : > { %v2765_v39 = vadd.f32 %v2761_v35, %v1343_v11  ;;  %v2127_v40 = vadd.f32 %v1300_v37, %v724_v36  ;;  %v2014_v41 = vpop.f32.mrb[3].mxu0 }
 0x146   : > { %v1371_v42 = vmul.f32 0.044715, %v2765_v39  ;;  %v1344_v43 = vmul.f32 %v2127_v40, %v2756_v31  ;;  %v729_v44 = vpop.f32.mrb[4].mxu1  ;;  %v1364_v41 = vmul.f32 0.5, %v2765_v39 }
 0x147   : > { %v1305_v45 = vpop.f32.mrb[4].mxu0  ;;  %v1869_v46 = vpop.f32.mrb[5].mxu1 }
 0x148   : > { %v1378_v47 = vmul.f32 %v1371_v42, %v2765_v39  ;;  %v2771_v48 = vadd.f32 %v2761_v35, %v1344_v43  ;;  %v2128_v49 = vadd.f32 %v1305_v45, %v729_v44  ;;  %v2017_v50 = vpop.f32.mrb[5].mxu0 }
 0x14a   : > { %v1385_v51 = vmul.f32 %v1378_v47, %v2765_v39  ;;  %v1372_v52 = vmul.f32 0.044715, %v2771_v48  ;;  %v1345_v53 = vmul.f32 %v2128_v49, %v2756_v31  ;;  %v734_v54 = vpop.f32.mrb[6].mxu1 }
 0x14b   : > { %v1310_v55 = vpop.f32.mrb[6].mxu0  ;;  %v1872_v56 = vpop.f32.mrb[7].mxu1 }
 0x14c   : > { %v1392_v57 = vadd.f32 %v1385_v51, %v2765_v39  ;;  %v1379_v58 = vmul.f32 %v1372_v52, %v2771_v48  ;;  %v2779_v59 = vadd.f32 %v2761_v35, %v1345_v53  ;;  %v2129_v60 = vadd.f32 %v1310_v55, %v734_v54  ;;  %v2020_v61 = vpop.f32.mrb[7].mxu0 }
 0x14d   : > { %v1365_v39 = vmul.f32 0.5, %v2771_v48 }
 0x14e   : > { %v1399_v62 = vmul.f32 0.7978846, %v1392_v57  ;;  %v1386_v63 = vmul.f32 %v1379_v58, %v2771_v48  ;;  %v1373_v0 = vmul.f32 0.044715, %v2779_v59  ;;  %v739_v1 = vpop.f32.mrb[8].mxu1  ;;  %v1346_v2 = vmul.f32 %v2129_v60, %v2756_v31 }
 0x14f   : > { %v1315_v4 = vpop.f32.mrb[8].mxu0  ;;  %v1875_v5 = vpop.f32.mrb[9].mxu1 }
 0x150   : > { %2229 = vtanh.f32 %v1399_v62  ;;  %v1393_v6 = vadd.f32 %v1386_v63, %v2771_v48  ;;  %v1380_v7 = vmul.f32 %v1373_v0, %v2779_v59  ;;  %v2130_v8 = vadd.f32 %v1315_v4, %v739_v1  ;;  %v2023_v9 = vpop.f32.mrb[9].mxu0 }
 0x151   : > { %v2787_v10 = vadd.f32 %v2761_v35, %v1346_v2 }
 0x152   : > { %v1400_v3 = vmul.f32 0.7978846, %v1393_v6  ;;  %v1387_v12 = vmul.f32 %v1380_v7, %v2779_v59  ;;  %v1347_v13 = vmul.f32 %v2130_v8, %v2756_v31  ;;  %v744_v14 = vpop.f32.mrb[10].mxu1 }
 0x153   : > { %v1374_v15 = vmul.f32 0.044715, %v2787_v10  ;;  %v1320_v16 = vpop.f32.mrb[10].mxu0  ;;  %v1878_v17 = vpop.f32.mrb[11].mxu1  ;;  %v1367_v0 = vmul.f32 0.5, %v2787_v10 }
 0x154   : > { %2231 = vtanh.f32 %v1400_v3  ;;  %v1394_v18 = vadd.f32 %v1387_v12, %v2779_v59  ;;  %v1361_v19 = vadd.f32 %v2761_v35, %v1347_v13  ;;  %v2131_v20 = vadd.f32 %v1320_v16, %v744_v14  ;;  %v2026_v21 = vpop.f32.mrb[11].mxu0 }
 0x155   : > { %v1381_v22 = vmul.f32 %v1374_v15, %v2787_v10 }
 0x156   : > { %v1401_v23 = vmul.f32 0.7978846, %v1394_v18  ;;  %v1375_v24 = vmul.f32 0.044715, %v1361_v19  ;;  %v1348_v25 = vmul.f32 %v2131_v20, %v2756_v31  ;;  %v749_v26 = vpop.f32.mrb[12].mxu1  ;;  %v1368_v5 = vmul.f32 0.5, %v1361_v19 }
 0x157   : > { %v1388_v27 = vmul.f32 %v1381_v22, %v2787_v10  ;;  %v1325_v28 = vpop.f32.mrb[12].mxu0  ;;  %v1881_v29 = vpop.f32.mrb[13].mxu1 }
 0x158   : > { %2233 = vtanh.f32 %v1401_v23  ;;  %v1382_v30 = vmul.f32 %v1375_v24, %v1361_v19  ;;  %v1362_v32 = vadd.f32 %v2761_v35, %v1348_v25  ;;  %v2132_v33 = vadd.f32 %v1325_v28, %v749_v26  ;;  %v2029_v34 = vpop.f32.mrb[13].mxu0 }
 0x159   : > { %v1395_v11 = vadd.f32 %v1388_v27, %v2787_v10 }
 0x15a   : > { %v2230_v36 = vpop.eup %2229  ;;  %v1389_v37 = vmul.f32 %v1382_v30, %v1361_v19  ;;  %v1376_v38 = vmul.f32 0.044715, %v1362_v32  ;;  %v1349_v40 = vmul.f32 %v2132_v33, %v2756_v31  ;;  %v1369_v8 = vmul.f32 0.5, %v1362_v32 }
 0x15b   : > { %v1413_v42 = vadd.f32 1.0, %v2230_v36  ;;  %v1402_v43 = vmul.f32 0.7978846, %v1395_v11 }
 0x15c   : > { %v1396_v44 = vadd.f32 %v1389_v37, %v1361_v19  ;;  %v1383_v45 = vmul.f32 %v1376_v38, %v1362_v32  ;;  %v1363_v46 = vadd.f32 %v2761_v35, %v1349_v40  ;;  %v1366_v35 = vmul.f32 0.5, %v2779_v59 }
 0x15d   : > { %v1420_v47 = vmul.f32 %v1413_v42, %v1364_v41  ;;  %2235 = vtanh.f32 %v1402_v43 }
 0x15e   : > { %v2232_v49 = vpop.eup %2231  ;;  %v1403_v50 = vmul.f32 0.7978846, %v1396_v44  ;;  %v1390_v31 = vmul.f32 %v1383_v45, %v1362_v32  ;;  %v1377_v51 = vmul.f32 0.044715, %v1363_v46  ;;  %v1370_v13 = vmul.f32 0.5, %v1363_v46 }
 0x15f   : > { %1427 = vst [vmem:[%s2805_s16] sm:$0xff] %v1420_v47  ;;  %v1414_v52 = vadd.f32 1.0, %v2232_v49 }
 0x160   : > { %2237 = vtanh.f32 %v1403_v50  ;;  %v1397_v53 = vadd.f32 %v1390_v31, %v1362_v32  ;;  %v1384_v54 = vmul.f32 %v1377_v51, %v1363_v46 }
 0x161   : > { %v1421_v55 = vmul.f32 %v1414_v52, %v1365_v39 }
 0x162   : > { %v2234_v56 = vpop.eup %2233  ;;  %v1404_v57 = vmul.f32 0.7978846, %v1397_v53  ;;  %v1391_v58 = vmul.f32 %v1384_v54, %v1363_v46 }
 0x163   : > { %1428 = vst [vmem:[%s2805_s16 + $0x8] sm:$0xff] %v1421_v55  ;;  %v1415_v60 = vadd.f32 1.0, %v2234_v56 }
 0x164   : > { %2239 = vtanh.f32 %v1404_v57  ;;  %v1398_v61 = vadd.f32 %v1391_v58, %v1363_v46 }
 0x165   : > { %v1422_v62 = vmul.f32 %v1415_v60, %v1366_v35 }
 0x166   : > { %v1405_v63 = vmul.f32 0.7978846, %v1398_v61 }
 0x167   : > { %v2236_v48 = vpop.eup %2235  ;;  %1429 = vst [vmem:[%s2805_s16 + $0x10] sm:$0xff] %v1422_v62 }
 0x168   : > { %v1416_v1 = vadd.f32 1.0, %v2236_v48  ;;  %2241 = vtanh.f32 %v1405_v63 }
 0x16a   : > { %v2238_v2 = vpop.eup %2237  ;;  %v1423_v4 = vmul.f32 %v1416_v1, %v1367_v0 }
 0x16b   : > { %v1417_v6 = vadd.f32 1.0, %v2238_v2 }
 0x16c   : > { %1430 = vst [vmem:[%s2805_s16 + $0x18] sm:$0xff] %v1423_v4 }
 0x16d   : > { %v1424_v59 = vmul.f32 %v1417_v6, %v1368_v5 }
 0x16e   : > { %v2240_v7 = vpop.eup %2239 }
 0x16f   : > { %1431 = vst [vmem:[%s2805_s16 + $0x20] sm:$0xff] %v1424_v59  ;;  %v1418_v9 = vadd.f32 1.0, %v2240_v7 }
 0x171   : > { %v1425_v3 = vmul.f32 %v1418_v9, %v1369_v8 }
 0x172   : > { %v2242_v12 = vpop.eup %2241 }
 0x173   : > { %1432 = vst [vmem:[%s2805_s16 + $0x28] sm:$0xff] %v1425_v3  ;;  %v1419_v14 = vadd.f32 1.0, %v2242_v12 }
 0x175   : > { %v1426_v15 = vmul.f32 %v1419_v14, %v1370_v13 }
 0x177   : > { %1433 = vst [vmem:[%s2805_s16 + $0x30] sm:$0xf] %v1426_v15 }
 0x178 PF: > { %s14_s15 = sadd.s32 1, %s2249_s15  }
 0x179   : > { %p11_p4 = scmp.ge.s32.totalorder %s14_s15, 4  }
 0x17b   :  { %13 = sbr.rel (!%p11_p4) target bundleno = 1 (0x1), region = 73 }

// kernel: ducnn_forward.10
= control target key start
LH: loop header
LB: loop body
LE: loop exit
PB: predicated region body
PF: predicated region fallthrough
CT: control target
= control target key end

     0   :  { %s3110_s15 = smov 0   ;;  %s3811_s0 = inlined_call_operand.vmem [shape: f32[2,108,6], index: 0, kind: input, shape index: {}]   ;;  %s3812_s1 = inlined_call_operand.vmem [shape: f32[9,6,64], index: 1, kind: input, shape index: {}]   ;;  %s3813_s2 = inlined_call_operand.vmem [shape: f32[1,64], index: 2, kind: input, shape index: {}]   ;;  %s3814_s3 = inlined_call_operand.vmem [shape: f32[1,64], index: 3, kind: input, shape index: {}]   ;;  %s3815_s4 = inlined_call_operand.vmem [shape: f32[2,100,64], index: 4, kind: output, shape index: {}]  }
   0x1 LB: > { %s2200_s16 = sadd.s32 4294967295, %s3081_s15   ;;  %p2204_p0 = scmp.ge.s32.totalorder %s3081_s15, 1  ;;  %s3081_s15 = sphi %s3110_s15, %s14_s15  }
   0x2   : > { %p162_p1 = scmp.lt.s32.totalorder %s3081_s15, 3 }
   0x4   : > { %p163_p2 = pnand %p2204_p0, %p162_p1 }
   0x5   : > { %vm267_vm0 = vcmask (!%p163_p2), 1045504   ;;  %v3121_v0 = vld [vmem:[%s3812_s1 + $0x20] sm:$0x3f] (!%p163_p2)  ;;  %v2207_v1 = vld [vmem:[%s3812_s1 + $0x8] sm:$0x3f] (!%p163_p2)  ;;  %v3083_v2 = vmov (!%p163_p2), 0.0  }
   0x6   : > { %166 = sbr.rel (%p163_p2) target bundleno = 495 (0x1ef), region = 36  ;;  %2635 = vmatprep.subr.mxu0 (!%p163_p2), %v3083_v2  ;;  %2471 = vmatprep.subr.mxu1 (!%p163_p2), %v3083_v2  ;;  %p188_p3 = scmp.lt.s32.totalorder (!%p163_p2), %s2200_s16, 1  ;;  %vm3084_vm1 = vmmov (!%p163_p2), 0   ;;  %vm227_vm2 = vcmask (!%p163_p2), 48128   ;;  %v2281_v3 = vld [vmem:[%s3812_s1 + $0x28] sm:$0x3f] (!%p163_p2) }
   0x7   : > { %2636 = vmatpush3.msk.msra.mxu0 (!%p163_p2), %vm267_vm0, %v3121_v0  ;;  %2472 = vmatpush3.msk.msra.mxu1 (!%p163_p2), %vm267_vm0, %v2207_v1  ;;  %v211_v6 = vld [vmem:[%s3812_s1] sm:$0x3f] (!%p163_p2)  ;;  %v2296_v21 = vld [vmem:[%s3812_s1 + $0x30] sm:$0x3f] (!%p163_p2)  ;;  %v2311_v49 = vld [vmem:[%s3812_s1 + $0x38] sm:$0x3f] (!%p163_p2) }
   0x8   : > { %2473 = vmatprep.mubr.msk.f32.mxu1 (!%p163_p2), %vm3084_vm1, %v3083_v2  ;;  %2637 = vmatprep.mubr.msk.f32.mxu0 (!%p163_p2), %vm3084_vm1, %v3083_v2  ;;  %v2236_v34 = vld [vmem:[%s3812_s1 + $0x10] sm:$0x3f] (!%p163_p2)  ;;  %v2251_v62 = vld [vmem:[%s3812_s1 + $0x18] sm:$0x3f] (!%p163_p2)  ;;  %vm2130_vm3 = vcmask (!%p163_p2), 523264   ;;  %vm2143_vm4 = vcmask (!%p163_p2), 519168  }
   0x9   : > { %2676 = vmatprep.subr.mxu0 (!%p163_p2), %v3083_v2  ;;  %2512 = vmatprep.subr.mxu1 (!%p163_p2), %v3083_v2 }
   0xd   : > { %s3817_s16 = smov (!%p188_p3, %s2200_s16), 1 }
   0xe   : > { %s3037_s21 = smul.u32 112, %s3817_s16 }
   0xf   : > { %s3038_s19 = smul.u32 104, %s3817_s16 }
  0x10   : > { %s3143_s24 = scalar_lea.vmem %s3811_s0, %s3037_s21 }
  0x11   : > { %v212_v4 = vld [vmem:[%s3143_s24 + $0x1] sm:$0xff]  ;;  %v213_v7 = vld [vmem:[%s3143_s24 + $0x9] sm:$0xff]  ;;  %v214_v9 = vld [vmem:[%s3143_s24 + $0x11] sm:$0xff]  ;;  %s3731_s21 = scalar_lea.vmem %s3815_s4, %s3038_s19 }
  0x12   : > { %v973_v5 = vld [vmem:[%s3143_s24 + $0x4] sm:$0xff]  ;;  %2474 = vmatmul.mubr.msk.f32.vlgmr.msra.gmra.mrb[0].mxu1 %vm227_vm2, %v212_v4  ;;  %v974_v8 = vld [vmem:[%s3143_s24 + $0xc] sm:$0xff]  ;;  %v975_v10 = vld [vmem:[%s3143_s24 + $0x14] sm:$0xff] }
  0x13   : > { %2638 = vmatmul.mubr.msk.f32.vlgmr.msra.gmra.mrb[0].mxu0 %vm227_vm2, %v973_v5  ;;  %2476 = vmatprep.mubr.msk.f32.mxu1 %vm3084_vm1, %v3083_v2  ;;  %v215_v11 = vld [vmem:[%s3143_s24 + $0x19] sm:$0xff]  ;;  %v216_v13 = vld [vmem:[%s3143_s24 + $0x21] sm:$0xff]  ;;  %v217_v15 = vld [vmem:[%s3143_s24 + $0x29] sm:$0xff] }
  0x14   : > { %2677 = vmatpush3.msk.msra.mxu0 %vm267_vm0, %v2281_v3  ;;  %2640 = vmatprep.mubr.msk.f32.mxu0 %vm3084_vm1, %v3083_v2  ;;  %v976_v12 = vld [vmem:[%s3143_s24 + $0x1c] sm:$0xff]  ;;  %v977_v14 = vld [vmem:[%s3143_s24 + $0x24] sm:$0xff]  ;;  %v978_v16 = vld [vmem:[%s3143_s24 + $0x2c] sm:$0xff] }
  0x15   : > { %2513 = vmatpush3.msk.msra.mxu1 %vm267_vm0, %v211_v6  ;;  %2717 = vmatprep.subr.mxu0 %v3083_v2  ;;  %v218_v17 = vld [vmem:[%s3143_s24 + $0x31] sm:$0xff]  ;;  %v219_v19 = vld [vmem:[%s3143_s24 + $0x39] sm:$0xff]  ;;  %v1173_v20 = vld [vmem:[%s3143_s24 + $0x5] sm:$0xff] }
  0x16   : > { %2553 = vmatprep.subr.mxu1 %v3083_v2  ;;  %2477 = vmatmul.mubr.msk.f32.gmra.mrb[2].mxu1 %vm227_vm2, %v213_v7  ;;  %v979_v18 = vld [vmem:[%s3143_s24 + $0x34] sm:$0xff]  ;;  %v220_v22 = vld [vmem:[%s3143_s24 + $0x41] sm:$0xff]  ;;  %v221_v24 = vld [vmem:[%s3143_s24 + $0x49] sm:$0xff] }
  0x17   : > { %2641 = vmatmul.mubr.msk.f32.gmra.mrb[2].mxu0 %vm227_vm2, %v974_v8  ;;  %2479 = vmatprep.mubr.msk.f32.mxu1 %vm3084_vm1, %v3083_v2  ;;  %v1174_v23 = vld [vmem:[%s3143_s24 + $0xd] sm:$0xff]  ;;  %v1175_v25 = vld [vmem:[%s3143_s24 + $0x15] sm:$0xff]  ;;  %v1176_v27 = vld [vmem:[%s3143_s24 + $0x1d] sm:$0xff] }
  0x18   : > { %2643 = vmatprep.mubr.msk.f32.mxu0 %vm3084_vm1, %v3083_v2  ;;  %v222_v26 = vld [vmem:[%s3143_s24 + $0x51] sm:$0xff]  ;;  %v223_v28 = vld [vmem:[%s3143_s24 + $0x59] sm:$0xff]  ;;  %v1177_v29 = vld [vmem:[%s3143_s24 + $0x25] sm:$0xff] }
  0x19   : > { %v224_v30 = vld [vmem:[%s3143_s24 + $0x61] sm:$0xf]  ;;  %v1178_v31 = vld [vmem:[%s3143_s24 + $0x2d] sm:$0xff]  ;;  %v1179_v33 = vld [vmem:[%s3143_s24 + $0x35] sm:$0xff] }
  0x1a   : > { %2480 = vmatmul.mubr.msk.f32.gmra.mrb[4].mxu1 %vm227_vm2, %v214_v9  ;;  %v198_v32 = vld [vmem:[%s3143_s24] sm:$0xff]  ;;  %v3276_v35 = vld [vmem:[%s3143_s24 + $0x8] sm:$0xff]  ;;  %v3289_v37 = vld [vmem:[%s3143_s24 + $0x10] sm:$0xff] }
  0x1b   : > { %2644 = vmatmul.mubr.msk.f32.gmra.mrb[4].mxu0 %vm227_vm2, %v975_v10  ;;  %2482 = vmatprep.mubr.msk.f32.mxu1 %vm3084_vm1, %v3083_v2  ;;  %v1180_v36 = vld [vmem:[%s3143_s24 + $0x3d] sm:$0xff]  ;;  %v1181_v38 = vld [vmem:[%s3143_s24 + $0x45] sm:$0xff]  ;;  %v1182_v40 = vld [vmem:[%s3143_s24 + $0x4d] sm:$0xff] }
  0x1c   : > { %2646 = vmatprep.mubr.msk.f32.mxu0 %vm3084_vm1, %v3083_v2  ;;  %v3300_v39 = vld [vmem:[%s3143_s24 + $0x18] sm:$0xff]  ;;  %v3311_v41 = vld [vmem:[%s3143_s24 + $0x20] sm:$0xff]  ;;  %v3322_v43 = vld [vmem:[%s3143_s24 + $0x28] sm:$0xff] }
  0x1d   : > { %v1183_v42 = vld [vmem:[%s3143_s24 + $0x55] sm:$0xff]  ;;  %v1184_v44 = vld [vmem:[%s3143_s24 + $0x5d] sm:$0xff]  ;;  %v1185_v46 = vld [vmem:[%s3143_s24 + $0x65] sm:$0xf] }
  0x1e   : > { %2483 = vmatmul.mubr.msk.f32.gmra.mrb[6].mxu1 %vm227_vm2, %v215_v11  ;;  %v3333_v45 = vld [vmem:[%s3143_s24 + $0x30] sm:$0xff]  ;;  %v3344_v47 = vld [vmem:[%s3143_s24 + $0x38] sm:$0xff]  ;;  %v1373_v48 = vld [vmem:[%s3143_s24 + $0x6] sm:$0xff] }
  0x1f   : > { %2647 = vmatmul.mubr.msk.f32.gmra.mrb[6].mxu0 %vm227_vm2, %v976_v12  ;;  %2485 = vmatprep.mubr.msk.f32.mxu1 %vm3084_vm1, %v3083_v2  ;;  %v3357_v50 = vld [vmem:[%s3143_s24 + $0x40] sm:$0xff]  ;;  %v1374_v51 = vld [vmem:[%s3143_s24 + $0xe] sm:$0xff]  ;;  %v1375_v53 = vld [vmem:[%s3143_s24 + $0x16] sm:$0xff] }
  0x20   : > { %2649 = vmatprep.mubr.msk.f32.mxu0 %vm3084_vm1, %v3083_v2  ;;  %v3371_v52 = vld [vmem:[%s3143_s24 + $0x48] sm:$0xff]  ;;  %v3382_v54 = vld [vmem:[%s3143_s24 + $0x50] sm:$0xff]  ;;  %v1376_v55 = vld [vmem:[%s3143_s24 + $0x1e] sm:$0xff] }
  0x21   : > { %v3393_v56 = vld [vmem:[%s3143_s24 + $0x58] sm:$0xff]  ;;  %v1377_v57 = vld [vmem:[%s3143_s24 + $0x26] sm:$0xff]  ;;  %v210_v58 = vld [vmem:[%s3143_s24 + $0x60] sm:$0xf] }
  0x22   : > { %2486 = vmatmul.mubr.msk.f32.gmra.mrb[8].mxu1 %vm227_vm2, %v216_v13  ;;  %v1378_v59 = vld [vmem:[%s3143_s24 + $0x2e] sm:$0xff]  ;;  %v573_v60 = vld [vmem:[%s3143_s24 + $0x2] sm:$0xff]  ;;  %v1379_v61 = vld [vmem:[%s3143_s24 + $0x36] sm:$0xff] }
  0x23   : > { %2650 = vmatmul.mubr.msk.f32.gmra.mrb[8].mxu0 %vm227_vm2, %v977_v14  ;;  %2488 = vmatprep.mubr.msk.f32.mxu1 %vm3084_vm1, %v3083_v2  ;;  %v574_v63 = vld [vmem:[%s3143_s24 + $0xa] sm:$0xff]  ;;  %v1380_v1 = vld [vmem:[%s3143_s24 + $0x3e] sm:$0xff]  ;;  %v575_v3 = vld [vmem:[%s3143_s24 + $0x12] sm:$0xff] }
  0x24   : > { %2652 = vmatprep.mubr.msk.f32.mxu0 %vm3084_vm1, %v3083_v2  ;;  %v1381_v4 = vld [vmem:[%s3143_s24 + $0x46] sm:$0xff]  ;;  %v576_v5 = vld [vmem:[%s3143_s24 + $0x1a] sm:$0xff]  ;;  %v1382_v6 = vld [vmem:[%s3143_s24 + $0x4e] sm:$0xff] }
  0x25   : > { %v577_v7 = vld [vmem:[%s3143_s24 + $0x22] sm:$0xff]  ;;  %v1383_v8 = vld [vmem:[%s3143_s24 + $0x56] sm:$0xff]  ;;  %v578_v9 = vld [vmem:[%s3143_s24 + $0x2a] sm:$0xff] }
  0x26   : > { %2489 = vmatmul.mubr.msk.f32.gmra.mrb[10].mxu1 %vm227_vm2, %v217_v15  ;;  %v1384_v10 = vld [vmem:[%s3143_s24 + $0x5e] sm:$0xff]  ;;  %v579_v11 = vld [vmem:[%s3143_s24 + $0x32] sm:$0xff]  ;;  %v1385_v12 = vld [vmem:[%s3143_s24 + $0x66] sm:$0xf] }
  0x27   : > { %2653 = vmatmul.mubr.msk.f32.gmra.mrb[10].mxu0 %vm227_vm2, %v978_v16  ;;  %2491 = vmatprep.mubr.msk.f32.mxu1 %vm3084_vm1, %v3083_v2  ;;  %v580_v13 = vld [vmem:[%s3143_s24 + $0x3a] sm:$0xff]  ;;  %v1573_v14 = vld [vmem:[%s3143_s24 + $0x7] sm:$0xff] }
  0x28   : > { %2655 = vmatprep.mubr.msk.f32.mxu0 %vm3084_vm1, %v3083_v2  ;;  %v2326_v15 = vld [vmem:[%s3812_s1 + $0x40] sm:$0x3f] }
  0x29   : > { %v581_v16 = vld [vmem:[%s3143_s24 + $0x42] sm:$0xff] }
  0x2a   : > { %2492 = vmatmul.mubr.msk.f32.gmra.mrb[12].mxu1 %vm227_vm2, %v218_v17  ;;  %v1574_v17 = vld [vmem:[%s3143_s24 + $0xf] sm:$0xff] }
  0x2b   : > { %2656 = vmatmul.mubr.msk.f32.gmra.mrb[12].mxu0 %vm227_vm2, %v979_v18  ;;  %2494 = vmatprep.mubr.msk.f32.mxu1 %vm3084_vm1, %v3083_v2  ;;  %v582_v18 = vld [vmem:[%s3143_s24 + $0x4a] sm:$0xff] }
  0x2c   : > { %2678 = vmatprep.mubr.msk.f32.mxu0 %vm3084_vm1, %v3083_v2 }
  0x2e   : > { %2495 = vmatmul.mubr.msk.f32.gmra.mrb[14].mxu1 %vm227_vm2, %v219_v19  ;;  %v1575_v19 = vld [vmem:[%s3143_s24 + $0x17] sm:$0xff] }
  0x2f   : > { %2679 = vmatmul.mubr.msk.f32.vlgmr.msra.gmra.mrb[0].mxu0 %vm227_vm2, %v1173_v20  ;;  %2497 = vmatprep.mubr.msk.f32.mxu1 %vm3084_vm1, %v3083_v2  ;;  %v583_v20 = vld [vmem:[%s3143_s24 + $0x52] sm:$0xff] }
  0x30   : > { %2718 = vmatpush3.msk.msra.mxu0 %vm267_vm0, %v2296_v21  ;;  %2681 = vmatprep.mubr.msk.f32.mxu0 %vm3084_vm1, %v3083_v2  ;;  %v1576_v21 = vld [vmem:[%s3143_s24 + $0x1f] sm:$0xff] }
  0x31   : > { %2758 = vmatprep.subr.mxu0 %v3083_v2 }
  0x32   : > { %2498 = vmatmul.mubr.msk.f32.gmra.mrb[16].mxu1 %vm227_vm2, %v220_v22  ;;  %v584_v22 = vld [vmem:[%s3143_s24 + $0x5a] sm:$0xff] }
  0x33   : > { %2682 = vmatmul.mubr.msk.f32.gmra.mrb[2].mxu0 %vm227_vm2, %v1174_v23  ;;  %2500 = vmatprep.mubr.msk.f32.mxu1 %vm3084_vm1, %v3083_v2  ;;  %v1577_v23 = vld [vmem:[%s3143_s24 + $0x27] sm:$0xff] }
  0x34   : > { %2684 = vmatprep.mubr.msk.f32.mxu0 %vm3084_vm1, %v3083_v2 }
  0x36   : > { %2501 = vmatmul.mubr.msk.f32.gmra.mrb[18].mxu1 %vm227_vm2, %v221_v24  ;;  %v585_v24 = vld [vmem:[%s3143_s24 + $0x62] sm:$0xf] }
  0x37   : > { %2685 = vmatmul.mubr.msk.f32.gmra.mrb[4].mxu0 %vm227_vm2, %v1175_v25  ;;  %2503 = vmatprep.mubr.msk.f32.mxu1 %vm3084_vm1, %v3083_v2  ;;  %v1578_v25 = vld [vmem:[%s3143_s24 + $0x2f] sm:$0xff] }
  0x38   : > { %2687 = vmatprep.mubr.msk.f32.mxu0 %vm3084_vm1, %v3083_v2 }
  0x3a   : > { %2504 = vmatmul.mubr.msk.f32.gmra.mrb[20].mxu1 %vm227_vm2, %v222_v26  ;;  %v773_v26 = vld [vmem:[%s3143_s24 + $0x3] sm:$0xff] }
  0x3b   : > { %2688 = vmatmul.mubr.msk.f32.gmra.mrb[6].mxu0 %vm227_vm2, %v1176_v27  ;;  %2506 = vmatprep.mubr.msk.f32.mxu1 %vm3084_vm1, %v3083_v2  ;;  %v1579_v27 = vld [vmem:[%s3143_s24 + $0x37] sm:$0xff] }
  0x3c   : > { %2690 = vmatprep.mubr.msk.f32.mxu0 %vm3084_vm1, %v3083_v2 }
  0x3e   : > { %2507 = vmatmul.mubr.msk.f32.gmra.mrb[22].mxu1 %vm227_vm2, %v223_v28  ;;  %v774_v28 = vld [vmem:[%s3143_s24 + $0xb] sm:$0xff] }
  0x3f   : > { %2691 = vmatmul.mubr.msk.f32.gmra.mrb[8].mxu0 %vm227_vm2, %v1177_v29  ;;  %2509 = vmatprep.mubr.msk.f32.mxu1 %vm3084_vm1, %v3083_v2  ;;  %v1580_v29 = vld [vmem:[%s3143_s24 + $0x3f] sm:$0xff] }
  0x40   : > { %2693 = vmatprep.mubr.msk.f32.mxu0 %vm3084_vm1, %v3083_v2 }
  0x42   : > { %2510 = vmatmul.mubr.msk.f32.gmra.mrb[24].mxu1 %vm227_vm2, %v224_v30  ;;  %v775_v30 = vld [vmem:[%s3143_s24 + $0x13] sm:$0xff] }
  0x43   : > { %2694 = vmatmul.mubr.msk.f32.gmra.mrb[10].mxu0 %vm227_vm2, %v1178_v31  ;;  %2514 = vmatprep.mubr.msk.f32.mxu1 %vm3084_vm1, %v3083_v2  ;;  %v1581_v31 = vld [vmem:[%s3143_s24 + $0x47] sm:$0xff] }
  0x44   : > { %2696 = vmatprep.mubr.msk.f32.mxu0 %vm3084_vm1, %v3083_v2 }
  0x46   : > { %2515 = vmatmul.mubr.msk.f32.vlgmr.msra.gmra.mrb[0].mxu1 %vm227_vm2, %v198_v32  ;;  %v1582_v32 = vld [vmem:[%s3143_s24 + $0x4f] sm:$0xff] }
  0x47   : > { %2697 = vmatmul.mubr.msk.f32.gmra.mrb[12].mxu0 %vm227_vm2, %v1179_v33  ;;  %2517 = vmatprep.mubr.msk.f32.mxu1 %vm3084_vm1, %v3083_v2  ;;  %v777_v33 = vld [vmem:[%s3143_s24 + $0x23] sm:$0xff] }
  0x48   : > { %2699 = vmatprep.mubr.msk.f32.mxu0 %vm3084_vm1, %v3083_v2  ;;  %2554 = vmatpush3.msk.msra.mxu1 %vm267_vm0, %v2236_v34  ;;  %v1583_v34 = vld [vmem:[%s3143_s24 + $0x57] sm:$0xff] }
  0x49   : > { %2594 = vmatprep.subr.mxu1 %v3083_v2 }
  0x4a   : > { %2518 = vmatmul.mubr.msk.f32.gmra.mrb[2].mxu1 %vm227_vm2, %v3276_v35 }
  0x4b   : > { %2700 = vmatmul.mubr.msk.f32.gmra.mrb[14].mxu0 %vm227_vm2, %v1180_v36  ;;  %2520 = vmatprep.mubr.msk.f32.mxu1 %vm3084_vm1, %v3083_v2  ;;  %v778_v36 = vld [vmem:[%s3143_s24 + $0x2b] sm:$0xff] }
  0x4c   : > { %2702 = vmatprep.mubr.msk.f32.mxu0 %vm3084_vm1, %v3083_v2 }
  0x4e   : > { %2521 = vmatmul.mubr.msk.f32.gmra.mrb[4].mxu1 %vm227_vm2, %v3289_v37 }
  0x4f   : > { %2703 = vmatmul.mubr.msk.f32.gmra.mrb[16].mxu0 %vm227_vm2, %v1181_v38  ;;  %2523 = vmatprep.mubr.msk.f32.mxu1 %vm3084_vm1, %v3083_v2  ;;  %v1584_v38 = vld [vmem:[%s3143_s24 + $0x5f] sm:$0xff] }
  0x50   : > { %2705 = vmatprep.mubr.msk.f32.mxu0 %vm3084_vm1, %v3083_v2 }
  0x52   : > { %2524 = vmatmul.mubr.msk.f32.gmra.mrb[6].mxu1 %vm227_vm2, %v3300_v39 }
  0x53   : > { %2706 = vmatmul.mubr.msk.f32.gmra.mrb[18].mxu0 %vm227_vm2, %v1182_v40  ;;  %2526 = vmatprep.mubr.msk.f32.mxu1 %vm3084_vm1, %v3083_v2  ;;  %v779_v40 = vld [vmem:[%s3143_s24 + $0x33] sm:$0xff] }
  0x54   : > { %2708 = vmatprep.mubr.msk.f32.mxu0 %vm3084_vm1, %v3083_v2 }
  0x56   : > { %2527 = vmatmul.mubr.msk.f32.gmra.mrb[8].mxu1 %vm227_vm2, %v3311_v41 }
  0x57   : > { %2709 = vmatmul.mubr.msk.f32.gmra.mrb[20].mxu0 %vm227_vm2, %v1183_v42  ;;  %2529 = vmatprep.mubr.msk.f32.mxu1 %vm3084_vm1, %v3083_v2  ;;  %v1585_v42 = vld [vmem:[%s3143_s24 + $0x67] sm:$0xf] }
  0x58   : > { %2711 = vmatprep.mubr.msk.f32.mxu0 %vm3084_vm1, %v3083_v2 }
  0x5a   : > { %2530 = vmatmul.mubr.msk.f32.gmra.mrb[10].mxu1 %vm227_vm2, %v3322_v43 }
  0x5b   : > { %2712 = vmatmul.mubr.msk.f32.gmra.mrb[22].mxu0 %vm227_vm2, %v1184_v44  ;;  %2532 = vmatprep.mubr.msk.f32.mxu1 %vm3084_vm1, %v3083_v2  ;;  %v780_v44 = vld [vmem:[%s3143_s24 + $0x3b] sm:$0xff] }
  0x5c   : > { %2714 = vmatprep.mubr.msk.f32.mxu0 %vm3084_vm1, %v3083_v2 }
  0x5e   : > { %2533 = vmatmul.mubr.msk.f32.gmra.mrb[12].mxu1 %vm227_vm2, %v3333_v45 }
  0x5f   : > { %2715 = vmatmul.mubr.msk.f32.gmra.mrb[24].mxu0 %vm227_vm2, %v1185_v46  ;;  %2535 = vmatprep.mubr.msk.f32.mxu1 %vm3084_vm1, %v3083_v2  ;;  %v781_v46 = vld [vmem:[%s3143_s24 + $0x43] sm:$0xff] }
  0x60   : > { %2719 = vmatprep.mubr.msk.f32.mxu0 %vm3084_vm1, %v3083_v2 }
  0x62   : > { %2536 = vmatmul.mubr.msk.f32.gmra.mrb[14].mxu1 %vm227_vm2, %v3344_v47 }
  0x63   : > { %2720 = vmatmul.mubr.msk.f32.vlgmr.msra.gmra.mrb[0].mxu0 %vm227_vm2, %v1373_v48  ;;  %2538 = vmatprep.mubr.msk.f32.mxu1 %vm3084_vm1, %v3083_v2  ;;  %v983_v48 = vld [vmem:[%s3143_s24 + $0x54] sm:$0xff] }
  0x64   : > { %2759 = vmatpush3.msk.msra.mxu0 %vm267_vm0, %v2311_v49  ;;  %2722 = vmatprep.mubr.msk.f32.mxu0 %vm3084_vm1, %v3083_v2  ;;  %v984_v49 = vld [vmem:[%s3143_s24 + $0x5c] sm:$0xff] }
  0x65   : > { %2799 = vmatprep.subr.mxu0 %v3083_v2 }
  0x66   : > { %2539 = vmatmul.mubr.msk.f32.gmra.mrb[16].mxu1 %vm227_vm2, %v3357_v50 }
  0x67   : > { %2723 = vmatmul.mubr.msk.f32.gmra.mrb[2].mxu0 %vm227_vm2, %v1374_v51  ;;  %2541 = vmatprep.mubr.msk.f32.mxu1 %vm3084_vm1, %v3083_v2  ;;  %v1784_v51 = vld [vmem:[%s3143_s24 + $0x60] sm:$0xff] }
  0x68   : > { %2725 = vmatprep.mubr.msk.f32.mxu0 %vm3084_vm1, %v3083_v2 }
  0x6a   : > { %2542 = vmatmul.mubr.msk.f32.gmra.mrb[18].mxu1 %vm227_vm2, %v3371_v52 }
  0x6b   : > { %2726 = vmatmul.mubr.msk.f32.gmra.mrb[4].mxu0 %vm227_vm2, %v1375_v53  ;;  %2544 = vmatprep.mubr.msk.f32.mxu1 %vm3084_vm1, %v3083_v2 }
  0x6c   : > { %2728 = vmatprep.mubr.msk.f32.mxu0 %vm3084_vm1, %v3083_v2 }
  0x6e   : > { %2545 = vmatmul.mubr.msk.f32.gmra.mrb[20].mxu1 %vm227_vm2, %v3382_v54 }
  0x6f   : > { %2729 = vmatmul.mubr.msk.f32.gmra.mrb[6].mxu0 %vm227_vm2, %v1376_v55  ;;  %2547 = vmatprep.mubr.msk.f32.mxu1 %vm3084_vm1, %v3083_v2 }
  0x70   : > { %2731 = vmatprep.mubr.msk.f32.mxu0 %vm3084_vm1, %v3083_v2 }
  0x72   : > { %2548 = vmatmul.mubr.msk.f32.gmra.mrb[22].mxu1 %vm227_vm2, %v3393_v56 }
  0x73   : > { %2732 = vmatmul.mubr.msk.f32.gmra.mrb[8].mxu0 %vm227_vm2, %v1377_v57  ;;  %2550 = vmatprep.mubr.msk.f32.mxu1 %vm3084_vm1, %v3083_v2 }
  0x74   : > { %2734 = vmatprep.mubr.msk.f32.mxu0 %vm3084_vm1, %v3083_v2 }
  0x76   : > { %2551 = vmatmul.mubr.msk.f32.gmra.mrb[24].mxu1 %vm227_vm2, %v210_v58 }
  0x77   : > { %2735 = vmatmul.mubr.msk.f32.gmra.mrb[10].mxu0 %vm227_vm2, %v1378_v59  ;;  %2555 = vmatprep.mubr.msk.f32.mxu1 %vm3084_vm1, %v3083_v2 }
  0x78   : > { %2737 = vmatprep.mubr.msk.f32.mxu0 %vm3084_vm1, %v3083_v2 }
  0x7a   : > { %2556 = vmatmul.mubr.msk.f32.vlgmr.msra.gmra.mrb[0].mxu1 %vm227_vm2, %v573_v60 }
  0x7b   : > { %2738 = vmatmul.mubr.msk.f32.gmra.mrb[12].mxu0 %vm227_vm2, %v1379_v61  ;;  %2558 = vmatprep.mubr.msk.f32.mxu1 %vm3084_vm1, %v3083_v2 }
  0x7c   : > { %2740 = vmatprep.mubr.msk.f32.mxu0 %vm3084_vm1, %v3083_v2  ;;  %2595 = vmatpush3.msk.msra.mxu1 %vm267_vm0, %v2251_v62 }
  0x7d   : > { %2840 = vmatprep.subr.mxu1 %v3083_v2 }
  0x7e   : > { %2559 = vmatmul.mubr.msk.f32.gmra.mrb[2].mxu1 %vm227_vm2, %v574_v63 }
  0x7f   : > { %2741 = vmatmul.mubr.msk.f32.gmra.mrb[14].mxu0 %vm227_vm2, %v1380_v1  ;;  %2561 = vmatprep.mubr.msk.f32.mxu1 %vm3084_vm1, %v3083_v2 }
  0x80   : > { %2743 = vmatprep.mubr.msk.f32.mxu0 %vm3084_vm1, %v3083_v2 }
  0x82   : > { %2562 = vmatmul.mubr.msk.f32.gmra.mrb[4].mxu1 %vm227_vm2, %v575_v3 }
  0x83   : > { %2744 = vmatmul.mubr.msk.f32.gmra.mrb[16].mxu0 %vm227_vm2, %v1381_v4  ;;  %2564 = vmatprep.mubr.msk.f32.mxu1 %vm3084_vm1, %v3083_v2 }
  0x84   : > { %2746 = vmatprep.mubr.msk.f32.mxu0 %vm3084_vm1, %v3083_v2 }
  0x86   : > { %2565 = vmatmul.mubr.msk.f32.gmra.mrb[6].mxu1 %vm227_vm2, %v576_v5 }
  0x87   : > { %2747 = vmatmul.mubr.msk.f32.gmra.mrb[18].mxu0 %vm227_vm2, %v1382_v6  ;;  %2567 = vmatprep.mubr.msk.f32.mxu1 %vm3084_vm1, %v3083_v2 }
  0x88   : > { %2749 = vmatprep.mubr.msk.f32.mxu0 %vm3084_vm1, %v3083_v2 }
  0x8a   : > { %2568 = vmatmul.mubr.msk.f32.gmra.mrb[8].mxu1 %vm227_vm2, %v577_v7 }
  0x8b   : > { %2750 = vmatmul.mubr.msk.f32.gmra.mrb[20].mxu0 %vm227_vm2, %v1383_v8  ;;  %2570 = vmatprep.mubr.msk.f32.mxu1 %vm3084_vm1, %v3083_v2  ;;  %v3686_v8 = vld [vmem:[%s3814_s3] ss:$0 sm:$0xff] }
  0x8c   : > { %2752 = vmatprep.mubr.msk.f32.mxu0 %vm3084_vm1, %v3083_v2 }
  0x8e   : > { %2571 = vmatmul.mubr.msk.f32.gmra.mrb[10].mxu1 %vm227_vm2, %v578_v9 }
  0x8f   : > { %2753 = vmatmul.mubr.msk.f32.gmra.mrb[22].mxu0 %vm227_vm2, %v1384_v10  ;;  %2573 = vmatprep.mubr.msk.f32.mxu1 %vm3084_vm1, %v3083_v2 }
  0x90   : > { %2755 = vmatprep.mubr.msk.f32.mxu0 %vm3084_vm1, %v3083_v2 }
  0x92   : > { %2574 = vmatmul.mubr.msk.f32.gmra.mrb[12].mxu1 %vm227_vm2, %v579_v11 }
  0x93   : > { %2756 = vmatmul.mubr.msk.f32.gmra.mrb[24].mxu0 %vm227_vm2, %v1385_v12  ;;  %2576 = vmatprep.mubr.msk.f32.mxu1 %vm3084_vm1, %v3083_v2 }
  0x94   : > { %2760 = vmatprep.mubr.msk.f32.mxu0 %vm3084_vm1, %v3083_v2 }
  0x96   : > { %2577 = vmatmul.mubr.msk.f32.gmra.mrb[14].mxu1 %vm227_vm2, %v580_v13 }
  0x97   : > { %2761 = vmatmul.mubr.msk.f32.vlgmr.msra.gmra.mrb[0].mxu0 %vm227_vm2, %v1573_v14  ;;  %2579 = vmatprep.mubr.msk.f32.mxu1 %vm3084_vm1, %v3083_v2 }
  0x98   : > { %2800 = vmatpush3.msk.msra.mxu0 %vm267_vm0, %v2326_v15  ;;  %2763 = vmatprep.mubr.msk.f32.mxu0 %vm3084_vm1, %v3083_v2 }
  0x9a   : > { %2580 = vmatmul.mubr.msk.f32.gmra.mrb[16].mxu1 %vm227_vm2, %v581_v16 }
  0x9b   : > { %2764 = vmatmul.mubr.msk.f32.gmra.mrb[2].mxu0 %vm227_vm2, %v1574_v17  ;;  %2582 = vmatprep.mubr.msk.f32.mxu1 %vm3084_vm1, %v3083_v2 }
  0x9c   : > { %2766 = vmatprep.mubr.msk.f32.mxu0 %vm3084_vm1, %v3083_v2 }
  0x9e   : > { %2583 = vmatmul.mubr.msk.f32.gmra.mrb[18].mxu1 %vm227_vm2, %v582_v18 }
  0x9f   : > { %2767 = vmatmul.mubr.msk.f32.gmra.mrb[4].mxu0 %vm227_vm2, %v1575_v19  ;;  %2585 = vmatprep.mubr.msk.f32.mxu1 %vm3084_vm1, %v3083_v2 }
  0xa0   : > { %2769 = vmatprep.mubr.msk.f32.mxu0 %vm3084_vm1, %v3083_v2 }
  0xa2   : > { %2586 = vmatmul.mubr.msk.f32.gmra.mrb[20].mxu1 %vm227_vm2, %v583_v20 }
  0xa3   : > { %2770 = vmatmul.mubr.msk.f32.gmra.mrb[6].mxu0 %vm227_vm2, %v1576_v21  ;;  %2588 = vmatprep.mubr.msk.f32.mxu1 %vm3084_vm1, %v3083_v2 }
  0xa4   : > { %2772 = vmatprep.mubr.msk.f32.mxu0 %vm3084_vm1, %v3083_v2 }
  0xa6   : > { %2589 = vmatmul.mubr.msk.f32.gmra.mrb[22].mxu1 %vm227_vm2, %v584_v22 }
  0xa7   : > { %2773 = vmatmul.mubr.msk.f32.gmra.mrb[8].mxu0 %vm227_vm2, %v1577_v23  ;;  %2591 = vmatprep.mubr.msk.f32.mxu1 %vm3084_vm1, %v3083_v2 }
  0xa8   : > { %2775 = vmatprep.mubr.msk.f32.mxu0 %vm3084_vm1, %v3083_v2 }
  0xaa   : > { %2592 = vmatmul.mubr.msk.f32.gmra.mrb[24].mxu1 %vm227_vm2, %v585_v24 }
  0xab   : > { %2776 = vmatmul.mubr.msk.f32.gmra.mrb[10].mxu0 %vm227_vm2, %v1578_v25  ;;  %2596 = vmatprep.mubr.msk.f32.mxu1 %vm3084_vm1, %v3083_v2 }
  0xac   : > { %2778 = vmatprep.mubr.msk.f32.mxu0 %vm3084_vm1, %v3083_v2 }
  0xae   : > { %2597 = vmatmul.mubr.msk.f32.vlgmr.msra.gmra.mrb[0].mxu1 %vm227_vm2, %v773_v26 }
  0xaf   : > { %2779 = vmatmul.mubr.msk.f32.gmra.mrb[12].mxu0 %vm227_vm2, %v1579_v27  ;;  %2599 = vmatprep.mubr.msk.f32.mxu1 %vm3084_vm1, %v3083_v2 }
  0xb0   : > { %2781 = vmatprep.mubr.msk.f32.mxu0 %vm3084_vm1, %v3083_v2  ;;  %2841 = vmatpush3.msk.msra.mxu1 %vm267_vm0, %v3121_v0  ;;  %v776_v0 = vld [vmem:[%s3143_s24 + $0x1b] sm:$0xff] }
  0xb2   : > { %2600 = vmatmul.mubr.msk.f32.gmra.mrb[2].mxu1 %vm227_vm2, %v774_v28 }
  0xb3   : > { %2782 = vmatmul.mubr.msk.f32.gmra.mrb[14].mxu0 %vm227_vm2, %v1580_v29  ;;  %2602 = vmatprep.mubr.msk.f32.mxu1 %vm3084_vm1, %v3083_v2 }
  0xb4   : > { %2784 = vmatprep.mubr.msk.f32.mxu0 %vm3084_vm1, %v3083_v2 }
  0xb6   : > { %2603 = vmatmul.mubr.msk.f32.gmra.mrb[4].mxu1 %vm227_vm2, %v775_v30 }
  0xb7   : > { %2785 = vmatmul.mubr.msk.f32.gmra.mrb[16].mxu0 %vm227_vm2, %v1581_v31  ;;  %2605 = vmatprep.mubr.msk.f32.mxu1 %vm3084_vm1, %v3083_v2 }
  0xb8   : > { %2787 = vmatprep.mubr.msk.f32.mxu0 %vm3084_vm1, %v3083_v2 }
  0xba   : > { %2606 = vmatmul.mubr.msk.f32.gmra.mrb[6].mxu1 %vm227_vm2, %v776_v0 }
  0xbb   : > { %2788 = vmatmul.mubr.msk.f32.gmra.mrb[18].mxu0 %vm227_vm2, %v1582_v32  ;;  %2608 = vmatprep.mubr.msk.f32.mxu1 %vm3084_vm1, %v3083_v2 }
  0xbc   : > { %2790 = vmatprep.mubr.msk.f32.mxu0 %vm3084_vm1, %v3083_v2 }
  0xbe   : > { %2609 = vmatmul.mubr.msk.f32.gmra.mrb[8].mxu1 %vm227_vm2, %v777_v33 }
  0xbf   : > { %2791 = vmatmul.mubr.msk.f32.gmra.mrb[20].mxu0 %vm227_vm2, %v1583_v34  ;;  %2611 = vmatprep.mubr.msk.f32.mxu1 %vm3084_vm1, %v3083_v2 }
  0xc0   : > { %2793 = vmatprep.mubr.msk.f32.mxu0 %vm3084_vm1, %v3083_v2 }
  0xc2   : > { %2612 = vmatmul.mubr.msk.f32.gmra.mrb[10].mxu1 %vm227_vm2, %v778_v36 }
  0xc3   : > { %2794 = vmatmul.mubr.msk.f32.gmra.mrb[22].mxu0 %vm227_vm2, %v1584_v38  ;;  %2614 = vmatprep.mubr.msk.f32.mxu1 %vm3084_vm1, %v3083_v2 }
  0xc4   : > { %2796 = vmatprep.mubr.msk.f32.mxu0 %vm3084_vm1, %v3083_v2 }
  0xc6   : > { %2615 = vmatmul.mubr.msk.f32.gmra.mrb[12].mxu1 %vm227_vm2, %v779_v40 }
  0xc7   : > { %2797 = vmatmul.mubr.msk.f32.gmra.mrb[24].mxu0 %vm227_vm2, %v1585_v42  ;;  %2617 = vmatprep.mubr.msk.f32.mxu1 %vm3084_vm1, %v3083_v2 }
  0xc8   : > { %2801 = vmatprep.mubr.msk.f32.mxu0 %vm3084_vm1, %v3083_v2 }
  0xca   : > { %2618 = vmatmul.mubr.msk.f32.gmra.mrb[14].mxu1 %vm227_vm2, %v780_v44 }
  0xcb   : > { %2802 = vmatmul.mubr.msk.f32.vlgmr.msra.gmra.mrb[0].mxu0 %vm227_vm2, %v3276_v35  ;;  %2620 = vmatprep.mubr.msk.f32.mxu1 %vm3084_vm1, %v3083_v2  ;;  %v782_v35 = vld [vmem:[%s3143_s24 + $0x4b] sm:$0xff] }
  0xcc   : > { %2804 = vmatprep.mubr.msk.f32.mxu0 %vm3084_vm1, %v3083_v2 }
  0xce   : > { %2621 = vmatmul.mubr.msk.f32.gmra.mrb[16].mxu1 %vm227_vm2, %v781_v46 }
  0xcf   : > { %2805 = vmatmul.mubr.msk.f32.gmra.mrb[2].mxu0 %vm227_vm2, %v3289_v37  ;;  %2623 = vmatprep.mubr.msk.f32.mxu1 %vm3084_vm1, %v3083_v2  ;;  %v783_v37 = vld [vmem:[%s3143_s24 + $0x53] sm:$0xff] }
  0xd0   : > { %2807 = vmatprep.mubr.msk.f32.mxu0 %vm3084_vm1, %v3083_v2 }
  0xd2   : > { %2624 = vmatmul.mubr.msk.f32.gmra.mrb[18].mxu1 %vm227_vm2, %v782_v35 }
  0xd3   : > { %2808 = vmatmul.mubr.msk.f32.gmra.mrb[4].mxu0 %vm227_vm2, %v3300_v39  ;;  %2626 = vmatprep.mubr.msk.f32.mxu1 %vm3084_vm1, %v3083_v2  ;;  %v784_v39 = vld [vmem:[%s3143_s24 + $0x5b] sm:$0xff] }
  0xd4   : > { %2810 = vmatprep.mubr.msk.f32.mxu0 %vm3084_vm1, %v3083_v2 }
  0xd6   : > { %2627 = vmatmul.mubr.msk.f32.gmra.mrb[20].mxu1 %vm227_vm2, %v783_v37 }
  0xd7   : > { %2811 = vmatmul.mubr.msk.f32.gmra.mrb[6].mxu0 %vm227_vm2, %v3311_v41  ;;  %2629 = vmatprep.mubr.msk.f32.mxu1 %vm3084_vm1, %v3083_v2  ;;  %v785_v41 = vld [vmem:[%s3143_s24 + $0x63] sm:$0xf] }
  0xd8   : > { %2813 = vmatprep.mubr.msk.f32.mxu0 %vm3084_vm1, %v3083_v2 }
  0xda   : > { %2630 = vmatmul.mubr.msk.f32.gmra.mrb[22].mxu1 %vm227_vm2, %v784_v39 }
  0xdb   : > { %2814 = vmatmul.mubr.msk.f32.gmra.mrb[8].mxu0 %vm227_vm2, %v3322_v43  ;;  %2632 = vmatprep.mubr.msk.f32.mxu1 %vm3084_vm1, %v3083_v2  ;;  %v980_v43 = vld [vmem:[%s3143_s24 + $0x3c] sm:$0xff] }
  0xdc   : > { %2816 = vmatprep.mubr.msk.f32.mxu0 %vm3084_vm1, %v3083_v2 }
  0xde   : > { %2633 = vmatmul.mubr.msk.f32.gmra.mrb[24].mxu1 %vm227_vm2, %v785_v41 }
  0xdf   : > { %2817 = vmatmul.mubr.msk.f32.gmra.mrb[10].mxu0 %vm227_vm2, %v3333_v45  ;;  %2658 = vmatprep.mubr.msk.f32.mxu1 %vm3084_vm1, %v3083_v2  ;;  %v981_v45 = vld [vmem:[%s3143_s24 + $0x44] sm:$0xff] }
  0xe0   : > { %2819 = vmatprep.mubr.msk.f32.mxu0 %vm3084_vm1, %v3083_v2 }
  0xe2   : > { %2659 = vmatmul.mubr.msk.f32.vlgmr.msra.gmra.mrb[14].mxu1 %vm227_vm2, %v980_v43 }
  0xe3   : > { %2820 = vmatmul.mubr.msk.f32.gmra.mrb[12].mxu0 %vm227_vm2, %v3344_v47  ;;  %2661 = vmatprep.mubr.msk.f32.mxu1 %vm3084_vm1, %v3083_v2  ;;  %v982_v47 = vld [vmem:[%s3143_s24 + $0x4c] sm:$0xff] }
  0xe4   : > { %2822 = vmatprep.mubr.msk.f32.mxu0 %vm3084_vm1, %v3083_v2 }
  0xe6   : > { %2662 = vmatmul.mubr.msk.f32.gmra.mrb[16].mxu1 %vm227_vm2, %v981_v45 }
  0xe7   : > { %2823 = vmatmul.mubr.msk.f32.gmra.mrb[14].mxu0 %vm227_vm2, %v3357_v50  ;;  %2664 = vmatprep.mubr.msk.f32.mxu1 %vm3084_vm1, %v3083_v2  ;;  %v985_v50 = vld [vmem:[%s3143_s24 + $0x64] sm:$0xf] }
  0xe8   : > { %2825 = vmatprep.mubr.msk.f32.mxu0 %vm3084_vm1, %v3083_v2 }
  0xea   : > { %2665 = vmatmul.mubr.msk.f32.gmra.mrb[18].mxu1 %vm227_vm2, %v982_v47 }
  0xeb   : > { %2826 = vmatmul.mubr.msk.f32.gmra.mrb[16].mxu0 %vm227_vm2, %v3371_v52  ;;  %2667 = vmatprep.mubr.msk.f32.mxu1 %vm3084_vm1, %v3083_v2  ;;  %v1785_v52 = vld [vmem:[%s3143_s24 + $0x68] sm:$0xf] }
  0xec   : > { %2828 = vmatprep.mubr.msk.f32.mxu0 %vm3084_vm1, %v3083_v2 }
  0xee   : > { %2668 = vmatmul.mubr.msk.f32.gmra.mrb[20].mxu1 %vm227_vm2, %v983_v48 }
  0xef   : > { %2829 = vmatmul.mubr.msk.f32.gmra.mrb[18].mxu0 %vm227_vm2, %v3382_v54  ;;  %2670 = vmatprep.mubr.msk.f32.mxu1 %vm3084_vm1, %v3083_v2 }
  0xf0   : > { %2831 = vmatprep.mubr.msk.f32.mxu0 %vm3084_vm1, %v3083_v2 }
  0xf2   : > { %2671 = vmatmul.mubr.msk.f32.gmra.mrb[22].mxu1 %vm227_vm2, %v984_v49 }
  0xf3   : > { %2832 = vmatmul.mubr.msk.f32.gmra.mrb[20].mxu0 %vm227_vm2, %v3393_v56  ;;  %2673 = vmatprep.mubr.msk.f32.mxu1 %vm3084_vm1, %v3083_v2 }
  0xf4   : > { %2834 = vmatprep.mubr.msk.f32.mxu0 %vm3084_vm1, %v3083_v2 }
  0xf6   : > { %2674 = vmatmul.mubr.msk.f32.gmra.mrb[24].mxu1 %vm227_vm2, %v985_v50 }
  0xf7   : > { %2835 = vmatmul.mubr.msk.f32.gmra.mrb[22].mxu0 %vm227_vm2, %v1784_v51 }
  0xf8   : > { %2837 = vmatprep.mubr.msk.f32.mxu0 %vm3084_vm1, %v3083_v2  ;;  %v3681_v2 = vld [vmem:[%s3813_s2] ss:$0 sm:$0xff] }
  0xfb   : > { %2838 = vmatmul.mubr.msk.f32.gmra.mrb[24].mxu0 %vm227_vm2, %v1785_v52 }
 0x181   : > { %v896_v53 = vpop.f32.mrb[0].mxu1 }
 0x182   : > { %v2598_v54 = vpop.f32.mrb[1].mxu1 }
 0x185   : > { %v901_v55 = vpop.f32.mrb[2].mxu1 }
 0x186   : > { %v2601_v56 = vpop.f32.mrb[3].mxu1 }
 0x189   : > { %v906_v57 = vpop.f32.mrb[4].mxu1 }
 0x18a   : > { %v2604_v58 = vpop.f32.mrb[5].mxu1 }
 0x18d   : > { %v911_v59 = vpop.f32.mrb[6].mxu1 }
 0x18e   : > { %v2607_v60 = vpop.f32.mrb[7].mxu1 }
 0x191   : > { %v916_v61 = vpop.f32.mrb[8].mxu1 }
 0x192   : > { %v2610_v62 = vpop.f32.mrb[9].mxu1 }
 0x195   : > { %v921_v63 = vpop.f32.mrb[10].mxu1 }
 0x196   : > { %v2613_v1 = vpop.f32.mrb[11].mxu1 }
 0x199   : > { %v926_v3 = vpop.f32.mrb[12].mxu1 }
 0x19a   : > { %v2616_v4 = vpop.f32.mrb[13].mxu1 }
 0x19e   : > { %v1896_v5 = vpop.f32.mrb[0].mxu0 }
 0x19f   : > { %v2842_v6 = vadd.f32 %v1896_v5, %v896_v53  ;;  %v2803_v7 = vpop.f32.mrb[1].mxu0 }
 0x1a1   : > { %v1980_v9 = vmul.f32 %v2842_v6, %v3681_v2 }
 0x1a2   : > { %v1901_v10 = vpop.f32.mrb[2].mxu0 }
 0x1a3   : > { %v2000_v11 = vadd.f32 %v3686_v8, %v1980_v9  ;;  %v2843_v12 = vadd.f32 %v1901_v10, %v901_v55  ;;  %v2806_v13 = vpop.f32.mrb[3].mxu0 }
 0x1a5   : > { %v2026_v14 = vmul.f32 0.044715, %v2000_v11  ;;  %v1981_v15 = vmul.f32 %v2843_v12, %v3681_v2  ;;  %v2013_v4 = vmul.f32 0.5, %v2000_v11 }
 0x1a6   : > { %v1906_v16 = vpop.f32.mrb[4].mxu0 }
 0x1a7   : > { %v2039_v17 = vmul.f32 %v2026_v14, %v2000_v11  ;;  %v3692_v18 = vadd.f32 %v3686_v8, %v1981_v15  ;;  %v2844_v19 = vadd.f32 %v1906_v16, %v906_v57  ;;  %v2809_v20 = vpop.f32.mrb[5].mxu0 }
 0x1a9   : > { %v2052_v21 = vmul.f32 %v2039_v17, %v2000_v11  ;;  %v2027_v22 = vmul.f32 0.044715, %v3692_v18  ;;  %v1982_v23 = vmul.f32 %v2844_v19, %v3681_v2 }
 0x1aa   : > { %v1911_v24 = vpop.f32.mrb[6].mxu0 }
 0x1ab   : > { %v2065_v25 = vadd.f32 %v2052_v21, %v2000_v11  ;;  %v2040_v26 = vmul.f32 %v2027_v22, %v3692_v18  ;;  %v3698_v27 = vadd.f32 %v3686_v8, %v1982_v23  ;;  %v2845_v28 = vadd.f32 %v1911_v24, %v911_v59  ;;  %v2812_v29 = vpop.f32.mrb[7].mxu0 }
 0x1ac   : > { %v2014_v21 = vmul.f32 0.5, %v3692_v18 }
 0x1ad   : > { %v2078_v30 = vmul.f32 0.7978846, %v2065_v25  ;;  %v2053_v31 = vmul.f32 %v2040_v26, %v3692_v18  ;;  %v2028_v0 = vmul.f32 0.044715, %v3698_v27  ;;  %v1983_v32 = vmul.f32 %v2845_v28, %v3681_v2 }
 0x1ae   : > { %v1916_v33 = vpop.f32.mrb[8].mxu0 }
 0x1af   : > { %3049 = vtanh.f32 %v2078_v30  ;;  %v2066_v34 = vadd.f32 %v2053_v31, %v3692_v18  ;;  %v2041_v36 = vmul.f32 %v2028_v0, %v3698_v27  ;;  %v2846_v38 = vadd.f32 %v1916_v33, %v916_v61  ;;  %v2815_v40 = vpop.f32.mrb[9].mxu0 }
 0x1b0   : > { %v3706_v42 = vadd.f32 %v3686_v8, %v1983_v32 }
 0x1b1   : > { %v2079_v44 = vmul.f32 0.7978846, %v2066_v34  ;;  %v2054_v46 = vmul.f32 %v2041_v36, %v3698_v27  ;;  %v1984_v35 = vmul.f32 %v2846_v38, %v3681_v2  ;;  %v2015_v38 = vmul.f32 0.5, %v3698_v27 }
 0x1b2   : > { %v2029_v37 = vmul.f32 0.044715, %v3706_v42  ;;  %v1921_v39 = vpop.f32.mrb[10].mxu0 }
 0x1b3   : > { %3051 = vtanh.f32 %v2079_v44  ;;  %v2067_v41 = vadd.f32 %v2054_v46, %v3698_v27  ;;  %v3713_v43 = vadd.f32 %v3686_v8, %v1984_v35  ;;  %v2847_v45 = vadd.f32 %v1921_v39, %v921_v63  ;;  %v2818_v47 = vpop.f32.mrb[11].mxu0 }
 0x1b4   : > { %v2042_v48 = vmul.f32 %v2029_v37, %v3706_v42 }
 0x1b5   : > { %v2080_v49 = vmul.f32 0.7978846, %v2067_v41  ;;  %v2030_v50 = vmul.f32 0.044715, %v3713_v43  ;;  %v1985_v51 = vmul.f32 %v2847_v45, %v3681_v2  ;;  %v1131_v53 = vpop.f32.mrb[14].mxu1 }
 0x1b6   : > { %v2055_v52 = vmul.f32 %v2042_v48, %v3706_v42  ;;  %v1926_v54 = vpop.f32.mrb[12].mxu0  ;;  %v2660_v58 = vpop.f32.mrb[15].mxu1 }
 0x1b7   : > { %3053 = vtanh.f32 %v2080_v49  ;;  %v2043_v55 = vmul.f32 %v2030_v50, %v3713_v43  ;;  %v3722_v56 = vadd.f32 %v3686_v8, %v1985_v51  ;;  %v2848_v57 = vadd.f32 %v1926_v54, %v926_v3  ;;  %v2821_v59 = vpop.f32.mrb[13].mxu0 }
 0x1b8   : > { %v2068_v60 = vadd.f32 %v2055_v52, %v3706_v42 }
 0x1b9   : > { %v3050_v61 = vpop.eup %3049  ;;  %v2056_v62 = vmul.f32 %v2043_v55, %v3713_v43  ;;  %v2031_v63 = vmul.f32 0.044715, %v3722_v56  ;;  %v1986_v1 = vmul.f32 %v2848_v57, %v3681_v2  ;;  %v1136_v7 = vpop.f32.mrb[16].mxu1 }
 0x1ba   : > { %v2104_v5 = vadd.f32 1.0, %v3050_v61  ;;  %v2081_v6 = vmul.f32 0.7978846, %v2068_v60  ;;  %v1931_v9 = vpop.f32.mrb[14].mxu0  ;;  %v2663_v14 = vpop.f32.mrb[17].mxu1 }
 0x1bb   : > { %v2069_v3 = vadd.f32 %v2056_v62, %v3713_v43  ;;  %v2044_v10 = vmul.f32 %v2031_v63, %v3722_v56  ;;  %v3736_v12 = vadd.f32 %v3686_v8, %v1986_v1  ;;  %v2849_v13 = vadd.f32 %v1931_v9, %v1131_v53  ;;  %v2824_v11 = vpop.f32.mrb[15].mxu0 }
 0x1bc   : > { %v2117_v15 = vmul.f32 %v2104_v5, %v2013_v4  ;;  %3055 = vtanh.f32 %v2081_v6  ;;  %v2016_v53 = vmul.f32 0.5, %v3706_v42 }
 0x1bd   : > { %v3052_v16 = vpop.eup %3051  ;;  %v2082_v17 = vmul.f32 0.7978846, %v2069_v3  ;;  %v2057_v19 = vmul.f32 %v2044_v10, %v3722_v56  ;;  %v2032_v20 = vmul.f32 0.044715, %v3736_v12  ;;  %v1987_v23 = vmul.f32 %v2849_v13, %v3681_v2  ;;  %v1141_v24 = vpop.f32.mrb[18].mxu1 }
 0x1be   : > { %2131 = vst.msk [vmem:[%s3731_s21] sm:$0xff] %vm2130_vm3, %v2117_v15  ;;  %v2105_v22 = vadd.f32 1.0, %v3052_v16  ;;  %v1936_v25 = vpop.f32.mrb[16].mxu0  ;;  %v2666_v30 = vpop.f32.mrb[19].mxu1 }
 0x1bf   : > { %3057 = vtanh.f32 %v2082_v17  ;;  %v2070_v26 = vadd.f32 %v2057_v19, %v3722_v56  ;;  %v2045_v28 = vmul.f32 %v2032_v20, %v3736_v12  ;;  %v2850_v29 = vadd.f32 %v1936_v25, %v1136_v7  ;;  %v2827_v31 = vpop.f32.mrb[17].mxu0 }
 0x1c0   : > { %v2118_v0 = vmul.f32 %v2105_v22, %v2014_v21  ;;  %v3747_v32 = vadd.f32 %v3686_v8, %v1987_v23  ;;  %v2017_v7 = vmul.f32 0.5, %v3713_v43  ;;  %v2018_v25 = vmul.f32 0.5, %v3722_v56 }
 0x1c1   : > { %v3054_v33 = vpop.eup %3053  ;;  %v2083_v18 = vmul.f32 0.7978846, %v2070_v26  ;;  %v2058_v34 = vmul.f32 %v2045_v28, %v3736_v12  ;;  %v1988_v36 = vmul.f32 %v2850_v29, %v3681_v2  ;;  %v1146_v46 = vpop.f32.mrb[20].mxu1  ;;  %v2019_v56 = vmul.f32 0.5, %v3736_v12 }
 0x1c2   : > { %2132 = vst.msk [vmem:[%s3731_s21 + $0x8] sm:$0xff] %vm2130_vm3, %v2118_v0  ;;  %v2106_v40 = vadd.f32 1.0, %v3054_v33  ;;  %v2033_v44 = vmul.f32 0.044715, %v3747_v32  ;;  %v1941_v35 = vpop.f32.mrb[18].mxu0  ;;  %v2669_v45 = vpop.f32.mrb[21].mxu1 }
 0x1c3   : > { %3059 = vtanh.f32 %v2083_v18  ;;  %v2071_v37 = vadd.f32 %v2058_v34, %v3736_v12  ;;  %v3757_v39 = vadd.f32 %v3686_v8, %v1988_v36  ;;  %v2851_v41 = vadd.f32 %v1941_v35, %v1141_v24  ;;  %v2830_v47 = vpop.f32.mrb[19].mxu0 }
 0x1c4   : > { %v2119_v48 = vmul.f32 %v2106_v40, %v2015_v38  ;;  %v2046_v49 = vmul.f32 %v2033_v44, %v3747_v32 }
 0x1c5   : > { %v2084_v50 = vmul.f32 0.7978846, %v2071_v37  ;;  %v2034_v27 = vmul.f32 0.044715, %v3757_v39  ;;  %v1989_v51 = vmul.f32 %v2851_v41, %v3681_v2  ;;  %v1151_v55 = vpop.f32.mrb[22].mxu1 }
 0x1c6   : > { %v3056_v52 = vpop.eup %3055  ;;  %2133 = vst.msk [vmem:[%s3731_s21 + $0x10] sm:$0xff] %vm2130_vm3, %v2119_v48  ;;  %v2059_v54 = vmul.f32 %v2046_v49, %v3747_v32  ;;  %v1946_v57 = vpop.f32.mrb[20].mxu0 }
 0x1c7   : > { %v2107_v58 = vadd.f32 1.0, %v3056_v52  ;;  %3061 = vtanh.f32 %v2084_v50  ;;  %v2047_v59 = vmul.f32 %v2034_v27, %v3757_v39  ;;  %v3768_v60 = vadd.f32 %v3686_v8, %v1989_v51  ;;  %v2672_v61 = vpop.f32.mrb[23].mxu1  ;;  %v2833_v62 = vpop.f32.mrb[21].mxu0 }
 0x1c8   : > { %v2072_v63 = vadd.f32 %v2059_v54, %v3747_v32  ;;  %v2852_v1 = vadd.f32 %v1946_v57, %v1146_v46  ;;  %v2021_v57 = vmul.f32 0.5, %v3757_v39 }
 0x1c9   : > { %v3058_v4 = vpop.eup %3057  ;;  %v2120_v5 = vmul.f32 %v2107_v58, %v2016_v53  ;;  %v2060_v42 = vmul.f32 %v2047_v59, %v3757_v39  ;;  %v2035_v6 = vmul.f32 0.044715, %v3768_v60  ;;  %v1156_v13 = vpop.f32.mrb[24].mxu1 }
 0x1ca   : > { %v2108_v9 = vadd.f32 1.0, %v3058_v4  ;;  %v2085_v3 = vmul.f32 0.7978846, %v2072_v63  ;;  %v1990_v10 = vmul.f32 %v2852_v1, %v3681_v2  ;;  %v1951_v14 = vpop.f32.mrb[22].mxu0  ;;  %v2675_v17 = vpop.f32.mrb[25].mxu1  ;;  %v2022_v63 = vmul.f32 0.5, %v3768_v60 }
 0x1cb   : > { %2134 = vst.msk [vmem:[%s3731_s21 + $0x18] sm:$0xff] %vm2130_vm3, %v2120_v5  ;;  %v2073_v11 = vadd.f32 %v2060_v42, %v3757_v39  ;;  %v2048_v15 = vmul.f32 %v2035_v6, %v3768_v60  ;;  %v2853_v16 = vadd.f32 %v1951_v14, %v1151_v55  ;;  %v2836_v19 = vpop.f32.mrb[23].mxu0 }
 0x1cc   : > { %v2121_v20 = vmul.f32 %v2108_v9, %v2017_v7  ;;  %3063 = vtanh.f32 %v2085_v3  ;;  %v2010_v43 = vadd.f32 %v3686_v8, %v1990_v10 }
 0x1cd   : > { %v3060_v21 = vpop.eup %3059  ;;  %v2086_v22 = vmul.f32 0.7978846, %v2073_v11  ;;  %v2061_v23 = vmul.f32 %v2048_v15, %v3768_v60  ;;  %v1991_v24 = vmul.f32 %v2853_v16, %v3681_v2 }
 0x1ce   : > { %2135 = vst.msk [vmem:[%s3731_s21 + $0x20] sm:$0xff] %vm2130_vm3, %v2121_v20  ;;  %v2109_v26 = vadd.f32 1.0, %v3060_v21  ;;  %v2036_v28 = vmul.f32 0.044715, %v2010_v43  ;;  %v1956_v29 = vpop.f32.mrb[24].mxu0  ;;  %v2023_v39 = vmul.f32 0.5, %v2010_v43 }
 0x1cf   : > { %3065 = vtanh.f32 %v2086_v22  ;;  %v2074_v30 = vadd.f32 %v2061_v23, %v3768_v60  ;;  %v2011_v31 = vadd.f32 %v3686_v8, %v1991_v24  ;;  %v2854_v0 = vadd.f32 %v1956_v29, %v1156_v13  ;;  %v2839_v33 = vpop.f32.mrb[25].mxu0 }
 0x1d0   : > { %v2122_v18 = vmul.f32 %v2109_v26, %v2018_v25  ;;  %v2049_v34 = vmul.f32 %v2036_v28, %v2010_v43 }
 0x1d1   : > { %v3062_v36 = vpop.eup %3061  ;;  %v2087_v38 = vmul.f32 0.7978846, %v2074_v30  ;;  %v2037_v40 = vmul.f32 0.044715, %v2011_v31  ;;  %v1992_v44 = vmul.f32 %v2854_v0, %v3681_v2  ;;  %v2020_v2 = vmul.f32 0.5, %v3747_v32 }
 0x1d2   : > { %2136 = vst.msk [vmem:[%s3731_s21 + $0x28] sm:$0xff] %vm2130_vm3, %v2122_v18  ;;  %v2110_v46 = vadd.f32 1.0, %v3062_v36  ;;  %v2062_v35 = vmul.f32 %v2049_v34, %v2010_v43  ;;  %v2024_v9 = vmul.f32 0.5, %v2011_v31 }
 0x1d3   : > { %3067 = vtanh.f32 %v2087_v38  ;;  %v2050_v37 = vmul.f32 %v2037_v40, %v2011_v31  ;;  %v2012_v41 = vadd.f32 %v3686_v8, %v1992_v44 }
 0x1d4   : > { %v2123_v45 = vmul.f32 %v2110_v46, %v2019_v56  ;;  %v2075_v47 = vadd.f32 %v2062_v35, %v2010_v43 }
 0x1d5   : > { %v2063_v48 = vmul.f32 %v2050_v37, %v2011_v31  ;;  %v2038_v49 = vmul.f32 0.044715, %v2012_v41  ;;  %v2025_v60 = vmul.f32 0.5, %v2012_v41 }
 0x1d6   : > { %v3064_v50 = vpop.eup %3063  ;;  %2137 = vst.msk [vmem:[%s3731_s21 + $0x30] sm:$0xff] %vm2130_vm3, %v2123_v45  ;;  %v2088_v27 = vmul.f32 0.7978846, %v2075_v47 }
 0x1d7   : > { %v2111_v51 = vadd.f32 1.0, %v3064_v50  ;;  %v2076_v12 = vadd.f32 %v2063_v48, %v2011_v31  ;;  %v2051_v52 = vmul.f32 %v2038_v49, %v2012_v41 }
 0x1d8   : > { %3069 = vtanh.f32 %v2088_v27 }
 0x1d9   : > { %v3066_v53 = vpop.eup %3065  ;;  %v2124_v54 = vmul.f32 %v2111_v51, %v2020_v2  ;;  %v2089_v55 = vmul.f32 0.7978846, %v2076_v12  ;;  %v2064_v8 = vmul.f32 %v2051_v52, %v2012_v41 }
 0x1da   : > { %v2112_v58 = vadd.f32 1.0, %v3066_v53 }
 0x1db   : > { %2138 = vst.msk [vmem:[%s3731_s21 + $0x38] sm:$0xff] %vm2130_vm3, %v2124_v54  ;;  %3071 = vtanh.f32 %v2089_v55  ;;  %v2077_v59 = vadd.f32 %v2064_v8, %v2012_v41 }
 0x1dc   : > { %v2125_v61 = vmul.f32 %v2112_v58, %v2021_v57 }
 0x1dd   : > { %v3068_v32 = vpop.eup %3067  ;;  %v2090_v62 = vmul.f32 0.7978846, %v2077_v59 }
 0x1de   : > { %2139 = vst.msk [vmem:[%s3731_s21 + $0x40] sm:$0xff] %vm2130_vm3, %v2125_v61  ;;  %v2113_v1 = vadd.f32 1.0, %v3068_v32 }
 0x1df   : > { %3073 = vtanh.f32 %v2090_v62 }
 0x1e0   : > { %v2126_v4 = vmul.f32 %v2113_v1, %v2022_v63 }
 0x1e2   : > { %v3070_v5 = vpop.eup %3069  ;;  %2140 = vst.msk [vmem:[%s3731_s21 + $0x48] sm:$0xff] %vm2130_vm3, %v2126_v4 }
 0x1e3   : > { %v2114_v42 = vadd.f32 1.0, %v3070_v5 }
 0x1e5   : > { %v3072_v6 = vpop.eup %3071  ;;  %v2127_v7 = vmul.f32 %v2114_v42, %v2023_v39 }
 0x1e6   : > { %v2115_v3 = vadd.f32 1.0, %v3072_v6 }
 0x1e7   : > { %2141 = vst.msk [vmem:[%s3731_s21 + $0x50] sm:$0xff] %vm2130_vm3, %v2127_v7 }
 0x1e8   : > { %v2128_v10 = vmul.f32 %v2115_v3, %v2024_v9 }
 0x1e9   : > { %v3074_v13 = vpop.eup %3073 }
 0x1ea   : > { %2142 = vst.msk [vmem:[%s3731_s21 + $0x58] sm:$0xff] %vm2130_vm3, %v2128_v10  ;;  %v2116_v14 = vadd.f32 1.0, %v3074_v13 }
 0x1ec   : > { %v2129_v11 = vmul.f32 %v2116_v14, %v2025_v60 }
 0x1ee   : > { %2144 = vst.msk [vmem:[%s3731_s21 + $0x60] sm:$0xf] %vm2143_vm4, %v2129_v11 }
 0x1ef PF: > { %s14_s15 = sadd.s32 1, %s3081_s15  }
 0x1f0   : > { %p11_p4 = scmp.ge.s32.totalorder %s14_s15, 4  }
 0x1f2   :  { %13 = sbr.rel (!%p11_p4) target bundleno = 1 (0x1), region = 74 }

// kernel: ducnn_forward.14
= control target key start
LH: loop header
LB: loop body
LE: loop exit
PB: predicated region body
PF: predicated region fallthrough
CT: control target
= control target key end

     0   :  { %s232_s6 = smov 0   ;;  %s253_s0 = inlined_call_operand.vmem [shape: f32[2,4,14,128], index: 0, kind: input, shape index: {}]   ;;  %s254_s1 = inlined_call_operand.vmem [shape: f32[2,14,128], index: 1, kind: output, shape index: {}]  }
   0x1 LB: > { %s193_s7 = sadd.s32 4294967295, %s220_s6   ;;  %p197_p0 = scmp.ge.s32.totalorder %s220_s6, 1  ;;  %s220_s6 = sphi %s232_s6, %s11_s6  }
   0x2   : > { %p87_p1 = scmp.lt.s32.totalorder %s220_s6, 3 }
   0x4   : > { %p88_p2 = pnand %p197_p0, %p87_p1 }
   0x5   : > { %p107_p3 = scmp.lt.s32.totalorder (!%p88_p2), %s193_s7, 1  ;;  %vm128_vm0 = vcmask (!%p88_p2), 1045504  }
   0x6   : > { %91 = sbr.rel (%p88_p2) target bundleno = 25 (0x19), region = 24 }
   0xd   : > { %s256_s7 = smov (!%p107_p3, %s193_s7), 1 }
   0xe   : > { %s204_s8 = sshll.u32 %s256_s7, 6  ;;  %s205_s12 = sshll.u32 %s256_s7, 4 }
   0xf   : > { %s111_s11 = scalar_lea.vmem %s253_s0, %s204_s8  ;;  %s116_s15 = scalar_lea.vmem %s254_s1, %s205_s12 }
  0x10   : > { %v117_v0 = vld [vmem:[%s111_s11] sm:$0xff]  ;;  %v119_v1 = vld [vmem:[%s111_s11 + $0x10] sm:$0xff]  ;;  %v118_v5 = vld [vmem:[%s111_s11 + $0x8] sm:$0x3f] }
  0x11   : > { %v121_v2 = vld [vmem:[%s111_s11 + $0x20] sm:$0xff]  ;;  %v123_v3 = vld [vmem:[%s111_s11 + $0x30] sm:$0xff]  ;;  %v120_v6 = vld [vmem:[%s111_s11 + $0x18] sm:$0x3f]  ;;  %v129_v10 = vsel %vm128_vm0, %v118_v5, -inf }
  0x12   : > { %v125_v4 = vmax.f32 %v117_v0, %v121_v2  ;;  %v126_v7 = vmax.f32 %v119_v1, %v123_v3  ;;  %v122_v8 = vld [vmem:[%s111_s11 + $0x28] sm:$0x3f]  ;;  %v124_v9 = vld [vmem:[%s111_s11 + $0x38] sm:$0x3f]  ;;  %v130_v11 = vsel %vm128_vm0, %v120_v6, -inf }
  0x13   : > { %v131_v12 = vsel %vm128_vm0, %v122_v8, -inf  ;;  %v133_v13 = vsel %vm128_vm0, %v124_v9, -inf }
  0x14   : > { %v127_v14 = vmax.f32 %v125_v4, %v126_v7  ;;  %v132_v15 = vmax.f32 %v129_v10, %v131_v12  ;;  %v134_v16 = vmax.f32 %v130_v11, %v133_v13 }
  0x16   : > { %136 = vst [vmem:[%s116_s15] sm:$0xff] %v127_v14  ;;  %v135_v17 = vmax.f32 %v132_v15, %v134_v16 }
  0x18   : > { %137 = vst [vmem:[%s116_s15 + $0x8] sm:$0x3f] %v135_v17 }
  0x19 PF: > { %s11_s6 = sadd.s32 1, %s220_s6  }
  0x1a   : > { %p8_p4 = scmp.ge.s32.totalorder %s11_s6, 4  }
  0x1c   :  { %10 = sbr.rel (!%p8_p4) target bundleno = 1 (0x1), region = 54 }

// kernel: ducnn_forward.13
= control target key start
LH: loop header
LB: loop body
LE: loop exit
PB: predicated region body
PF: predicated region fallthrough
CT: control target
= control target key end

     0   :  { %s2462_s15 = smov 0   ;;  %s3166_s0 = inlined_call_operand.vmem [shape: f32[2,60,128], index: 0, kind: input, shape index: {}]   ;;  %s3167_s1 = inlined_call_operand.vmem [shape: f32[8,128,128], index: 1, kind: input, shape index: {}]   ;;  %s3168_s2 = inlined_call_operand.vmem [shape: f32[1,128], index: 2, kind: input, shape index: {}]   ;;  %s3169_s3 = inlined_call_operand.vmem [shape: f32[1,128], index: 3, kind: input, shape index: {}]   ;;  %s3170_s4 = inlined_call_operand.vmem [shape: f32[2,53,128], index: 4, kind: output, shape index: {}]  }
   0x1 LB: > { %s1384_s16 = sadd.s32 4294967295, %s2432_s15   ;;  %p1388_p0 = scmp.ge.s32.totalorder %s2432_s15, 1  ;;  %s2432_s15 = sphi %s2462_s15, %s14_s15  }
   0x2   : > { %p162_p1 = scmp.lt.s32.totalorder %s2432_s15, 3 }
   0x4   : > { %p163_p2 = pnand %p1388_p0, %p162_p1 }
   0x5   : > { %v1392_v0 = vld [vmem:[%s3167_s1 + $0x80] sm:$0xff] (!%p163_p2)  ;;  %v1393_v1 = vld [vmem:[%s3167_s1 + $0x88] sm:$0xff] (!%p163_p2)  ;;  %v2434_v3 = vmov (!%p163_p2), 0.0|0.0   ;;  %v1394_v6 = vld [vmem:[%s3167_s1 + $0x90] sm:$0xff] (!%p163_p2)  ;;  %vm2435_vm0 = vmmov (!%p163_p2), 0   ;;  %v2436_v11 = vmov (!%p163_p2), 0.0  }
   0x6   : > { %166 = sbr.rel (%p163_p2) target bundleno = 404 (0x194), region = 36  ;;  %v1440_v2 = vld [vmem:[%s3167_s1 + $0x200] sm:$0xff] (!%p163_p2)  ;;  %2117 = vmatprep.subr.bf16.mxu1 (!%p163_p2), %v2434_v3  ;;  %2213 = vmatprep.subr.bf16.mxu0 (!%p163_p2), %v2434_v3  ;;  %v2118_v4 = vpack.c.bf16 (!%p163_p2), %v1393_v1, %v1392_v0  ;;  %v1441_v5 = vld [vmem:[%s3167_s1 + $0x208] sm:$0xff] (!%p163_p2)  ;;  %v1395_v7 = vld [vmem:[%s3167_s1 + $0x98] sm:$0xff] (!%p163_p2)  ;;  %p188_p3 = scmp.lt.s32.totalorder (!%p163_p2), %s1384_s16, 1 }
   0x7   : > { %v2214_v8 = vpack.c.bf16 (!%p163_p2), %v1441_v5, %v1440_v2  ;;  %v1442_v9 = vld [vmem:[%s3167_s1 + $0x210] sm:$0xff] (!%p163_p2)  ;;  %v1443_v10 = vld [vmem:[%s3167_s1 + $0x218] sm:$0xff] (!%p163_p2)  ;;  %1725 = vmatprep.mubr.msk.f32.mxu1 (!%p163_p2), %vm2435_vm0, %v2436_v11  ;;  %1937 = vmatprep.mubr.msk.f32.mxu0 (!%p163_p2), %vm2435_vm0, %v2436_v11  ;;  %v2121_v12 = vpack.c.bf16 (!%p163_p2), %v1395_v7, %v1394_v6  ;;  %v1396_v14 = vld [vmem:[%s3167_s1 + $0xa0] sm:$0xff] (!%p163_p2) }
   0x8   : > { %2119 = vmatpush3.bf16.msra.mxu1 (!%p163_p2), %v2118_v4  ;;  %v2217_v13 = vpack.c.bf16 (!%p163_p2), %v1443_v10, %v1442_v9  ;;  %v1397_v15 = vld [vmem:[%s3167_s1 + $0xa8] sm:$0xff] (!%p163_p2)  ;;  %v1444_v16 = vld [vmem:[%s3167_s1 + $0x220] sm:$0xff] (!%p163_p2)  ;;  %v1398_v20 = vld [vmem:[%s3167_s1 + $0xb0] sm:$0xff] (!%p163_p2) }
   0x9   : > { %2215 = vmatpush3.bf16.msra.mxu0 (!%p163_p2), %v2214_v8  ;;  %2120 = vmatprep.subr.bf16.mxu1 (!%p163_p2), %v2434_v3  ;;  %v1445_v17 = vld [vmem:[%s3167_s1 + $0x228] sm:$0xff] (!%p163_p2)  ;;  %v2124_v18 = vpack.c.bf16 (!%p163_p2), %v1397_v15, %v1396_v14  ;;  %v1399_v21 = vld [vmem:[%s3167_s1 + $0xb8] sm:$0xff] (!%p163_p2)  ;;  %v1446_v22 = vld [vmem:[%s3167_s1 + $0x230] sm:$0xff] (!%p163_p2) }
   0xa   : > { %2216 = vmatprep.subr.bf16.mxu0 (!%p163_p2), %v2434_v3  ;;  %v2220_v19 = vpack.c.bf16 (!%p163_p2), %v1445_v17, %v1444_v16  ;;  %v1447_v23 = vld [vmem:[%s3167_s1 + $0x238] sm:$0xff] (!%p163_p2)  ;;  %v2127_v24 = vpack.c.bf16 (!%p163_p2), %v1399_v21, %v1398_v20  ;;  %v1400_v26 = vld [vmem:[%s3167_s1 + $0xc0] sm:$0xff] (!%p163_p2)  ;;  %v1401_v27 = vld [vmem:[%s3167_s1 + $0xc8] sm:$0xff] (!%p163_p2) }
   0xb   : > { %v2223_v25 = vpack.c.bf16 (!%p163_p2), %v1447_v23, %v1446_v22  ;;  %v1448_v28 = vld [vmem:[%s3167_s1 + $0x240] sm:$0xff] (!%p163_p2)  ;;  %v1449_v29 = vld [vmem:[%s3167_s1 + $0x248] sm:$0xff] (!%p163_p2)  ;;  %v2130_v30 = vpack.c.bf16 (!%p163_p2), %v1401_v27, %v1400_v26  ;;  %v1402_v32 = vld [vmem:[%s3167_s1 + $0xd0] sm:$0xff] (!%p163_p2) }
   0xc   : > { %2122 = vmatpush3.bf16.msra.mxu1 (!%p163_p2), %v2121_v12  ;;  %v2226_v31 = vpack.c.bf16 (!%p163_p2), %v1449_v29, %v1448_v28  ;;  %v1403_v33 = vld [vmem:[%s3167_s1 + $0xd8] sm:$0xff] (!%p163_p2)  ;;  %v1450_v34 = vld [vmem:[%s3167_s1 + $0x250] sm:$0xff] (!%p163_p2)  ;;  %v1404_v38 = vld [vmem:[%s3167_s1 + $0xe0] sm:$0xff] (!%p163_p2) }
   0xd   : > { %2218 = vmatpush3.bf16.msra.mxu0 %v2217_v13  ;;  %2123 = vmatprep.subr.bf16.mxu1 %v2434_v3  ;;  %v1451_v35 = vld [vmem:[%s3167_s1 + $0x258] sm:$0xff]  ;;  %v2133_v36 = vpack.c.bf16 %v1403_v33, %v1402_v32  ;;  %v1405_v39 = vld [vmem:[%s3167_s1 + $0xe8] sm:$0xff]  ;;  %v1452_v40 = vld [vmem:[%s3167_s1 + $0x260] sm:$0xff]  ;;  %s3172_s16 = smov (!%p188_p3, %s1384_s16), 1 }
   0xe   : > { %2219 = vmatprep.subr.bf16.mxu0 %v2434_v3  ;;  %v2229_v37 = vpack.c.bf16 %v1451_v35, %v1450_v34  ;;  %v1453_v41 = vld [vmem:[%s3167_s1 + $0x268] sm:$0xff]  ;;  %v2136_v42 = vpack.c.bf16 %v1405_v39, %v1404_v38  ;;  %v1406_v44 = vld [vmem:[%s3167_s1 + $0xf0] sm:$0xff]  ;;  %v1407_v45 = vld [vmem:[%s3167_s1 + $0xf8] sm:$0xff]  ;;  %s1508_s7 = sshll.u32 %s3172_s16, 6 }
   0xf   : > { %v2232_v43 = vpack.c.bf16 %v1453_v41, %v1452_v40  ;;  %v1454_v46 = vld [vmem:[%s3167_s1 + $0x270] sm:$0xff]  ;;  %v1455_v47 = vld [vmem:[%s3167_s1 + $0x278] sm:$0xff]  ;;  %v2139_v48 = vpack.c.bf16 %v1407_v45, %v1406_v44  ;;  %s2595_s10 = scalar_lea.vmem %s3166_s0, %s1508_s7  ;;  %v205_v50 = vld [vmem:[%s3167_s1] sm:$0xff] }
  0x10   : > { %2125 = vmatpush3.bf16.msra.mxu1 %v2124_v18  ;;  %v2235_v49 = vpack.c.bf16 %v1455_v47, %v1454_v46  ;;  %v206_v51 = vld [vmem:[%s3167_s1 + $0x8] sm:$0xff]  ;;  %v1456_v52 = vld [vmem:[%s3167_s1 + $0x280] sm:$0xff]  ;;  %v207_v58 = vld [vmem:[%s3167_s1 + $0x10] sm:$0xff] }
  0x11   : > { %2221 = vmatpush3.bf16.msra.mxu0 %v2220_v19  ;;  %2126 = vmatprep.subr.bf16.mxu1 %v2434_v3  ;;  %v1457_v53 = vld [vmem:[%s3167_s1 + $0x288] sm:$0xff]  ;;  %v2142_v55 = vpack.c.bf16 %v206_v51, %v205_v50  ;;  %v208_v59 = vld [vmem:[%s3167_s1 + $0x18] sm:$0xff]  ;;  %v1458_v60 = vld [vmem:[%s3167_s1 + $0x290] sm:$0xff] }
  0x12   : > { %2222 = vmatprep.subr.bf16.mxu0 %v2434_v3  ;;  %v221_v54 = vld [vmem:[%s2595_s10 + $0x1] sm:$0xff]  ;;  %v2238_v57 = vpack.c.bf16 %v1457_v53, %v1456_v52  ;;  %v1459_v61 = vld [vmem:[%s3167_s1 + $0x298] sm:$0xff]  ;;  %v2145_v62 = vpack.c.bf16 %v208_v59, %v207_v58  ;;  %v222_v63 = vld [vmem:[%s2595_s10 + $0x9] sm:$0xff] }
  0x13   : > { %v707_v56 = vld [vmem:[%s2595_s10 + $0x4] sm:$0xff]  ;;  %v2241_v0 = vpack.c.bf16 %v1459_v61, %v1458_v60  ;;  %v708_v4 = vld [vmem:[%s2595_s10 + $0xc] sm:$0xff]  ;;  %v212_v12 = vld [vmem:[%s3167_s1 + $0x38] sm:$0xff] }
  0x14   : > { %2128 = vmatpush3.bf16.msra.mxu1 %v2127_v24  ;;  %v209_v1 = vld [vmem:[%s3167_s1 + $0x20] sm:$0xff]  ;;  %v210_v2 = vld [vmem:[%s3167_s1 + $0x28] sm:$0xff]  ;;  %v223_v8 = vld [vmem:[%s2595_s10 + $0x11] sm:$0xff] }
  0x15   : > { %2224 = vmatpush3.bf16.msra.mxu0 %v2223_v25  ;;  %2129 = vmatprep.subr.bf16.mxu1 %v2434_v3  ;;  %v1460_v5 = vld [vmem:[%s3167_s1 + $0x2a0] sm:$0xff]  ;;  %v1461_v6 = vld [vmem:[%s3167_s1 + $0x2a8] sm:$0xff]  ;;  %v2148_v7 = vpack.c.bf16 %v210_v2, %v209_v1  ;;  %v211_v10 = vld [vmem:[%s3167_s1 + $0x30] sm:$0xff] }
  0x16   : > { %2225 = vmatprep.subr.bf16.mxu0 %v2434_v3  ;;  %v2244_v9 = vpack.c.bf16 %v1461_v6, %v1460_v5  ;;  %v709_v13 = vld [vmem:[%s2595_s10 + $0x14] sm:$0xff]  ;;  %v2151_v16 = vpack.c.bf16 %v212_v12, %v211_v10  ;;  %v213_v19 = vld [vmem:[%s3167_s1 + $0x40] sm:$0xff]  ;;  %v214_v20 = vld [vmem:[%s3167_s1 + $0x48] sm:$0xff] }
  0x17   : > { %v1462_v14 = vld [vmem:[%s3167_s1 + $0x2b0] sm:$0xff]  ;;  %v1463_v15 = vld [vmem:[%s3167_s1 + $0x2b8] sm:$0xff]  ;;  %v1464_v22 = vld [vmem:[%s3167_s1 + $0x2c0] sm:$0xff]  ;;  %v2154_v24 = vpack.c.bf16 %v214_v20, %v213_v19 }
  0x18   : > { %2131 = vmatpush3.bf16.msra.mxu1 %v2130_v30  ;;  %v224_v17 = vld [vmem:[%s2595_s10 + $0x19] sm:$0xff]  ;;  %v2247_v18 = vpack.c.bf16 %v1463_v15, %v1462_v14  ;;  %v1465_v23 = vld [vmem:[%s3167_s1 + $0x2c8] sm:$0xff]  ;;  %v215_v27 = vld [vmem:[%s3167_s1 + $0x50] sm:$0xff] }
  0x19   : > { %2227 = vmatpush3.bf16.msra.mxu0 %v2226_v31  ;;  %2132 = vmatprep.subr.bf16.mxu1 %v2434_v3  ;;  %v710_v21 = vld [vmem:[%s2595_s10 + $0x1c] sm:$0xff]  ;;  %v2250_v26 = vpack.c.bf16 %v1465_v23, %v1464_v22  ;;  %v711_v29 = vld [vmem:[%s2595_s10 + $0x24] sm:$0xff]  ;;  %v1466_v30 = vld [vmem:[%s3167_s1 + $0x2d0] sm:$0xff] }
  0x1a   : > { %2228 = vmatprep.subr.bf16.mxu0 %v2434_v3  ;;  %v225_v25 = vld [vmem:[%s2595_s10 + $0x21] sm:$0xff]  ;;  %v216_v28 = vld [vmem:[%s3167_s1 + $0x58] sm:$0xff]  ;;  %v226_v33 = vld [vmem:[%s2595_s10 + $0x29] sm:$0xff] }
  0x1b   : > { %v1467_v31 = vld [vmem:[%s3167_s1 + $0x2d8] sm:$0xff]  ;;  %v2157_v32 = vpack.c.bf16 %v216_v28, %v215_v27  ;;  %v217_v35 = vld [vmem:[%s3167_s1 + $0x60] sm:$0xff]  ;;  %v1469_v39 = vld [vmem:[%s3167_s1 + $0x2e8] sm:$0xff] }
  0x1c   : > { %2134 = vmatpush3.bf16.msra.mxu1 %v2133_v36  ;;  %v2253_v34 = vpack.c.bf16 %v1467_v31, %v1466_v30  ;;  %v218_v36 = vld [vmem:[%s3167_s1 + $0x68] sm:$0xff]  ;;  %v1468_v38 = vld [vmem:[%s3167_s1 + $0x2e0] sm:$0xff]  ;;  %v227_v41 = vld [vmem:[%s2595_s10 + $0x31] sm:$0x1f] }
  0x1d   : > { %2230 = vmatpush3.bf16.msra.mxu0 %v2229_v37  ;;  %2135 = vmatprep.subr.bf16.mxu1 %v2434_v3  ;;  %v712_v37 = vld [vmem:[%s2595_s10 + $0x2c] sm:$0xff]  ;;  %v2160_v40 = vpack.c.bf16 %v218_v36, %v217_v35  ;;  %v220_v44 = vld [vmem:[%s3167_s1 + $0x78] sm:$0xff]  ;;  %v1408_v50 = vld [vmem:[%s3167_s1 + $0x100] sm:$0xff] }
  0x1e   : > { %2231 = vmatprep.subr.bf16.mxu0 %v2434_v3  ;;  %v713_v45 = vld [vmem:[%s2595_s10 + $0x34] sm:$0x1f]  ;;  %v1409_v51 = vld [vmem:[%s3167_s1 + $0x108] sm:$0xff]  ;;  %v1472_v52 = vld [vmem:[%s3167_s1 + $0x300] sm:$0xff] }
  0x1f   : > { %v1470_v46 = vld [vmem:[%s3167_s1 + $0x2f0] sm:$0xff]  ;;  %v1471_v47 = vld [vmem:[%s3167_s1 + $0x2f8] sm:$0xff]  ;;  %v1473_v53 = vld [vmem:[%s3167_s1 + $0x308] sm:$0xff] }
  0x20   : > { %2137 = vmatpush3.bf16.msra.mxu1 %v2136_v42  ;;  %v2256_v42 = vpack.c.bf16 %v1469_v39, %v1468_v38  ;;  %v1410_v58 = vld [vmem:[%s3167_s1 + $0x110] sm:$0xff]  ;;  %v1411_v59 = vld [vmem:[%s3167_s1 + $0x118] sm:$0xff]  ;;  %v1412_v1 = vld [vmem:[%s3167_s1 + $0x120] sm:$0xff] }
  0x21   : > { %2233 = vmatpush3.bf16.msra.mxu0 %v2232_v43  ;;  %2138 = vmatprep.subr.bf16.mxu1 %v2434_v3  ;;  %v219_v43 = vld [vmem:[%s3167_s1 + $0x70] sm:$0xff]  ;;  %v1475_v61 = vld [vmem:[%s3167_s1 + $0x318] sm:$0xff]  ;;  %v1413_v2 = vld [vmem:[%s3167_s1 + $0x128] sm:$0xff] }
  0x22   : > { %2234 = vmatprep.subr.bf16.mxu0 %v2434_v3  ;;  %v1474_v60 = vld [vmem:[%s3167_s1 + $0x310] sm:$0xff]  ;;  %v1476_v5 = vld [vmem:[%s3167_s1 + $0x320] sm:$0xff]  ;;  %v1477_v6 = vld [vmem:[%s3167_s1 + $0x328] sm:$0xff] }
  0x23   : > { %v1414_v10 = vld [vmem:[%s3167_s1 + $0x130] sm:$0xff]  ;;  %v1415_v12 = vld [vmem:[%s3167_s1 + $0x138] sm:$0xff]  ;;  %v1416_v19 = vld [vmem:[%s3167_s1 + $0x140] sm:$0xff] }
  0x24   : > { %2140 = vmatpush3.bf16.msra.mxu1 %v2139_v48  ;;  %v2163_v48 = vpack.c.bf16 %v220_v44, %v219_v43  ;;  %v1478_v14 = vld [vmem:[%s3167_s1 + $0x330] sm:$0xff]  ;;  %v1479_v15 = vld [vmem:[%s3167_s1 + $0x338] sm:$0xff]  ;;  %v1417_v20 = vld [vmem:[%s3167_s1 + $0x148] sm:$0xff] }
  0x25   : > { %2236 = vmatpush3.bf16.msra.mxu0 %v2235_v49  ;;  %2141 = vmatprep.subr.bf16.mxu1 %v2434_v3  ;;  %v2259_v49 = vpack.c.bf16 %v1471_v47, %v1470_v46  ;;  %v1480_v22 = vld [vmem:[%s3167_s1 + $0x340] sm:$0xff]  ;;  %v1481_v23 = vld [vmem:[%s3167_s1 + $0x348] sm:$0xff]  ;;  %v1418_v27 = vld [vmem:[%s3167_s1 + $0x150] sm:$0xff] }
  0x26   : > { %2237 = vmatprep.subr.bf16.mxu0 %v2434_v3  ;;  %v1419_v28 = vld [vmem:[%s3167_s1 + $0x158] sm:$0xff]  ;;  %v1482_v30 = vld [vmem:[%s3167_s1 + $0x350] sm:$0xff]  ;;  %v1420_v35 = vld [vmem:[%s3167_s1 + $0x160] sm:$0xff] }
  0x27   : > { %1726 = vmatmul.mubr.f32.vlgmr.msra.gmra.mrb[0].mxu1 %v221_v54  ;;  %v198_v54 = vld [vmem:[%s2595_s10] sm:$0xff]  ;;  %v1483_v31 = vld [vmem:[%s3167_s1 + $0x358] sm:$0xff]  ;;  %v1421_v36 = vld [vmem:[%s3167_s1 + $0x168] sm:$0xff] }
  0x28   : > { %2143 = vmatpush3.bf16.msra.mxu1 %v2142_v55  ;;  %1938 = vmatmul.mubr.f32.vlgmr.msra.gmra.mrb[0].mxu0 %v707_v56  ;;  %v2166_v55 = vpack.c.bf16 %v1409_v51, %v1408_v50  ;;  %v838_v56 = vld [vmem:[%s2595_s10 + $0x5] sm:$0xff]  ;;  %v1422_v43 = vld [vmem:[%s3167_s1 + $0x170] sm:$0xff]  ;;  %v1423_v44 = vld [vmem:[%s3167_s1 + $0x178] sm:$0xff] }
  0x29   : > { %2239 = vmatpush3.bf16.msra.mxu0 %v2238_v57  ;;  %2144 = vmatprep.subr.bf16.mxu1 %v2434_v3  ;;  %v2262_v57 = vpack.c.bf16 %v1473_v53, %v1472_v52  ;;  %v1484_v38 = vld [vmem:[%s3167_s1 + $0x360] sm:$0xff]  ;;  %v1485_v39 = vld [vmem:[%s3167_s1 + $0x368] sm:$0xff]  ;;  %v1486_v46 = vld [vmem:[%s3167_s1 + $0x370] sm:$0xff] }
  0x2a   : > { %2240 = vmatprep.subr.bf16.mxu0 %v2434_v3  ;;  %1728 = vmatprep.mubr.msk.f32.mxu1 %vm2435_vm0, %v2436_v11  ;;  %v1487_v47 = vld [vmem:[%s3167_s1 + $0x378] sm:$0xff]  ;;  %v1424_v50 = vld [vmem:[%s3167_s1 + $0x180] sm:$0xff]  ;;  %v1425_v51 = vld [vmem:[%s3167_s1 + $0x188] sm:$0xff] }
  0x2b   : > { %1940 = vmatprep.mubr.msk.f32.mxu0 %vm2435_vm0, %v2436_v11  ;;  %1729 = vmatmul.mubr.f32.gmra.mrb[2].mxu1 %v222_v63  ;;  %v199_v63 = vld [vmem:[%s2595_s10 + $0x8] sm:$0xff]  ;;  %v1488_v52 = vld [vmem:[%s3167_s1 + $0x380] sm:$0xff] }
  0x2c   : > { %2146 = vmatpush3.bf16.msra.mxu1 %v2145_v62  ;;  %1941 = vmatmul.mubr.f32.gmra.mrb[2].mxu0 %v708_v4  ;;  %v2169_v62 = vpack.c.bf16 %v1411_v59, %v1410_v58  ;;  %v839_v4 = vld [vmem:[%s2595_s10 + $0xd] sm:$0xff]  ;;  %v1427_v59 = vld [vmem:[%s3167_s1 + $0x198] sm:$0xff] }
  0x2d   : > { %2242 = vmatpush3.bf16.msra.mxu0 %v2241_v0  ;;  %2147 = vmatprep.subr.bf16.mxu1 %v2434_v3  ;;  %v2265_v0 = vpack.c.bf16 %v1475_v61, %v1474_v60  ;;  %v1489_v53 = vld [vmem:[%s3167_s1 + $0x388] sm:$0xff]  ;;  %v1426_v58 = vld [vmem:[%s3167_s1 + $0x190] sm:$0xff]  ;;  %v1491_v61 = vld [vmem:[%s3167_s1 + $0x398] sm:$0xff] }
  0x2e   : > { %2243 = vmatprep.subr.bf16.mxu0 %v2434_v3  ;;  %1731 = vmatprep.mubr.msk.f32.mxu1 %vm2435_vm0, %v2436_v11  ;;  %v1490_v60 = vld [vmem:[%s3167_s1 + $0x390] sm:$0xff] }
  0x2f   : > { %1943 = vmatprep.mubr.msk.f32.mxu0 %vm2435_vm0, %v2436_v11  ;;  %1732 = vmatmul.mubr.f32.gmra.mrb[4].mxu1 %v223_v8  ;;  %v200_v8 = vld [vmem:[%s2595_s10 + $0x10] sm:$0xff] }
  0x30   : > { %2149 = vmatpush3.bf16.msra.mxu1 %v2148_v7  ;;  %1944 = vmatmul.mubr.f32.gmra.mrb[4].mxu0 %v709_v13  ;;  %v2172_v7 = vpack.c.bf16 %v1413_v2, %v1412_v1  ;;  %v840_v13 = vld [vmem:[%s2595_s10 + $0x15] sm:$0xff]  ;;  %v1428_v2 = vld [vmem:[%s3167_s1 + $0x1a0] sm:$0xff] }
  0x31   : > { %2245 = vmatpush3.bf16.msra.mxu0 %v2244_v9  ;;  %2150 = vmatprep.subr.bf16.mxu1 %v2434_v3  ;;  %v2268_v9 = vpack.c.bf16 %v1477_v6, %v1476_v5  ;;  %v970_v1 = vld [vmem:[%s2595_s10 + $0xe] sm:$0xff]  ;;  %v1492_v5 = vld [vmem:[%s3167_s1 + $0x3a0] sm:$0xff] }
  0x32   : > { %2246 = vmatprep.subr.bf16.mxu0 %v2434_v3  ;;  %1734 = vmatprep.mubr.msk.f32.mxu1 %vm2435_vm0, %v2436_v11  ;;  %v1493_v6 = vld [vmem:[%s3167_s1 + $0x3a8] sm:$0xff] }
  0x33   : > { %1946 = vmatprep.mubr.msk.f32.mxu0 %vm2435_vm0, %v2436_v11  ;;  %1735 = vmatmul.mubr.f32.gmra.mrb[6].mxu1 %v224_v17  ;;  %v201_v17 = vld [vmem:[%s2595_s10 + $0x18] sm:$0xff] }
  0x34   : > { %2152 = vmatpush3.bf16.msra.mxu1 %v2151_v16  ;;  %1947 = vmatmul.mubr.f32.gmra.mrb[6].mxu0 %v710_v21  ;;  %v2175_v16 = vpack.c.bf16 %v1415_v12, %v1414_v10  ;;  %v841_v21 = vld [vmem:[%s2595_s10 + $0x1d] sm:$0xff]  ;;  %v1430_v12 = vld [vmem:[%s3167_s1 + $0x1b0] sm:$0xff] }
  0x35   : > { %2248 = vmatpush3.bf16.msra.mxu0 %v2247_v18  ;;  %2153 = vmatprep.subr.bf16.mxu1 %v2434_v3  ;;  %v2271_v18 = vpack.c.bf16 %v1479_v15, %v1478_v14  ;;  %v971_v10 = vld [vmem:[%s2595_s10 + $0x16] sm:$0xff] }
  0x36   : > { %2249 = vmatprep.subr.bf16.mxu0 %v2434_v3  ;;  %1737 = vmatprep.mubr.msk.f32.mxu1 %vm2435_vm0, %v2436_v11  ;;  %v1494_v14 = vld [vmem:[%s3167_s1 + $0x3b0] sm:$0xff]  ;;  %v1495_v15 = vld [vmem:[%s3167_s1 + $0x3b8] sm:$0xff] }
  0x37   : > { %1949 = vmatprep.mubr.msk.f32.mxu0 %vm2435_vm0, %v2436_v11  ;;  %1738 = vmatmul.mubr.f32.gmra.mrb[8].mxu1 %v225_v25  ;;  %v202_v25 = vld [vmem:[%s2595_s10 + $0x20] sm:$0xff] }
  0x38   : > { %2155 = vmatpush3.bf16.msra.mxu1 %v2154_v24  ;;  %1950 = vmatmul.mubr.f32.gmra.mrb[8].mxu0 %v711_v29  ;;  %v2178_v24 = vpack.c.bf16 %v1417_v20, %v1416_v19  ;;  %v842_v29 = vld [vmem:[%s2595_s10 + $0x25] sm:$0xff] }
  0x39   : > { %2251 = vmatpush3.bf16.msra.mxu0 %v2250_v26  ;;  %2156 = vmatprep.subr.bf16.mxu1 %v2434_v3  ;;  %v2274_v26 = vpack.c.bf16 %v1481_v23, %v1480_v22  ;;  %v972_v19 = vld [vmem:[%s2595_s10 + $0x1e] sm:$0xff]  ;;  %v1497_v23 = vld [vmem:[%s3167_s1 + $0x3c8] sm:$0xff] }
  0x3a   : > { %2252 = vmatprep.subr.bf16.mxu0 %v2434_v3  ;;  %1740 = vmatprep.mubr.msk.f32.mxu1 %vm2435_vm0, %v2436_v11  ;;  %v1432_v20 = vld [vmem:[%s3167_s1 + $0x1c0] sm:$0xff] }
  0x3b   : > { %1952 = vmatprep.mubr.msk.f32.mxu0 %vm2435_vm0, %v2436_v11  ;;  %1741 = vmatmul.mubr.f32.gmra.mrb[10].mxu1 %v226_v33  ;;  %v203_v33 = vld [vmem:[%s2595_s10 + $0x28] sm:$0xff]  ;;  %v1496_v22 = vld [vmem:[%s3167_s1 + $0x3c0] sm:$0xff] }
  0x3c   : > { %2158 = vmatpush3.bf16.msra.mxu1 %v2157_v32  ;;  %1953 = vmatmul.mubr.f32.gmra.mrb[10].mxu0 %v712_v37  ;;  %v2181_v32 = vpack.c.bf16 %v1419_v28, %v1418_v27  ;;  %v843_v37 = vld [vmem:[%s2595_s10 + $0x2d] sm:$0xff] }
  0x3d   : > { %2254 = vmatpush3.bf16.msra.mxu0 %v2253_v34  ;;  %2159 = vmatprep.subr.bf16.mxu1 %v2434_v3  ;;  %v2277_v34 = vpack.c.bf16 %v1483_v31, %v1482_v30  ;;  %v973_v27 = vld [vmem:[%s2595_s10 + $0x26] sm:$0xff]  ;;  %v1434_v28 = vld [vmem:[%s3167_s1 + $0x1d0] sm:$0xff]  ;;  %v1499_v31 = vld [vmem:[%s3167_s1 + $0x3d8] sm:$0xff] }
  0x3e   : > { %2255 = vmatprep.subr.bf16.mxu0 %v2434_v3  ;;  %1743 = vmatprep.mubr.msk.f32.mxu1 %vm2435_vm0, %v2436_v11  ;;  %v1498_v30 = vld [vmem:[%s3167_s1 + $0x3d0] sm:$0xff] }
  0x3f   : > { %1955 = vmatprep.mubr.msk.f32.mxu0 %vm2435_vm0, %v2436_v11  ;;  %1744 = vmatmul.mubr.f32.gmra.mrb[12].mxu1 %v227_v41  ;;  %v204_v41 = vld [vmem:[%s2595_s10 + $0x30] sm:$0x1f] }
  0x40   : > { %2161 = vmatpush3.bf16.msra.mxu1 %v2160_v40  ;;  %1956 = vmatmul.mubr.f32.gmra.mrb[12].mxu0 %v713_v45  ;;  %v2184_v40 = vpack.c.bf16 %v1421_v36, %v1420_v35  ;;  %v844_v45 = vld [vmem:[%s2595_s10 + $0x35] sm:$0x1f]  ;;  %v1436_v36 = vld [vmem:[%s3167_s1 + $0x1e0] sm:$0xff] }
  0x41   : > { %2257 = vmatpush3.bf16.msra.mxu0 %v2256_v42  ;;  %2162 = vmatprep.subr.bf16.mxu1 %v2434_v3  ;;  %v2280_v42 = vpack.c.bf16 %v1485_v39, %v1484_v38  ;;  %v974_v35 = vld [vmem:[%s2595_s10 + $0x2e] sm:$0xff]  ;;  %v1500_v38 = vld [vmem:[%s3167_s1 + $0x3e0] sm:$0xff] }
  0x42   : > { %2258 = vmatprep.subr.bf16.mxu0 %v2434_v3  ;;  %1778 = vmatprep.mubr.msk.f32.mxu1 %vm2435_vm0, %v2436_v11  ;;  %v1501_v39 = vld [vmem:[%s3167_s1 + $0x3e8] sm:$0xff] }
  0x43   : > { %1990 = vmatprep.mubr.msk.f32.mxu0 %vm2435_vm0, %v2436_v11 }
  0x44   : > { %2164 = vmatpush3.bf16.msra.mxu1 %v2163_v48  ;;  %v2187_v48 = vpack.c.bf16 %v1423_v44, %v1422_v43  ;;  %v975_v43 = vld [vmem:[%s2595_s10 + $0x36] sm:$0x1f] }
  0x45   : > { %2260 = vmatpush3.bf16.msra.mxu0 %v2259_v49  ;;  %2165 = vmatprep.subr.bf16.mxu1 %v2434_v3  ;;  %v2283_v49 = vpack.c.bf16 %v1487_v47, %v1486_v46  ;;  %v1438_v44 = vld [vmem:[%s3167_s1 + $0x1f0] sm:$0xff]  ;;  %v1503_v47 = vld [vmem:[%s3167_s1 + $0x3f8] sm:$0xff] }
  0x46   : > { %2261 = vmatprep.subr.bf16.mxu0 %v2434_v3  ;;  %v1502_v46 = vld [vmem:[%s3167_s1 + $0x3f0] sm:$0xff] }
  0x47   : > { %1779 = vmatmul.mubr.f32.vlgmr.msra.gmra.mrb[0].mxu1 %v198_v54  ;;  %v445_v54 = vld [vmem:[%s2595_s10 + $0x2] sm:$0xff] }
  0x48   : > { %2167 = vmatpush3.bf16.msra.mxu1 %v2166_v55  ;;  %1991 = vmatmul.mubr.f32.vlgmr.msra.gmra.mrb[0].mxu0 %v838_v56  ;;  %v2190_v55 = vpack.c.bf16 %v1425_v51, %v1424_v50  ;;  %v969_v56 = vld [vmem:[%s2595_s10 + $0x6] sm:$0xff] }
  0x49   : > { %2263 = vmatpush3.bf16.msra.mxu0 %v2262_v57  ;;  %2168 = vmatprep.subr.bf16.mxu1 %v2434_v3  ;;  %v2286_v57 = vpack.c.bf16 %v1489_v53, %v1488_v52  ;;  %v576_v50 = vld [vmem:[%s2595_s10 + $0x3] sm:$0xff]  ;;  %v1101_v52 = vld [vmem:[%s2595_s10 + $0xf] sm:$0xff] }
  0x4a   : > { %2264 = vmatprep.subr.bf16.mxu0 %v2434_v3  ;;  %1781 = vmatprep.mubr.msk.f32.mxu1 %vm2435_vm0, %v2436_v11  ;;  %v1100_v51 = vld [vmem:[%s2595_s10 + $0x7] sm:$0xff]  ;;  %v578_v53 = vld [vmem:[%s2595_s10 + $0x13] sm:$0xff] }
  0x4b   : > { %1993 = vmatprep.mubr.msk.f32.mxu0 %vm2435_vm0, %v2436_v11  ;;  %1782 = vmatmul.mubr.f32.gmra.mrb[2].mxu1 %v199_v63  ;;  %v446_v63 = vld [vmem:[%s2595_s10 + $0xa] sm:$0xff] }
  0x4c   : > { %2170 = vmatpush3.bf16.msra.mxu1 %v2169_v62  ;;  %1994 = vmatmul.mubr.f32.gmra.mrb[2].mxu0 %v839_v4  ;;  %v2193_v62 = vpack.c.bf16 %v1427_v59, %v1426_v58  ;;  %v1429_v4 = vld [vmem:[%s3167_s1 + $0x1a8] sm:$0xff] }
  0x4d   : > { %2266 = vmatpush3.bf16.msra.mxu0 %v2265_v0  ;;  %2171 = vmatprep.subr.bf16.mxu1 %v2434_v3  ;;  %v2289_v0 = vpack.c.bf16 %v1491_v61, %v1490_v60  ;;  %v1104_v58 = vld [vmem:[%s2595_s10 + $0x27] sm:$0xff]  ;;  %v1105_v60 = vld [vmem:[%s2595_s10 + $0x2f] sm:$0xff] }
  0x4e   : > { %2267 = vmatprep.subr.bf16.mxu0 %v2434_v3  ;;  %1784 = vmatprep.mubr.msk.f32.mxu1 %vm2435_vm0, %v2436_v11  ;;  %v581_v59 = vld [vmem:[%s2595_s10 + $0x2b] sm:$0xff]  ;;  %v582_v61 = vld [vmem:[%s2595_s10 + $0x33] sm:$0x1f] }
  0x4f   : > { %1996 = vmatprep.mubr.msk.f32.mxu0 %vm2435_vm0, %v2436_v11  ;;  %1785 = vmatmul.mubr.f32.gmra.mrb[4].mxu1 %v200_v8  ;;  %v447_v8 = vld [vmem:[%s2595_s10 + $0x12] sm:$0xff] }
  0x50   : > { %2173 = vmatpush3.bf16.msra.mxu1 %v2172_v7  ;;  %1997 = vmatmul.mubr.f32.gmra.mrb[4].mxu0 %v840_v13  ;;  %v2196_v7 = vpack.c.bf16 %v1429_v4, %v1428_v2  ;;  %v1431_v13 = vld [vmem:[%s3167_s1 + $0x1b8] sm:$0xff] }
  0x51   : > { %2269 = vmatpush3.bf16.msra.mxu0 %v2268_v9  ;;  %2174 = vmatprep.subr.bf16.mxu1 %v2434_v3  ;;  %v2292_v9 = vpack.c.bf16 %v1493_v6, %v1492_v5  ;;  %v3106_v6 = vld [vmem:[%s3169_s3] ss:$0 sm:$0xff] }
  0x52   : > { %2270 = vmatprep.subr.bf16.mxu0 %v2434_v3  ;;  %1787 = vmatprep.mubr.msk.f32.mxu1 %vm2435_vm0, %v2436_v11 }
  0x53   : > { %1999 = vmatprep.mubr.msk.f32.mxu0 %vm2435_vm0, %v2436_v11  ;;  %1788 = vmatmul.mubr.f32.gmra.mrb[6].mxu1 %v201_v17  ;;  %v448_v17 = vld [vmem:[%s2595_s10 + $0x1a] sm:$0xff] }
  0x54   : > { %2176 = vmatpush3.bf16.msra.mxu1 %v2175_v16  ;;  %2000 = vmatmul.mubr.f32.gmra.mrb[6].mxu0 %v841_v21  ;;  %v2199_v16 = vpack.c.bf16 %v1431_v13, %v1430_v12  ;;  %v1433_v21 = vld [vmem:[%s3167_s1 + $0x1c8] sm:$0xff] }
  0x55   : > { %2272 = vmatpush3.bf16.msra.mxu0 %v2271_v18  ;;  %2177 = vmatprep.subr.bf16.mxu1 %v2434_v3  ;;  %v2295_v18 = vpack.c.bf16 %v1495_v15, %v1494_v14 }
  0x56   : > { %2273 = vmatprep.subr.bf16.mxu0 %v2434_v3  ;;  %1790 = vmatprep.mubr.msk.f32.mxu1 %vm2435_vm0, %v2436_v11 }
  0x57   : > { %2002 = vmatprep.mubr.msk.f32.mxu0 %vm2435_vm0, %v2436_v11  ;;  %1791 = vmatmul.mubr.f32.gmra.mrb[8].mxu1 %v202_v25  ;;  %v449_v25 = vld [vmem:[%s2595_s10 + $0x22] sm:$0xff] }
  0x58   : > { %2179 = vmatpush3.bf16.msra.mxu1 %v2178_v24  ;;  %2003 = vmatmul.mubr.f32.gmra.mrb[8].mxu0 %v842_v29  ;;  %v2202_v24 = vpack.c.bf16 %v1433_v21, %v1432_v20  ;;  %v1435_v29 = vld [vmem:[%s3167_s1 + $0x1d8] sm:$0xff] }
  0x59   : > { %2275 = vmatpush3.bf16.msra.mxu0 %v2274_v26  ;;  %2180 = vmatprep.subr.bf16.mxu1 %v2434_v3  ;;  %v2298_v26 = vpack.c.bf16 %v1497_v23, %v1496_v22 }
  0x5a   : > { %2276 = vmatprep.subr.bf16.mxu0 %v2434_v3  ;;  %1793 = vmatprep.mubr.msk.f32.mxu1 %vm2435_vm0, %v2436_v11 }
  0x5b   : > { %2005 = vmatprep.mubr.msk.f32.mxu0 %vm2435_vm0, %v2436_v11  ;;  %1794 = vmatmul.mubr.f32.gmra.mrb[10].mxu1 %v203_v33  ;;  %v450_v33 = vld [vmem:[%s2595_s10 + $0x2a] sm:$0xff] }
  0x5c   : > { %2182 = vmatpush3.bf16.msra.mxu1 %v2181_v32  ;;  %2006 = vmatmul.mubr.f32.gmra.mrb[10].mxu0 %v843_v37  ;;  %v2205_v32 = vpack.c.bf16 %v1435_v29, %v1434_v28  ;;  %v1437_v37 = vld [vmem:[%s3167_s1 + $0x1e8] sm:$0xff] }
  0x5d   : > { %2278 = vmatpush3.bf16.msra.mxu0 %v2277_v34  ;;  %2183 = vmatprep.subr.bf16.mxu1 %v2434_v3  ;;  %v2301_v34 = vpack.c.bf16 %v1499_v31, %v1498_v30 }
  0x5e   : > { %2279 = vmatprep.subr.bf16.mxu0 %v2434_v3  ;;  %1796 = vmatprep.mubr.msk.f32.mxu1 %vm2435_vm0, %v2436_v11 }
  0x5f   : > { %2008 = vmatprep.mubr.msk.f32.mxu0 %vm2435_vm0, %v2436_v11  ;;  %1797 = vmatmul.mubr.f32.gmra.mrb[12].mxu1 %v204_v41  ;;  %v451_v41 = vld [vmem:[%s2595_s10 + $0x32] sm:$0x1f] }
  0x60   : > { %2185 = vmatpush3.bf16.msra.mxu1 %v2184_v40  ;;  %2009 = vmatmul.mubr.f32.gmra.mrb[12].mxu0 %v844_v45  ;;  %v2208_v40 = vpack.c.bf16 %v1437_v37, %v1436_v36  ;;  %v1439_v45 = vld [vmem:[%s3167_s1 + $0x1f8] sm:$0xff] }
  0x61   : > { %2281 = vmatpush3.bf16.msra.mxu0 %v2280_v42  ;;  %2186 = vmatprep.subr.bf16.mxu1 %v2434_v3  ;;  %v2304_v42 = vpack.c.bf16 %v1501_v39, %v1500_v38 }
  0x62   : > { %2282 = vmatprep.subr.bf16.mxu0 %v2434_v3  ;;  %1831 = vmatprep.mubr.msk.f32.mxu1 %vm2435_vm0, %v2436_v11 }
  0x63   : > { %2043 = vmatprep.mubr.msk.f32.mxu0 %vm2435_vm0, %v2436_v11 }
  0x64   : > { %2188 = vmatpush3.bf16.msra.mxu1 %v2187_v48  ;;  %v2211_v48 = vpack.c.bf16 %v1439_v45, %v1438_v44 }
  0x65   : > { %2284 = vmatpush3.bf16.msra.mxu0 %v2283_v49  ;;  %2189 = vmatprep.subr.bf16.mxu1 %v2434_v3  ;;  %v2307_v49 = vpack.c.bf16 %v1503_v47, %v1502_v46 }
  0x66   : > { %2285 = vmatprep.subr.bf16.mxu0 %v2434_v3 }
  0x67   : > { %1832 = vmatmul.mubr.f32.vlgmr.msra.gmra.mrb[0].mxu1 %v445_v54  ;;  %v1102_v54 = vld [vmem:[%s2595_s10 + $0x17] sm:$0xff] }
  0x68   : > { %2191 = vmatpush3.bf16.msra.mxu1 %v2190_v55  ;;  %2044 = vmatmul.mubr.f32.vlgmr.msra.gmra.mrb[0].mxu0 %v969_v56  ;;  %v579_v55 = vld [vmem:[%s2595_s10 + $0x1b] sm:$0xff] }
  0x69   : > { %2287 = vmatpush3.bf16.msra.mxu0 %v2286_v57  ;;  %2192 = vmatprep.subr.bf16.mxu1 %v2434_v3  ;;  %v1103_v56 = vld [vmem:[%s2595_s10 + $0x1f] sm:$0xff] }
  0x6a   : > { %2288 = vmatprep.subr.bf16.mxu0 %v2434_v3  ;;  %1834 = vmatprep.mubr.msk.f32.mxu1 %vm2435_vm0, %v2436_v11  ;;  %v580_v57 = vld [vmem:[%s2595_s10 + $0x23] sm:$0xff] }
  0x6b   : > { %2046 = vmatprep.mubr.msk.f32.mxu0 %vm2435_vm0, %v2436_v11  ;;  %1835 = vmatmul.mubr.f32.gmra.mrb[2].mxu1 %v446_v63 }
  0x6c   : > { %2194 = vmatpush3.bf16.msra.mxu1 %v2193_v62  ;;  %2047 = vmatmul.mubr.f32.gmra.mrb[2].mxu0 %v970_v1  ;;  %v1106_v62 = vld [vmem:[%s2595_s10 + $0x37] sm:$0x1f]  ;;  %v3101_v1 = vld [vmem:[%s3168_s2] ss:$0 sm:$0xff] }
  0x6d   : > { %2290 = vmatpush3.bf16.msra.mxu0 %v2289_v0  ;;  %2195 = vmatprep.subr.bf16.mxu1 %v2434_v3 }
  0x6e   : > { %2291 = vmatprep.subr.bf16.mxu0 %v2434_v3  ;;  %1837 = vmatprep.mubr.msk.f32.mxu1 %vm2435_vm0, %v2436_v11 }
  0x6f   : > { %2049 = vmatprep.mubr.msk.f32.mxu0 %vm2435_vm0, %v2436_v11  ;;  %1838 = vmatmul.mubr.f32.gmra.mrb[4].mxu1 %v447_v8 }
  0x70   : > { %2197 = vmatpush3.bf16.msra.mxu1 %v2196_v7  ;;  %2050 = vmatmul.mubr.f32.gmra.mrb[4].mxu0 %v971_v10 }
  0x71   : > { %2293 = vmatpush3.bf16.msra.mxu0 %v2292_v9  ;;  %2198 = vmatprep.subr.bf16.mxu1 %v2434_v3 }
  0x72   : > { %2294 = vmatprep.subr.bf16.mxu0 %v2434_v3  ;;  %1840 = vmatprep.mubr.msk.f32.mxu1 %vm2435_vm0, %v2436_v11 }
  0x73   : > { %2052 = vmatprep.mubr.msk.f32.mxu0 %vm2435_vm0, %v2436_v11  ;;  %1841 = vmatmul.mubr.f32.gmra.mrb[6].mxu1 %v448_v17 }
  0x74   : > { %2200 = vmatpush3.bf16.msra.mxu1 %v2199_v16  ;;  %2053 = vmatmul.mubr.f32.gmra.mrb[6].mxu0 %v972_v19 }
  0x75   : > { %2296 = vmatpush3.bf16.msra.mxu0 %v2295_v18  ;;  %2201 = vmatprep.subr.bf16.mxu1 %v2434_v3 }
  0x76   : > { %2297 = vmatprep.subr.bf16.mxu0 %v2434_v3  ;;  %1843 = vmatprep.mubr.msk.f32.mxu1 %vm2435_vm0, %v2436_v11 }
  0x77   : > { %2055 = vmatprep.mubr.msk.f32.mxu0 %vm2435_vm0, %v2436_v11  ;;  %1844 = vmatmul.mubr.f32.gmra.mrb[8].mxu1 %v449_v25 }
  0x78   : > { %2203 = vmatpush3.bf16.msra.mxu1 %v2202_v24  ;;  %2056 = vmatmul.mubr.f32.gmra.mrb[8].mxu0 %v973_v27 }
  0x79   : > { %2299 = vmatpush3.bf16.msra.mxu0 %v2298_v26  ;;  %2204 = vmatprep.subr.bf16.mxu1 %v2434_v3 }
  0x7a   : > { %2300 = vmatprep.subr.bf16.mxu0 %v2434_v3  ;;  %1846 = vmatprep.mubr.msk.f32.mxu1 %vm2435_vm0, %v2436_v11 }
  0x7b   : > { %2058 = vmatprep.mubr.msk.f32.mxu0 %vm2435_vm0, %v2436_v11  ;;  %1847 = vmatmul.mubr.f32.gmra.mrb[10].mxu1 %v450_v33 }
  0x7c   : > { %2206 = vmatpush3.bf16.msra.mxu1 %v2205_v32  ;;  %2059 = vmatmul.mubr.f32.gmra.mrb[10].mxu0 %v974_v35 }
  0x7d   : > { %2302 = vmatpush3.bf16.msra.mxu0 %v2301_v34  ;;  %2207 = vmatprep.subr.bf16.mxu1 %v2434_v3 }
  0x7e   : > { %2303 = vmatprep.subr.bf16.mxu0 %v2434_v3  ;;  %1849 = vmatprep.mubr.msk.f32.mxu1 %vm2435_vm0, %v2436_v11 }
  0x7f   : > { %2061 = vmatprep.mubr.msk.f32.mxu0 %vm2435_vm0, %v2436_v11  ;;  %1850 = vmatmul.mubr.f32.gmra.mrb[12].mxu1 %v451_v41 }
  0x80   : > { %2209 = vmatpush3.bf16.msra.mxu1 %v2208_v40  ;;  %2062 = vmatmul.mubr.f32.gmra.mrb[12].mxu0 %v975_v43 }
  0x81   : > { %2305 = vmatpush3.bf16.msra.mxu0 %v2304_v42  ;;  %2210 = vmatprep.subr.bf16.mxu1 %v2434_v3 }
  0x82   : > { %2306 = vmatprep.subr.bf16.mxu0 %v2434_v3  ;;  %1884 = vmatprep.mubr.msk.f32.mxu1 %vm2435_vm0, %v2436_v11  ;;  %v577_v3 = vld [vmem:[%s2595_s10 + $0xb] sm:$0xff]  ;;  %s2400_s10 = smul.u32 56, %s3172_s16 }
  0x83   : > { %2096 = vmatprep.mubr.msk.f32.mxu0 %vm2435_vm0, %v2436_v11 }
  0x84   : > { %2212 = vmatpush3.bf16.msra.mxu1 %v2211_v48  ;;  %s3150_s16 = scalar_lea.vmem %s3170_s4, %s2400_s10 }
  0x85   : > { %2308 = vmatpush3.bf16.msra.mxu0 %v2307_v49 }
  0x87   : > { %1885 = vmatmul.mubr.f32.vlgmr.msra.gmra.mrb[0].mxu1 %v576_v50 }
  0x88   : > { %2097 = vmatmul.mubr.f32.vlgmr.msra.gmra.mrb[0].mxu0 %v1100_v51  ;;  %1887 = vmatprep.mubr.msk.f32.mxu1 %vm2435_vm0, %v2436_v11 }
  0x89   : > { %2099 = vmatprep.mubr.msk.f32.mxu0 %vm2435_vm0, %v2436_v11 }
  0x8b   : > { %1888 = vmatmul.mubr.f32.gmra.mrb[2].mxu1 %v577_v3 }
  0x8c   : > { %2100 = vmatmul.mubr.f32.gmra.mrb[2].mxu0 %v1101_v52  ;;  %1890 = vmatprep.mubr.msk.f32.mxu1 %vm2435_vm0, %v2436_v11 }
  0x8d   : > { %2102 = vmatprep.mubr.msk.f32.mxu0 %vm2435_vm0, %v2436_v11 }
  0x8f   : > { %1891 = vmatmul.mubr.f32.gmra.mrb[4].mxu1 %v578_v53 }
  0x90   : > { %2103 = vmatmul.mubr.f32.gmra.mrb[4].mxu0 %v1102_v54  ;;  %1893 = vmatprep.mubr.msk.f32.mxu1 %vm2435_vm0, %v2436_v11 }
  0x91   : > { %2105 = vmatprep.mubr.msk.f32.mxu0 %vm2435_vm0, %v2436_v11 }
  0x93   : > { %1894 = vmatmul.mubr.f32.gmra.mrb[6].mxu1 %v579_v55 }
  0x94   : > { %2106 = vmatmul.mubr.f32.gmra.mrb[6].mxu0 %v1103_v56  ;;  %1896 = vmatprep.mubr.msk.f32.mxu1 %vm2435_vm0, %v2436_v11 }
  0x95   : > { %2108 = vmatprep.mubr.msk.f32.mxu0 %vm2435_vm0, %v2436_v11 }
  0x97   : > { %1897 = vmatmul.mubr.f32.gmra.mrb[8].mxu1 %v580_v57 }
  0x98   : > { %2109 = vmatmul.mubr.f32.gmra.mrb[8].mxu0 %v1104_v58  ;;  %1899 = vmatprep.mubr.msk.f32.mxu1 %vm2435_vm0, %v2436_v11 }
  0x99   : > { %2111 = vmatprep.mubr.msk.f32.mxu0 %vm2435_vm0, %v2436_v11 }
  0x9b   : > { %1900 = vmatmul.mubr.f32.gmra.mrb[10].mxu1 %v581_v59 }
  0x9c   : > { %2112 = vmatmul.mubr.f32.gmra.mrb[10].mxu0 %v1105_v60  ;;  %1902 = vmatprep.mubr.msk.f32.mxu1 %vm2435_vm0, %v2436_v11 }
  0x9d   : > { %2114 = vmatprep.mubr.msk.f32.mxu0 %vm2435_vm0, %v2436_v11 }
  0x9f   : > { %1903 = vmatmul.mubr.f32.gmra.mrb[12].mxu1 %v582_v61 }
  0xa0   : > { %2115 = vmatmul.mubr.f32.gmra.mrb[12].mxu0 %v1106_v62 }
 0x15a   : > { %v666_v63 = vpop.f32.mrb[0].mxu1 }
 0x15b   : > { %v1190_v0 = vpop.f32.mrb[0].mxu0  ;;  %v1886_v2 = vpop.f32.mrb[1].mxu1 }
 0x15c   : > { %v2309_v4 = vadd.f32 %v1190_v0, %v666_v63  ;;  %v2098_v5 = vpop.f32.mrb[1].mxu0 }
 0x15e   : > { %v1238_v11 = vmul.f32 %v2309_v4, %v3101_v1  ;;  %v671_v7 = vpop.f32.mrb[2].mxu1 }
 0x15f   : > { %v1195_v8 = vpop.f32.mrb[2].mxu0  ;;  %v1889_v9 = vpop.f32.mrb[3].mxu1 }
 0x160   : > { %v3110_v10 = vadd.f32 %v3106_v6, %v1238_v11  ;;  %v2310_v12 = vadd.f32 %v1195_v8, %v671_v7  ;;  %v2101_v13 = vpop.f32.mrb[3].mxu0 }
 0x162   : > { %v1266_v14 = vmul.f32 0.044715, %v3110_v10  ;;  %v1239_v15 = vmul.f32 %v2310_v12, %v3101_v1  ;;  %v676_v16 = vpop.f32.mrb[4].mxu1  ;;  %v1259_v13 = vmul.f32 0.5, %v3110_v10 }
 0x163   : > { %v1200_v17 = vpop.f32.mrb[4].mxu0  ;;  %v1892_v18 = vpop.f32.mrb[5].mxu1 }
 0x164   : > { %v1273_v19 = vmul.f32 %v1266_v14, %v3110_v10  ;;  %v3116_v20 = vadd.f32 %v3106_v6, %v1239_v15  ;;  %v2311_v21 = vadd.f32 %v1200_v17, %v676_v16  ;;  %v2104_v22 = vpop.f32.mrb[5].mxu0 }
 0x166   : > { %v1280_v23 = vmul.f32 %v1273_v19, %v3110_v10  ;;  %v1267_v24 = vmul.f32 0.044715, %v3116_v20  ;;  %v1240_v25 = vmul.f32 %v2311_v21, %v3101_v1  ;;  %v681_v26 = vpop.f32.mrb[6].mxu1 }
 0x167   : > { %v1205_v27 = vpop.f32.mrb[6].mxu0  ;;  %v1895_v28 = vpop.f32.mrb[7].mxu1 }
 0x168   : > { %v1287_v29 = vadd.f32 %v1280_v23, %v3110_v10  ;;  %v1274_v30 = vmul.f32 %v1267_v24, %v3116_v20  ;;  %v3124_v31 = vadd.f32 %v3106_v6, %v1240_v25  ;;  %v2312_v32 = vadd.f32 %v1205_v27, %v681_v26  ;;  %v2107_v33 = vpop.f32.mrb[7].mxu0 }
 0x169   : > { %v1260_v10 = vmul.f32 0.5, %v3116_v20 }
 0x16a   : > { %v1294_v34 = vmul.f32 0.7978846, %v1287_v29  ;;  %v1281_v35 = vmul.f32 %v1274_v30, %v3116_v20  ;;  %v1268_v36 = vmul.f32 0.044715, %v3124_v31  ;;  %v686_v37 = vpop.f32.mrb[8].mxu1  ;;  %v1241_v38 = vmul.f32 %v2312_v32, %v3101_v1 }
 0x16b   : > { %v1210_v39 = vpop.f32.mrb[8].mxu0  ;;  %v1898_v40 = vpop.f32.mrb[9].mxu1 }
 0x16c   : > { %2412 = vtanh.f32 %v1294_v34  ;;  %v1288_v41 = vadd.f32 %v1281_v35, %v3116_v20  ;;  %v1275_v42 = vmul.f32 %v1268_v36, %v3124_v31  ;;  %v2313_v43 = vadd.f32 %v1210_v39, %v686_v37  ;;  %v2110_v44 = vpop.f32.mrb[9].mxu0 }
 0x16d   : > { %v3132_v45 = vadd.f32 %v3106_v6, %v1241_v38 }
 0x16e   : > { %v1295_v46 = vmul.f32 0.7978846, %v1288_v41  ;;  %v1282_v47 = vmul.f32 %v1275_v42, %v3124_v31  ;;  %v1242_v48 = vmul.f32 %v2313_v43, %v3101_v1  ;;  %v691_v49 = vpop.f32.mrb[10].mxu1 }
 0x16f   : > { %v1269_v50 = vmul.f32 0.044715, %v3132_v45  ;;  %v1215_v51 = vpop.f32.mrb[10].mxu0  ;;  %v1901_v3 = vpop.f32.mrb[11].mxu1  ;;  %v1262_v36 = vmul.f32 0.5, %v3132_v45 }
 0x170   : > { %2414 = vtanh.f32 %v1295_v46  ;;  %v1289_v52 = vadd.f32 %v1282_v47, %v3124_v31  ;;  %v1256_v53 = vadd.f32 %v3106_v6, %v1242_v48  ;;  %v2314_v54 = vadd.f32 %v1215_v51, %v691_v49  ;;  %v2113_v55 = vpop.f32.mrb[11].mxu0 }
 0x171   : > { %v1276_v56 = vmul.f32 %v1269_v50, %v3132_v45 }
 0x172   : > { %v1296_v57 = vmul.f32 0.7978846, %v1289_v52  ;;  %v1270_v58 = vmul.f32 0.044715, %v1256_v53  ;;  %v1243_v59 = vmul.f32 %v2314_v54, %v3101_v1  ;;  %v696_v60 = vpop.f32.mrb[12].mxu1  ;;  %v1263_v40 = vmul.f32 0.5, %v1256_v53 }
 0x173   : > { %v1283_v61 = vmul.f32 %v1276_v56, %v3132_v45  ;;  %v1220_v62 = vpop.f32.mrb[12].mxu0  ;;  %v1904_v63 = vpop.f32.mrb[13].mxu1 }
 0x174   : > { %2416 = vtanh.f32 %v1296_v57  ;;  %v1277_v0 = vmul.f32 %v1270_v58, %v1256_v53  ;;  %v1257_v2 = vadd.f32 %v3106_v6, %v1243_v59  ;;  %v2315_v4 = vadd.f32 %v1220_v62, %v696_v60  ;;  %v2116_v5 = vpop.f32.mrb[13].mxu0 }
 0x175   : > { %v1290_v11 = vadd.f32 %v1283_v61, %v3132_v45 }
 0x176   : > { %v2413_v7 = vpop.eup %2412  ;;  %v1284_v8 = vmul.f32 %v1277_v0, %v1256_v53  ;;  %v1271_v9 = vmul.f32 0.044715, %v1257_v2  ;;  %v1244_v12 = vmul.f32 %v2315_v4, %v3101_v1  ;;  %v1264_v43 = vmul.f32 0.5, %v1257_v2 }
 0x177   : > { %v1308_v14 = vadd.f32 1.0, %v2413_v7  ;;  %v1297_v15 = vmul.f32 0.7978846, %v1290_v11 }
 0x178   : > { %v1291_v16 = vadd.f32 %v1284_v8, %v1256_v53  ;;  %v1278_v17 = vmul.f32 %v1271_v9, %v1257_v2  ;;  %v1258_v18 = vadd.f32 %v3106_v6, %v1244_v12  ;;  %v1261_v6 = vmul.f32 0.5, %v3124_v31 }
 0x179   : > { %v1315_v19 = vmul.f32 %v1308_v14, %v1259_v13  ;;  %2418 = vtanh.f32 %v1297_v15 }
 0x17a   : > { %v2415_v21 = vpop.eup %2414  ;;  %v1298_v22 = vmul.f32 0.7978846, %v1291_v16  ;;  %v1285_v1 = vmul.f32 %v1278_v17, %v1257_v2  ;;  %v1272_v23 = vmul.f32 0.044715, %v1258_v18  ;;  %v1265_v48 = vmul.f32 0.5, %v1258_v18 }
 0x17b   : > { %1322 = vst [vmem:[%s3150_s16] sm:$0xff] %v1315_v19  ;;  %v1309_v24 = vadd.f32 1.0, %v2415_v21 }
 0x17c   : > { %2420 = vtanh.f32 %v1298_v22  ;;  %v1292_v25 = vadd.f32 %v1285_v1, %v1257_v2  ;;  %v1279_v26 = vmul.f32 %v1272_v23, %v1258_v18 }
 0x17d   : > { %v1316_v27 = vmul.f32 %v1309_v24, %v1260_v10 }
 0x17e   : > { %v2417_v28 = vpop.eup %2416  ;;  %v1299_v29 = vmul.f32 0.7978846, %v1292_v25  ;;  %v1286_v30 = vmul.f32 %v1279_v26, %v1258_v18 }
 0x17f   : > { %1323 = vst [vmem:[%s3150_s16 + $0x8] sm:$0xff] %v1316_v27  ;;  %v1310_v32 = vadd.f32 1.0, %v2417_v28 }
 0x180   : > { %2422 = vtanh.f32 %v1299_v29  ;;  %v1293_v33 = vadd.f32 %v1286_v30, %v1258_v18 }
 0x181   : > { %v1317_v34 = vmul.f32 %v1310_v32, %v1261_v6 }
 0x182   : > { %v1300_v35 = vmul.f32 0.7978846, %v1293_v33 }
 0x183   : > { %v2419_v20 = vpop.eup %2418  ;;  %1324 = vst [vmem:[%s3150_s16 + $0x10] sm:$0xff] %v1317_v34 }
 0x184   : > { %v1311_v37 = vadd.f32 1.0, %v2419_v20  ;;  %2424 = vtanh.f32 %v1300_v35 }
 0x186   : > { %v2421_v38 = vpop.eup %2420  ;;  %v1318_v39 = vmul.f32 %v1311_v37, %v1262_v36 }
 0x187   : > { %v1312_v41 = vadd.f32 1.0, %v2421_v38 }
 0x188   : > { %1325 = vst [vmem:[%s3150_s16 + $0x18] sm:$0xff] %v1318_v39 }
 0x189   : > { %v1319_v31 = vmul.f32 %v1312_v41, %v1263_v40 }
 0x18a   : > { %v2423_v42 = vpop.eup %2422 }
 0x18b   : > { %1326 = vst [vmem:[%s3150_s16 + $0x20] sm:$0xff] %v1319_v31  ;;  %v1313_v44 = vadd.f32 1.0, %v2423_v42 }
 0x18d   : > { %v1320_v46 = vmul.f32 %v1313_v44, %v1264_v43 }
 0x18e   : > { %v2425_v47 = vpop.eup %2424 }
 0x18f   : > { %1327 = vst [vmem:[%s3150_s16 + $0x28] sm:$0xff] %v1320_v46  ;;  %v1314_v49 = vadd.f32 1.0, %v2425_v47 }
 0x191   : > { %v1321_v50 = vmul.f32 %v1314_v49, %v1265_v48 }
 0x193   : > { %1328 = vst [vmem:[%s3150_s16 + $0x30] sm:$0x1f] %v1321_v50 }
 0x194 PF: > { %s14_s15 = sadd.s32 1, %s2432_s15  }
 0x195   : > { %p11_p4 = scmp.ge.s32.totalorder %s14_s15, 4  }
 0x197   :  { %13 = sbr.rel (!%p11_p4) target bundleno = 1 (0x1), region = 73 }

// kernel: ducnn_forward.16
= control target key start
LH: loop header
LB: loop body
LE: loop exit
PB: predicated region body
PF: predicated region fallthrough
CT: control target
= control target key end

     0   :  { %s203_s6 = smov 0   ;;  %s223_s0 = inlined_call_operand.vmem [shape: f32[2,2,8,64], index: 0, kind: input, shape index: {}]   ;;  %s224_s1 = inlined_call_operand.vmem [shape: f32[2,7,64], index: 1, kind: output, shape index: {}]  }
   0x1 LB: > { %s180_s7 = sadd.s32 4294967295, %s205_s6   ;;  %p184_p0 = scmp.ge.s32.totalorder %s205_s6, 1  ;;  %s205_s6 = sphi %s203_s6, %s11_s6  }
   0x2   : > { %p87_p1 = scmp.lt.s32.totalorder %s205_s6, 3 }
   0x4   : > { %p88_p2 = pnand %p184_p0, %p87_p1 }
   0x5   : > { %p106_p3 = scmp.lt.s32.totalorder (!%p88_p2), %s180_s7, 1  ;;  %vm117_vm0 = vcmask (!%p88_p2), 523264   ;;  %vm125_vm1 = vcmask (!%p88_p2), 522240  }
   0x6   : > { %91 = sbr.rel (%p88_p2) target bundleno = 25 (0x19), region = 24 }
   0xd   : > { %s226_s7 = smov (!%p106_p3, %s180_s7), 1 }
   0xe   : > { %s190_s8 = sshll.u32 %s226_s7, 4  ;;  %s187_s12 = sshll.u32 %s226_s7, 3 }
   0xf   : > { %s110_s11 = scalar_lea.vmem %s223_s0, %s190_s8  ;;  %s114_s15 = scalar_lea.vmem %s224_s1, %s187_s12 }
  0x10   : > { %v115_v0 = vld [vmem:[%s110_s11] sm:$0xff]  ;;  %v116_v1 = vld [vmem:[%s110_s11 + $0x8] sm:$0xff] }
  0x11   : > { %v118_v2 = vsel %vm117_vm0, %v115_v0, -inf  ;;  %v119_v3 = vsel %vm117_vm0, %v116_v1, -inf }
  0x12   : > { %v120_v4 = vmax.f32 %v118_v2, %v119_v3 }
  0x14   : > { %v122_v5 = vrot.slane %v120_v4, 1 }
  0x16   : > { %v124_v6 = vmax.f32 %v120_v4, %v122_v5 }
  0x18   : > { %126 = vst.msk [vmem:[%s114_s15] sm:$0x7f] %vm125_vm1, %v124_v6 }
  0x19 PF: > { %s11_s6 = sadd.s32 1, %s205_s6  }
  0x1a   : > { %p8_p4 = scmp.ge.s32.totalorder %s11_s6, 4  }
  0x1c   :  { %10 = sbr.rel (!%p8_p4) target bundleno = 1 (0x1), region = 54 }

// kernel: ducnn_forward.15
= control target key start
LH: loop header
LB: loop body
LE: loop exit
PB: predicated region body
PF: predicated region fallthrough
CT: control target
= control target key end

     0   :  { %s1508_s15 = smov 0   ;;  %s1753_s0 = inlined_call_operand.vmem [shape: f32[2,20,50], index: 0, kind: input, shape index: {}]   ;;  %s1754_s1 = inlined_call_operand.vmem [shape: f32[8,50,64], index: 1, kind: input, shape index: {}]   ;;  %s1755_s2 = inlined_call_operand.vmem [shape: f32[1,64], index: 2, kind: input, shape index: {}]   ;;  %s1756_s3 = inlined_call_operand.vmem [shape: f32[1,64], index: 3, kind: input, shape index: {}]   ;;  %s1757_s4 = inlined_call_operand.vmem [shape: f32[2,13,64], index: 4, kind: output, shape index: {}]  }
   0x1 LB: > { %s1058_s16 = sadd.s32 4294967295, %s1481_s15   ;;  %p1062_p0 = scmp.ge.s32.totalorder %s1481_s15, 1  ;;  %s1481_s15 = sphi %s1508_s15, %s14_s15  }
   0x2   : > { %p162_p1 = scmp.lt.s32.totalorder %s1481_s15, 3 }
   0x4   : > { %p163_p2 = pnand %p1062_p0, %p162_p1 }
   0x5   : > { %v1066_v0 = vld [vmem:[%s1754_s1 + $0x38] sm:$0xff] (!%p163_p2)  ;;  %v1067_v1 = vld [vmem:[%s1754_s1 + $0x40] sm:$0xff] (!%p163_p2)  ;;  %p188_p3 = scmp.lt.s32.totalorder (!%p163_p2), %s1058_s16, 1  ;;  %v1100_v4 = vld [vmem:[%s1754_s1 + $0xe8] sm:$0xff] (!%p163_p2)  ;;  %vm217_vm0 = vcmask (!%p163_p2), 408576   ;;  %vm224_vm1 = vcmask (!%p163_p2), 1041408  }
   0x6   : > { %166 = sbr.rel (%p163_p2) target bundleno = 313 (0x139), region = 36  ;;  %v1099_v2 = vld [vmem:[%s1754_s1 + $0xe0] sm:$0xff] (!%p163_p2)  ;;  %v1352_v3 = vpack.c.bf16 (!%p163_p2), %v1067_v1, %v1066_v0  ;;  %v1068_v5 = vld [vmem:[%s1754_s1 + $0x48] sm:$0xff] (!%p163_p2)  ;;  %v1069_v6 = vld [vmem:[%s1754_s1 + $0x50] sm:$0xff] (!%p163_p2)  ;;  %vm1001_vm2 = vcmask (!%p163_p2), 520192   ;;  %vm999_vm3 = vcmask (!%p163_p2), 523264  }
   0x7   : > { %v1400_v7 = vpack.c.bf16 (!%p163_p2), %v1100_v4, %v1099_v2  ;;  %v1356_v8 = vpack.c.bf16 (!%p163_p2), %v1069_v6, %v1068_v5  ;;  %v1101_v9 = vld [vmem:[%s1754_s1 + $0xf0] sm:$0xff] (!%p163_p2)  ;;  %v1102_v10 = vld [vmem:[%s1754_s1 + $0xf8] sm:$0xff] (!%p163_p2)  ;;  %v1071_v13 = vld [vmem:[%s1754_s1 + $0x60] sm:$0xff] (!%p163_p2) }
   0x8   : > { %v1070_v11 = vld [vmem:[%s1754_s1 + $0x58] sm:$0xff] (!%p163_p2)  ;;  %1353 = vmatprep.subr.bf16.mxu1 (!%p163_p2), %v1352_v3  ;;  %v1404_v12 = vpack.c.bf16 (!%p163_p2), %v1102_v10, %v1101_v9  ;;  %v1103_v14 = vld [vmem:[%s1754_s1 + $0x100] sm:$0xff] (!%p163_p2)  ;;  %v1104_v15 = vld [vmem:[%s1754_s1 + $0x108] sm:$0xff] (!%p163_p2) }
   0x9   : > { %1401 = vmatprep.subr.bf16.mxu0 (!%p163_p2), %v1400_v7  ;;  %1355 = vmatpush3.bf16.msra.mxu1 (!%p163_p2), %v1352_v3  ;;  %v1360_v16 = vpack.c.bf16 (!%p163_p2), %v1071_v13, %v1070_v11  ;;  %v1408_v17 = vpack.c.bf16 (!%p163_p2), %v1104_v15, %v1103_v14  ;;  %v1072_v20 = vld [vmem:[%s1754_s1 + $0x68] sm:$0x3] (!%p163_p2)  ;;  %v200_v21 = vld [vmem:[%s1754_s1] sm:$0xff] (!%p163_p2)  ;;  %v1105_v23 = vld [vmem:[%s1754_s1 + $0x110] sm:$0x3] (!%p163_p2) }
   0xa   : > { %1403 = vmatpush3.bf16.msra.mxu0 (!%p163_p2), %v1400_v7  ;;  %1357 = vmatprep.subr.bf16.mxu1 (!%p163_p2), %v1356_v8  ;;  %v201_v22 = vld [vmem:[%s1754_s1 + $0x8] sm:$0xff] (!%p163_p2)  ;;  %v1109_v24 = vld [vmem:[%s1754_s1 + $0x118] sm:$0xff] (!%p163_p2)  ;;  %v1110_v25 = vld [vmem:[%s1754_s1 + $0x120] sm:$0xff] (!%p163_p2) }
   0xb   : > { %1405 = vmatprep.subr.bf16.mxu0 (!%p163_p2), %v1404_v12  ;;  %v1364_v26 = vpack.c.bf16 (!%p163_p2), %v201_v22, %v200_v21  ;;  %v202_v27 = vld [vmem:[%s1754_s1 + $0x10] sm:$0xff] (!%p163_p2)  ;;  %v203_v28 = vld [vmem:[%s1754_s1 + $0x18] sm:$0xff] (!%p163_p2)  ;;  %v1412_v29 = vpack.c.bf16 (!%p163_p2), %v1110_v25, %v1109_v24  ;;  %v1111_v30 = vld [vmem:[%s1754_s1 + $0x128] sm:$0xff] (!%p163_p2) }
   0xc   : > { %v1112_v31 = vld [vmem:[%s1754_s1 + $0x130] sm:$0xff] (!%p163_p2)  ;;  %v1368_v34 = vpack.c.bf16 (!%p163_p2), %v203_v28, %v202_v27  ;;  %v204_v36 = vld [vmem:[%s1754_s1 + $0x20] sm:$0xff] (!%p163_p2)  ;;  %v205_v37 = vld [vmem:[%s1754_s1 + $0x28] sm:$0xff] (!%p163_p2) }
   0xd   : > { %s1759_s16 = smov (!%p188_p3, %s1058_s16), 1  ;;  %1359 = vmatpush3.bf16.msra.mxu1 %v1356_v8  ;;  %v1416_v35 = vpack.c.bf16 %v1112_v31, %v1111_v30  ;;  %v1113_v38 = vld [vmem:[%s1754_s1 + $0x138] sm:$0xff]  ;;  %v1114_v39 = vld [vmem:[%s1754_s1 + $0x140] sm:$0xff]  ;;  %v1372_v42 = vpack.c.bf16 %v205_v37, %v204_v36  ;;  %v206_v44 = vld [vmem:[%s1754_s1 + $0x30] sm:$0x3] }
   0xe   : > { %s1462_s17 = smul.u32 24, %s1759_s16  ;;  %1407 = vmatpush3.bf16.msra.mxu0 %v1404_v12  ;;  %1361 = vmatprep.subr.bf16.mxu1 %v1360_v16  ;;  %v1420_v43 = vpack.c.bf16 %v1114_v39, %v1113_v38  ;;  %v1079_v45 = vld [vmem:[%s1754_s1 + $0x70] sm:$0xff]  ;;  %v1080_v46 = vld [vmem:[%s1754_s1 + $0x78] sm:$0xff]  ;;  %v1115_v47 = vld [vmem:[%s1754_s1 + $0x148] sm:$0x3] }
   0xf   : > { %1409 = vmatprep.subr.bf16.mxu0 %v1408_v17  ;;  %v1119_v48 = vld [vmem:[%s1754_s1 + $0x150] sm:$0xff]  ;;  %v1120_v49 = vld [vmem:[%s1754_s1 + $0x158] sm:$0xff]  ;;  %v1376_v50 = vpack.c.bf16 %v1080_v46, %v1079_v45  ;;  %v1081_v51 = vld [vmem:[%s1754_s1 + $0x80] sm:$0xff] }
  0x10   : > { %s1558_s20 = scalar_lea.vmem %s1753_s0, %s1462_s17  ;;  %v1082_v52 = vld [vmem:[%s1754_s1 + $0x88] sm:$0xff]  ;;  %v1424_v53 = vpack.c.bf16 %v1120_v49, %v1119_v48  ;;  %v1121_v54 = vld [vmem:[%s1754_s1 + $0x160] sm:$0xff]  ;;  %v1083_v60 = vld [vmem:[%s1754_s1 + $0x90] sm:$0xff] }
  0x11   : > { %v207_v18 = vld [vmem:[%s1558_s20 + $0x1] sm:$0xff]  ;;  %1363 = vmatpush3.bf16.msra.mxu1 %v1360_v16  ;;  %v208_v32 = vld [vmem:[%s1558_s20 + $0x9] sm:$0x1f]  ;;  %v1380_v58 = vpack.c.bf16 %v1082_v52, %v1081_v51  ;;  %v1084_v61 = vld [vmem:[%s1754_s1 + $0x98] sm:$0xff] }
  0x12   : > { %v579_v19 = vld [vmem:[%s1558_s20 + $0x4] sm:$0xff]  ;;  %1230 = vmatprep.mubr.msk.f32.mxu1 %vm217_vm0, %v207_v18  ;;  %1411 = vmatpush3.bf16.msra.mxu0 %v1408_v17  ;;  %v580_v33 = vld [vmem:[%s1558_s20 + $0xc] sm:$0x1f]  ;;  %v1124_v63 = vld [vmem:[%s1754_s1 + $0x178] sm:$0xff]  ;;  %v1384_v2 = vpack.c.bf16 %v1084_v61, %v1083_v60 }
  0x13   : > { %1298 = vmatprep.mubr.msk.f32.mxu0 %vm217_vm0, %v579_v19  ;;  %1228 = vmatprep.subr.msk.mxu1 %vm224_vm1, %v1072_v20  ;;  %v198_v40 = vld [vmem:[%s1558_s20] sm:$0xff]  ;;  %v1122_v55 = vld [vmem:[%s1754_s1 + $0x168] sm:$0xff]  ;;  %v1123_v62 = vld [vmem:[%s1754_s1 + $0x170] sm:$0xff] }
  0x14   : > { %1296 = vmatprep.subr.msk.mxu0 %vm224_vm1, %v1105_v23  ;;  %v675_v41 = vld [vmem:[%s1558_s20 + $0x5] sm:$0xff]  ;;  %v676_v57 = vld [vmem:[%s1558_s20 + $0xd] sm:$0x1f]  ;;  %v1428_v59 = vpack.c.bf16 %v1122_v55, %v1121_v54  ;;  %v1432_v3 = vpack.c.bf16 %v1124_v63, %v1123_v62  ;;  %v1085_v4 = vld [vmem:[%s1754_s1 + $0xa0] sm:$0x3] }
  0x15   : > { %1229 = vmatpush3.msk.msra.mxu1 %vm224_vm1, %v1072_v20  ;;  %v199_v56 = vld [vmem:[%s1558_s20 + $0x8] sm:$0x1f]  ;;  %v1090_v6 = vld [vmem:[%s1754_s1 + $0xb0] sm:$0xff]  ;;  %v1125_v7 = vld [vmem:[%s1754_s1 + $0x180] sm:$0x3] }
  0x16   : > { %1297 = vmatpush3.msk.msra.mxu0 %vm224_vm1, %v1105_v23  ;;  %1365 = vmatprep.subr.bf16.mxu1 %v1364_v26  ;;  %v387_v0 = vld [vmem:[%s1558_s20 + $0x2] sm:$0xff]  ;;  %v1130_v9 = vld [vmem:[%s1754_s1 + $0x190] sm:$0xff]  ;;  %v1091_v11 = vld [vmem:[%s1754_s1 + $0xb8] sm:$0xff] }
  0x17   : > { %1413 = vmatprep.subr.bf16.mxu0 %v1412_v29  ;;  %1231 = vmatmul.mubr.msk.f32.vlgmr.msra.gmra.mrb[0].mxu1 %vm217_vm0, %v208_v32  ;;  %v771_v1 = vld [vmem:[%s1558_s20 + $0x6] sm:$0xff]  ;;  %v1131_v14 = vld [vmem:[%s1754_s1 + $0x198] sm:$0xff]  ;;  %v772_v17 = vld [vmem:[%s1558_s20 + $0xe] sm:$0x1f] }
  0x18   : > { %1367 = vmatpush3.bf16.msra.mxu1 %v1364_v26  ;;  %1299 = vmatmul.mubr.msk.f32.vlgmr.msra.gmra.mrb[0].mxu0 %vm217_vm0, %v580_v33  ;;  %v1089_v5 = vld [vmem:[%s1754_s1 + $0xa8] sm:$0xff]  ;;  %v1092_v12 = vld [vmem:[%s1754_s1 + $0xc0] sm:$0xff]  ;;  %v1094_v21 = vld [vmem:[%s1754_s1 + $0xd0] sm:$0xff] }
  0x19   : > { %1415 = vmatpush3.bf16.msra.mxu0 %v1412_v29  ;;  %1369 = vmatprep.subr.bf16.mxu1 %v1368_v34  ;;  %v1129_v8 = vld [vmem:[%s1754_s1 + $0x188] sm:$0xff]  ;;  %v1388_v10 = vpack.c.bf16 %v1090_v6, %v1089_v5  ;;  %v1132_v15 = vld [vmem:[%s1754_s1 + $0x1a0] sm:$0xff]  ;;  %v1392_v18 = vpack.c.bf16 %v1092_v12, %v1091_v11  ;;  %v1134_v23 = vld [vmem:[%s1754_s1 + $0x1b0] sm:$0xff] }
  0x1a   : > { %1417 = vmatprep.subr.bf16.mxu0 %v1416_v35  ;;  %1247 = vmatprep.mubr.msk.f32.mxu1 %vm217_vm0, %v198_v40  ;;  %v1436_v13 = vpack.c.bf16 %v1130_v9, %v1129_v8  ;;  %v388_v16 = vld [vmem:[%s1558_s20 + $0xa] sm:$0x1f]  ;;  %v1440_v19 = vpack.c.bf16 %v1132_v15, %v1131_v14  ;;  %v1095_v28 = vld [vmem:[%s1754_s1 + $0xd8] sm:$0x3]  ;;  %v868_v31 = vld [vmem:[%s1558_s20 + $0xf] sm:$0x1f] }
  0x1b   : > { %1315 = vmatprep.mubr.msk.f32.mxu0 %vm217_vm0, %v675_v41  ;;  %v1093_v20 = vld [vmem:[%s1754_s1 + $0xc8] sm:$0xff]  ;;  %v1135_v29 = vld [vmem:[%s1754_s1 + $0x1b8] sm:$0x3]  ;;  %v1140_v38 = vld [vmem:[%s1756_s3] ss:$0 sm:$0xff] }
  0x1c   : > { %1371 = vmatpush3.bf16.msra.mxu1 %v1368_v34  ;;  %v1133_v22 = vld [vmem:[%s1754_s1 + $0x1a8] sm:$0xff]  ;;  %v1396_v26 = vpack.c.bf16 %v1094_v21, %v1093_v20  ;;  %v1139_v34 = vld [vmem:[%s1755_s2] ss:$0 sm:$0xff] }
  0x1d   : > { %1419 = vmatpush3.bf16.msra.mxu0 %v1416_v35  ;;  %1373 = vmatprep.subr.bf16.mxu1 %v1372_v42  ;;  %v483_v24 = vld [vmem:[%s1558_s20 + $0x3] sm:$0xff]  ;;  %v1444_v27 = vpack.c.bf16 %v1134_v23, %v1133_v22  ;;  %v484_v30 = vld [vmem:[%s1558_s20 + $0xb] sm:$0x1f] }
  0x1e   : > { %1421 = vmatprep.subr.bf16.mxu0 %v1420_v43  ;;  %v867_v25 = vld [vmem:[%s1558_s20 + $0x7] sm:$0xff]  ;;  %s1143_s20 = sshll.u32 %s1759_s16, 4 }
  0x1f   : > { %s197_s23 = scalar_lea.vmem %s1757_s4, %s1143_s20 }
  0x20   : > { %1375 = vmatpush3.bf16.msra.mxu1 %v1372_v42 }
  0x21   : > { %1423 = vmatpush3.bf16.msra.mxu0 %v1420_v43  ;;  %1245 = vmatprep.subr.msk.mxu1 %vm224_vm1, %v206_v44 }
  0x22   : > { %1313 = vmatprep.subr.msk.mxu0 %vm224_vm1, %v1115_v47 }
  0x24   : > { %1246 = vmatpush3.msk.msra.mxu1 %vm224_vm1, %v206_v44 }
  0x25   : > { %1314 = vmatpush3.msk.msra.mxu0 %vm224_vm1, %v1115_v47  ;;  %1377 = vmatprep.subr.bf16.mxu1 %v1376_v50 }
  0x26   : > { %1425 = vmatprep.subr.bf16.mxu0 %v1424_v53  ;;  %1248 = vmatmul.mubr.msk.f32.vlgmr.msra.gmra.mrb[0].mxu1 %vm217_vm0, %v199_v56 }
  0x27   : > { %1379 = vmatpush3.bf16.msra.mxu1 %v1376_v50  ;;  %1316 = vmatmul.mubr.msk.f32.vlgmr.msra.gmra.mrb[0].mxu0 %vm217_vm0, %v676_v57 }
  0x28   : > { %1427 = vmatpush3.bf16.msra.mxu0 %v1424_v53  ;;  %1381 = vmatprep.subr.bf16.mxu1 %v1380_v58 }
  0x29   : > { %1429 = vmatprep.subr.bf16.mxu0 %v1428_v59  ;;  %1264 = vmatprep.mubr.msk.f32.mxu1 %vm217_vm0, %v387_v0 }
  0x2a   : > { %1332 = vmatprep.mubr.msk.f32.mxu0 %vm217_vm0, %v771_v1 }
  0x2b   : > { %1383 = vmatpush3.bf16.msra.mxu1 %v1380_v58 }
  0x2c   : > { %1431 = vmatpush3.bf16.msra.mxu0 %v1428_v59  ;;  %1385 = vmatprep.subr.bf16.mxu1 %v1384_v2 }
  0x2d   : > { %1433 = vmatprep.subr.bf16.mxu0 %v1432_v3 }
  0x2f   : > { %1387 = vmatpush3.bf16.msra.mxu1 %v1384_v2 }
  0x30   : > { %1435 = vmatpush3.bf16.msra.mxu0 %v1432_v3  ;;  %1262 = vmatprep.subr.msk.mxu1 %vm224_vm1, %v1085_v4 }
  0x31   : > { %1330 = vmatprep.subr.msk.mxu0 %vm224_vm1, %v1125_v7 }
  0x33   : > { %1263 = vmatpush3.msk.msra.mxu1 %vm224_vm1, %v1085_v4 }
  0x34   : > { %1331 = vmatpush3.msk.msra.mxu0 %vm224_vm1, %v1125_v7  ;;  %1389 = vmatprep.subr.bf16.mxu1 %v1388_v10 }
  0x35   : > { %1437 = vmatprep.subr.bf16.mxu0 %v1436_v13  ;;  %1265 = vmatmul.mubr.msk.f32.vlgmr.msra.gmra.mrb[0].mxu1 %vm217_vm0, %v388_v16 }
  0x36   : > { %1391 = vmatpush3.bf16.msra.mxu1 %v1388_v10  ;;  %1333 = vmatmul.mubr.msk.f32.vlgmr.msra.gmra.mrb[0].mxu0 %vm217_vm0, %v772_v17 }
  0x37   : > { %1439 = vmatpush3.bf16.msra.mxu0 %v1436_v13  ;;  %1393 = vmatprep.subr.bf16.mxu1 %v1392_v18 }
  0x38   : > { %1441 = vmatprep.subr.bf16.mxu0 %v1440_v19  ;;  %1281 = vmatprep.mubr.msk.f32.mxu1 %vm217_vm0, %v483_v24 }
  0x39   : > { %1349 = vmatprep.mubr.msk.f32.mxu0 %vm217_vm0, %v867_v25 }
  0x3a   : > { %1395 = vmatpush3.bf16.msra.mxu1 %v1392_v18 }
  0x3b   : > { %1443 = vmatpush3.bf16.msra.mxu0 %v1440_v19  ;;  %1397 = vmatprep.subr.bf16.mxu1 %v1396_v26 }
  0x3c   : > { %1445 = vmatprep.subr.bf16.mxu0 %v1444_v27 }
  0x3e   : > { %1399 = vmatpush3.bf16.msra.mxu1 %v1396_v26 }
  0x3f   : > { %1447 = vmatpush3.bf16.msra.mxu0 %v1444_v27  ;;  %1279 = vmatprep.subr.msk.mxu1 %vm224_vm1, %v1095_v28 }
  0x40   : > { %1347 = vmatprep.subr.msk.mxu0 %vm224_vm1, %v1135_v29 }
  0x42   : > { %1280 = vmatpush3.msk.msra.mxu1 %vm224_vm1, %v1095_v28 }
  0x43   : > { %1348 = vmatpush3.msk.msra.mxu0 %vm224_vm1, %v1135_v29  ;;  %1282 = vmatmul.mubr.msk.f32.vlgmr.msra.gmra.mrb[0].mxu1 %vm217_vm0, %v484_v30 }
  0x44   : > { %1350 = vmatmul.mubr.msk.f32.vlgmr.msra.gmra.mrb[0].mxu0 %vm217_vm0, %v868_v31 }
 0x116   : > { %v1283_v32 = vpop.f32.mrb[0].mxu1 }
 0x117   : > { %v1351_v33 = vpop.f32.mrb[0].mxu0  ;;  %v568_v35 = vpop.f32.mrb[1].mxu1 }
 0x118   : > { %v1448_v36 = vadd.f32 %v1351_v33, %v1283_v32  ;;  %v952_v37 = vpop.f32.mrb[1].mxu0 }
 0x119   : > { %v1449_v39 = vadd.f32 %v952_v37, %v568_v35 }
 0x11a   : > { %v971_v40 = vmul.f32 %v1448_v36, %v1139_v34 }
 0x11b   : > { %v970_v41 = vmul.f32 %v1449_v39, %v1139_v34 }
 0x11c   : > { %v980_v42 = vadd.f32 %v1140_v38, %v971_v40 }
 0x11d   : > { %v979_v43 = vadd.f32 %v1140_v38, %v970_v41 }
 0x11e   : > { %v984_v44 = vmul.f32 0.044715, %v980_v42  ;;  %v982_v56 = vmul.f32 0.5, %v980_v42 }
 0x11f   : > { %v983_v45 = vmul.f32 0.044715, %v979_v43  ;;  %v981_v58 = vmul.f32 0.5, %v979_v43 }
 0x120   : > { %v986_v46 = vmul.f32 %v984_v44, %v980_v42 }
 0x121   : > { %v985_v47 = vmul.f32 %v983_v45, %v979_v43 }
 0x122   : > { %v988_v48 = vmul.f32 %v986_v46, %v980_v42 }
 0x123   : > { %v987_v49 = vmul.f32 %v985_v47, %v979_v43 }
 0x124   : > { %v990_v50 = vadd.f32 %v988_v48, %v980_v42 }
 0x125   : > { %v989_v51 = vadd.f32 %v987_v49, %v979_v43 }
 0x126   : > { %v992_v52 = vmul.f32 0.7978846, %v990_v50 }
 0x127   : > { %v991_v53 = vmul.f32 0.7978846, %v989_v51 }
 0x128   : > { %1471 = vtanh.f32 %v992_v52 }
 0x129   : > { %1473 = vtanh.f32 %v991_v53 }
 0x132   : > { %v1472_v54 = vpop.eup %1471 }
 0x133   : > { %v1474_v55 = vpop.eup %1473  ;;  %v996_v57 = vadd.f32 1.0, %v1472_v54 }
 0x134   : > { %v995_v59 = vadd.f32 1.0, %v1474_v55 }
 0x135   : > { %v998_v60 = vmul.f32 %v996_v57, %v982_v56 }
 0x136   : > { %v997_v61 = vmul.f32 %v995_v59, %v981_v58 }
 0x137   : > { %1002 = vst.msk [vmem:[%s197_s23 + $0x8] sm:$0x1f] %vm1001_vm2, %v998_v60 }
 0x138   : > { %1000 = vst.msk [vmem:[%s197_s23] sm:$0xff] %vm999_vm3, %v997_v61 }
 0x139 PF: > { %s14_s15 = sadd.s32 1, %s1481_s15  }
 0x13a   : > { %p11_p4 = scmp.ge.s32.totalorder %s14_s15, 4  }
 0x13c   :  { %13 = sbr.rel (!%p11_p4) target bundleno = 1 (0x1), region = 73 }

// kernel: ducnn_forward.17
= control target key start
LH: loop header
LB: loop body
LE: loop exit
PB: predicated region body
PF: predicated region fallthrough
CT: control target
= control target key end

     0   :  { %s1269_s15 = smov 0   ;;  %s1532_s0 = inlined_call_operand.vmem [shape: f32[2,13,64], index: 0, kind: input, shape index: {}]   ;;  %s1533_s1 = inlined_call_operand.vmem [shape: f32[7,64,128], index: 1, kind: input, shape index: {}]   ;;  %s1534_s2 = inlined_call_operand.vmem [shape: f32[1,128], index: 2, kind: input, shape index: {}]   ;;  %s1535_s3 = inlined_call_operand.vmem [shape: f32[1,128], index: 3, kind: input, shape index: {}]   ;;  %s1536_s4 = inlined_call_operand.vmem [shape: f32[2,7,128], index: 4, kind: output, shape index: {}]  }
   0x1 LB: > { %s861_s16 = sadd.s32 4294967295, %s1239_s15   ;;  %p865_p0 = scmp.ge.s32.totalorder %s1239_s15, 1  ;;  %s1239_s15 = sphi %s1269_s15, %s14_s15  }
   0x2   : > { %p162_p1 = scmp.lt.s32.totalorder %s1239_s15, 3 }
   0x4   : > { %p163_p2 = pnand %p865_p0, %p162_p1 }
   0x5   : > { %v869_v0 = vld [vmem:[%s1533_s1 + $0x40] sm:$0xff] (!%p163_p2)  ;;  %v870_v1 = vld [vmem:[%s1533_s1 + $0x48] sm:$0xff] (!%p163_p2)  ;;  %v1241_v3 = vmov (!%p163_p2), 0.0|0.0   ;;  %v871_v6 = vld [vmem:[%s1533_s1 + $0x50] sm:$0xff] (!%p163_p2)  ;;  %p1299_p3 = scmp.lt.s32.totalorder (!%p163_p2), %s861_s16, 1  ;;  %vm1242_vm0 = vmmov (!%p163_p2), 0  }
   0x6   : > { %166 = sbr.rel (%p163_p2) target bundleno = 316 (0x13c), region = 36  ;;  %v888_v2 = vld [vmem:[%s1533_s1 + $0xc0] sm:$0xff] (!%p163_p2)  ;;  %1125 = vmatprep.subr.bf16.mxu1 (!%p163_p2), %v1241_v3  ;;  %1161 = vmatprep.subr.bf16.mxu0 (!%p163_p2), %v1241_v3  ;;  %v1126_v4 = vpack.c.bf16 (!%p163_p2), %v870_v1, %v869_v0  ;;  %v889_v5 = vld [vmem:[%s1533_s1 + $0xc8] sm:$0xff] (!%p163_p2)  ;;  %v872_v7 = vld [vmem:[%s1533_s1 + $0x58] sm:$0xff] (!%p163_p2)  ;;  %v1243_v11 = vmov (!%p163_p2), 0.0   ;;  %vm215_vm1 = vcmask (!%p163_p2), 523264  }
   0x7   : > { %v1162_v8 = vpack.c.bf16 (!%p163_p2), %v889_v5, %v888_v2  ;;  %v890_v9 = vld [vmem:[%s1533_s1 + $0xd0] sm:$0xff] (!%p163_p2)  ;;  %v891_v10 = vld [vmem:[%s1533_s1 + $0xd8] sm:$0xff] (!%p163_p2)  ;;  %1008 = vmatprep.mubr.msk.f32.mxu1 (!%p163_p2), %vm1242_vm0, %v1243_v11  ;;  %1065 = vmatprep.mubr.msk.f32.mxu0 (!%p163_p2), %vm1242_vm0, %v1243_v11  ;;  %v1129_v12 = vpack.c.bf16 (!%p163_p2), %v872_v7, %v871_v6  ;;  %v873_v14 = vld [vmem:[%s1533_s1 + $0x60] sm:$0xff] (!%p163_p2) }
   0x8   : > { %1127 = vmatpush3.bf16.msra.mxu1 (!%p163_p2), %v1126_v4  ;;  %v1165_v13 = vpack.c.bf16 (!%p163_p2), %v891_v10, %v890_v9  ;;  %v874_v15 = vld [vmem:[%s1533_s1 + $0x68] sm:$0xff] (!%p163_p2)  ;;  %v892_v16 = vld [vmem:[%s1533_s1 + $0xe0] sm:$0xff] (!%p163_p2)  ;;  %v875_v20 = vld [vmem:[%s1533_s1 + $0x70] sm:$0xff] (!%p163_p2) }
   0x9   : > { %1163 = vmatpush3.bf16.msra.mxu0 (!%p163_p2), %v1162_v8  ;;  %1128 = vmatprep.subr.bf16.mxu1 (!%p163_p2), %v1241_v3  ;;  %v893_v17 = vld [vmem:[%s1533_s1 + $0xe8] sm:$0xff] (!%p163_p2)  ;;  %v1132_v18 = vpack.c.bf16 (!%p163_p2), %v874_v15, %v873_v14  ;;  %v876_v21 = vld [vmem:[%s1533_s1 + $0x78] sm:$0xff] (!%p163_p2)  ;;  %v894_v22 = vld [vmem:[%s1533_s1 + $0xf0] sm:$0xff] (!%p163_p2) }
   0xa   : > { %1164 = vmatprep.subr.bf16.mxu0 (!%p163_p2), %v1241_v3  ;;  %v1168_v19 = vpack.c.bf16 (!%p163_p2), %v893_v17, %v892_v16  ;;  %v895_v23 = vld [vmem:[%s1533_s1 + $0xf8] sm:$0xff] (!%p163_p2)  ;;  %v1135_v24 = vpack.c.bf16 (!%p163_p2), %v876_v21, %v875_v20  ;;  %v197_v26 = vld [vmem:[%s1533_s1] sm:$0xff] (!%p163_p2)  ;;  %v198_v27 = vld [vmem:[%s1533_s1 + $0x8] sm:$0xff] (!%p163_p2) }
   0xb   : > { %v1171_v25 = vpack.c.bf16 (!%p163_p2), %v895_v23, %v894_v22  ;;  %v897_v28 = vld [vmem:[%s1533_s1 + $0x100] sm:$0xff] (!%p163_p2)  ;;  %v898_v29 = vld [vmem:[%s1533_s1 + $0x108] sm:$0xff] (!%p163_p2)  ;;  %v1138_v31 = vpack.c.bf16 (!%p163_p2), %v198_v27, %v197_v26  ;;  %v199_v34 = vld [vmem:[%s1533_s1 + $0x10] sm:$0xff] (!%p163_p2) }
   0xc   : > { %1130 = vmatpush3.bf16.msra.mxu1 (!%p163_p2), %v1129_v12  ;;  %v1174_v33 = vpack.c.bf16 (!%p163_p2), %v898_v29, %v897_v28  ;;  %v200_v35 = vld [vmem:[%s1533_s1 + $0x18] sm:$0xff] (!%p163_p2)  ;;  %v899_v36 = vld [vmem:[%s1533_s1 + $0x110] sm:$0xff] (!%p163_p2)  ;;  %v201_v40 = vld [vmem:[%s1533_s1 + $0x20] sm:$0xff] (!%p163_p2) }
   0xd   : > { %s1539_s16 = smov (!%p1299_p3, %s861_s16), 1  ;;  %1166 = vmatpush3.bf16.msra.mxu0 %v1165_v13  ;;  %1131 = vmatprep.subr.bf16.mxu1 %v1241_v3  ;;  %v900_v37 = vld [vmem:[%s1533_s1 + $0x118] sm:$0xff]  ;;  %v1141_v38 = vpack.c.bf16 %v200_v35, %v199_v34  ;;  %v202_v41 = vld [vmem:[%s1533_s1 + $0x28] sm:$0xff]  ;;  %v901_v42 = vld [vmem:[%s1533_s1 + $0x120] sm:$0xff] }
   0xe   : > { %1167 = vmatprep.subr.bf16.mxu0 %v1241_v3  ;;  %s928_s26 = sshll.u32 %s1539_s16, 4  ;;  %v1177_v39 = vpack.c.bf16 %v900_v37, %v899_v36  ;;  %v902_v43 = vld [vmem:[%s1533_s1 + $0x128] sm:$0xff]  ;;  %v1144_v44 = vpack.c.bf16 %v202_v41, %v201_v40  ;;  %v203_v46 = vld [vmem:[%s1533_s1 + $0x30] sm:$0xff]  ;;  %v204_v47 = vld [vmem:[%s1533_s1 + $0x38] sm:$0xff] }
   0xf   : > { %s1352_s29 = scalar_lea.vmem %s1532_s0, %s928_s26  ;;  %v1180_v45 = vpack.c.bf16 %v902_v43, %v901_v42  ;;  %v903_v48 = vld [vmem:[%s1533_s1 + $0x130] sm:$0xff]  ;;  %v904_v49 = vld [vmem:[%s1533_s1 + $0x138] sm:$0xff]  ;;  %v1147_v50 = vpack.c.bf16 %v204_v47, %v203_v46  ;;  %v879_v52 = vld [vmem:[%s1533_s1 + $0x80] sm:$0xff] }
  0x10   : > { %1133 = vmatpush3.bf16.msra.mxu1 %v1132_v18  ;;  %v205_v30 = vld [vmem:[%s1352_s29 + $0x1] sm:$0x7f]  ;;  %v1183_v51 = vpack.c.bf16 %v904_v49, %v903_v48  ;;  %v880_v53 = vld [vmem:[%s1533_s1 + $0x88] sm:$0xff]  ;;  %v881_v60 = vld [vmem:[%s1533_s1 + $0x90] sm:$0xff] }
  0x11   : > { %1169 = vmatpush3.bf16.msra.mxu0 %v1168_v19  ;;  %1134 = vmatprep.subr.bf16.mxu1 %v1241_v3  ;;  %v446_v32 = vld [vmem:[%s1352_s29 + $0x3] sm:$0x7f]  ;;  %v1150_v57 = vpack.c.bf16 %v880_v53, %v879_v52  ;;  %v882_v61 = vld [vmem:[%s1533_s1 + $0x98] sm:$0xff]  ;;  %v908_v62 = vld [vmem:[%s1533_s1 + $0x150] sm:$0xff] }
  0x12   : > { %1170 = vmatprep.subr.bf16.mxu0 %v1241_v3  ;;  %v906_v54 = vld [vmem:[%s1533_s1 + $0x140] sm:$0xff]  ;;  %v907_v55 = vld [vmem:[%s1533_s1 + $0x148] sm:$0xff]  ;;  %v909_v63 = vld [vmem:[%s1533_s1 + $0x158] sm:$0xff]  ;;  %v1153_v0 = vpack.c.bf16 %v882_v61, %v881_v60 }
  0x13   : > { %v196_v56 = vld [vmem:[%s1352_s29] sm:$0x7f]  ;;  %v1186_v59 = vpack.c.bf16 %v907_v55, %v906_v54  ;;  %v1189_v1 = vpack.c.bf16 %v909_v63, %v908_v62  ;;  %v884_v4 = vld [vmem:[%s1533_s1 + $0xa8] sm:$0xff]  ;;  %v885_v9 = vld [vmem:[%s1533_s1 + $0xb0] sm:$0xff] }
  0x14   : > { %1136 = vmatpush3.bf16.msra.mxu1 %v1135_v24  ;;  %v530_v58 = vld [vmem:[%s1352_s29 + $0x4] sm:$0x7f]  ;;  %v886_v10 = vld [vmem:[%s1533_s1 + $0xb8] sm:$0xff]  ;;  %v912_v12 = vld [vmem:[%s1533_s1 + $0x170] sm:$0xff] }
  0x15   : > { %1172 = vmatpush3.bf16.msra.mxu0 %v1171_v25  ;;  %1137 = vmatprep.subr.bf16.mxu1 %v1241_v3  ;;  %v883_v2 = vld [vmem:[%s1533_s1 + $0xa0] sm:$0xff]  ;;  %v911_v6 = vld [vmem:[%s1533_s1 + $0x168] sm:$0xff]  ;;  %v913_v13 = vld [vmem:[%s1533_s1 + $0x178] sm:$0xff]  ;;  %v1159_v14 = vpack.c.bf16 %v886_v10, %v885_v9 }
  0x16   : > { %1173 = vmatprep.subr.bf16.mxu0 %v1241_v3  ;;  %v910_v5 = vld [vmem:[%s1533_s1 + $0x160] sm:$0xff]  ;;  %v1156_v7 = vpack.c.bf16 %v884_v4, %v883_v2  ;;  %v1195_v15 = vpack.c.bf16 %v913_v13, %v912_v12  ;;  %v916_v17 = vld [vmem:[%s1533_s1 + $0x188] sm:$0xff]  ;;  %v917_v21 = vld [vmem:[%s1533_s1 + $0x190] sm:$0xff] }
  0x17   : > { %1009 = vmatmul.mubr.msk.f32.vlgmr.msra.gmra.mrb[0].mxu1 %vm215_vm1, %v205_v30  ;;  %v1192_v8 = vpack.c.bf16 %v911_v6, %v910_v5  ;;  %v915_v16 = vld [vmem:[%s1533_s1 + $0x180] sm:$0xff]  ;;  %v918_v22 = vld [vmem:[%s1533_s1 + $0x198] sm:$0xff]  ;;  %v920_v25 = vld [vmem:[%s1533_s1 + $0x1a8] sm:$0xff] }
  0x18   : > { %1139 = vmatpush3.bf16.msra.mxu1 %v1138_v31  ;;  %1066 = vmatmul.mubr.msk.f32.vlgmr.msra.gmra.mrb[0].mxu0 %vm215_vm1, %v446_v32  ;;  %v362_v18 = vld [vmem:[%s1352_s29 + $0x2] sm:$0x7f]  ;;  %v1198_v20 = vpack.c.bf16 %v916_v17, %v915_v16  ;;  %v1201_v23 = vpack.c.bf16 %v918_v22, %v917_v21  ;;  %v921_v27 = vld [vmem:[%s1533_s1 + $0x1b0] sm:$0xff]  ;;  %v925_v36 = vld [vmem:[%s1535_s3] ss:$0 sm:$0xff] }
  0x19   : > { %1175 = vmatpush3.bf16.msra.mxu0 %v1174_v33  ;;  %1140 = vmatprep.subr.bf16.mxu1 %v1241_v3  ;;  %v614_v19 = vld [vmem:[%s1352_s29 + $0x5] sm:$0x7f]  ;;  %v924_v33 = vld [vmem:[%s1534_s2] ss:$0 sm:$0xff] }
  0x1a   : > { %1176 = vmatprep.subr.bf16.mxu0 %v1241_v3  ;;  %1027 = vmatprep.mubr.msk.f32.mxu1 %vm1242_vm0, %v1243_v11  ;;  %v919_v24 = vld [vmem:[%s1533_s1 + $0x1a0] sm:$0xff] }
  0x1b   : > { %1084 = vmatprep.mubr.msk.f32.mxu0 %vm1242_vm0, %v1243_v11  ;;  %v1204_v26 = vpack.c.bf16 %v920_v25, %v919_v24  ;;  %v698_v29 = vld [vmem:[%s1352_s29 + $0x6] sm:$0x7f]  ;;  %s868_s29 = sshll.u32 %s1539_s16, 3 }
  0x1c   : > { %1142 = vmatpush3.bf16.msra.mxu1 %v1141_v38  ;;  %s195_s23 = scalar_lea.vmem %s1536_s4, %s868_s29 }
  0x1d   : > { %1178 = vmatpush3.bf16.msra.mxu0 %v1177_v39  ;;  %1143 = vmatprep.subr.bf16.mxu1 %v1241_v3 }
  0x1e   : > { %1179 = vmatprep.subr.bf16.mxu0 %v1241_v3 }
  0x20   : > { %1145 = vmatpush3.bf16.msra.mxu1 %v1144_v44 }
  0x21   : > { %1181 = vmatpush3.bf16.msra.mxu0 %v1180_v45  ;;  %1146 = vmatprep.subr.bf16.mxu1 %v1241_v3 }
  0x22   : > { %1182 = vmatprep.subr.bf16.mxu0 %v1241_v3 }
  0x24   : > { %1148 = vmatpush3.bf16.msra.mxu1 %v1147_v50 }
  0x25   : > { %1184 = vmatpush3.bf16.msra.mxu0 %v1183_v51  ;;  %1149 = vmatprep.subr.bf16.mxu1 %v1241_v3 }
  0x26   : > { %1185 = vmatprep.subr.bf16.mxu0 %v1241_v3 }
  0x27   : > { %1028 = vmatmul.mubr.msk.f32.vlgmr.msra.gmra.mrb[0].mxu1 %vm215_vm1, %v196_v56 }
  0x28   : > { %1151 = vmatpush3.bf16.msra.mxu1 %v1150_v57  ;;  %1085 = vmatmul.mubr.msk.f32.vlgmr.msra.gmra.mrb[0].mxu0 %vm215_vm1, %v530_v58 }
  0x29   : > { %1187 = vmatpush3.bf16.msra.mxu0 %v1186_v59  ;;  %1152 = vmatprep.subr.bf16.mxu1 %v1241_v3 }
  0x2a   : > { %1188 = vmatprep.subr.bf16.mxu0 %v1241_v3  ;;  %1046 = vmatprep.mubr.msk.f32.mxu1 %vm1242_vm0, %v1243_v11 }
  0x2b   : > { %1103 = vmatprep.mubr.msk.f32.mxu0 %vm1242_vm0, %v1243_v11 }
  0x2c   : > { %1154 = vmatpush3.bf16.msra.mxu1 %v1153_v0 }
  0x2d   : > { %1190 = vmatpush3.bf16.msra.mxu0 %v1189_v1  ;;  %1155 = vmatprep.subr.bf16.mxu1 %v1241_v3 }
  0x2e   : > { %1191 = vmatprep.subr.bf16.mxu0 %v1241_v3 }
  0x30   : > { %1157 = vmatpush3.bf16.msra.mxu1 %v1156_v7 }
  0x31   : > { %1193 = vmatpush3.bf16.msra.mxu0 %v1192_v8  ;;  %1158 = vmatprep.subr.bf16.mxu1 %v1241_v3 }
  0x32   : > { %1194 = vmatprep.subr.bf16.mxu0 %v1241_v3 }
  0x34   : > { %1160 = vmatpush3.bf16.msra.mxu1 %v1159_v14 }
  0x35   : > { %1196 = vmatpush3.bf16.msra.mxu0 %v1195_v15 }
  0x36   : > { %1197 = vmatprep.subr.bf16.mxu0 %v1241_v3 }
  0x37   : > { %1047 = vmatmul.mubr.msk.f32.vlgmr.msra.gmra.mrb[0].mxu1 %vm215_vm1, %v362_v18 }
  0x38   : > { %1104 = vmatmul.mubr.msk.f32.vlgmr.msra.gmra.mrb[0].mxu0 %vm215_vm1, %v614_v19 }
  0x39   : > { %1199 = vmatpush3.bf16.msra.mxu0 %v1198_v20  ;;  %1122 = vmatprep.mubr.msk.f32.mxu0 %vm1242_vm0, %v1243_v11  ;;  %v922_v11 = vld [vmem:[%s1533_s1 + $0x1b8] sm:$0xff] }
  0x3a   : > { %1200 = vmatprep.subr.bf16.mxu0 %v1241_v3  ;;  %v1207_v28 = vpack.c.bf16 %v922_v11, %v921_v27 }
  0x3d   : > { %1202 = vmatpush3.bf16.msra.mxu0 %v1201_v23 }
  0x3e   : > { %1203 = vmatprep.subr.bf16.mxu0 %v1241_v3 }
  0x41   : > { %1205 = vmatpush3.bf16.msra.mxu0 %v1204_v26 }
  0x42   : > { %1206 = vmatprep.subr.bf16.mxu0 %v1241_v3 }
  0x45   : > { %1208 = vmatpush3.bf16.msra.mxu0 %v1207_v28 }
  0x48   : > { %1123 = vmatmul.mubr.msk.f32.vlgmr.msra.gmra.mrb[0].mxu0 %vm215_vm1, %v698_v29 }
 0x10a   : > { %v441_v30 = vpop.f32.mrb[0].mxu1 }
 0x10b   : > { %v1048_v31 = vpop.f32.mrb[1].mxu1 }
 0x11b   : > { %v777_v32 = vpop.f32.mrb[0].mxu0 }
 0x11c   : > { %v1209_v34 = vadd.f32 %v777_v32, %v441_v30  ;;  %v1124_v35 = vpop.f32.mrb[1].mxu0 }
 0x11e   : > { %v789_v37 = vmul.f32 %v1209_v34, %v924_v33 }
 0x120   : > { %v797_v3 = vadd.f32 %v925_v36, %v789_v37 }
 0x122   : > { %v799_v38 = vmul.f32 0.044715, %v797_v3  ;;  %v798_v44 = vmul.f32 0.5, %v797_v3 }
 0x124   : > { %v800_v39 = vmul.f32 %v799_v38, %v797_v3 }
 0x126   : > { %v801_v40 = vmul.f32 %v800_v39, %v797_v3 }
 0x128   : > { %v802_v41 = vadd.f32 %v801_v40, %v797_v3 }
 0x12a   : > { %v803_v42 = vmul.f32 0.7978846, %v802_v41 }
 0x12c   : > { %1231 = vtanh.f32 %v803_v42 }
 0x136   : > { %v1232_v43 = vpop.eup %1231 }
 0x137   : > { %v805_v45 = vadd.f32 1.0, %v1232_v43 }
 0x139   : > { %v806_v46 = vmul.f32 %v805_v45, %v798_v44 }
 0x13b   : > { %807 = vst [vmem:[%s195_s23] sm:$0x7f] %v806_v46 }
 0x13c PF: > { %s14_s15 = sadd.s32 1, %s1239_s15  }
 0x13d   : > { %p11_p4 = scmp.ge.s32.totalorder %s14_s15, 4  }
 0x13f   :  { %13 = sbr.rel (!%p11_p4) target bundleno = 1 (0x1), region = 72 }

// kernel: ducnn_forward.19
= control target key start
LH: loop header
LB: loop body
LE: loop exit
PB: predicated region body
PF: predicated region fallthrough
CT: control target
= control target key end

     0   :  { %s198_s6 = smov 0   ;;  %s218_s0 = inlined_call_operand.vmem [shape: f32[2,2,4,128], index: 0, kind: input, shape index: {}]   ;;  %s219_s1 = inlined_call_operand.vmem [shape: f32[2,4,128], index: 1, kind: output, shape index: {}]  }
   0x1 LB: > { %s175_s7 = sadd.s32 4294967295, %s200_s6   ;;  %p179_p0 = scmp.ge.s32.totalorder %s200_s6, 1  ;;  %s200_s6 = sphi %s198_s6, %s11_s6  }
   0x2   : > { %p87_p1 = scmp.lt.s32.totalorder %s200_s6, 3 }
   0x4   : > { %p88_p2 = pnand %p179_p0, %p87_p1 }
   0x5   : > { %p106_p3 = scmp.lt.s32.totalorder (!%p88_p2), %s175_s7, 1  ;;  %vm117_vm0 = vcmask (!%p88_p2), 1043456  }
   0x6   : > { %91 = sbr.rel (%p88_p2) target bundleno = 21 (0x15), region = 24 }
   0xd   : > { %s221_s7 = smov (!%p106_p3, %s175_s7), 1 }
   0xe   : > { %s185_s8 = sshll.u32 %s221_s7, 3  ;;  %s182_s9 = sshll.u32 %s221_s7, 2 }
   0xf   : > { %s110_s12 = scalar_lea.vmem %s218_s0, %s185_s8  ;;  %s114_s15 = scalar_lea.vmem %s219_s1, %s182_s9 }
  0x10   : > { %v115_v0 = vld [vmem:[%s110_s12] sm:$0xf]  ;;  %v116_v1 = vld [vmem:[%s110_s12 + $0x4] sm:$0xf] }
  0x11   : > { %v118_v2 = vsel %vm117_vm0, %v115_v0, -inf  ;;  %v119_v3 = vsel %vm117_vm0, %v116_v1, -inf }
  0x12   : > { %v120_v4 = vmax.f32 %v118_v2, %v119_v3 }
  0x14   : > { %121 = vst [vmem:[%s114_s15] sm:$0xf] %v120_v4 }
  0x15 PF: > { %s11_s6 = sadd.s32 1, %s200_s6  }
  0x16   : > { %p8_p4 = scmp.ge.s32.totalorder %s11_s6, 4  }
  0x18   :  { %10 = sbr.rel (!%p8_p4) target bundleno = 1 (0x1), region = 54 }

// kernel: ducnn_forward.18
= control target key start
LH: loop header
LB: loop body
LE: loop exit
PB: predicated region body
PF: predicated region fallthrough
CT: control target
= control target key end

     0   :  { %s1596_s15 = smov 0   ;;  %s2042_s0 = inlined_call_operand.vmem [shape: f32[2,13,128], index: 0, kind: input, shape index: {}]   ;;  %s2043_s1 = inlined_call_operand.vmem [shape: f32[7,128,128], index: 1, kind: input, shape index: {}]   ;;  %s2044_s2 = inlined_call_operand.vmem [shape: f32[1,128], index: 2, kind: input, shape index: {}]   ;;  %s2045_s3 = inlined_call_operand.vmem [shape: f32[1,128], index: 3, kind: input, shape index: {}]   ;;  %s2046_s4 = inlined_call_operand.vmem [shape: f32[2,7,128], index: 4, kind: output, shape index: {}]  }
   0x1 LB: > { %s895_s16 = sadd.s32 4294967295, %s1566_s15   ;;  %p899_p0 = scmp.ge.s32.totalorder %s1566_s15, 1  ;;  %s1566_s15 = sphi %s1596_s15, %s14_s15  }
   0x2   : > { %p162_p1 = scmp.lt.s32.totalorder %s1566_s15, 3 }
   0x4   : > { %p163_p2 = pnand %p899_p0, %p162_p1 }
   0x5   : > { %v903_v0 = vld [vmem:[%s2043_s1 + $0x80] sm:$0xff] (!%p163_p2)  ;;  %v904_v1 = vld [vmem:[%s2043_s1 + $0x88] sm:$0xff] (!%p163_p2)  ;;  %v1568_v3 = vmov (!%p163_p2), 0.0|0.0   ;;  %v905_v6 = vld [vmem:[%s2043_s1 + $0x90] sm:$0xff] (!%p163_p2)  ;;  %vm1569_vm0 = vmmov (!%p163_p2), 0   ;;  %v1570_v11 = vmov (!%p163_p2), 0.0  }
   0x6   : > { %166 = sbr.rel (%p163_p2) target bundleno = 380 (0x17c), region = 36  ;;  %v935_v2 = vld [vmem:[%s2043_s1 + $0x180] sm:$0xff] (!%p163_p2)  ;;  %1368 = vmatprep.subr.bf16.mxu1 (!%p163_p2), %v1568_v3  ;;  %1440 = vmatprep.subr.bf16.mxu0 (!%p163_p2), %v1568_v3  ;;  %v1369_v4 = vpack.c.bf16 (!%p163_p2), %v904_v1, %v903_v0  ;;  %v936_v5 = vld [vmem:[%s2043_s1 + $0x188] sm:$0xff] (!%p163_p2)  ;;  %v906_v7 = vld [vmem:[%s2043_s1 + $0x98] sm:$0xff] (!%p163_p2)  ;;  %p187_p3 = scmp.lt.s32.totalorder (!%p163_p2), %s895_s16, 1 }
   0x7   : > { %v1441_v8 = vpack.c.bf16 (!%p163_p2), %v936_v5, %v935_v2  ;;  %v937_v9 = vld [vmem:[%s2043_s1 + $0x190] sm:$0xff] (!%p163_p2)  ;;  %v938_v10 = vld [vmem:[%s2043_s1 + $0x198] sm:$0xff] (!%p163_p2)  ;;  %1155 = vmatprep.mubr.msk.f32.mxu1 (!%p163_p2), %vm1569_vm0, %v1570_v11  ;;  %1260 = vmatprep.mubr.msk.f32.mxu0 (!%p163_p2), %vm1569_vm0, %v1570_v11  ;;  %v1372_v12 = vpack.c.bf16 (!%p163_p2), %v906_v7, %v905_v6  ;;  %v907_v14 = vld [vmem:[%s2043_s1 + $0xa0] sm:$0xff] (!%p163_p2) }
   0x8   : > { %1370 = vmatpush3.bf16.msra.mxu1 (!%p163_p2), %v1369_v4  ;;  %v1444_v13 = vpack.c.bf16 (!%p163_p2), %v938_v10, %v937_v9  ;;  %v908_v15 = vld [vmem:[%s2043_s1 + $0xa8] sm:$0xff] (!%p163_p2)  ;;  %v939_v16 = vld [vmem:[%s2043_s1 + $0x1a0] sm:$0xff] (!%p163_p2)  ;;  %v909_v20 = vld [vmem:[%s2043_s1 + $0xb0] sm:$0xff] (!%p163_p2) }
   0x9   : > { %1442 = vmatpush3.bf16.msra.mxu0 (!%p163_p2), %v1441_v8  ;;  %1371 = vmatprep.subr.bf16.mxu1 (!%p163_p2), %v1568_v3  ;;  %v940_v17 = vld [vmem:[%s2043_s1 + $0x1a8] sm:$0xff] (!%p163_p2)  ;;  %v1375_v18 = vpack.c.bf16 (!%p163_p2), %v908_v15, %v907_v14  ;;  %v910_v21 = vld [vmem:[%s2043_s1 + $0xb8] sm:$0xff] (!%p163_p2)  ;;  %v941_v22 = vld [vmem:[%s2043_s1 + $0x1b0] sm:$0xff] (!%p163_p2) }
   0xa   : > { %1443 = vmatprep.subr.bf16.mxu0 (!%p163_p2), %v1568_v3  ;;  %v1447_v19 = vpack.c.bf16 (!%p163_p2), %v940_v17, %v939_v16  ;;  %v942_v23 = vld [vmem:[%s2043_s1 + $0x1b8] sm:$0xff] (!%p163_p2)  ;;  %v1378_v24 = vpack.c.bf16 (!%p163_p2), %v910_v21, %v909_v20  ;;  %v911_v26 = vld [vmem:[%s2043_s1 + $0xc0] sm:$0xff] (!%p163_p2)  ;;  %v912_v27 = vld [vmem:[%s2043_s1 + $0xc8] sm:$0xff] (!%p163_p2) }
   0xb   : > { %v1450_v25 = vpack.c.bf16 (!%p163_p2), %v942_v23, %v941_v22  ;;  %v943_v28 = vld [vmem:[%s2043_s1 + $0x1c0] sm:$0xff] (!%p163_p2)  ;;  %v944_v29 = vld [vmem:[%s2043_s1 + $0x1c8] sm:$0xff] (!%p163_p2)  ;;  %v1381_v30 = vpack.c.bf16 (!%p163_p2), %v912_v27, %v911_v26  ;;  %v913_v32 = vld [vmem:[%s2043_s1 + $0xd0] sm:$0xff] (!%p163_p2) }
   0xc   : > { %1373 = vmatpush3.bf16.msra.mxu1 (!%p163_p2), %v1372_v12  ;;  %v1453_v31 = vpack.c.bf16 (!%p163_p2), %v944_v29, %v943_v28  ;;  %v914_v33 = vld [vmem:[%s2043_s1 + $0xd8] sm:$0xff] (!%p163_p2)  ;;  %v945_v34 = vld [vmem:[%s2043_s1 + $0x1d0] sm:$0xff] (!%p163_p2)  ;;  %v915_v38 = vld [vmem:[%s2043_s1 + $0xe0] sm:$0xff] (!%p163_p2) }
   0xd   : > { %1445 = vmatpush3.bf16.msra.mxu0 %v1444_v13  ;;  %1374 = vmatprep.subr.bf16.mxu1 %v1568_v3  ;;  %v946_v35 = vld [vmem:[%s2043_s1 + $0x1d8] sm:$0xff]  ;;  %v1384_v36 = vpack.c.bf16 %v914_v33, %v913_v32  ;;  %v916_v39 = vld [vmem:[%s2043_s1 + $0xe8] sm:$0xff]  ;;  %v947_v40 = vld [vmem:[%s2043_s1 + $0x1e0] sm:$0xff]  ;;  %s2048_s16 = smov (!%p187_p3, %s895_s16), 1 }
   0xe   : > { %1446 = vmatprep.subr.bf16.mxu0 %v1568_v3  ;;  %v1456_v37 = vpack.c.bf16 %v946_v35, %v945_v34  ;;  %v948_v41 = vld [vmem:[%s2043_s1 + $0x1e8] sm:$0xff]  ;;  %v1387_v42 = vpack.c.bf16 %v916_v39, %v915_v38  ;;  %v917_v44 = vld [vmem:[%s2043_s1 + $0xf0] sm:$0xff]  ;;  %v918_v45 = vld [vmem:[%s2043_s1 + $0xf8] sm:$0xff]  ;;  %s1003_s7 = sshll.u32 %s2048_s16, 4 }
   0xf   : > { %v1459_v43 = vpack.c.bf16 %v948_v41, %v947_v40  ;;  %v949_v46 = vld [vmem:[%s2043_s1 + $0x1f0] sm:$0xff]  ;;  %v950_v47 = vld [vmem:[%s2043_s1 + $0x1f8] sm:$0xff]  ;;  %v1390_v48 = vpack.c.bf16 %v918_v45, %v917_v44  ;;  %s1729_s10 = scalar_lea.vmem %s2042_s0, %s1003_s7  ;;  %v197_v50 = vld [vmem:[%s2043_s1] sm:$0xff] }
  0x10   : > { %1376 = vmatpush3.bf16.msra.mxu1 %v1375_v18  ;;  %v1462_v49 = vpack.c.bf16 %v950_v47, %v949_v46  ;;  %v198_v51 = vld [vmem:[%s2043_s1 + $0x8] sm:$0xff]  ;;  %v951_v52 = vld [vmem:[%s2043_s1 + $0x200] sm:$0xff]  ;;  %v199_v58 = vld [vmem:[%s2043_s1 + $0x10] sm:$0xff] }
  0x11   : > { %1448 = vmatpush3.bf16.msra.mxu0 %v1447_v19  ;;  %1377 = vmatprep.subr.bf16.mxu1 %v1568_v3  ;;  %v952_v53 = vld [vmem:[%s2043_s1 + $0x208] sm:$0xff]  ;;  %v213_v54 = vld [vmem:[%s1729_s10 + $0x1] sm:$0x7f]  ;;  %v1393_v55 = vpack.c.bf16 %v198_v51, %v197_v50  ;;  %v200_v59 = vld [vmem:[%s2043_s1 + $0x18] sm:$0xff] }
  0x12   : > { %1449 = vmatprep.subr.bf16.mxu0 %v1568_v3  ;;  %v460_v56 = vld [vmem:[%s1729_s10 + $0x3] sm:$0x7f]  ;;  %v1465_v57 = vpack.c.bf16 %v952_v53, %v951_v52  ;;  %v953_v60 = vld [vmem:[%s2043_s1 + $0x210] sm:$0xff]  ;;  %v954_v61 = vld [vmem:[%s2043_s1 + $0x218] sm:$0xff]  ;;  %v1396_v62 = vpack.c.bf16 %v200_v59, %v199_v58 }
  0x13   : > { %v1468_v63 = vpack.c.bf16 %v954_v61, %v953_v60  ;;  %v201_v0 = vld [vmem:[%s2043_s1 + $0x20] sm:$0xff]  ;;  %v202_v1 = vld [vmem:[%s2043_s1 + $0x28] sm:$0xff]  ;;  %v203_v7 = vld [vmem:[%s2043_s1 + $0x30] sm:$0xff] }
  0x14   : > { %1379 = vmatpush3.bf16.msra.mxu1 %v1378_v24  ;;  %v955_v2 = vld [vmem:[%s2043_s1 + $0x220] sm:$0xff]  ;;  %v956_v4 = vld [vmem:[%s2043_s1 + $0x228] sm:$0xff]  ;;  %v1399_v5 = vpack.c.bf16 %v202_v1, %v201_v0  ;;  %v204_v8 = vld [vmem:[%s2043_s1 + $0x38] sm:$0xff] }
  0x15   : > { %1451 = vmatpush3.bf16.msra.mxu0 %v1450_v25  ;;  %1380 = vmatprep.subr.bf16.mxu1 %v1568_v3  ;;  %v1471_v6 = vpack.c.bf16 %v956_v4, %v955_v2  ;;  %v957_v9 = vld [vmem:[%s2043_s1 + $0x230] sm:$0xff]  ;;  %v958_v10 = vld [vmem:[%s2043_s1 + $0x238] sm:$0xff]  ;;  %v1402_v12 = vpack.c.bf16 %v204_v8, %v203_v7  ;;  %v205_v14 = vld [vmem:[%s2043_s1 + $0x40] sm:$0xff] }
  0x16   : > { %1452 = vmatprep.subr.bf16.mxu0 %v1568_v3  ;;  %v1474_v13 = vpack.c.bf16 %v958_v10, %v957_v9  ;;  %v206_v15 = vld [vmem:[%s2043_s1 + $0x48] sm:$0xff]  ;;  %v959_v16 = vld [vmem:[%s2043_s1 + $0x240] sm:$0xff]  ;;  %v207_v20 = vld [vmem:[%s2043_s1 + $0x50] sm:$0xff] }
  0x17   : > { %v960_v17 = vld [vmem:[%s2043_s1 + $0x248] sm:$0xff]  ;;  %v1405_v18 = vpack.c.bf16 %v206_v15, %v205_v14  ;;  %v208_v21 = vld [vmem:[%s2043_s1 + $0x58] sm:$0xff]  ;;  %v961_v22 = vld [vmem:[%s2043_s1 + $0x250] sm:$0xff] }
  0x18   : > { %1382 = vmatpush3.bf16.msra.mxu1 %v1381_v30  ;;  %v1477_v19 = vpack.c.bf16 %v960_v17, %v959_v16  ;;  %v962_v23 = vld [vmem:[%s2043_s1 + $0x258] sm:$0xff]  ;;  %v1408_v24 = vpack.c.bf16 %v208_v21, %v207_v20  ;;  %v209_v26 = vld [vmem:[%s2043_s1 + $0x60] sm:$0xff]  ;;  %v210_v27 = vld [vmem:[%s2043_s1 + $0x68] sm:$0xff] }
  0x19   : > { %1454 = vmatpush3.bf16.msra.mxu0 %v1453_v31  ;;  %1383 = vmatprep.subr.bf16.mxu1 %v1568_v3  ;;  %v1480_v25 = vpack.c.bf16 %v962_v23, %v961_v22  ;;  %v963_v28 = vld [vmem:[%s2043_s1 + $0x260] sm:$0xff]  ;;  %v964_v29 = vld [vmem:[%s2043_s1 + $0x268] sm:$0xff]  ;;  %v1411_v30 = vpack.c.bf16 %v210_v27, %v209_v26  ;;  %v211_v32 = vld [vmem:[%s2043_s1 + $0x70] sm:$0xff] }
  0x1a   : > { %1455 = vmatprep.subr.bf16.mxu0 %v1568_v3  ;;  %v1483_v31 = vpack.c.bf16 %v964_v29, %v963_v28  ;;  %v212_v33 = vld [vmem:[%s2043_s1 + $0x78] sm:$0xff]  ;;  %v965_v34 = vld [vmem:[%s2043_s1 + $0x270] sm:$0xff]  ;;  %v919_v38 = vld [vmem:[%s2043_s1 + $0x100] sm:$0xff] }
  0x1b   : > { %v966_v35 = vld [vmem:[%s2043_s1 + $0x278] sm:$0xff]  ;;  %v920_v39 = vld [vmem:[%s2043_s1 + $0x108] sm:$0xff]  ;;  %v967_v40 = vld [vmem:[%s2043_s1 + $0x280] sm:$0xff] }
  0x1c   : > { %1385 = vmatpush3.bf16.msra.mxu1 %v1384_v36  ;;  %v1414_v36 = vpack.c.bf16 %v212_v33, %v211_v32  ;;  %v968_v41 = vld [vmem:[%s2043_s1 + $0x288] sm:$0xff]  ;;  %v921_v46 = vld [vmem:[%s2043_s1 + $0x110] sm:$0xff]  ;;  %v922_v47 = vld [vmem:[%s2043_s1 + $0x118] sm:$0xff] }
  0x1d   : > { %1457 = vmatpush3.bf16.msra.mxu0 %v1456_v37  ;;  %1386 = vmatprep.subr.bf16.mxu1 %v1568_v3  ;;  %v1486_v37 = vpack.c.bf16 %v966_v35, %v965_v34  ;;  %v549_v44 = vld [vmem:[%s1729_s10 + $0x4] sm:$0x7f]  ;;  %v1489_v45 = vpack.c.bf16 %v968_v41, %v967_v40  ;;  %v1420_v50 = vpack.c.bf16 %v922_v47, %v921_v46  ;;  %v925_v58 = vld [vmem:[%s2043_s1 + $0x130] sm:$0xff]  ;;  %v926_v59 = vld [vmem:[%s2043_s1 + $0x138] sm:$0xff] }
  0x1e   : > { %1458 = vmatprep.subr.bf16.mxu0 %v1568_v3  ;;  %v923_v52 = vld [vmem:[%s2043_s1 + $0x120] sm:$0xff]  ;;  %v924_v53 = vld [vmem:[%s2043_s1 + $0x128] sm:$0xff]  ;;  %v973_v60 = vld [vmem:[%s2043_s1 + $0x2b0] sm:$0xff] }
  0x1f   : > { %v974_v61 = vld [vmem:[%s2043_s1 + $0x2b8] sm:$0xff]  ;;  %v927_v0 = vld [vmem:[%s2043_s1 + $0x140] sm:$0xff]  ;;  %v928_v1 = vld [vmem:[%s2043_s1 + $0x148] sm:$0xff] }
  0x20   : > { %1388 = vmatpush3.bf16.msra.mxu1 %v1387_v42  ;;  %v196_v42 = vld [vmem:[%s1729_s10] sm:$0x7f]  ;;  %v976_v4 = vld [vmem:[%s2043_s1 + $0x2c8] sm:$0xff]  ;;  %v929_v7 = vld [vmem:[%s2043_s1 + $0x150] sm:$0xff] }
  0x21   : > { %1460 = vmatpush3.bf16.msra.mxu0 %v1459_v43  ;;  %1389 = vmatprep.subr.bf16.mxu1 %v1568_v3  ;;  %v1417_v43 = vpack.c.bf16 %v920_v39, %v919_v38  ;;  %v975_v2 = vld [vmem:[%s2043_s1 + $0x2c0] sm:$0xff]  ;;  %v930_v8 = vld [vmem:[%s2043_s1 + $0x158] sm:$0xff]  ;;  %v977_v9 = vld [vmem:[%s2043_s1 + $0x2d0] sm:$0xff] }
  0x22   : > { %1461 = vmatprep.subr.bf16.mxu0 %v1568_v3  ;;  %v978_v10 = vld [vmem:[%s2043_s1 + $0x2d8] sm:$0xff]  ;;  %v931_v14 = vld [vmem:[%s2043_s1 + $0x160] sm:$0xff]  ;;  %v932_v15 = vld [vmem:[%s2043_s1 + $0x168] sm:$0xff] }
  0x23   : > { %v979_v16 = vld [vmem:[%s2043_s1 + $0x2e0] sm:$0xff]  ;;  %v980_v17 = vld [vmem:[%s2043_s1 + $0x2e8] sm:$0xff]  ;;  %v933_v20 = vld [vmem:[%s2043_s1 + $0x170] sm:$0xff] }
  0x24   : > { %1391 = vmatpush3.bf16.msra.mxu1 %v1390_v48  ;;  %v969_v48 = vld [vmem:[%s2043_s1 + $0x290] sm:$0xff]  ;;  %v934_v21 = vld [vmem:[%s2043_s1 + $0x178] sm:$0xff]  ;;  %v983_v26 = vld [vmem:[%s2043_s1 + $0x300] sm:$0xff] }
  0x25   : > { %1463 = vmatpush3.bf16.msra.mxu0 %v1462_v49  ;;  %1392 = vmatprep.subr.bf16.mxu1 %v1568_v3  ;;  %v970_v49 = vld [vmem:[%s2043_s1 + $0x298] sm:$0xff]  ;;  %v981_v22 = vld [vmem:[%s2043_s1 + $0x2f0] sm:$0xff]  ;;  %v984_v27 = vld [vmem:[%s2043_s1 + $0x308] sm:$0xff] }
  0x26   : > { %1464 = vmatprep.subr.bf16.mxu0 %v1568_v3  ;;  %v1492_v51 = vpack.c.bf16 %v970_v49, %v969_v48  ;;  %v982_v23 = vld [vmem:[%s2043_s1 + $0x2f8] sm:$0xff]  ;;  %v371_v28 = vld [vmem:[%s1729_s10 + $0x2] sm:$0x7f]  ;;  %v997_v48 = vld [vmem:[%s2043_s1 + $0x370] sm:$0xff] }
  0x27   : > { %1156 = vmatmul.mubr.f32.vlgmr.msra.gmra.mrb[0].mxu1 %v213_v54  ;;  %v971_v54 = vld [vmem:[%s2043_s1 + $0x2a0] sm:$0xff]  ;;  %v986_v32 = vld [vmem:[%s2043_s1 + $0x318] sm:$0xff]  ;;  %v988_v35 = vld [vmem:[%s2043_s1 + $0x328] sm:$0xff] }
  0x28   : > { %1394 = vmatpush3.bf16.msra.mxu1 %v1393_v55  ;;  %1261 = vmatmul.mubr.f32.vlgmr.msra.gmra.mrb[0].mxu0 %v460_v56  ;;  %v972_v55 = vld [vmem:[%s2043_s1 + $0x2a8] sm:$0xff]  ;;  %v1423_v56 = vpack.c.bf16 %v924_v53, %v923_v52  ;;  %v987_v34 = vld [vmem:[%s2043_s1 + $0x320] sm:$0xff]  ;;  %v998_v49 = vld [vmem:[%s2043_s1 + $0x378] sm:$0xff] }
  0x29   : > { %1466 = vmatpush3.bf16.msra.mxu0 %v1465_v57  ;;  %1395 = vmatprep.subr.bf16.mxu1 %v1568_v3  ;;  %v1495_v57 = vpack.c.bf16 %v972_v55, %v971_v54  ;;  %v638_v29 = vld [vmem:[%s1729_s10 + $0x5] sm:$0x7f]  ;;  %v999_v55 = vld [vmem:[%s2044_s2] ss:$0 sm:$0xff] }
  0x2a   : > { %1467 = vmatprep.subr.bf16.mxu0 %v1568_v3  ;;  %1190 = vmatprep.mubr.msk.f32.mxu1 %vm1569_vm0, %v1570_v11  ;;  %v991_v39 = vld [vmem:[%s2043_s1 + $0x340] sm:$0xff]  ;;  %v992_v40 = vld [vmem:[%s2043_s1 + $0x348] sm:$0xff] }
  0x2b   : > { %1295 = vmatprep.mubr.msk.f32.mxu0 %vm1569_vm0, %v1570_v11  ;;  %v1525_v41 = vpack.c.bf16 %v992_v40, %v991_v39  ;;  %v996_v46 = vld [vmem:[%s2043_s1 + $0x368] sm:$0xff] }
  0x2c   : > { %1397 = vmatpush3.bf16.msra.mxu1 %v1396_v62  ;;  %v1426_v62 = vpack.c.bf16 %v926_v59, %v925_v58  ;;  %v1000_v58 = vld [vmem:[%s2045_s3] ss:$0 sm:$0xff] }
  0x2d   : > { %1469 = vmatpush3.bf16.msra.mxu0 %v1468_v63  ;;  %1398 = vmatprep.subr.bf16.mxu1 %v1568_v3  ;;  %v1498_v63 = vpack.c.bf16 %v974_v61, %v973_v60 }
  0x2e   : > { %1470 = vmatprep.subr.bf16.mxu0 %v1568_v3 }
  0x30   : > { %1400 = vmatpush3.bf16.msra.mxu1 %v1399_v5  ;;  %v1429_v5 = vpack.c.bf16 %v928_v1, %v927_v0 }
  0x31   : > { %1472 = vmatpush3.bf16.msra.mxu0 %v1471_v6  ;;  %1401 = vmatprep.subr.bf16.mxu1 %v1568_v3  ;;  %v1501_v6 = vpack.c.bf16 %v976_v4, %v975_v2 }
  0x32   : > { %1473 = vmatprep.subr.bf16.mxu0 %v1568_v3 }
  0x34   : > { %1403 = vmatpush3.bf16.msra.mxu1 %v1402_v12  ;;  %v1432_v12 = vpack.c.bf16 %v930_v8, %v929_v7 }
  0x35   : > { %1475 = vmatpush3.bf16.msra.mxu0 %v1474_v13  ;;  %1404 = vmatprep.subr.bf16.mxu1 %v1568_v3  ;;  %v1504_v13 = vpack.c.bf16 %v978_v10, %v977_v9 }
  0x36   : > { %1476 = vmatprep.subr.bf16.mxu0 %v1568_v3 }
  0x38   : > { %1406 = vmatpush3.bf16.msra.mxu1 %v1405_v18  ;;  %v1435_v18 = vpack.c.bf16 %v932_v15, %v931_v14 }
  0x39   : > { %1478 = vmatpush3.bf16.msra.mxu0 %v1477_v19  ;;  %1407 = vmatprep.subr.bf16.mxu1 %v1568_v3  ;;  %v1507_v19 = vpack.c.bf16 %v980_v17, %v979_v16 }
  0x3a   : > { %1479 = vmatprep.subr.bf16.mxu0 %v1568_v3 }
  0x3c   : > { %1409 = vmatpush3.bf16.msra.mxu1 %v1408_v24  ;;  %v1438_v24 = vpack.c.bf16 %v934_v21, %v933_v20 }
  0x3d   : > { %1481 = vmatpush3.bf16.msra.mxu0 %v1480_v25  ;;  %1410 = vmatprep.subr.bf16.mxu1 %v1568_v3  ;;  %v1510_v25 = vpack.c.bf16 %v982_v23, %v981_v22 }
  0x3e   : > { %1482 = vmatprep.subr.bf16.mxu0 %v1568_v3 }
  0x40   : > { %1412 = vmatpush3.bf16.msra.mxu1 %v1411_v30  ;;  %v1513_v30 = vpack.c.bf16 %v984_v27, %v983_v26 }
  0x41   : > { %1484 = vmatpush3.bf16.msra.mxu0 %v1483_v31  ;;  %1413 = vmatprep.subr.bf16.mxu1 %v1568_v3  ;;  %v985_v31 = vld [vmem:[%s2043_s1 + $0x310] sm:$0xff] }
  0x42   : > { %1485 = vmatprep.subr.bf16.mxu0 %v1568_v3  ;;  %v1516_v33 = vpack.c.bf16 %v986_v32, %v985_v31 }
  0x44   : > { %1415 = vmatpush3.bf16.msra.mxu1 %v1414_v36  ;;  %v1519_v36 = vpack.c.bf16 %v988_v35, %v987_v34 }
  0x45   : > { %1487 = vmatpush3.bf16.msra.mxu0 %v1486_v37  ;;  %1416 = vmatprep.subr.bf16.mxu1 %v1568_v3  ;;  %v989_v37 = vld [vmem:[%s2043_s1 + $0x330] sm:$0xff] }
  0x46   : > { %1488 = vmatprep.subr.bf16.mxu0 %v1568_v3 }
  0x47   : > { %1191 = vmatmul.mubr.f32.vlgmr.msra.gmra.mrb[0].mxu1 %v196_v42  ;;  %v993_v42 = vld [vmem:[%s2043_s1 + $0x350] sm:$0xff] }
  0x48   : > { %1418 = vmatpush3.bf16.msra.mxu1 %v1417_v43  ;;  %1296 = vmatmul.mubr.f32.vlgmr.msra.gmra.mrb[0].mxu0 %v549_v44  ;;  %v994_v43 = vld [vmem:[%s2043_s1 + $0x358] sm:$0xff] }
  0x49   : > { %1490 = vmatpush3.bf16.msra.mxu0 %v1489_v45  ;;  %1419 = vmatprep.subr.bf16.mxu1 %v1568_v3  ;;  %v1528_v44 = vpack.c.bf16 %v994_v43, %v993_v42  ;;  %v995_v45 = vld [vmem:[%s2043_s1 + $0x360] sm:$0xff] }
  0x4a   : > { %1491 = vmatprep.subr.bf16.mxu0 %v1568_v3  ;;  %1225 = vmatprep.mubr.msk.f32.mxu1 %vm1569_vm0, %v1570_v11  ;;  %v1531_v47 = vpack.c.bf16 %v996_v46, %v995_v45 }
  0x4b   : > { %1330 = vmatprep.mubr.msk.f32.mxu0 %vm1569_vm0, %v1570_v11 }
  0x4c   : > { %1421 = vmatpush3.bf16.msra.mxu1 %v1420_v50  ;;  %v1534_v50 = vpack.c.bf16 %v998_v49, %v997_v48 }
  0x4d   : > { %1493 = vmatpush3.bf16.msra.mxu0 %v1492_v51  ;;  %1422 = vmatprep.subr.bf16.mxu1 %v1568_v3  ;;  %v727_v51 = vld [vmem:[%s1729_s10 + $0x6] sm:$0x7f]  ;;  %s902_s10 = sshll.u32 %s2048_s16, 3 }
  0x4e   : > { %1494 = vmatprep.subr.bf16.mxu0 %v1568_v3  ;;  %s195_s18 = scalar_lea.vmem %s2046_s4, %s902_s10 }
  0x50   : > { %1424 = vmatpush3.bf16.msra.mxu1 %v1423_v56 }
  0x51   : > { %1496 = vmatpush3.bf16.msra.mxu0 %v1495_v57  ;;  %1425 = vmatprep.subr.bf16.mxu1 %v1568_v3 }
  0x52   : > { %1497 = vmatprep.subr.bf16.mxu0 %v1568_v3 }
  0x54   : > { %1427 = vmatpush3.bf16.msra.mxu1 %v1426_v62 }
  0x55   : > { %1499 = vmatpush3.bf16.msra.mxu0 %v1498_v63  ;;  %1428 = vmatprep.subr.bf16.mxu1 %v1568_v3 }
  0x56   : > { %1500 = vmatprep.subr.bf16.mxu0 %v1568_v3 }
  0x58   : > { %1430 = vmatpush3.bf16.msra.mxu1 %v1429_v5 }
  0x59   : > { %1502 = vmatpush3.bf16.msra.mxu0 %v1501_v6  ;;  %1431 = vmatprep.subr.bf16.mxu1 %v1568_v3 }
  0x5a   : > { %1503 = vmatprep.subr.bf16.mxu0 %v1568_v3 }
  0x5c   : > { %1433 = vmatpush3.bf16.msra.mxu1 %v1432_v12 }
  0x5d   : > { %1505 = vmatpush3.bf16.msra.mxu0 %v1504_v13  ;;  %1434 = vmatprep.subr.bf16.mxu1 %v1568_v3 }
  0x5e   : > { %1506 = vmatprep.subr.bf16.mxu0 %v1568_v3 }
  0x60   : > { %1436 = vmatpush3.bf16.msra.mxu1 %v1435_v18 }
  0x61   : > { %1508 = vmatpush3.bf16.msra.mxu0 %v1507_v19  ;;  %1437 = vmatprep.subr.bf16.mxu1 %v1568_v3 }
  0x62   : > { %1509 = vmatprep.subr.bf16.mxu0 %v1568_v3 }
  0x64   : > { %1439 = vmatpush3.bf16.msra.mxu1 %v1438_v24 }
  0x65   : > { %1511 = vmatpush3.bf16.msra.mxu0 %v1510_v25 }
  0x66   : > { %1512 = vmatprep.subr.bf16.mxu0 %v1568_v3 }
  0x67   : > { %1226 = vmatmul.mubr.f32.vlgmr.msra.gmra.mrb[0].mxu1 %v371_v28 }
  0x68   : > { %1331 = vmatmul.mubr.f32.vlgmr.msra.gmra.mrb[0].mxu0 %v638_v29 }
  0x69   : > { %1514 = vmatpush3.bf16.msra.mxu0 %v1513_v30  ;;  %1365 = vmatprep.mubr.msk.f32.mxu0 %vm1569_vm0, %v1570_v11  ;;  %v990_v11 = vld [vmem:[%s2043_s1 + $0x338] sm:$0xff] }
  0x6a   : > { %1515 = vmatprep.subr.bf16.mxu0 %v1568_v3  ;;  %v1522_v38 = vpack.c.bf16 %v990_v11, %v989_v37 }
  0x6d   : > { %1517 = vmatpush3.bf16.msra.mxu0 %v1516_v33 }
  0x6e   : > { %1518 = vmatprep.subr.bf16.mxu0 %v1568_v3 }
  0x71   : > { %1520 = vmatpush3.bf16.msra.mxu0 %v1519_v36 }
  0x72   : > { %1521 = vmatprep.subr.bf16.mxu0 %v1568_v3 }
  0x75   : > { %1523 = vmatpush3.bf16.msra.mxu0 %v1522_v38 }
  0x76   : > { %1524 = vmatprep.subr.bf16.mxu0 %v1568_v3 }
  0x79   : > { %1526 = vmatpush3.bf16.msra.mxu0 %v1525_v41 }
  0x7a   : > { %1527 = vmatprep.subr.bf16.mxu0 %v1568_v3 }
  0x7d   : > { %1529 = vmatpush3.bf16.msra.mxu0 %v1528_v44 }
  0x7e   : > { %1530 = vmatprep.subr.bf16.mxu0 %v1568_v3 }
  0x81   : > { %1532 = vmatpush3.bf16.msra.mxu0 %v1531_v47 }
  0x82   : > { %1533 = vmatprep.subr.bf16.mxu0 %v1568_v3 }
  0x85   : > { %1535 = vmatpush3.bf16.msra.mxu0 %v1534_v50 }
  0x88   : > { %1366 = vmatmul.mubr.f32.vlgmr.msra.gmra.mrb[0].mxu0 %v727_v51 }
 0x13a   : > { %v455_v52 = vpop.f32.mrb[0].mxu1 }
 0x13b   : > { %v1227_v53 = vpop.f32.mrb[1].mxu1 }
 0x15b   : > { %v811_v54 = vpop.f32.mrb[0].mxu0 }
 0x15c   : > { %v1536_v56 = vadd.f32 %v811_v54, %v455_v52  ;;  %v1367_v57 = vpop.f32.mrb[1].mxu0 }
 0x15e   : > { %v823_v59 = vmul.f32 %v1536_v56, %v999_v55 }
 0x160   : > { %v831_v60 = vadd.f32 %v1000_v58, %v823_v59 }
 0x162   : > { %v833_v3 = vmul.f32 0.044715, %v831_v60  ;;  %v832_v2 = vmul.f32 0.5, %v831_v60 }
 0x164   : > { %v834_v61 = vmul.f32 %v833_v3, %v831_v60 }
 0x166   : > { %v835_v62 = vmul.f32 %v834_v61, %v831_v60 }
 0x168   : > { %v836_v63 = vadd.f32 %v835_v62, %v831_v60 }
 0x16a   : > { %v837_v0 = vmul.f32 0.7978846, %v836_v63 }
 0x16c   : > { %1558 = vtanh.f32 %v837_v0 }
 0x176   : > { %v1559_v1 = vpop.eup %1558 }
 0x177   : > { %v839_v4 = vadd.f32 1.0, %v1559_v1 }
 0x179   : > { %v840_v5 = vmul.f32 %v839_v4, %v832_v2 }
 0x17b   : > { %841 = vst [vmem:[%s195_s18] sm:$0x7f] %v840_v5 }
 0x17c PF: > { %s14_s15 = sadd.s32 1, %s1566_s15  }
 0x17d   : > { %p11_p4 = scmp.ge.s32.totalorder %s14_s15, 4  }
 0x17f   :  { %13 = sbr.rel (!%p11_p4) target bundleno = 1 (0x1), region = 72 }

</bundles_post_ra>
